<compile_context>
chip_gen: v7x
topology: tpu7x:2x2x1
jax: 0.10.0
libtpu: 0.0.40
codegen_flags: <defaults>
</compile_context>

<pallas_src>
import functools

import jax
import jax.numpy as jnp
from jax.experimental import pallas as pl
from jax.experimental.pallas import tpu as pltpu

BN_EPS = 1e-5


def _deconv_block_kernel(H, W, Cin, Cout, BB,
                         x_ref, w_ref, bias_ref, mask_ref,
                         y_ref, stats_ref,
                         xp_ref, col_ref):
    """Fused upsample(x2,nearest)+Conv2d(3,'same')+bias+ReLU + BN partial stats.

    Grid: (G,) with G = B // BB, each step processes BB images.
      x_ref    : (BB, H*W, Cin) bf16   input images (channels-last, flat spatial)
      w_ref    : (9*Cin, 4*Cout) bf16  phase-folded 3x3 taps, im2col ordering
      bias_ref : (1, 4*Cout) f32       conv bias tiled over the 4 phases
      mask_ref : (1, Mtot) f32         1 on valid rows, 0 on padded/junk rows
      y_ref    : (1, Mtot, 4*Cout) f32 phase-packed pre-BN conv+bias+ReLU output
      stats_ref: (1, 2, 4*Cout) f32    row 0 = masked sum, row 1 = masked sum sq
      xp_ref   : (rows_p, Cin) bf16    BB zero-padded images, flat, concatenated
      col_ref  : (Mtot, 9*Cin) bf16    im2col scratch
    """
    Wp = W + 2
    S = (H + 2) * Wp            # flat padded rows per image
    Mtot = BB * S

    # Zero the padded scratch EVERY step: no cross-step carried state, so the
    # batch grid axis can be sharded ("parallel") across TensorCores safely.
    xp_ref[...] = jnp.zeros_like(xp_ref)

    # Scatter the BB images (already bf16) into the concatenated zero-padded
    # flat layout: input pixel (a, c) of image b lives at b*S + (a+1)*Wp + (c+1).
    for b in range(BB):
        for a in range(H):
            dst = b * S + (a + 1) * Wp + 1
            xp_ref[dst:dst + W, :] = x_ref[b, a * W:(a + 1) * W, :]

    # im2col: tap k = (dh, dw) of every output row is ONE contiguous slice of
    # the flat padded scratch; write each tap once into its column block.
    for k in range(9):
        off = (k // 3) * Wp + (k % 3)
        col_ref[:, k * Cin:(k + 1) * Cin] = xp_ref[off:off + Mtot, :]

    # Single bf16 MXU matmul over K = 9*Cin, f32 accumulate, then bias + ReLU
    # (ReLU is applied BEFORE BatchNorm, as in the PyTorch module).
    y = jnp.dot(col_ref[...], w_ref[...], preferred_element_type=jnp.float32)
    y = jnp.maximum(y + bias_ref[...], 0.0)                # (Mtot, 4*Cout) f32

    # BatchNorm partial statistics over VALID rows only, as two tiny MXU dots
    # with the 0/1 mask row as LHS (no lane broadcasts, no XLU column reduce).
    stats_ref[0, 0:1, :] = jnp.dot(mask_ref[...], y,
                                   preferred_element_type=jnp.float32)
    stats_ref[0, 1:2, :] = jnp.dot(mask_ref[...], y * y,
                                   preferred_element_type=jnp.float32)

    # Phase-packed pre-BN output; junk rows are sliced away in the XLA epilogue.
    y_ref[0] = y


def deconv_block(x_nhwc, w, bias, gamma, beta, *, bb_max=8):
    """One DeconvBlock.  x_nhwc: (B, H, W, Cin).  Returns (B, 2H, 2W, Cout) f32."""
    B, H, W, Cin = x_nhwc.shape
    Cout = w.shape[-1]                 # w: (3, 3, Cin, Cout)  HWIO
    Hp, Wp = H + 2, W + 2
    S = Hp * Wp
    C4 = 4 * Cout

    # Batch blocking: BB images per grid step (largest divisor of B <= bb_max),
    # so BN statistics see exactly the real batch (no zero-padded images).
    BB = max(d for d in range(1, min(B, bb_max) + 1) if B % d == 0)
    G = B // BB
    Mtot = BB * S
    rows_p = -(-(Mtot + 2 * Wp + 2) // 16) * 16   # padded-scratch rows (bf16 tiles)

    # --- tiny one-time parameter / layout prep (XLA) ---
    # Fold nearest-2x-upsample + 3x3 conv into per-phase 3x3 taps on the
    # original grid: sel[r, d, kh] = 1 iff tap kh of output phase r reads input
    # row offset d-1 (same table for columns).  Exact in f32.
    sel = jnp.array([[[1., 0., 0.], [0., 1., 1.], [0., 0., 0.]],
                     [[0., 0., 0.], [1., 1., 0.], [0., 0., 1.]]], jnp.float32)
    wfold = jnp.einsum('rdh,sew,hwio->deirso', sel, sel, w.astype(jnp.float32),
                       precision=jax.lax.Precision.HIGHEST)
    wfold = wfold.reshape(9 * Cin, C4).astype(jnp.bfloat16)   # im2col row order
    bias4 = jnp.tile(bias.astype(jnp.float32).reshape(1, Cout), (1, 4))

    # Lane-dense 0/1 validity-mask row over the Mtot matmul rows.
    r = jnp.arange(Mtot, dtype=jnp.int32)
    rm = r % S
    mask = (((rm // Wp) < H) & ((rm % Wp) < W)).astype(jnp.float32).reshape(1, Mtot)

    x2d = x_nhwc.reshape(B, H * W, Cin).astype(jnp.bfloat16)  # cast once, half DMA

    kernel = functools.partial(_deconv_block_kernel, H, W, Cin, Cout, BB)

    y_all, stats = pl.pallas_call(
        kernel,
        out_shape=(jax.ShapeDtypeStruct((G, Mtot, C4), jnp.float32),
                   jax.ShapeDtypeStruct((G, 2, C4), jnp.float32)),
        grid=(G,),
        in_specs=[
            pl.BlockSpec((BB, H * W, Cin), lambda g: (g, 0, 0)),  # batch block
            pl.BlockSpec((9 * Cin, C4), lambda g: (0, 0)),        # folded weights
            pl.BlockSpec((1, C4), lambda g: (0, 0)),              # bias (phase-tiled)
            pl.BlockSpec((1, Mtot), lambda g: (0, 0)),            # validity mask row
        ],
        out_specs=(pl.BlockSpec((1, Mtot, C4), lambda g: (g, 0, 0)),
                   pl.BlockSpec((1, 2, C4), lambda g: (g, 0, 0))),
        scratch_shapes=[
            pltpu.VMEM((rows_p, Cin), jnp.bfloat16),     # flat padded images
            pltpu.VMEM((Mtot, 9 * Cin), jnp.bfloat16),   # im2col
        ],
        compiler_params=pltpu.CompilerParams(
            dimension_semantics=("parallel",)),           # no carried state
    )(x2d, wfold, bias4, mask)

    # --- XLA epilogue: finish training-mode BN + junk slicing + de-interleave ---
    s1 = jnp.sum(stats[:, 0, :], axis=0).reshape(4, Cout).sum(axis=0)
    s2 = jnp.sum(stats[:, 1, :], axis=0).reshape(4, Cout).sum(axis=0)
    n = float(B * 4 * H * W)                    # = B * 2H * 2W pixels per channel
    mean = s1 / n
    var = jnp.maximum(s2 / n - mean * mean, 0.0)            # biased variance
    scale = gamma.astype(jnp.float32) * jax.lax.rsqrt(var + BN_EPS)
    shift = beta.astype(jnp.float32) - mean * scale
    scale4 = jnp.tile(scale, 4)                 # back to (r, s, o) packed columns
    shift4 = jnp.tile(shift, 4)

    y = y_all.reshape(G, BB, Hp, Wp, C4)[:, :, :H, :W, :]   # drop junk rows/cols
    y = y * scale4 + shift4                                  # BN affine (fused)
    y = y.reshape(B, H, W, 2, 2, Cout)
    y = jnp.transpose(y, (0, 1, 3, 2, 4, 5)).reshape(B, 2 * H, 2 * W, Cout)
    return y


def dc_decoder(x_flat, params):
    """x_flat: (B, 512*4*4) f32.  Returns NCHW output like the PyTorch module."""
    B = x_flat.shape[0]
    x = x_flat.reshape(B, 512, 4, 4)            # 'B (C H W) -> B C H W'
    x = jnp.transpose(x, (0, 2, 3, 1))          # NCHW -> NHWC (channels on lanes)
    for (w, b, g, bt) in params:
        x = deconv_block(x, w, b, g, bt)
    return jnp.transpose(x, (0, 3, 1, 2))       # back to NCHW


def reference_forward(x_flat, params):
    """Pure-JAX/XLA f32 reference of the PyTorch forward (for validation)."""
    B = x_flat.shape[0]
    x = jnp.transpose(x_flat.reshape(B, 512, 4, 4), (0, 2, 3, 1))
    for (w, b, g, bt) in params:
        x = jnp.repeat(jnp.repeat(x, 2, axis=1), 2, axis=2)     # nearest x2
        x = jax.lax.conv_general_dilated(
            x, w, window_strides=(1, 1), padding='SAME',
            dimension_numbers=('NHWC', 'HWIO', 'NHWC'))
        x = jnp.maximum(x + b.reshape(1, 1, 1, -1), 0.0)
        mean = jnp.mean(x, axis=(0, 1, 2), keepdims=True)
        var = jnp.mean(jnp.square(x - mean), axis=(0, 1, 2), keepdims=True)
        x = (x - mean) * jax.lax.rsqrt(var + BN_EPS) \
            * g.reshape(1, 1, 1, -1) + bt.reshape(1, 1, 1, -1)
    return jnp.transpose(x, (0, 3, 1, 2))


def init_params(key, filters):
    """Deterministic synthetic parameters (shapes match nn.Conv2d / nn.BatchNorm2d).

    NOTE: weights here are generated directly in HWIO; real PyTorch Conv2d weights
    are OIHW and must be transposed (2, 3, 1, 0) -> HWIO before use.
    """
    params = []
    for fi, fo in zip(filters[:-1], filters[1:]):
        key, k1, k2, k3, k4 = jax.random.split(key, 5)
        w = 0.05 * jax.random.normal(k1, (3, 3, fi, fo), jnp.float32)   # HWIO
        b = 0.05 * jax.random.normal(k2, (fo,), jnp.float32)
        gamma = 1.0 + 0.1 * jax.random.normal(k3, (fo,), jnp.float32)
        beta = 0.1 * jax.random.normal(k4, (fo,), jnp.float32)
        params.append((w, b, gamma, beta))
    return params


if __name__ == "__main__":
    key = jax.random.PRNGKey(0)
    # The forward hard-codes C=512, H=4, W=4; keep the rest of the chain small.
    filters = [512, 32, 16]
    B = 2

    kp, kx = jax.random.split(key)
    params = init_params(kp, filters)
    x = jax.random.normal(kx, (B, 512 * 4 * 4), jnp.float32)

    fwd = jax.jit(lambda xx: dc_decoder(xx, params))
    out = jax.block_until_ready(fwd(x))

    # Two DeconvBlocks: 4x4 -> 8x8 -> 16x16 spatial, channels 512 -> 32 -> 16.
    assert out.shape == (B, filters[-1], 16, 16), out.shape
    assert bool(jnp.all(jnp.isfinite(out)))

    # Validate against the f32 XLA reference (bf16 matmul + one-pass variance
    # introduce ~1e-2 absolute error on the BN-normalized outputs).
    ref = reference_forward(x, params)
    err = float(jnp.max(jnp.abs(out - ref)))
    assert err < 0.15, f"max abs err vs reference: {err}"

    print("KERNEL_OK")
</pallas_src>

<mosaic_0001>
module attributes {stable_mosaic.version = 11 : i64} {
  func.func @_deconv_block_kernel(%arg0: i32, %arg1: memref<2x16x512xbf16, #tpu.memory_space<vmem>>, %arg2: memref<4608x128xbf16, #tpu.memory_space<vmem>>, %arg3: memref<1x128xf32, #tpu.memory_space<vmem>>, %arg4: memref<1x72xf32, #tpu.memory_space<vmem>>, %arg5: memref<1x72x128xf32, #tpu.memory_space<vmem>>, %arg6: memref<1x2x128xf32, #tpu.memory_space<vmem>>, %arg7: memref<96x512xbf16, #tpu.memory_space<vmem>>, %arg8: memref<72x4608xbf16, #tpu.memory_space<vmem>>) attributes {dimension_semantics = [#tpu.dimension_semantics<parallel>], iteration_bounds = array<i64: 1>, scalar_prefetch = 0 : i64, scratch_operands = 2 : i64, tpu.core_type = #tpu.core_type<tc>, window_params = [{transform_indices = @transform_0, window_bounds = array<i64: 2, 16, 512>}, {pipeline_mode = #tpu.pipeline_mode<synchronous>, transform_indices = @transform_1, window_bounds = array<i64: 4608, 128>}, {pipeline_mode = #tpu.pipeline_mode<synchronous>, transform_indices = @transform_2, window_bounds = array<i64: 1, 128>}, {pipeline_mode = #tpu.pipeline_mode<synchronous>, transform_indices = @transform_3, window_bounds = array<i64: 1, 72>}, {transform_indices = @transform_4, window_bounds = array<i64: 1, 72, 128>}, {transform_indices = @transform_5, window_bounds = array<i64: 1, 2, 128>}]} {
    %cst = arith.constant 0.000000e+00 : bf16
    %0 = vector.broadcast %cst : bf16 to vector<96x512xbf16>
    %c0 = arith.constant 0 : index
    %c0_0 = arith.constant 0 : index
    %1 = vector.load %arg7[%c0, %c0_0] : memref<96x512xbf16, #tpu.memory_space<vmem>>, vector<96x512xbf16>
    tpu.vector_store %arg7[%c0, %c0_0], %0 {strides = array<i32>} : memref<96x512xbf16, #tpu.memory_space<vmem>>, vector<96x512xbf16>,
    %c0_1 = arith.constant 0 : index
    %c0_2 = arith.constant 0 : index
    %c0_3 = arith.constant 0 : index
    %2 = vector.load %arg1[%c0_1, %c0_2, %c0_3] : memref<2x16x512xbf16, #tpu.memory_space<vmem>>, vector<1x4x512xbf16>
    %3 = vector.shape_cast %2 : vector<1x4x512xbf16> to vector<4x512xbf16>
    %c7 = arith.constant 7 : index
    %c0_4 = arith.constant 0 : index
    %4 = vector.load %arg7[%c7, %c0_4] : memref<96x512xbf16, #tpu.memory_space<vmem>>, vector<4x512xbf16>
    tpu.vector_store %arg7[%c7, %c0_4], %3 {strides = array<i32>} : memref<96x512xbf16, #tpu.memory_space<vmem>>, vector<4x512xbf16>,
    %c0_5 = arith.constant 0 : index
    %c4 = arith.constant 4 : index
    %c0_6 = arith.constant 0 : index
    %5 = vector.load %arg1[%c0_5, %c4, %c0_6] : memref<2x16x512xbf16, #tpu.memory_space<vmem>>, vector<1x4x512xbf16>
    %6 = vector.shape_cast %5 : vector<1x4x512xbf16> to vector<4x512xbf16>
    %c13 = arith.constant 13 : index
    %c0_7 = arith.constant 0 : index
    %7 = vector.load %arg7[%c13, %c0_7] : memref<96x512xbf16, #tpu.memory_space<vmem>>, vector<4x512xbf16>
    tpu.vector_store %arg7[%c13, %c0_7], %6 {strides = array<i32>} : memref<96x512xbf16, #tpu.memory_space<vmem>>, vector<4x512xbf16>,
    %c0_8 = arith.constant 0 : index
    %c8 = arith.constant 8 : index
    %c0_9 = arith.constant 0 : index
    %8 = vector.load %arg1[%c0_8, %c8, %c0_9] : memref<2x16x512xbf16, #tpu.memory_space<vmem>>, vector<1x4x512xbf16>
    %9 = vector.shape_cast %8 : vector<1x4x512xbf16> to vector<4x512xbf16>
    %c19 = arith.constant 19 : index
    %c0_10 = arith.constant 0 : index
    %10 = vector.load %arg7[%c19, %c0_10] : memref<96x512xbf16, #tpu.memory_space<vmem>>, vector<4x512xbf16>
    tpu.vector_store %arg7[%c19, %c0_10], %9 {strides = array<i32>} : memref<96x512xbf16, #tpu.memory_space<vmem>>, vector<4x512xbf16>,
    %c0_11 = arith.constant 0 : index
    %c12 = arith.constant 12 : index
    %c0_12 = arith.constant 0 : index
    %11 = vector.load %arg1[%c0_11, %c12, %c0_12] : memref<2x16x512xbf16, #tpu.memory_space<vmem>>, vector<1x4x512xbf16>
    %12 = vector.shape_cast %11 : vector<1x4x512xbf16> to vector<4x512xbf16>
    %c25 = arith.constant 25 : index
    %c0_13 = arith.constant 0 : index
    %13 = vector.load %arg7[%c25, %c0_13] : memref<96x512xbf16, #tpu.memory_space<vmem>>, vector<4x512xbf16>
    tpu.vector_store %arg7[%c25, %c0_13], %12 {strides = array<i32>} : memref<96x512xbf16, #tpu.memory_space<vmem>>, vector<4x512xbf16>,
    %c1 = arith.constant 1 : index
    %c0_14 = arith.constant 0 : index
    %c0_15 = arith.constant 0 : index
    %14 = vector.load %arg1[%c1, %c0_14, %c0_15] : memref<2x16x512xbf16, #tpu.memory_space<vmem>>, vector<1x4x512xbf16>
    %15 = vector.shape_cast %14 : vector<1x4x512xbf16> to vector<4x512xbf16>
    %c43 = arith.constant 43 : index
    %c0_16 = arith.constant 0 : index
    %16 = vector.load %arg7[%c43, %c0_16] : memref<96x512xbf16, #tpu.memory_space<vmem>>, vector<4x512xbf16>
    tpu.vector_store %arg7[%c43, %c0_16], %15 {strides = array<i32>} : memref<96x512xbf16, #tpu.memory_space<vmem>>, vector<4x512xbf16>,
    %c1_17 = arith.constant 1 : index
    %c4_18 = arith.constant 4 : index
    %c0_19 = arith.constant 0 : index
    %17 = vector.load %arg1[%c1_17, %c4_18, %c0_19] : memref<2x16x512xbf16, #tpu.memory_space<vmem>>, vector<1x4x512xbf16>
    %18 = vector.shape_cast %17 : vector<1x4x512xbf16> to vector<4x512xbf16>
    %c49 = arith.constant 49 : index
    %c0_20 = arith.constant 0 : index
    %19 = vector.load %arg7[%c49, %c0_20] : memref<96x512xbf16, #tpu.memory_space<vmem>>, vector<4x512xbf16>
    tpu.vector_store %arg7[%c49, %c0_20], %18 {strides = array<i32>} : memref<96x512xbf16, #tpu.memory_space<vmem>>, vector<4x512xbf16>,
    %c1_21 = arith.constant 1 : index
    %c8_22 = arith.constant 8 : index
    %c0_23 = arith.constant 0 : index
    %20 = vector.load %arg1[%c1_21, %c8_22, %c0_23] : memref<2x16x512xbf16, #tpu.memory_space<vmem>>, vector<1x4x512xbf16>
    %21 = vector.shape_cast %20 : vector<1x4x512xbf16> to vector<4x512xbf16>
    %c55 = arith.constant 55 : index
    %c0_24 = arith.constant 0 : index
    %22 = vector.load %arg7[%c55, %c0_24] : memref<96x512xbf16, #tpu.memory_space<vmem>>, vector<4x512xbf16>
    tpu.vector_store %arg7[%c55, %c0_24], %21 {strides = array<i32>} : memref<96x512xbf16, #tpu.memory_space<vmem>>, vector<4x512xbf16>,
    %c1_25 = arith.constant 1 : index
    %c12_26 = arith.constant 12 : index
    %c0_27 = arith.constant 0 : index
    %23 = vector.load %arg1[%c1_25, %c12_26, %c0_27] : memref<2x16x512xbf16, #tpu.memory_space<vmem>>, vector<1x4x512xbf16>
    %24 = vector.shape_cast %23 : vector<1x4x512xbf16> to vector<4x512xbf16>
    %c61 = arith.constant 61 : index
    %c0_28 = arith.constant 0 : index
    %25 = vector.load %arg7[%c61, %c0_28] : memref<96x512xbf16, #tpu.memory_space<vmem>>, vector<4x512xbf16>
    tpu.vector_store %arg7[%c61, %c0_28], %24 {strides = array<i32>} : memref<96x512xbf16, #tpu.memory_space<vmem>>, vector<4x512xbf16>,
    %c0_29 = arith.constant 0 : index
    %c0_30 = arith.constant 0 : index
    %26 = vector.load %arg7[%c0_29, %c0_30] : memref<96x512xbf16, #tpu.memory_space<vmem>>, vector<72x512xbf16>
    %c0_31 = arith.constant 0 : index
    %c0_32 = arith.constant 0 : index
    %27 = vector.load %arg8[%c0_31, %c0_32] : memref<72x4608xbf16, #tpu.memory_space<vmem>>, vector<72x512xbf16>
    tpu.vector_store %arg8[%c0_31, %c0_32], %26 {strides = array<i32>} : memref<72x4608xbf16, #tpu.memory_space<vmem>>, vector<72x512xbf16>,
    %c1_33 = arith.constant 1 : index
    %c0_34 = arith.constant 0 : index
    %28 = vector.load %arg7[%c1_33, %c0_34] : memref<96x512xbf16, #tpu.memory_space<vmem>>, vector<72x512xbf16>
    %c0_35 = arith.constant 0 : index
    %c512 = arith.constant 512 : index
    %29 = vector.load %arg8[%c0_35, %c512] : memref<72x4608xbf16, #tpu.memory_space<vmem>>, vector<72x512xbf16>
    tpu.vector_store %arg8[%c0_35, %c512], %28 {strides = array<i32>} : memref<72x4608xbf16, #tpu.memory_space<vmem>>, vector<72x512xbf16>,
    %c2 = arith.constant 2 : index
    %c0_36 = arith.constant 0 : index
    %30 = vector.load %arg7[%c2, %c0_36] : memref<96x512xbf16, #tpu.memory_space<vmem>>, vector<72x512xbf16>
    %c0_37 = arith.constant 0 : index
    %c1024 = arith.constant 1024 : index
    %31 = vector.load %arg8[%c0_37, %c1024] : memref<72x4608xbf16, #tpu.memory_space<vmem>>, vector<72x512xbf16>
    tpu.vector_store %arg8[%c0_37, %c1024], %30 {strides = array<i32>} : memref<72x4608xbf16, #tpu.memory_space<vmem>>, vector<72x512xbf16>,
    %c6 = arith.constant 6 : index
    %c0_38 = arith.constant 0 : index
    %32 = vector.load %arg7[%c6, %c0_38] : memref<96x512xbf16, #tpu.memory_space<vmem>>, vector<72x512xbf16>
    %c0_39 = arith.constant 0 : index
    %c1536 = arith.constant 1536 : index
    %33 = vector.load %arg8[%c0_39, %c1536] : memref<72x4608xbf16, #tpu.memory_space<vmem>>, vector<72x512xbf16>
    tpu.vector_store %arg8[%c0_39, %c1536], %32 {strides = array<i32>} : memref<72x4608xbf16, #tpu.memory_space<vmem>>, vector<72x512xbf16>,
    %c7_40 = arith.constant 7 : index
    %c0_41 = arith.constant 0 : index
    %34 = vector.load %arg7[%c7_40, %c0_41] : memref<96x512xbf16, #tpu.memory_space<vmem>>, vector<72x512xbf16>
    %c0_42 = arith.constant 0 : index
    %c2048 = arith.constant 2048 : index
    %35 = vector.load %arg8[%c0_42, %c2048] : memref<72x4608xbf16, #tpu.memory_space<vmem>>, vector<72x512xbf16>
    tpu.vector_store %arg8[%c0_42, %c2048], %34 {strides = array<i32>} : memref<72x4608xbf16, #tpu.memory_space<vmem>>, vector<72x512xbf16>,
    %c8_43 = arith.constant 8 : index
    %c0_44 = arith.constant 0 : index
    %36 = vector.load %arg7[%c8_43, %c0_44] : memref<96x512xbf16, #tpu.memory_space<vmem>>, vector<72x512xbf16>
    %c0_45 = arith.constant 0 : index
    %c2560 = arith.constant 2560 : index
    %37 = vector.load %arg8[%c0_45, %c2560] : memref<72x4608xbf16, #tpu.memory_space<vmem>>, vector<72x512xbf16>
    tpu.vector_store %arg8[%c0_45, %c2560], %36 {strides = array<i32>} : memref<72x4608xbf16, #tpu.memory_space<vmem>>, vector<72x512xbf16>,
    %c12_46 = arith.constant 12 : index
    %c0_47 = arith.constant 0 : index
    %38 = vector.load %arg7[%c12_46, %c0_47] : memref<96x512xbf16, #tpu.memory_space<vmem>>, vector<72x512xbf16>
    %c0_48 = arith.constant 0 : index
    %c3072 = arith.constant 3072 : index
    %39 = vector.load %arg8[%c0_48, %c3072] : memref<72x4608xbf16, #tpu.memory_space<vmem>>, vector<72x512xbf16>
    tpu.vector_store %arg8[%c0_48, %c3072], %38 {strides = array<i32>} : memref<72x4608xbf16, #tpu.memory_space<vmem>>, vector<72x512xbf16>,
    %c13_49 = arith.constant 13 : index
    %c0_50 = arith.constant 0 : index
    %40 = vector.load %arg7[%c13_49, %c0_50] : memref<96x512xbf16, #tpu.memory_space<vmem>>, vector<72x512xbf16>
    %c0_51 = arith.constant 0 : index
    %c3584 = arith.constant 3584 : index
    %41 = vector.load %arg8[%c0_51, %c3584] : memref<72x4608xbf16, #tpu.memory_space<vmem>>, vector<72x512xbf16>
    tpu.vector_store %arg8[%c0_51, %c3584], %40 {strides = array<i32>} : memref<72x4608xbf16, #tpu.memory_space<vmem>>, vector<72x512xbf16>,
    %c14 = arith.constant 14 : index
    %c0_52 = arith.constant 0 : index
    %42 = vector.load %arg7[%c14, %c0_52] : memref<96x512xbf16, #tpu.memory_space<vmem>>, vector<72x512xbf16>
    %c0_53 = arith.constant 0 : index
    %c4096 = arith.constant 4096 : index
    %43 = vector.load %arg8[%c0_53, %c4096] : memref<72x4608xbf16, #tpu.memory_space<vmem>>, vector<72x512xbf16>
    tpu.vector_store %arg8[%c0_53, %c4096], %42 {strides = array<i32>} : memref<72x4608xbf16, #tpu.memory_space<vmem>>, vector<72x512xbf16>,
    %c0_54 = arith.constant 0 : index
    %c0_55 = arith.constant 0 : index
    %44 = vector.load %arg8[%c0_54, %c0_55] : memref<72x4608xbf16, #tpu.memory_space<vmem>>, vector<72x4608xbf16>
    %c0_56 = arith.constant 0 : index
    %c0_57 = arith.constant 0 : index
    %45 = vector.load %arg2[%c0_56, %c0_57] : memref<4608x128xbf16, #tpu.memory_space<vmem>>, vector<4608x128xbf16>
    %cst_58 = arith.constant dense<0.000000e+00> : vector<72x128xf32>
    %46 = tpu.matmul %44, %45, %cst_58 {dimension_numbers = #tpu.dot_dimension_numbers<[1], [0], [0], [1], [0, 0, 1, 1], [], []>} : vector<72x4608xbf16>, vector<4608x128xbf16>, vector<72x128xf32> -> vector<72x128xf32>
    %c0_59 = arith.constant 0 : index
    %c0_60 = arith.constant 0 : index
    %47 = vector.load %arg3[%c0_59, %c0_60] : memref<1x128xf32, #tpu.memory_space<vmem>>, vector<1x128xf32>
    %48 = vector.broadcast %47 : vector<1x128xf32> to vector<72x128xf32>
    %49 = arith.addf %46, %48 : vector<72x128xf32>
    %cst_61 = arith.constant 0.000000e+00 : f32
    %50 = vector.broadcast %cst_61 : f32 to vector<72x128xf32>
    %51 = arith.maximumf %49, %50 : vector<72x128xf32>
    %c0_62 = arith.constant 0 : index
    %c0_63 = arith.constant 0 : index
    %52 = vector.load %arg4[%c0_62, %c0_63] : memref<1x72xf32, #tpu.memory_space<vmem>>, vector<1x72xf32>
    %cst_64 = arith.constant dense<0.000000e+00> : vector<1x128xf32>
    %53 = tpu.matmul %52, %51, %cst_64 {dimension_numbers = #tpu.dot_dimension_numbers<[1], [0], [0], [1], [0, 0, 1, 1], [], []>} : vector<1x72xf32>, vector<72x128xf32>, vector<1x128xf32> -> vector<1x128xf32>
    %c0_65 = arith.constant 0 : index
    %c0_66 = arith.constant 0 : index
    %c0_67 = arith.constant 0 : index
    %54 = vector.load %arg6[%c0_65, %c0_66, %c0_67] : memref<1x2x128xf32, #tpu.memory_space<vmem>>, vector<1x1x128xf32>
    %55 = vector.shape_cast %54 : vector<1x1x128xf32> to vector<1x128xf32>
    %56 = vector.shape_cast %53 : vector<1x128xf32> to vector<1x1x128xf32>
    tpu.vector_store %arg6[%c0_65, %c0_66, %c0_67], %56 {strides = array<i32>} : memref<1x2x128xf32, #tpu.memory_space<vmem>>, vector<1x1x128xf32>,
    %c0_68 = arith.constant 0 : index
    %c0_69 = arith.constant 0 : index
    %57 = vector.load %arg4[%c0_68, %c0_69] : memref<1x72xf32, #tpu.memory_space<vmem>>, vector<1x72xf32>
    %58 = arith.mulf %51, %51 : vector<72x128xf32>
    %cst_70 = arith.constant dense<0.000000e+00> : vector<1x128xf32>
    %59 = tpu.matmul %57, %58, %cst_70 {dimension_numbers = #tpu.dot_dimension_numbers<[1], [0], [0], [1], [0, 0, 1, 1], [], []>} : vector<1x72xf32>, vector<72x128xf32>, vector<1x128xf32> -> vector<1x128xf32>
    %c0_71 = arith.constant 0 : index
    %c1_72 = arith.constant 1 : index
    %c0_73 = arith.constant 0 : index
    %60 = vector.load %arg6[%c0_71, %c1_72, %c0_73] : memref<1x2x128xf32, #tpu.memory_space<vmem>>, vector<1x1x128xf32>
    %61 = vector.shape_cast %60 : vector<1x1x128xf32> to vector<1x128xf32>
    %62 = vector.shape_cast %59 : vector<1x128xf32> to vector<1x1x128xf32>
    tpu.vector_store %arg6[%c0_71, %c1_72, %c0_73], %62 {strides = array<i32>} : memref<1x2x128xf32, #tpu.memory_space<vmem>>, vector<1x1x128xf32>,
    %c0_74 = arith.constant 0 : index
    %c0_75 = arith.constant 0 : index
    %c0_76 = arith.constant 0 : index
    %63 = vector.load %arg5[%c0_74, %c0_75, %c0_76] : memref<1x72x128xf32, #tpu.memory_space<vmem>>, vector<1x72x128xf32>
    %64 = vector.shape_cast %63 : vector<1x72x128xf32> to vector<72x128xf32>
    %65 = vector.shape_cast %51 : vector<72x128xf32> to vector<1x72x128xf32>
    tpu.vector_store %arg5[%c0_74, %c0_75, %c0_76], %65 {strides = array<i32>} : memref<1x72x128xf32, #tpu.memory_space<vmem>>, vector<1x72x128xf32>,
    return
  }
  func.func @transform_0(%arg0: i32) -> (i32, i32, i32) {
    %c0_i32 = arith.constant 0 : i32
    %c0_i32_0 = arith.constant 0 : i32
    %c0_i32_1 = arith.constant 0 : i32
    return %arg0, %c0_i32, %c0_i32_0 : i32, i32, i32
  }
  func.func @transform_1(%arg0: i32) -> (i32, i32) {
    %c0_i32 = arith.constant 0 : i32
    %c0_i32_0 = arith.constant 0 : i32
    %c0_i32_1 = arith.constant 0 : i32
    return %c0_i32, %c0_i32_0 : i32, i32
  }
  func.func @transform_2(%arg0: i32) -> (i32, i32) {
    %c0_i32 = arith.constant 0 : i32
    %c0_i32_0 = arith.constant 0 : i32
    %c0_i32_1 = arith.constant 0 : i32
    return %c0_i32, %c0_i32_0 : i32, i32
  }
  func.func @transform_3(%arg0: i32) -> (i32, i32) {
    %c0_i32 = arith.constant 0 : i32
    %c0_i32_0 = arith.constant 0 : i32
    %c0_i32_1 = arith.constant 0 : i32
    return %c0_i32, %c0_i32_0 : i32, i32
  }
  func.func @transform_4(%arg0: i32) -> (i32, i32, i32) {
    %c0_i32 = arith.constant 0 : i32
    %c0_i32_0 = arith.constant 0 : i32
    %c0_i32_1 = arith.constant 0 : i32
    return %arg0, %c0_i32, %c0_i32_0 : i32, i32, i32
  }
  func.func @transform_5(%arg0: i32) -> (i32, i32, i32) {
    %c0_i32 = arith.constant 0 : i32
    %c0_i32_0 = arith.constant 0 : i32
    %c0_i32_1 = arith.constant 0 : i32
    return %arg0, %c0_i32, %c0_i32_0 : i32, i32, i32
  }
}

module attributes {stable_mosaic.version = 11 : i64} {
  func.func @_deconv_block_kernel(%arg0: i32, %arg1: memref<2x64x32xbf16, #tpu.memory_space<vmem>>, %arg2: memref<288x64xbf16, #tpu.memory_space<vmem>>, %arg3: memref<1x64xf32, #tpu.memory_space<vmem>>, %arg4: memref<1x200xf32, #tpu.memory_space<vmem>>, %arg5: memref<1x200x64xf32, #tpu.memory_space<vmem>>, %arg6: memref<1x2x64xf32, #tpu.memory_space<vmem>>, %arg7: memref<224x32xbf16, #tpu.memory_space<vmem>>, %arg8: memref<200x288xbf16, #tpu.memory_space<vmem>>) attributes {dimension_semantics = [#tpu.dimension_semantics<parallel>], iteration_bounds = array<i64: 1>, scalar_prefetch = 0 : i64, scratch_operands = 2 : i64, tpu.core_type = #tpu.core_type<tc>, window_params = [{transform_indices = @transform_0, window_bounds = array<i64: 2, 64, 32>}, {pipeline_mode = #tpu.pipeline_mode<synchronous>, transform_indices = @transform_1, window_bounds = array<i64: 288, 64>}, {pipeline_mode = #tpu.pipeline_mode<synchronous>, transform_indices = @transform_2, window_bounds = array<i64: 1, 64>}, {pipeline_mode = #tpu.pipeline_mode<synchronous>, transform_indices = @transform_3, window_bounds = array<i64: 1, 200>}, {transform_indices = @transform_4, window_bounds = array<i64: 1, 200, 64>}, {transform_indices = @transform_5, window_bounds = array<i64: 1, 2, 64>}]} {
    %cst = arith.constant 0.000000e+00 : bf16
    %0 = vector.broadcast %cst : bf16 to vector<224x32xbf16>
    %c0 = arith.constant 0 : index
    %c0_0 = arith.constant 0 : index
    %1 = vector.load %arg7[%c0, %c0_0] : memref<224x32xbf16, #tpu.memory_space<vmem>>, vector<224x32xbf16>
    tpu.vector_store %arg7[%c0, %c0_0], %0 {strides = array<i32>} : memref<224x32xbf16, #tpu.memory_space<vmem>>, vector<224x32xbf16>,
    %c0_1 = arith.constant 0 : index
    %c0_2 = arith.constant 0 : index
    %c0_3 = arith.constant 0 : index
    %2 = vector.load %arg1[%c0_1, %c0_2, %c0_3] : memref<2x64x32xbf16, #tpu.memory_space<vmem>>, vector<1x8x32xbf16>
    %3 = vector.shape_cast %2 : vector<1x8x32xbf16> to vector<8x32xbf16>
    %c11 = arith.constant 11 : index
    %c0_4 = arith.constant 0 : index
    %4 = vector.load %arg7[%c11, %c0_4] : memref<224x32xbf16, #tpu.memory_space<vmem>>, vector<8x32xbf16>
    tpu.vector_store %arg7[%c11, %c0_4], %3 {strides = array<i32>} : memref<224x32xbf16, #tpu.memory_space<vmem>>, vector<8x32xbf16>,
    %c0_5 = arith.constant 0 : index
    %c8 = arith.constant 8 : index
    %c0_6 = arith.constant 0 : index
    %5 = vector.load %arg1[%c0_5, %c8, %c0_6] : memref<2x64x32xbf16, #tpu.memory_space<vmem>>, vector<1x8x32xbf16>
    %6 = vector.shape_cast %5 : vector<1x8x32xbf16> to vector<8x32xbf16>
    %c21 = arith.constant 21 : index
    %c0_7 = arith.constant 0 : index
    %7 = vector.load %arg7[%c21, %c0_7] : memref<224x32xbf16, #tpu.memory_space<vmem>>, vector<8x32xbf16>
    tpu.vector_store %arg7[%c21, %c0_7], %6 {strides = array<i32>} : memref<224x32xbf16, #tpu.memory_space<vmem>>, vector<8x32xbf16>,
    %c0_8 = arith.constant 0 : index
    %c16 = arith.constant 16 : index
    %c0_9 = arith.constant 0 : index
    %8 = vector.load %arg1[%c0_8, %c16, %c0_9] : memref<2x64x32xbf16, #tpu.memory_space<vmem>>, vector<1x8x32xbf16>
    %9 = vector.shape_cast %8 : vector<1x8x32xbf16> to vector<8x32xbf16>
    %c31 = arith.constant 31 : index
    %c0_10 = arith.constant 0 : index
    %10 = vector.load %arg7[%c31, %c0_10] : memref<224x32xbf16, #tpu.memory_space<vmem>>, vector<8x32xbf16>
    tpu.vector_store %arg7[%c31, %c0_10], %9 {strides = array<i32>} : memref<224x32xbf16, #tpu.memory_space<vmem>>, vector<8x32xbf16>,
    %c0_11 = arith.constant 0 : index
    %c24 = arith.constant 24 : index
    %c0_12 = arith.constant 0 : index
    %11 = vector.load %arg1[%c0_11, %c24, %c0_12] : memref<2x64x32xbf16, #tpu.memory_space<vmem>>, vector<1x8x32xbf16>
    %12 = vector.shape_cast %11 : vector<1x8x32xbf16> to vector<8x32xbf16>
    %c41 = arith.constant 41 : index
    %c0_13 = arith.constant 0 : index
    %13 = vector.load %arg7[%c41, %c0_13] : memref<224x32xbf16, #tpu.memory_space<vmem>>, vector<8x32xbf16>
    tpu.vector_store %arg7[%c41, %c0_13], %12 {strides = array<i32>} : memref<224x32xbf16, #tpu.memory_space<vmem>>, vector<8x32xbf16>,
    %c0_14 = arith.constant 0 : index
    %c32 = arith.constant 32 : index
    %c0_15 = arith.constant 0 : index
    %14 = vector.load %arg1[%c0_14, %c32, %c0_15] : memref<2x64x32xbf16, #tpu.memory_space<vmem>>, vector<1x8x32xbf16>
    %15 = vector.shape_cast %14 : vector<1x8x32xbf16> to vector<8x32xbf16>
    %c51 = arith.constant 51 : index
    %c0_16 = arith.constant 0 : index
    %16 = vector.load %arg7[%c51, %c0_16] : memref<224x32xbf16, #tpu.memory_space<vmem>>, vector<8x32xbf16>
    tpu.vector_store %arg7[%c51, %c0_16], %15 {strides = array<i32>} : memref<224x32xbf16, #tpu.memory_space<vmem>>, vector<8x32xbf16>,
    %c0_17 = arith.constant 0 : index
    %c40 = arith.constant 40 : index
    %c0_18 = arith.constant 0 : index
    %17 = vector.load %arg1[%c0_17, %c40, %c0_18] : memref<2x64x32xbf16, #tpu.memory_space<vmem>>, vector<1x8x32xbf16>
    %18 = vector.shape_cast %17 : vector<1x8x32xbf16> to vector<8x32xbf16>
    %c61 = arith.constant 61 : index
    %c0_19 = arith.constant 0 : index
    %19 = vector.load %arg7[%c61, %c0_19] : memref<224x32xbf16, #tpu.memory_space<vmem>>, vector<8x32xbf16>
    tpu.vector_store %arg7[%c61, %c0_19], %18 {strides = array<i32>} : memref<224x32xbf16, #tpu.memory_space<vmem>>, vector<8x32xbf16>,
    %c0_20 = arith.constant 0 : index
    %c48 = arith.constant 48 : index
    %c0_21 = arith.constant 0 : index
    %20 = vector.load %arg1[%c0_20, %c48, %c0_21] : memref<2x64x32xbf16, #tpu.memory_space<vmem>>, vector<1x8x32xbf16>
    %21 = vector.shape_cast %20 : vector<1x8x32xbf16> to vector<8x32xbf16>
    %c71 = arith.constant 71 : index
    %c0_22 = arith.constant 0 : index
    %22 = vector.load %arg7[%c71, %c0_22] : memref<224x32xbf16, #tpu.memory_space<vmem>>, vector<8x32xbf16>
    tpu.vector_store %arg7[%c71, %c0_22], %21 {strides = array<i32>} : memref<224x32xbf16, #tpu.memory_space<vmem>>, vector<8x32xbf16>,
    %c0_23 = arith.constant 0 : index
    %c56 = arith.constant 56 : index
    %c0_24 = arith.constant 0 : index
    %23 = vector.load %arg1[%c0_23, %c56, %c0_24] : memref<2x64x32xbf16, #tpu.memory_space<vmem>>, vector<1x8x32xbf16>
    %24 = vector.shape_cast %23 : vector<1x8x32xbf16> to vector<8x32xbf16>
    %c81 = arith.constant 81 : index
    %c0_25 = arith.constant 0 : index
    %25 = vector.load %arg7[%c81, %c0_25] : memref<224x32xbf16, #tpu.memory_space<vmem>>, vector<8x32xbf16>
    tpu.vector_store %arg7[%c81, %c0_25], %24 {strides = array<i32>} : memref<224x32xbf16, #tpu.memory_space<vmem>>, vector<8x32xbf16>,
    %c1 = arith.constant 1 : index
    %c0_26 = arith.constant 0 : index
    %c0_27 = arith.constant 0 : index
    %26 = vector.load %arg1[%c1, %c0_26, %c0_27] : memref<2x64x32xbf16, #tpu.memory_space<vmem>>, vector<1x8x32xbf16>
    %27 = vector.shape_cast %26 : vector<1x8x32xbf16> to vector<8x32xbf16>
    %c111 = arith.constant 111 : index
    %c0_28 = arith.constant 0 : index
    %28 = vector.load %arg7[%c111, %c0_28] : memref<224x32xbf16, #tpu.memory_space<vmem>>, vector<8x32xbf16>
    tpu.vector_store %arg7[%c111, %c0_28], %27 {strides = array<i32>} : memref<224x32xbf16, #tpu.memory_space<vmem>>, vector<8x32xbf16>,
    %c1_29 = arith.constant 1 : index
    %c8_30 = arith.constant 8 : index
    %c0_31 = arith.constant 0 : index
    %29 = vector.load %arg1[%c1_29, %c8_30, %c0_31] : memref<2x64x32xbf16, #tpu.memory_space<vmem>>, vector<1x8x32xbf16>
    %30 = vector.shape_cast %29 : vector<1x8x32xbf16> to vector<8x32xbf16>
    %c121 = arith.constant 121 : index
    %c0_32 = arith.constant 0 : index
    %31 = vector.load %arg7[%c121, %c0_32] : memref<224x32xbf16, #tpu.memory_space<vmem>>, vector<8x32xbf16>
    tpu.vector_store %arg7[%c121, %c0_32], %30 {strides = array<i32>} : memref<224x32xbf16, #tpu.memory_space<vmem>>, vector<8x32xbf16>,
    %c1_33 = arith.constant 1 : index
    %c16_34 = arith.constant 16 : index
    %c0_35 = arith.constant 0 : index
    %32 = vector.load %arg1[%c1_33, %c16_34, %c0_35] : memref<2x64x32xbf16, #tpu.memory_space<vmem>>, vector<1x8x32xbf16>
    %33 = vector.shape_cast %32 : vector<1x8x32xbf16> to vector<8x32xbf16>
    %c131 = arith.constant 131 : index
    %c0_36 = arith.constant 0 : index
    %34 = vector.load %arg7[%c131, %c0_36] : memref<224x32xbf16, #tpu.memory_space<vmem>>, vector<8x32xbf16>
    tpu.vector_store %arg7[%c131, %c0_36], %33 {strides = array<i32>} : memref<224x32xbf16, #tpu.memory_space<vmem>>, vector<8x32xbf16>,
    %c1_37 = arith.constant 1 : index
    %c24_38 = arith.constant 24 : index
    %c0_39 = arith.constant 0 : index
    %35 = vector.load %arg1[%c1_37, %c24_38, %c0_39] : memref<2x64x32xbf16, #tpu.memory_space<vmem>>, vector<1x8x32xbf16>
    %36 = vector.shape_cast %35 : vector<1x8x32xbf16> to vector<8x32xbf16>
    %c141 = arith.constant 141 : index
    %c0_40 = arith.constant 0 : index
    %37 = vector.load %arg7[%c141, %c0_40] : memref<224x32xbf16, #tpu.memory_space<vmem>>, vector<8x32xbf16>
    tpu.vector_store %arg7[%c141, %c0_40], %36 {strides = array<i32>} : memref<224x32xbf16, #tpu.memory_space<vmem>>, vector<8x32xbf16>,
    %c1_41 = arith.constant 1 : index
    %c32_42 = arith.constant 32 : index
    %c0_43 = arith.constant 0 : index
    %38 = vector.load %arg1[%c1_41, %c32_42, %c0_43] : memref<2x64x32xbf16, #tpu.memory_space<vmem>>, vector<1x8x32xbf16>
    %39 = vector.shape_cast %38 : vector<1x8x32xbf16> to vector<8x32xbf16>
    %c151 = arith.constant 151 : index
    %c0_44 = arith.constant 0 : index
    %40 = vector.load %arg7[%c151, %c0_44] : memref<224x32xbf16, #tpu.memory_space<vmem>>, vector<8x32xbf16>
    tpu.vector_store %arg7[%c151, %c0_44], %39 {strides = array<i32>} : memref<224x32xbf16, #tpu.memory_space<vmem>>, vector<8x32xbf16>,
    %c1_45 = arith.constant 1 : index
    %c40_46 = arith.constant 40 : index
    %c0_47 = arith.constant 0 : index
    %41 = vector.load %arg1[%c1_45, %c40_46, %c0_47] : memref<2x64x32xbf16, #tpu.memory_space<vmem>>, vector<1x8x32xbf16>
    %42 = vector.shape_cast %41 : vector<1x8x32xbf16> to vector<8x32xbf16>
    %c161 = arith.constant 161 : index
    %c0_48 = arith.constant 0 : index
    %43 = vector.load %arg7[%c161, %c0_48] : memref<224x32xbf16, #tpu.memory_space<vmem>>, vector<8x32xbf16>
    tpu.vector_store %arg7[%c161, %c0_48], %42 {strides = array<i32>} : memref<224x32xbf16, #tpu.memory_space<vmem>>, vector<8x32xbf16>,
    %c1_49 = arith.constant 1 : index
    %c48_50 = arith.constant 48 : index
    %c0_51 = arith.constant 0 : index
    %44 = vector.load %arg1[%c1_49, %c48_50, %c0_51] : memref<2x64x32xbf16, #tpu.memory_space<vmem>>, vector<1x8x32xbf16>
    %45 = vector.shape_cast %44 : vector<1x8x32xbf16> to vector<8x32xbf16>
    %c171 = arith.constant 171 : index
    %c0_52 = arith.constant 0 : index
    %46 = vector.load %arg7[%c171, %c0_52] : memref<224x32xbf16, #tpu.memory_space<vmem>>, vector<8x32xbf16>
    tpu.vector_store %arg7[%c171, %c0_52], %45 {strides = array<i32>} : memref<224x32xbf16, #tpu.memory_space<vmem>>, vector<8x32xbf16>,
    %c1_53 = arith.constant 1 : index
    %c56_54 = arith.constant 56 : index
    %c0_55 = arith.constant 0 : index
    %47 = vector.load %arg1[%c1_53, %c56_54, %c0_55] : memref<2x64x32xbf16, #tpu.memory_space<vmem>>, vector<1x8x32xbf16>
    %48 = vector.shape_cast %47 : vector<1x8x32xbf16> to vector<8x32xbf16>
    %c181 = arith.constant 181 : index
    %c0_56 = arith.constant 0 : index
    %49 = vector.load %arg7[%c181, %c0_56] : memref<224x32xbf16, #tpu.memory_space<vmem>>, vector<8x32xbf16>
    tpu.vector_store %arg7[%c181, %c0_56], %48 {strides = array<i32>} : memref<224x32xbf16, #tpu.memory_space<vmem>>, vector<8x32xbf16>,
    %c0_57 = arith.constant 0 : index
    %c0_58 = arith.constant 0 : index
    %50 = vector.load %arg7[%c0_57, %c0_58] : memref<224x32xbf16, #tpu.memory_space<vmem>>, vector<200x32xbf16>
    %c0_59 = arith.constant 0 : index
    %c0_60 = arith.constant 0 : index
    %51 = vector.load %arg8[%c0_59, %c0_60] : memref<200x288xbf16, #tpu.memory_space<vmem>>, vector<200x32xbf16>
    tpu.vector_store %arg8[%c0_59, %c0_60], %50 {strides = array<i32>} : memref<200x288xbf16, #tpu.memory_space<vmem>>, vector<200x32xbf16>,
    %c1_61 = arith.constant 1 : index
    %c0_62 = arith.constant 0 : index
    %52 = vector.load %arg7[%c1_61, %c0_62] : memref<224x32xbf16, #tpu.memory_space<vmem>>, vector<200x32xbf16>
    %c0_63 = arith.constant 0 : index
    %c32_64 = arith.constant 32 : index
    %53 = vector.load %arg8[%c0_63, %c32_64] : memref<200x288xbf16, #tpu.memory_space<vmem>>, vector<200x32xbf16>
    tpu.vector_store %arg8[%c0_63, %c32_64], %52 {strides = array<i32>} : memref<200x288xbf16, #tpu.memory_space<vmem>>, vector<200x32xbf16>,
    %c2 = arith.constant 2 : index
    %c0_65 = arith.constant 0 : index
    %54 = vector.load %arg7[%c2, %c0_65] : memref<224x32xbf16, #tpu.memory_space<vmem>>, vector<200x32xbf16>
    %c0_66 = arith.constant 0 : index
    %c64 = arith.constant 64 : index
    %55 = vector.load %arg8[%c0_66, %c64] : memref<200x288xbf16, #tpu.memory_space<vmem>>, vector<200x32xbf16>
    tpu.vector_store %arg8[%c0_66, %c64], %54 {strides = array<i32>} : memref<200x288xbf16, #tpu.memory_space<vmem>>, vector<200x32xbf16>,
    %c10 = arith.constant 10 : index
    %c0_67 = arith.constant 0 : index
    %56 = vector.load %arg7[%c10, %c0_67] : memref<224x32xbf16, #tpu.memory_space<vmem>>, vector<200x32xbf16>
    %c0_68 = arith.constant 0 : index
    %c96 = arith.constant 96 : index
    %57 = vector.load %arg8[%c0_68, %c96] : memref<200x288xbf16, #tpu.memory_space<vmem>>, vector<200x32xbf16>
    tpu.vector_store %arg8[%c0_68, %c96], %56 {strides = array<i32>} : memref<200x288xbf16, #tpu.memory_space<vmem>>, vector<200x32xbf16>,
    %c11_69 = arith.constant 11 : index
    %c0_70 = arith.constant 0 : index
    %58 = vector.load %arg7[%c11_69, %c0_70] : memref<224x32xbf16, #tpu.memory_space<vmem>>, vector<200x32xbf16>
    %c0_71 = arith.constant 0 : index
    %c128 = arith.constant 128 : index
    %59 = vector.load %arg8[%c0_71, %c128] : memref<200x288xbf16, #tpu.memory_space<vmem>>, vector<200x32xbf16>
    tpu.vector_store %arg8[%c0_71, %c128], %58 {strides = array<i32>} : memref<200x288xbf16, #tpu.memory_space<vmem>>, vector<200x32xbf16>,
    %c12 = arith.constant 12 : index
    %c0_72 = arith.constant 0 : index
    %60 = vector.load %arg7[%c12, %c0_72] : memref<224x32xbf16, #tpu.memory_space<vmem>>, vector<200x32xbf16>
    %c0_73 = arith.constant 0 : index
    %c160 = arith.constant 160 : index
    %61 = vector.load %arg8[%c0_73, %c160] : memref<200x288xbf16, #tpu.memory_space<vmem>>, vector<200x32xbf16>
    tpu.vector_store %arg8[%c0_73, %c160], %60 {strides = array<i32>} : memref<200x288xbf16, #tpu.memory_space<vmem>>, vector<200x32xbf16>,
    %c20 = arith.constant 20 : index
    %c0_74 = arith.constant 0 : index
    %62 = vector.load %arg7[%c20, %c0_74] : memref<224x32xbf16, #tpu.memory_space<vmem>>, vector<200x32xbf16>
    %c0_75 = arith.constant 0 : index
    %c192 = arith.constant 192 : index
    %63 = vector.load %arg8[%c0_75, %c192] : memref<200x288xbf16, #tpu.memory_space<vmem>>, vector<200x32xbf16>
    tpu.vector_store %arg8[%c0_75, %c192], %62 {strides = array<i32>} : memref<200x288xbf16, #tpu.memory_space<vmem>>, vector<200x32xbf16>,
    %c21_76 = arith.constant 21 : index
    %c0_77 = arith.constant 0 : index
    %64 = vector.load %arg7[%c21_76, %c0_77] : memref<224x32xbf16, #tpu.memory_space<vmem>>, vector<200x32xbf16>
    %c0_78 = arith.constant 0 : index
    %c224 = arith.constant 224 : index
    %65 = vector.load %arg8[%c0_78, %c224] : memref<200x288xbf16, #tpu.memory_space<vmem>>, vector<200x32xbf16>
    tpu.vector_store %arg8[%c0_78, %c224], %64 {strides = array<i32>} : memref<200x288xbf16, #tpu.memory_space<vmem>>, vector<200x32xbf16>,
    %c22 = arith.constant 22 : index
    %c0_79 = arith.constant 0 : index
    %66 = vector.load %arg7[%c22, %c0_79] : memref<224x32xbf16, #tpu.memory_space<vmem>>, vector<200x32xbf16>
    %c0_80 = arith.constant 0 : index
    %c256 = arith.constant 256 : index
    %67 = vector.load %arg8[%c0_80, %c256] : memref<200x288xbf16, #tpu.memory_space<vmem>>, vector<200x32xbf16>
    tpu.vector_store %arg8[%c0_80, %c256], %66 {strides = array<i32>} : memref<200x288xbf16, #tpu.memory_space<vmem>>, vector<200x32xbf16>,
    %c0_81 = arith.constant 0 : index
    %c0_82 = arith.constant 0 : index
    %68 = vector.load %arg8[%c0_81, %c0_82] : memref<200x288xbf16, #tpu.memory_space<vmem>>, vector<200x288xbf16>
    %c0_83 = arith.constant 0 : index
    %c0_84 = arith.constant 0 : index
    %69 = vector.load %arg2[%c0_83, %c0_84] : memref<288x64xbf16, #tpu.memory_space<vmem>>, vector<288x64xbf16>
    %cst_85 = arith.constant dense<0.000000e+00> : vector<200x64xf32>
    %70 = tpu.matmul %68, %69, %cst_85 {dimension_numbers = #tpu.dot_dimension_numbers<[1], [0], [0], [1], [0, 0, 1, 1], [], []>} : vector<200x288xbf16>, vector<288x64xbf16>, vector<200x64xf32> -> vector<200x64xf32>
    %c0_86 = arith.constant 0 : index
    %c0_87 = arith.constant 0 : index
    %71 = vector.load %arg3[%c0_86, %c0_87] : memref<1x64xf32, #tpu.memory_space<vmem>>, vector<1x64xf32>
    %72 = vector.broadcast %71 : vector<1x64xf32> to vector<200x64xf32>
    %73 = arith.addf %70, %72 : vector<200x64xf32>
    %cst_88 = arith.constant 0.000000e+00 : f32
    %74 = vector.broadcast %cst_88 : f32 to vector<200x64xf32>
    %75 = arith.maximumf %73, %74 : vector<200x64xf32>
    %c0_89 = arith.constant 0 : index
    %c0_90 = arith.constant 0 : index
    %76 = vector.load %arg4[%c0_89, %c0_90] : memref<1x200xf32, #tpu.memory_space<vmem>>, vector<1x200xf32>
    %cst_91 = arith.constant dense<0.000000e+00> : vector<1x64xf32>
    %77 = tpu.matmul %76, %75, %cst_91 {dimension_numbers = #tpu.dot_dimension_numbers<[1], [0], [0], [1], [0, 0, 1, 1], [], []>} : vector<1x200xf32>, vector<200x64xf32>, vector<1x64xf32> -> vector<1x64xf32>
    %c0_92 = arith.constant 0 : index
    %c0_93 = arith.constant 0 : index
    %c0_94 = arith.constant 0 : index
    %78 = vector.load %arg6[%c0_92, %c0_93, %c0_94] : memref<1x2x64xf32, #tpu.memory_space<vmem>>, vector<1x1x64xf32>
    %79 = vector.shape_cast %78 : vector<1x1x64xf32> to vector<1x64xf32>
    %80 = vector.shape_cast %77 : vector<1x64xf32> to vector<1x1x64xf32>
    tpu.vector_store %arg6[%c0_92, %c0_93, %c0_94], %80 {strides = array<i32>} : memref<1x2x64xf32, #tpu.memory_space<vmem>>, vector<1x1x64xf32>,
    %c0_95 = arith.constant 0 : index
    %c0_96 = arith.constant 0 : index
    %81 = vector.load %arg4[%c0_95, %c0_96] : memref<1x200xf32, #tpu.memory_space<vmem>>, vector<1x200xf32>
    %82 = arith.mulf %75, %75 : vector<200x64xf32>
    %cst_97 = arith.constant dense<0.000000e+00> : vector<1x64xf32>
    %83 = tpu.matmul %81, %82, %cst_97 {dimension_numbers = #tpu.dot_dimension_numbers<[1], [0], [0], [1], [0, 0, 1, 1], [], []>} : vector<1x200xf32>, vector<200x64xf32>, vector<1x64xf32> -> vector<1x64xf32>
    %c0_98 = arith.constant 0 : index
    %c1_99 = arith.constant 1 : index
    %c0_100 = arith.constant 0 : index
    %84 = vector.load %arg6[%c0_98, %c1_99, %c0_100] : memref<1x2x64xf32, #tpu.memory_space<vmem>>, vector<1x1x64xf32>
    %85 = vector.shape_cast %84 : vector<1x1x64xf32> to vector<1x64xf32>
    %86 = vector.shape_cast %83 : vector<1x64xf32> to vector<1x1x64xf32>
    tpu.vector_store %arg6[%c0_98, %c1_99, %c0_100], %86 {strides = array<i32>} : memref<1x2x64xf32, #tpu.memory_space<vmem>>, vector<1x1x64xf32>,
    %c0_101 = arith.constant 0 : index
    %c0_102 = arith.constant 0 : index
    %c0_103 = arith.constant 0 : index
    %87 = vector.load %arg5[%c0_101, %c0_102, %c0_103] : memref<1x200x64xf32, #tpu.memory_space<vmem>>, vector<1x200x64xf32>
    %88 = vector.shape_cast %87 : vector<1x200x64xf32> to vector<200x64xf32>
    %89 = vector.shape_cast %75 : vector<200x64xf32> to vector<1x200x64xf32>
    tpu.vector_store %arg5[%c0_101, %c0_102, %c0_103], %89 {strides = array<i32>} : memref<1x200x64xf32, #tpu.memory_space<vmem>>, vector<1x200x64xf32>,
    return
  }
  func.func @transform_0(%arg0: i32) -> (i32, i32, i32) {
    %c0_i32 = arith.constant 0 : i32
    %c0_i32_0 = arith.constant 0 : i32
    %c0_i32_1 = arith.constant 0 : i32
    return %arg0, %c0_i32, %c0_i32_0 : i32, i32, i32
  }
  func.func @transform_1(%arg0: i32) -> (i32, i32) {
    %c0_i32 = arith.constant 0 : i32
    %c0_i32_0 = arith.constant 0 : i32
    %c0_i32_1 = arith.constant 0 : i32
    return %c0_i32, %c0_i32_0 : i32, i32
  }
  func.func @transform_2(%arg0: i32) -> (i32, i32) {
    %c0_i32 = arith.constant 0 : i32
    %c0_i32_0 = arith.constant 0 : i32
    %c0_i32_1 = arith.constant 0 : i32
    return %c0_i32, %c0_i32_0 : i32, i32
  }
  func.func @transform_3(%arg0: i32) -> (i32, i32) {
    %c0_i32 = arith.constant 0 : i32
    %c0_i32_0 = arith.constant 0 : i32
    %c0_i32_1 = arith.constant 0 : i32
    return %c0_i32, %c0_i32_0 : i32, i32
  }
  func.func @transform_4(%arg0: i32) -> (i32, i32, i32) {
    %c0_i32 = arith.constant 0 : i32
    %c0_i32_0 = arith.constant 0 : i32
    %c0_i32_1 = arith.constant 0 : i32
    return %arg0, %c0_i32, %c0_i32_0 : i32, i32, i32
  }
  func.func @transform_5(%arg0: i32) -> (i32, i32, i32) {
    %c0_i32 = arith.constant 0 : i32
    %c0_i32_0 = arith.constant 0 : i32
    %c0_i32_1 = arith.constant 0 : i32
    return %arg0, %c0_i32, %c0_i32_0 : i32, i32, i32
  }
}

</mosaic_0001>

<bundles_post_ra>
// kernel: _lambda_.3
= control target key start
LH: loop header
LB: loop body
LE: loop exit
PB: predicated region body
PF: predicated region fallthrough
CT: control target
= control target key end

     0   :  { %vm6809_vm0 = vcmask 261120   ;;  %vm48_vm1 = vcmask 261125   ;;  %vm49_vm2 = vsmask.f32 7958  ;;  %v4648_v0 = vmov 0   ;;  %s4649_s7 = smov 64   ;;  %s6803_s0 = inlined_call_operand.vmem [shape: bf16[2,64,32], index: 0, kind: input, shape index: {}]   ;;  %s6804_s1 = inlined_call_operand.vmem [shape: bf16[288,64], index: 1, kind: input, shape index: {}]   ;;  %s6805_s2 = inlined_call_operand.vmem [shape: f32[1,64], index: 2, kind: input, shape index: {}]   ;;  %s6806_s4 = inlined_call_operand.vmem [shape: f32[1,200,64], index: 4, kind: output, shape index: {0}]   ;;  %s6807_s3 = inlined_call_operand.vmem [shape: f32[1,200], index: 3, kind: input, shape index: {}]   ;;  %s6808_s5 = inlined_call_operand.vmem [shape: f32[1,2,64], index: 5, kind: output, shape index: {1}]  }
   0x1   :  { %21 = vst.msk [vmem:[#allocation2] sm:$0xff] %vm6809_vm0, %v4648_v0  ;;  %22 = vst.msk [vmem:[#allocation2 + $0x8] sm:$0xff] %vm6809_vm0, %v4648_v0  ;;  %v4512_v1 = vld [vmem:[%s6803_s0] ss:$0 sps:$4 sm:$0xff]   ;;  %vm54_vm3 = vcmask 254976   ;;  %vm73_vm4 = vcmask 260098  }
   0x2   :  { %23 = vst.msk [vmem:[#allocation2 + $0x10] sm:$0xff] %vm6809_vm0, %v4648_v0  ;;  %24 = vst.msk [vmem:[#allocation2 + $0x18] sm:$0xff] %vm6809_vm0, %v4648_v0  ;;  %vm55_vm5 = vsmask.f32 1280  ;;  %v4513_v2 = vld [vmem:[%s6803_s0 + $0x4] ss:$0 sps:$4 sm:$0xff]  }
   0x3   :  { %25 = vst.msk [vmem:[#allocation2 + $0x20] sm:$0xff] %vm6809_vm0, %v4648_v0  ;;  %26 = vst.msk [vmem:[#allocation2 + $0x28] sm:$0xff] %vm6809_vm0, %v4648_v0  ;;  %v40_v3 = vshrl.u32 %v4512_v1, 16  ;;  %v43_v4 = vshll.u32 %v4512_v1, 16  ;;  %vm74_vm6 = vsmask.f32 6410 }
   0x4   :  { %27 = vst.msk [vmem:[#allocation2 + $0x30] sm:$0xff] %vm6809_vm0, %v4648_v0  ;;  %28 = vst.msk [vmem:[#allocation2 + $0x38] sm:$0xff] %vm6809_vm0, %v4648_v0  ;;  %v6815_v5 = vmov 0  ;;  %v65_v6 = vshrl.u32 %v4513_v2, 16  ;;  %v68_v7 = vshll.u32 %v4513_v2, 16  ;;  %vm92_vm8 = vcmask 261127  }
   0x5   :  { %29 = vst.msk [vmem:[#allocation2 + $0x40] sm:$0xff] %vm6809_vm0, %v4648_v0  ;;  %30 = vst.msk [vmem:[#allocation2 + $0x48] sm:$0xff] %vm6809_vm0, %v4648_v0  ;;  %v4514_v8 = vld [vmem:[%s6803_s0 + $0x8] ss:$0 sps:$4 sm:$0xff]   ;;  %v42_v9 = vrot.slane %v40_v3, 2  ;;  %v45_v10 = vrot.slane %v43_v4, 3 }
   0x6   :  { %31 = vst.msk [vmem:[#allocation2 + $0x50] sm:$0xff] %vm6809_vm0, %v4648_v0  ;;  %32 = vst.msk [vmem:[#allocation2 + $0x58] sm:$0xff] %vm6809_vm0, %v4648_v0  ;;  %v6817_v11 = vmov 0  ;;  %vm93_vm10 = vsmask.f32 7966  ;;  %v67_v12 = vrot.slane %v65_v6, 5 }
   0x7   :  { %33 = vst.msk [vmem:[#allocation2 + $0x60] sm:$0xff] %vm6809_vm0, %v4648_v0  ;;  %34 = vst.msk [vmem:[#allocation2 + $0x68] sm:$0xff] %vm6809_vm0, %v4648_v0  ;;  %v70_v13 = vrot.slane %v68_v7, 6  ;;  %v6819_v14 = vmov 0  ;;  %v84_v15 = vshll.u32 %v4514_v8, 16  ;;  %v46_v16 = vor.u32 %v45_v10, %v42_v9  ;;  %v4543_v45 = vld [vmem:[%s6804_s1 + $0x40] sm:$0xff]  }
   0x8   :  { %vm4707_vm7 = vmand %vm48_vm1, %vm49_vm2  ;;  %v87_v18 = vshrl.u32 %v4514_v8, 16  ;;  %v51_v19 = vld [vmem:[#allocation2] sm:$0xe0]  ;;  %v57_v20 = vld [vmem:[#allocation2 + $0x8] sm:$0x3]  ;;  %vm6810_vm13 = vcmask 257024   ;;  %4268 = vmatprep.subr.bf16.mxu0 %v4543_v45 }
   0x9   :  { %v6816_v5 = vsel %vm4707_vm7, 4294967295, %v6815_v5  ;;  %vm4716_vm9 = vmand %vm54_vm3, %vm55_vm5  ;;  %v71_v21 = vor.u32 %v70_v13, %v67_v12  ;;  %v76_v22 = vld [vmem:[#allocation2 + $0x8] sm:$0x7c]  ;;  %v52_v23 = vsel %vm4707_vm7, %v46_v16, %v51_v19  ;;  %v86_v25 = vrot.slane %v84_v15, 1  ;;  %v95_v26 = vld [vmem:[#allocation2 + $0x8] sm:$0x80] }
   0xa   :  { %v6818_v11 = vsel %vm4716_vm9, 4294967295, %v6817_v11  ;;  %vm4721_vm11 = vmand %vm73_vm4, %vm74_vm6  ;;  %v58_v24 = vsel %vm4716_vm9, %v46_v16, %v57_v20  ;;  %53 = vst [vmem:[#allocation2] sm:$0xe0] %v52_v23  ;;  %vm99_vm14 = vsmask.f32 3328  ;;  %vm118_vm1 = vcmask 261124  }
   0xb   :  { %v6820_v14 = vsel %vm4721_vm11, 4294967295, %v6819_v14  ;;  %vm4725_vm12 = vmand %vm92_vm8, %vm93_vm10  ;;  %59 = vst [vmem:[#allocation2 + $0x8] sm:$0x3] %v58_v24  ;;  %v77_v27 = vsel %vm4721_vm11, %v71_v21, %v76_v22  ;;  %v101_v28 = vld [vmem:[#allocation2 + $0x10] sm:$0xf]  ;;  %v89_v31 = vor.u32 %v87_v18, %v86_v25  ;;  %vm124_vm2 = vcmask 253952  }
   0xc   :  { %v4522_v29 = vld [vmem:[%s6803_s0 + $0xc] ss:$0 sps:$4 sm:$0xff]   ;;  %78 = vst [vmem:[#allocation2 + $0x8] sm:$0x7c] %v77_v27  ;;  %v96_v30 = vsel %vm4725_vm12, %v86_v25, %v95_v26  ;;  %vm4742_vm15 = vmand %vm6810_vm13, %vm99_vm14  ;;  %vm119_vm3 = vsmask.f32 7954 }
   0xd   :  { %97 = vst [vmem:[#allocation2 + $0x8] sm:$0x80] %v96_v30  ;;  %v109_v33 = vshrl.u32 %v4522_v29, 16  ;;  %v112_v34 = vshll.u32 %v4522_v29, 16  ;;  %vm125_vm4 = vsmask.f32 256  ;;  %v102_v35 = vsel %vm4742_vm15, %v89_v31, %v101_v28  ;;  %vm4752_vm8 = vmand %vm118_vm1, %vm119_vm3 }
   0xe   :  { %v127_v36 = vld [vmem:[#allocation2 + $0x18] sm:$0x1]  ;;  %103 = vst [vmem:[#allocation2 + $0x10] sm:$0xf] %v102_v35  ;;  %vm4748_vm6 = vmand %vm124_vm2, %vm125_vm4  ;;  %v121_v41 = vld [vmem:[#allocation2 + $0x10] sm:$0xf0] }
   0xf   :  { %v111_v37 = vrot.slane %v109_v33, 3  ;;  %v114_v38 = vrot.slane %v112_v34, 4  ;;  %vm992_vm10 = vcmask 1042432   ;;  %vm993_vm0 = vcmask 1046532   ;;  %v4761_v44 = vld [vmem:[%s6803_s0 + $0x10] ss:$0 sps:$4 sm:$0xff]  }
  0x10   :  { %v4515_v46 = vld [vmem:[#allocation2 + $0x4] ss:$0 sps:$4 sm:$0xcc]   ;;  %vm1899_vm1 = vcmask 1041408   ;;  %vm1900_vm2 = vcmask 1045508   ;;  %vm4772_vm3 = vmor %vm992_vm10, %vm993_vm0  ;;  %v135_v2 = vshrl.u32 %v4761_v44, 16 }
  0x11   :  { %v115_v42 = vor.u32 %v114_v38, %v111_v37  ;;  %v128_v43 = vsel %vm4748_vm6, %v111_v37, %v127_v36  ;;  %v479_v47 = vld [vmem:[#allocation2] sm:$0xff]  ;;  %v4114_v52 = vrot.slane %v4515_v46, 10  ;;  %vm4780_vm4 = vmor %vm1899_vm1, %vm1900_vm2  ;;  %vm557_vm0 = vsmask.f32 7440  ;;  %s4650_s8 = smov 32   ;;  %v4545_v24 = vld [vmem:[%s6804_s1 + $0x48] sm:$0xff]  }
  0x12   :  { %129 = vst [vmem:[#allocation2 + $0x18] sm:$0x1] %v128_v43  ;;  %v914_v48 = vld [vmem:[#allocation2] sm:$0xfe]  ;;  %v3982_v50 = vcombine.low %v479_v47, %v479_v47  ;;  %v3983_v9 = vcombine.high %v479_v47, %v479_v47  ;;  %v138_v12 = vshll.u32 %v4761_v44, 16  ;;  %v4546_v29 = vld [vmem:[%s6804_s1 + $0x8] sm:$0xff]   ;;  %vm4838_vm13 = vmor %vm99_vm14, %vm557_vm0 }
  0x13   :  { %v122_v49 = vsel %vm4752_vm8, %v115_v42, %v121_v41  ;;  %v4008_v53 = vcombine.low %v914_v48, %v914_v48  ;;  %v4009_v54 = vcombine.high %v914_v48, %v914_v48  ;;  %v4521_v61 = vld [vmem:[#allocation2 + $0x4] ss:$0 sps:$4 sm:$0xee]   ;;  %vm143_vm10 = vcmask 259073   ;;  %s4651_s13 = smov 96  }
  0x14   :  { %v1820_v51 = vld [vmem:[#allocation2 + $0x8] sm:$0xff]  ;;  %123 = vst [vmem:[#allocation2 + $0x10] sm:$0xf0] %v122_v49  ;;  %v560_v1 = vshrl.u32 %v3982_v50, 16  ;;  %v563_v10 = vshll.u32 %v3982_v50, 16  ;;  %v4544_v13 = vld [vmem:[%s6804_s1] sm:$0xff]  }
  0x15   :  { %v2078_v55 = vld [vmem:[#allocation2 + $0x8] sm:$0xfc]  ;;  %v4768_v56 = vcombine.low %v1820_v51, %v1820_v51  ;;  %v4776_v58 = vcombine.high %v1820_v51, %v1820_v51  ;;  %v4034_v63 = vrot.slane %v4008_v53, 9  ;;  %v997_v0 = vrot.slane %v4009_v54, 5  ;;  %4269 = vmatpush3.bf16.msra.mxu0 %v4544_v13  ;;  %v4555_v44 = vld [vmem:[%s6804_s1 + $0x60] sm:$0xff]  }
  0x16   :  { %v4115_v59 = vcombine.low %v2078_v55, %v2078_v55  ;;  %v4116_v60 = vcombine.high %v2078_v55, %v2078_v55  ;;  %v4061_v21 = vrot.slane %v4521_v61, 9  ;;  %v2332_v23 = vld [vmem:[#allocation2 + $0x8] sm:$0xfc]  ;;  %v562_v28 = vrot.slane %v560_v1, 4  ;;  %4270 = vmatprep.subr.bf16.mxu0 %v4545_v24 }
  0x17   :  { %v1904_v3 = vrot.slane %v4768_v56, 6  ;;  %v1907_v4 = vrot.slane %v4776_v58, 6  ;;  %v998_v8 = vsel %vm4772_vm3, %v4034_v63, %v997_v0  ;;  %v999_v18 = vrot.slane %v997_v0, 4 }
  0x18   :  { %v4141_v6 = vrot.slane %v4115_v59, 10  ;;  %v4787_v7 = vrot.slane %v4116_v60, 6  ;;  %1071 = vrot.lane.b32.xlu0 %v998_v8, %s4649_s7  ;;  %v4799_v19 = vrot.slane %v4768_v56, 5  ;;  %v565_v31 = vrot.slane %v563_v10, 5  ;;  %v4547_v59 = vld [vmem:[%s6804_s1 + $0x50] sm:$0xff]  }
  0x19   :  { %v1905_v15 = vsel %vm4780_vm4, %v4114_v52, %v1904_v3  ;;  %v1906_v16 = vrot.slane %v1904_v3, 4  ;;  %v1909_v27 = vrot.slane %v1907_v4, 4  ;;  %v569_v33 = vshll.u32 %v3983_v9, 16  ;;  %4271 = vmatpush3.bf16.msra.mxu0 %v4546_v29  ;;  %v4530_v8 = vld [vmem:[%s6803_s0 + $0x14] ss:$0 sps:$4 sm:$0xff]  }
  0x1a   :  { %1978 = vrot.lane.b32.xlu1 %v1905_v15, %s4650_s8  ;;  %v2159_v20 = vsel %vm4780_vm4, %v4141_v6, %v4787_v7  ;;  %v2160_v22 = vrot.slane %v4787_v7, 4  ;;  %v1001_v35 = vsel %vm4772_vm3, %v999_v18, %v4799_v19  ;;  %v1257_v36 = vrot.slane %v4776_v58, 5  ;;  %4272 = vmatprep.subr.bf16.mxu0 %v4547_v59 }
  0x1b   :  { %v1908_v25 = vsel %vm4780_vm4, %v1906_v16, %v1907_v4  ;;  %v2079_v26 = vld [vmem:[#allocation2 + $0x10] sm:$0xff]  ;;  %v573_v37 = vshrl.u32 %v3983_v9, 16  ;;  %v4143_v38 = vcombine.high %v2332_v23, %v2332_v23  ;;  %v1255_v41 = vsel %vm4772_vm3, %v4061_v21, %v4799_v19  ;;  %v4550_v21 = vld [vmem:[%s6804_s1 + $0x58] sm:$0xff]  }
  0x1c   :  { %v4814_v30 = vcombine.low %v2079_v26, %v2079_v26  ;;  %v4816_v34 = vcombine.high %v2079_v26, %v2079_v26  ;;  %2232 = vrot.lane.b32.xlu0 %v2159_v20, %s4649_s7  ;;  %v566_v43 = vor.u32 %v565_v31, %v562_v28  ;;  %v571_v45 = vrot.slane %v569_v33, 5  ;;  %v4549_v9 = vld [vmem:[%s6804_s1 + $0x10] sm:$0xff]  }
  0x1d   :  { %v575_v46 = vrot.slane %v573_v37, 4  ;;  %v579_v47 = vshll.u32 %v4768_v56, 16  ;;  %v2422_v48 = vshrl.u32 %v4143_v38, 16  ;;  %v2425_v49 = vshll.u32 %v4143_v38, 16  ;;  %4273 = vmatpush3.bf16.msra.mxu0 %v4549_v9  ;;  %v4552_v37 = vld [vmem:[%s6804_s1 + $0x18] sm:$0xff]  }
  0x1e   :  { %1980 = vrot.lane.b32.xlu1 %v1908_v25, %s4650_s8  ;;  %v2161_v42 = vrot.slane %v4814_v30, 6  ;;  %vm144_vm1 = vsmask.f32 5382  ;;  %vm2410_vm2 = vsmask.f32 5392  ;;  %v1256_v50 = vrot.slane %v4799_v19, 4  ;;  %4274 = vmatprep.subr.bf16.mxu0 %v4550_v21 }
  0x1f   :  { %v1913_v51 = vrot.slane %v4816_v34, 6  ;;  %v567_v52 = vrot.slane %v566_v43, 4  ;;  %v576_v53 = vor.u32 %v575_v46, %v571_v45  ;;  %v2424_v54 = vrot.slane %v2422_v48, 6  ;;  %vm4898_vm0 = vmand %vm143_vm10, %vm144_vm1 }
  0x20   :  { %1328 = vrot.lane.b32.xlu0 %v1255_v41, %s4651_s13  ;;  %v2427_v55 = vrot.slane %v2425_v49, 7  ;;  %v1911_v61 = vsel %vm4780_vm4, %v1909_v27, %v2161_v42  ;;  %v2432_v63 = vshrl.u32 %v4814_v30, 16  ;;  %v2435_v0 = vshll.u32 %v4814_v30, 16  ;;  %vm4907_vm14 = vmor %vm55_vm5, %vm2410_vm2 }
  0x21   :  { %v4142_v1 = vcombine.low %v2332_v23, %v2332_v23  ;;  %v2162_v3 = vsel %vm4780_vm4, %v2160_v22, %v2161_v42  ;;  %v1912_v4 = vrot.slane %v2161_v42, 4  ;;  %v581_v6 = vrot.slane %v579_v47, 5  ;;  %4275 = vmatpush3.bf16.msra.mxu0 %v4552_v37 }
  0x22   :  { %1073 = vrot.lane.b32.xlu1 %v1001_v35, %s4649_s7  ;;  %v589_v7 = vshll.u32 %v4776_v58, 16  ;;  %v577_v10 = vrot.slane %v576_v53, 4  ;;  %v593_v16 = vshrl.u32 %v4776_v58, 16  ;;  %v572_v18 = vsel %vm4838_vm13, %v567_v52, %v571_v45  ;;  %v146_v35 = vld [vmem:[#allocation2 + $0x18] sm:$0x3e]  ;;  %v4556_v53 = vld [vmem:[%s6804_s1 + $0x20] sm:$0xff]   ;;  %4276 = vmatprep.subr.bf16.mxu0 %v4555_v44 }
  0x23   :  { %v2413_v13 = vshrl.u32 %v4142_v1, 16  ;;  %v2416_v15 = vshll.u32 %v4142_v1, 16  ;;  %v2428_v19 = vor.u32 %v2427_v55, %v2424_v54  ;;  %v137_v20 = vrot.slane %v135_v2, 6  ;;  %v165_v55 = vld [vmem:[#allocation2 + $0x18] sm:$0xc0]  ;;  %v4557_v1 = vld [vmem:[%s6804_s1 + $0x68] sm:$0xff]  }
  0x24   :  { %1982 = vrot.lane.b32.xlu0 %v1911_v61, %s4650_s8  ;;  %v2434_v22 = vrot.slane %v2432_v63, 6  ;;  %v2437_v23 = vrot.slane %v2435_v0, 7  ;;  %v4873_v2 = vsel %vm4772_vm3, %v1256_v50, %v1257_v36  ;;  %v4875_v26 = vrot.slane %v589_v7, 5  ;;  %v4558_v7 = vld [vmem:[%s6804_s1 + $0x28] sm:$0xff]   ;;  %v4560_v58 = vld [vmem:[%s6804_s1 + $0x30] sm:$0xff]  }
  0x25   :  { %v2415_v24 = vrot.slane %v2413_v13, 6  ;;  %v2418_v25 = vrot.slane %v2416_v15, 7  ;;  %v595_v27 = vrot.slane %v593_v16, 4  ;;  %v583_v28 = vshrl.u32 %v4768_v56, 16  ;;  %4277 = vmatpush3.bf16.msra.mxu0 %v4556_v53  ;;  %v171_v15 = vld [vmem:[#allocation2 + $0x20] sm:$0x7] }
  0x26   :  { %2234 = vrot.lane.b32.xlu1 %v2162_v3, %s4649_s7  ;;  %v4882_v29 = vsel %vm4780_vm4, %v1912_v4, %v1913_v51  ;;  %v582_v31 = vsel %vm4838_vm13, %v577_v10, %v581_v6  ;;  %v2430_v56 = vrot.slane %v2428_v19, 4  ;;  %v140_v41 = vrot.slane %v138_v12, 7  ;;  %4278 = vmatprep.subr.bf16.mxu0 %v4557_v1  ;;  %v4533_v16 = vld [vmem:[%s6803_s0 + $0x18] ss:$0 sps:$4 sm:$0xff]  }
  0x27   :  { %v2419_v33 = vor.u32 %v2418_v25, %v2415_v24  ;;  %v585_v38 = vrot.slane %v583_v28, 4  ;;  %v154_v42 = vshrl.u32 %v4530_v8, 16  ;;  %v4894_v43 = vor.u32 %v2437_v23, %v2434_v22 }
  0x28   :  { %813 = vrot.lane.b32.xlu0 %v572_v18, %s4650_s8  ;;  %v157_v47 = vshll.u32 %v4530_v8, 16  ;;  %v596_v48 = vor.u32 %v595_v27, %v4875_v26  ;;  %v141_v50 = vor.u32 %v140_v41, %v137_v20  ;;  %vm6839_vm5 = vsmask.f32 7962 }
  0x29   :  { %v2420_v45 = vrot.slane %v2419_v33, 4  ;;  %v586_v49 = vor.u32 %v585_v38, %v581_v6  ;;  %v156_v52 = vrot.slane %v154_v42, 1  ;;  %vm6840_vm10 = vcmask 261126   ;;  %4279 = vmatpush3.bf16.msra.mxu0 %v4558_v7 }
  0x2a   :  { %1330 = vrot.lane.b32.xlu1 %v4873_v2, %s4651_s13  ;;  %v159_v54 = vrot.slane %v157_v47, 2  ;;  %v147_v59 = vsel %vm4898_vm0, %v141_v50, %v146_v35  ;;  %vm4920_vm1 = vmand %vm6840_vm10, %vm6839_vm5  ;;  %v2439_v8 = vsel %vm4907_vm14, %v2430_v56, %v4894_v43  ;;  %v597_v9 = vrot.slane %v596_v48, 4 }
  0x2b   :  { %v2429_v3 = vsel %vm4907_vm14, %v2420_v45, %v2428_v19  ;;  %v587_v4 = vrot.slane %v586_v49, 4  ;;  %148 = vst [vmem:[#allocation2 + $0x18] sm:$0x3e] %v147_v59  ;;  %v4939_v10 = vrot.slane %v2435_v0, 5  ;;  %v1006_v18 = vrot.slane %v4814_v30, 5  ;;  %v4559_v0 = vld [vmem:[%s6804_s1 + $0x70] sm:$0xff]  }
  0x2c   :  { %815 = vrot.lane.b32.xlu0 %v582_v31, %s4650_s8  ;;  %v160_v6 = vor.u32 %v159_v54, %v156_v52  ;;  %vm168_vm2 = vcmask 256000   ;;  %v1005_v20 = vrot.slane %v1257_v36, 4  ;;  %v2442_v22 = vshrl.u32 %v4816_v34, 16  ;;  %4280 = vmatprep.subr.bf16.mxu0 %v4559_v0  ;;  %v4562_v31 = vld [vmem:[%s6804_s1 + $0x38] sm:$0xff]   ;;  %v190_v45 = vld [vmem:[#allocation2 + $0x20] sm:$0xf8] }
  0x2d   :  { %v592_v19 = vsel %vm4838_vm13, %v587_v4, %v4875_v26  ;;  %v602_v21 = vsel %vm4838_vm13, %v597_v9, %v4939_v10  ;;  %v2445_v23 = vshll.u32 %v4816_v34, 16  ;;  %vm6811_vm5 = vsmask.f32 2304  ;;  %v4561_v26 = vld [vmem:[%s6804_s1 + $0x78] sm:$0xff]   ;;  %4281 = vmatpush3.bf16.msra.mxu0 %v4560_v58 }
  0x2e   :  { %1984 = vrot.lane.b32.xlu1 %v4882_v29, %s4650_s8  ;;  %v166_v13 = vsel %vm4920_vm1, %v160_v6, %v165_v55  ;;  %vm4963_vm10 = vmand %vm168_vm2, %vm6811_vm5  ;;  %v179_v25 = vshrl.u32 %v4533_v16, 16  ;;  %v182_v28 = vshll.u32 %v4533_v16, 16  ;;  %vm187_vm2 = vcmask 261123   ;;  %4282 = vmatprep.subr.bf16.mxu0 %v4561_v26 }
  0x2f   :  { %167 = vst [vmem:[#allocation2 + $0x18] sm:$0xc0] %v166_v13  ;;  %v172_v36 = vsel %vm4963_vm10, %v160_v6, %v171_v15  ;;  %v1007_v33 = vsel %vm4772_vm3, %v1005_v20, %v1006_v18  ;;  %v2444_v35 = vrot.slane %v2442_v22, 6  ;;  %v2447_v37 = vrot.slane %v2445_v23, 7  ;;  %v5036_v20 = vld [vmem:[%s6803_s0 + $0x20] ss:$0 sps:$4 sm:$0xff]  }
  0x30   :  { %2670 = vrot.lane.b32.xlu0 %v2429_v3, %s4651_s13  ;;  %173 = vst [vmem:[#allocation2 + $0x20] sm:$0x7] %v172_v36  ;;  %v181_v27 = vrot.slane %v179_v25, 4  ;;  %vm188_vm5 = vsmask.f32 7438  ;;  %v2166_v38 = vrot.slane %v1913_v51, 4 }
  0x31   :  { %v1263_v41 = vrot.slane %v4816_v34, 5  ;;  %v184_v42 = vrot.slane %v182_v28, 5  ;;  %v1262_v44 = vrot.slane %v1006_v18, 4  ;;  %v611_v48 = vrot.slane %v2445_v23, 5  ;;  %vm4990_vm11 = vmand %vm187_vm2, %vm188_vm5  ;;  %4283 = vmatpush3.bf16.msra.mxu0 %v4562_v31 }
  0x32   :  { %2672 = vrot.lane.b32.xlu1 %v2439_v8, %s4651_s13  ;;  %v615_v50 = vrot.slane %v2442_v22, 4  ;;  %v605_v34 = vrot.slane %v2432_v63, 4  ;;  %v2440_v1 = vrot.slane %v4894_v43, 4  ;;  %vm205_vm5 = vcmask 258048  }
  0x33   :  { %v185_v51 = vor.u32 %v184_v42, %v181_v27  ;;  %v1264_v6 = vsel %vm4772_vm3, %v1262_v44, %v1263_v41  ;;  %vm206_vm2 = vsmask.f32 4354  ;;  %v1011_v58 = vrot.slane %v1263_v41, 4 }
  0x34   :  { %817 = vrot.lane.b32.xlu0 %v592_v19, %s4650_s8  ;;  %v616_v3 = vor.u32 %v615_v50, %v611_v48  ;;  %v606_v4 = vor.u32 %v605_v34, %v4939_v10  ;;  %vm5047_vm9 = vmand %vm205_vm5, %vm206_vm2  ;;  %v217_v41 = vshll.u32 %v5036_v20, 16  ;;  %vm6849_vm5 = vcmask 257024  }
  0x35   :  { %v191_v55 = vsel %vm4990_vm11, %v185_v51, %v190_v45  ;;  %vm6850_vm2 = vsmask.f32 2304 }
  0x36   :  { %819 = vrot.lane.b32.xlu1 %v602_v21, %s4650_s8  ;;  %v2080_v56 = vld [vmem:[#allocation2 + $0x18] sm:$0xff]  ;;  %192 = vst [vmem:[#allocation2 + $0x20] sm:$0xf8] %v191_v55  ;;  %v617_v9 = vrot.slane %v616_v3, 4  ;;  %v607_v13 = vrot.slane %v606_v4, 4 }
  0x37   :  { %v4987_v47 = vcombine.low %v2080_v56, %v2080_v56  ;;  %v5025_v15 = vcombine.high %v2080_v56, %v2080_v56 }
  0x38   :  { %1075 = vrot.lane.b32.xlu0 %v4873_v2, %s4649_s7  ;;  %v2448_v2 = vor.u32 %v2447_v37, %v2444_v35  ;;  %v612_v0 = vsel %vm4838_vm13, %v607_v13, %v611_v48 }
  0x39   :  { %v2167_v52 = vrot.slane %v4987_v47, 6  ;;  %v2452_v53 = vshrl.u32 %v4987_v47, 16  ;;  %v2455_v54 = vshll.u32 %v4987_v47, 16  ;;  %v1919_v23 = vrot.slane %v5025_v15, 6 }
  0x3a   :  { %1077 = vrot.lane.b32.xlu1 %v1007_v33, %s4649_s7  ;;  %v2450_v7 = vrot.slane %v2448_v2, 4  ;;  %v2449_v43 = vsel %vm4907_vm14, %v2440_v1, %v2448_v2  ;;  %v1012_v36 = vrot.slane %v4987_v47, 5  ;;  %v2462_v27 = vshrl.u32 %v5025_v15, 16  ;;  %v1430_v1 = vld [vmem:[#allocation2 + $0x8] sm:$0xff] }
  0x3b   :  { %v2168_v59 = vsel %vm4780_vm4, %v2166_v38, %v2167_v52  ;;  %v2454_v30 = vrot.slane %v2452_v53, 6  ;;  %v2457_v63 = vrot.slane %v2455_v54, 7  ;;  %v5027_v16 = vrot.slane %v2455_v54, 5 }
  0x3c   :  { %2236 = vrot.lane.b32.xlu0 %v4882_v29, %s4649_s7  ;;  %v4536_v29 = vld [vmem:[%s6803_s0 + $0x1c] ss:$0 sps:$4 sm:$0xff]   ;;  %v1918_v22 = vrot.slane %v2167_v52, 4  ;;  %v2465_v28 = vshll.u32 %v5025_v15, 16  ;;  %v1013_v38 = vsel %vm4772_vm3, %v1011_v58, %v1012_v36  ;;  %v2464_v42 = vrot.slane %v2462_v27, 6 }
  0x3d   :  { %v5013_v8 = vor.u32 %v2457_v63, %v2454_v30  ;;  %v198_v18 = vshrl.u32 %v4536_v29, 16  ;;  %v201_v19 = vshll.u32 %v4536_v29, 16  ;;  %v622_v21 = vsel %vm4838_vm13, %v617_v9, %v5027_v16  ;;  %v2081_v26 = vld [vmem:[#allocation2 + $0x20] sm:$0xff]  ;;  %v225_v63 = vld [vmem:[#allocation2 + $0x30] sm:$0x80] }
  0x3e   :  { %2238 = vrot.lane.b32.xlu1 %v2168_v59, %s4649_s7  ;;  %v1920_v35 = vsel %vm4780_vm4, %v1918_v22, %v1919_v23  ;;  %v5053_v37 = vcombine.low %v2081_v26, %v2081_v26  ;;  %v2467_v44 = vrot.slane %v2465_v28, 7  ;;  %v2172_v48 = vrot.slane %v1919_v23, 4 }
  0x3f   :  { %v2459_v10 = vsel %vm4907_vm14, %v2450_v7, %v5013_v8  ;;  %v200_v25 = vrot.slane %v198_v18, 7  ;;  %v1268_v52 = vrot.slane %v1012_v36, 4  ;;  %v1269_v2 = vrot.slane %v5025_v15, 5  ;;  %v4542_v18 = vld [vmem:[#allocation2 + $0x4] ss:$0 sps:$4 sm:$0xee]  }
  0x40   :  { %1332 = vrot.lane.b32.xlu0 %v1007_v33, %s4651_s13  ;;  %v208_v33 = vld [vmem:[#allocation2 + $0x28] sm:$0x1f]  ;;  %v2173_v50 = vrot.slane %v5053_v37, 6  ;;  %v2472_v34 = vshrl.u32 %v5053_v37, 16  ;;  %v2475_v51 = vshll.u32 %v5053_v37, 16  ;;  %v2468_v54 = vor.u32 %v2467_v44, %v2464_v42 }
  0x41   :  { %v203_v56 = vor.u32 %v201_v19, %v200_v25  ;;  %v631_v55 = vrot.slane %v2465_v28, 5  ;;  %v625_v30 = vrot.slane %v2452_v53, 4  ;;  %v5074_v7 = vrot.slane %v217_v41, 1 }
  0x42   :  { %1334 = vrot.lane.b32.xlu1 %v1264_v6, %s4651_s13  ;;  %v2174_v3 = vsel %vm4780_vm4, %v2172_v48, %v2173_v50  ;;  %v2474_v4 = vrot.slane %v2472_v34, 6  ;;  %v2460_v47 = vrot.slane %v5013_v8, 4  ;;  %v5085_v13 = vsel %vm4772_vm3, %v1268_v52, %v1269_v2 }
  0x43   :  { %v209_v45 = vsel %vm5047_vm9, %v203_v56, %v208_v33  ;;  %v226_v29 = vsel %vm4725_vm12, %v5074_v7, %v225_v63  ;;  %v626_v9 = vor.u32 %v625_v30, %v5027_v16  ;;  %v5095_v16 = vcombine.high %v2081_v26, %v2081_v26 }
  0x44   :  { %2674 = vrot.lane.b32.xlu0 %v2449_v43, %s4651_s13  ;;  %210 = vst [vmem:[#allocation2 + $0x28] sm:$0x1f] %v209_v45  ;;  %v4063_v43 = vcombine.low %v1430_v1, %v1430_v1  ;;  %227 = vst [vmem:[#allocation2 + $0x30] sm:$0x80] %v226_v29  ;;  %v2469_v8 = vsel %vm4907_vm14, %v2460_v47, %v2468_v54  ;;  %v5100_v23 = vrot.slane %v2475_v51, 5  ;;  %v1512_v25 = vshrl.u32 %v4542_v18, 16 }
  0x45   :  { %v1515_v58 = vshll.u32 %v4542_v18, 16  ;;  %vm1509_vm12 = vsmask.f32 6416  ;;  %v1925_v28 = vrot.slane %v5095_v16, 6  ;;  %v1017_v33 = vrot.slane %v1269_v2, 4 }
  0x46   :  { %2676 = vrot.lane.b32.xlu1 %v2459_v10, %s4651_s13  ;;  %v2470_v10 = vrot.slane %v2468_v54, 4  ;;  %456 = vst.msk [vmem:[#allocation3 + $0x18] sm:$0xf] %vm6849_vm5, %v4063_v43  ;;  %v1521_v17 = vshrl.u32 %v4063_v43, 16  ;;  %v1514_v41 = vrot.slane %v1512_v25, 5  ;;  %v2482_v44 = vshrl.u32 %v5095_v16, 16  ;;  %vm5118_vm5 = vmor %vm6850_vm2, %vm1509_vm12 }
  0x47   :  { %v1517_v42 = vrot.slane %v1515_v58, 6  ;;  %v2485_v48 = vshll.u32 %v5095_v16, 16  ;;  %v4064_v54 = vcombine.high %v1430_v1, %v1430_v1  ;;  %vm6853_vm12 = vcmask 257024  }
  0x48   :  { %821 = vrot.lane.b32.xlu0 %v612_v0, %s4650_s8  ;;  %v1524_v0 = vshll.u32 %v4063_v43, 16  ;;  %v1523_v36 = vrot.slane %v1521_v17, 5  ;;  %v2484_v63 = vrot.slane %v2482_v44, 6  ;;  %vm6854_vm2 = vmmov %vm6853_vm12  ;;  %v655_v25 = vrot.slane %v2482_v44, 4 }
  0x49   :  { %v1518_v52 = vor.u32 %v1517_v42, %v1514_v41  ;;  %457 = vst.msk [vmem:[#allocation3 + $0x24] sm:$0xf] %vm6853_vm12, %v4064_v54  ;;  %v2487_v29 = vrot.slane %v2485_v48, 7  ;;  %v645_v58 = vrot.slane %v2472_v34, 4  ;;  %vm6855_vm12 = vmmov %vm6854_vm2  ;;  %v352_v34 = vld [vmem:[#allocation2] sm:$0xff] }
  0x4a   :  { %823 = vrot.lane.b32.xlu1 %v622_v21, %s4650_s8  ;;  %v627_v21 = vrot.slane %v626_v9, 4  ;;  %v2178_v9 = vrot.slane %v1925_v28, 4  ;;  %vm6858_vm7 = vmmov %vm6854_vm2 }
  0x4b   :  { %v5111_v45 = vld [vmem:[#allocation2 + $0x28] sm:$0xff]  ;;  %v1519_v30 = vrot.slane %v1518_v52, 4  ;;  %v646_v42 = vor.u32 %v645_v58, %v5100_v23  ;;  %v3957_v52 = vcombine.low %v352_v34, %v352_v34 }
  0x4c   :  { %1986 = vrot.lane.b32.xlu0 %v2168_v59, %s4650_s8  ;;  %v635_v59 = vrot.slane %v2462_v27, 4  ;;  %v1526_v27 = vrot.slane %v1524_v0, 6  ;;  %v632_v26 = vsel %vm4838_vm13, %v627_v21, %v631_v55  ;;  %v1431_v0 = vld [vmem:[#allocation2 + $0x10] sm:$0xff]  ;;  %v2488_v21 = vor.u32 %v2487_v29, %v2484_v63 }
  0x4d   :  { %v220_v63 = vshrl.u32 %v5036_v20, 16 }
  0x4e   :  { %1988 = vrot.lane.b32.xlu1 %v1920_v35, %s4650_s8  ;;  %v636_v53 = vor.u32 %v635_v59, %v631_v55  ;;  %v5129_v59 = vcombine.low %v5111_v45, %v5111_v45 }
  0x50   :  { %1079 = vrot.lane.b32.xlu0 %v1264_v6, %s4649_s7  ;;  %v2477_v6 = vrot.slane %v2475_v51, 7  ;;  %v637_v19 = vrot.slane %v636_v53, 4  ;;  %v1527_v51 = vor.u32 %v1526_v27, %v1523_v36  ;;  %v2492_v18 = vshrl.u32 %v5129_v59, 16 }
  0x51   :  { %v2495_v17 = vshll.u32 %v5129_v59, 16  ;;  %v5150_v27 = vcombine.low %v1431_v0, %v1431_v0 }
  0x52   :  { %1081 = vrot.lane.b32.xlu1 %v1013_v38, %s4649_s7  ;;  %v5087_v15 = vor.u32 %v2477_v6, %v2474_v4  ;;  %v642_v56 = vsel %vm4838_vm13, %v637_v19, %v5100_v23  ;;  %v1531_v4 = vshrl.u32 %v4064_v54, 16  ;;  %v1534_v6 = vshll.u32 %v4064_v54, 16  ;;  %v228_v23 = vld [vmem:[#allocation2 + $0x38] sm:$0xf] }
  0x53   :  { %v1528_v43 = vsel %vm5118_vm5, %v1519_v30, %v1527_v51  ;;  %v1529_v1 = vrot.slane %v1527_v51, 4  ;;  %458 = vst.msk [vmem:[#allocation3 + $0x30] sm:$0xf] %vm6854_vm2, %v5150_v27  ;;  %v665_v39 = vrot.slane %v2492_v18, 4 }
  0x54   :  { %2240 = vrot.lane.b32.xlu0 %v1920_v35, %s4649_s7  ;;  %v2479_v22 = vsel %vm4907_vm14, %v2470_v10, %v5087_v15  ;;  %v1018_v35 = vrot.slane %v5053_v37, 5  ;;  %1794 = vst.msk [vmem:[#allocation3 + $0x4] sm:$0xf] %vm6854_vm2, %v1528_v43  ;;  %v1533_v47 = vrot.slane %v1531_v4, 5  ;;  %v1536_v53 = vrot.slane %v1534_v6, 6 }
  0x55   :  { %v2179_v10 = vrot.slane %v5129_v59, 6  ;;  %v2480_v37 = vrot.slane %v5087_v15, 4  ;;  %v2490_v15 = vrot.slane %v2488_v21, 4  ;;  %v647_v43 = vrot.slane %v646_v42, 4 }
  0x56   :  { %2242 = vrot.lane.b32.xlu1 %v2174_v3, %s4649_s7  ;;  %v1537_v19 = vor.u32 %v1536_v53, %v1533_v47  ;;  %v5192_v47 = vcombine.high %v1431_v0, %v1431_v0  ;;  %v3958_v53 = vcombine.high %v352_v34, %v352_v34  ;;  %v245_v0 = vld [vmem:[#allocation2 + $0x38] sm:$0xf0]  ;;  %v4652_v42 = vmov 0.0  }
  0x57   :  { %v2489_v30 = vsel %vm4907_vm14, %v2480_v37, %v2488_v21  ;;  %4377 = vmatprep.subr.bf16.mxu1 %v4652_v42 }
  0x58   :  { %1336 = vrot.lane.b32.xlu0 %v1013_v38, %s4651_s13  ;;  %v1924_v38 = vrot.slane %v2173_v50, 4  ;;  %v1019_v50 = vsel %vm4772_vm3, %v1017_v33, %v1018_v35  ;;  %v1538_v36 = vsel %vm5118_vm5, %v1529_v1, %v1537_v19  ;;  %v1539_v44 = vrot.slane %v1537_v19, 4  ;;  %459 = vst.msk [vmem:[#allocation3 + $0x3c] sm:$0xf] %vm6858_vm7, %v5192_v47  ;;  %vm6859_vm7 = vmmov %vm6854_vm2 }
  0x59   :  { %1795 = vst.msk [vmem:[#allocation3 + $0x10] sm:$0xf] %vm6855_vm12, %v1538_v36  ;;  %vm6856_vm12 = vmmov %vm6854_vm2  ;;  %v222_v1 = vor.u32 %v220_v63, %v5074_v7  ;;  %v5203_v19 = vrot.slane %v2495_v17, 5  ;;  %v1551_v21 = vshrl.u32 %v5192_v47, 16  ;;  %v1554_v58 = vshll.u32 %v5192_v47, 16 }
  0x5a   :  { %1338 = vrot.lane.b32.xlu1 %v5085_v13, %s4651_s13  ;;  %v1926_v55 = vsel %vm4780_vm4, %v1924_v38, %v1925_v28  ;;  %v2497_v28 = vrot.slane %v2495_v17, 7  ;;  %v4553_v38 = vld [vmem:[%s6803_s0 + $0x24] ss:$0 sps:$4 sm:$0xff]   ;;  %454 = vst.msk [vmem:[#allocation3] sm:$0xf] %vm6856_vm12, %v3957_v52  ;;  %vm6857_vm12 = vmmov %vm6854_vm2  ;;  %v1024_v36 = vrot.slane %v5129_v59, 5 }
  0x5b   :  { %v236_v6 = vshrl.u32 %v4553_v38, 16  ;;  %v239_v29 = vshll.u32 %v4553_v38, 16  ;;  %v229_v7 = vsel %vm4742_vm15, %v222_v1, %v228_v23  ;;  %455 = vst.msk [vmem:[#allocation3 + $0xc] sm:$0xf] %vm6857_vm12, %v3958_v53  ;;  %vm4653_vm15 = vmmov 0  }
  0x5c   :  { %2678 = vrot.lane.b32.xlu0 %v2469_v8, %s4651_s13  ;;  %v1275_v8 = vrot.slane %v5095_v16, 5  ;;  %230 = vst [vmem:[#allocation2 + $0x38] sm:$0xf] %v229_v7  ;;  %v1930_v16 = vrot.slane %v2179_v10, 4  ;;  %4381 = vmatprep.mubr.msk.bf16.mxu1 %vm4653_vm15, %v4652_v42  ;;  %v248_v23 = vld [vmem:[#allocation2 + $0x40] sm:$0x1] }
  0x5e   :  { %2680 = vrot.lane.b32.xlu1 %v2479_v22, %s4651_s13  ;;  %v5143_v22 = vrot.slane %v2485_v48, 5  ;;  %v1023_v17 = vrot.slane %v1275_v8, 4 }
  0x60   :  { %825 = vrot.lane.b32.xlu0 %v632_v26, %s4650_s8  ;;  %v5156_v26 = vsel %vm4780_vm4, %v2178_v9, %v2179_v10  ;;  %v656_v41 = vor.u32 %v655_v25, %v5143_v22  ;;  %v5198_v9 = vrot.slane %v236_v6, 3  ;;  %v652_v32 = vsel %vm4838_vm13, %v647_v43, %v5143_v22 }
  0x62   :  { %827 = vrot.lane.b32.xlu1 %v642_v56, %s4650_s8  ;;  %v1544_v56 = vshll.u32 %v5150_v27, 16  ;;  %v657_v20 = vrot.slane %v656_v41, 4  ;;  %v249_v7 = vsel %vm4748_vm6, %v5198_v9, %v248_v23  ;;  %vm6862_vm6 = vmmov %vm6859_vm7 }
  0x63   :  { %250 = vst [vmem:[#allocation2 + $0x40] sm:$0x1] %v249_v7 }
  0x64   :  { %1990 = vrot.lane.b32.xlu0 %v2174_v3, %s4650_s8  ;;  %v1274_v3 = vrot.slane %v1018_v35, 4  ;;  %v1541_v35 = vshrl.u32 %v5150_v27, 16  ;;  %v1546_v51 = vrot.slane %v1544_v56, 6  ;;  %v1556_v56 = vrot.slane %v1554_v58, 6 }
  0x65   :  { %v662_v22 = vsel %vm4838_vm13, %v657_v20, %v5203_v19  ;;  %v4572_v20 = vld [vmem:[%s6803_s0 + $0x2c] ss:$0 sps:$4 sm:$0xff]  }
  0x66   :  { %1992 = vrot.lane.b32.xlu1 %v1926_v55, %s4650_s8  ;;  %v5166_v33 = vsel %vm4772_vm3, %v1274_v3, %v1275_v8  ;;  %v1543_v48 = vrot.slane %v1541_v35, 5  ;;  %v241_v3 = vrot.slane %v239_v29, 4  ;;  %v4563_v8 = vld [vmem:[%s6804_s1 + $0x80] sm:$0xff]   ;;  %v4571_v29 = vld [vmem:[%s6803_s0 + $0x28] ss:$0 sps:$4 sm:$0xff]  }
  0x67   :  { %4378 = vmatpush3.bf16.msra.mxu1 %v4563_v8 }
  0x68   :  { %1083 = vrot.lane.b32.xlu0 %v5085_v13, %s4649_s7  ;;  %v2494_v13 = vrot.slane %v2492_v18, 6  ;;  %v1547_v4 = vor.u32 %v1546_v51, %v1543_v48  ;;  %v242_v25 = vor.u32 %v241_v3, %v5198_v9  ;;  %4379 = vmatprep.subr.bf16.mxu1 %v4652_v42 }
  0x6a   :  { %1085 = vrot.lane.b32.xlu1 %v1019_v50, %s4649_s7  ;;  %v5180_v54 = vor.u32 %v2497_v28, %v2494_v13  ;;  %v5221_v13 = vld [vmem:[#allocation2 + $0x30] sm:$0xff]  ;;  %v1553_v28 = vrot.slane %v1551_v21, 5  ;;  %v246_v34 = vsel %vm4752_vm8, %v242_v25, %v245_v0  ;;  %v1549_v35 = vrot.slane %v1547_v4, 4 }
  0x6b   :  { %247 = vst [vmem:[#allocation2 + $0x38] sm:$0xf0] %v246_v34  ;;  %v5237_v38 = vcombine.low %v5221_v13, %v5221_v13  ;;  %vm2848_vm8 = vcmask 1040384   ;;  %v1280_v0 = vrot.slane %v1024_v36, 4  ;;  %v2856_v25 = vrot.slane %v5150_v27, 7 }
  0x6c   :  { %2244 = vrot.lane.b32.xlu0 %v1926_v55, %s4649_s7  ;;  %v5187_v55 = vcombine.high %v5111_v45, %v5111_v45  ;;  %v1548_v45 = vsel %vm5118_vm5, %v1539_v44, %v1547_v4  ;;  %v5239_v40 = vor.u32 %v1556_v56, %v1553_v28  ;;  %v2770_v44 = vld [vmem:[#allocation2 + $0x8] sm:$0xf8]  ;;  %v259_v28 = vshll.u32 %v4571_v29, 16 }
  0x6d   :  { %1796 = vst.msk [vmem:[#allocation3 + $0x1c] sm:$0xf] %vm6854_vm2, %v1548_v45  ;;  %v2185_v63 = vrot.slane %v5237_v38, 6  ;;  %v4168_v4 = vcombine.low %v2770_v44, %v2770_v44  ;;  %v4169_v6 = vcombine.high %v2770_v44, %v2770_v44  ;;  %vm2849_vm2 = vcmask 1044484  }
  0x6e   :  { %2246 = vrot.lane.b32.xlu1 %v5156_v26, %s4649_s7  ;;  %v2182_v37 = vrot.slane %v5187_v55, 6  ;;  %v1558_v41 = vsel %vm5118_vm5, %v1549_v35, %v5239_v40  ;;  %v2502_v51 = vshrl.u32 %v5187_v55, 16  ;;  %v2505_v52 = vshll.u32 %v5187_v55, 16  ;;  %vm5274_vm12 = vmor %vm2848_vm8, %vm2849_vm2 }
  0x6f   :  { %1797 = vst.msk [vmem:[#allocation3 + $0x28] sm:$0xf] %vm6859_vm7, %v1558_v41  ;;  %v2512_v43 = vshrl.u32 %v5237_v38, 16  ;;  %v2515_v1 = vshll.u32 %v5237_v38, 16  ;;  %v4194_v53 = vrot.slane %v4168_v4, 11  ;;  %v1281_v21 = vrot.slane %v5187_v55, 5  ;;  %vm6863_vm7 = vmmov %vm6862_vm6 }
  0x70   :  { %1340 = vrot.lane.b32.xlu0 %v1019_v50, %s4651_s13  ;;  %v2499_v50 = vsel %vm4907_vm14, %v2490_v15, %v5180_v54  ;;  %v5245_v15 = vsel %vm4772_vm3, %v1023_v17, %v1024_v36  ;;  %v2184_v10 = vrot.slane %v2182_v37, 4  ;;  %v1932_v48 = vsel %vm4780_vm4, %v1930_v16, %v2182_v37  ;;  %v264_v41 = vld [vmem:[#allocation2 + $0x40] sm:$0x3e] }
  0x71   :  { %v2504_v45 = vrot.slane %v2502_v51, 6  ;;  %v5285_v58 = vrot.slane %v2505_v52, 5  ;;  %v256_v17 = vshrl.u32 %v4571_v29, 16  ;;  %v272_v37 = vshrl.u32 %v4572_v20, 16  ;;  %v1432_v29 = vld [vmem:[#allocation2 + $0x18] sm:$0xff] }
  0x72   :  { %1342 = vrot.lane.b32.xlu1 %v5166_v33, %s4651_s13  ;;  %v5295_v34 = vsel %vm4780_vm4, %v2184_v10, %v2185_v63  ;;  %v2514_v35 = vrot.slane %v2512_v43, 6  ;;  %v2517_v56 = vrot.slane %v2515_v1, 7  ;;  %v5302_v59 = vcombine.high %v5221_v13, %v5221_v13 }
  0x73   :  { %v258_v16 = vrot.slane %v256_v17, 6  ;;  %v261_v8 = vrot.slane %v259_v28, 7  ;;  %v666_v13 = vor.u32 %v665_v39, %v5203_v19  ;;  %v274_v44 = vrot.slane %v272_v37, 1 }
  0x74   :  { %2682 = vrot.lane.b32.xlu0 %v2489_v30, %s4651_s13  ;;  %v4567_v30 = vld [vmem:[%s6804_s1 + $0x88] sm:$0xff]   ;;  %v1936_v4 = vrot.slane %v2185_v63, 4  ;;  %v1937_v23 = vrot.slane %v5302_v59, 6  ;;  %vm888_vm8 = vcmask 519424   ;;  %vm1146_vm2 = vcmask 781824  }
  0x75   :  { %4380 = vmatpush3.bf16.msra.mxu1 %v4567_v30  ;;  %v262_v30 = vor.u32 %v261_v8, %v258_v16  ;;  %v5341_v46 = vcombine.high %v1432_v29, %v1432_v29  ;;  %v2858_v55 = vrot.slane %v2856_v25, 4 }
  0x76   :  { %2684 = vrot.lane.b32.xlu1 %v2499_v50, %s4651_s13  ;;  %v2853_v50 = vrot.slane %v4169_v6, 7 }
  0x78   :  { %829 = vrot.lane.b32.xlu0 %v652_v32, %s4650_s8  ;;  %v675_v32 = vrot.slane %v2502_v51, 4  ;;  %v2854_v9 = vsel %vm5274_vm12, %v4194_v53, %v2853_v50  ;;  %v2855_v36 = vrot.slane %v2853_v50, 4  ;;  %v275_v51 = vshll.u32 %v4572_v20, 16  ;;  %v280_v20 = vld [vmem:[#allocation2 + $0x40] sm:$0xc0] }
  0x79   :  { %2952 = vst.msk [vmem:[#allocation3 + $0x8] sm:$0xf] %vm6862_vm6, %v2854_v9  ;;  %v265_v53 = vsel %vm4898_vm0, %v262_v30, %v264_v41  ;;  %v667_v50 = vrot.slane %v666_v13, 4  ;;  %vm6864_vm0 = vmmov %vm6862_vm6 }
  0x7a   :  { %831 = vrot.lane.b32.xlu1 %v662_v22, %s4650_s8  ;;  %v2857_v18 = vsel %vm5274_vm12, %v2855_v36, %v2856_v25  ;;  %v2500_v22 = vrot.slane %v5180_v54, 4  ;;  %v676_v10 = vor.u32 %v675_v32, %v5285_v58  ;;  %v277_v6 = vrot.slane %v275_v51, 2  ;;  %266 = vst [vmem:[#allocation2 + $0x40] sm:$0x3e] %v265_v53  ;;  %461 = vst.msk [vmem:[#allocation3 + $0x54] sm:$0xf] %vm6864_vm0, %v5341_v46 }
  0x7b   :  { %2953 = vst.msk [vmem:[#allocation3 + $0x14] sm:$0xf] %vm6863_vm7, %v2857_v18  ;;  %v5339_v32 = vcombine.low %v1432_v29, %v1432_v29  ;;  %v672_v24 = vsel %vm4838_vm13, %v667_v50, %v5285_v58  ;;  %v1029_v58 = vrot.slane %v1281_v21, 4  ;;  %v2525_v51 = vshll.u32 %v5302_v59, 16  ;;  %vm6867_vm6 = vmmov %vm6864_vm0 }
  0x7c   :  { %1994 = vrot.lane.b32.xlu0 %v5156_v26, %s4650_s8  ;;  %v2507_v26 = vrot.slane %v2505_v52, 7  ;;  %v5321_v52 = vor.u32 %v2517_v56, %v2514_v35  ;;  %v677_v63 = vrot.slane %v676_v10, 4  ;;  %v278_v7 = vor.u32 %v277_v6, %v274_v44  ;;  %vm6868_vm7 = vmmov %vm6864_vm0 }
  0x7d   :  { %v1561_v36 = vshrl.u32 %v5339_v32, 16  ;;  %v1564_v37 = vshll.u32 %v5339_v32, 16  ;;  %v1574_v35 = vshll.u32 %v5341_v46, 16  ;;  %v1559_v56 = vrot.slane %v5239_v40, 4 }
  0x7e   :  { %1996 = vrot.lane.b32.xlu1 %v1932_v48, %s4650_s8  ;;  %v281_v39 = vsel %vm4920_vm1, %v278_v7, %v280_v20  ;;  %vm6865_vm1 = vmmov %vm6864_vm0  ;;  %v1030_v44 = vrot.slane %v5237_v38, 5  ;;  %v2522_v40 = vshrl.u32 %v5302_v59, 16  ;;  %v2862_v6 = vrot.slane %v5339_v32, 7  ;;  %v4579_v20 = vld [vmem:[%s6803_s0 + $0x30] ss:$0 sps:$4 sm:$0xff]  }
  0x7f   :  { %282 = vst [vmem:[#allocation2 + $0x40] sm:$0xc0] %v281_v39  ;;  %460 = vst.msk [vmem:[#allocation3 + $0x48] sm:$0xf] %vm6865_vm1, %v5339_v32  ;;  %v1563_v16 = vrot.slane %v1561_v36, 5  ;;  %v1566_v8 = vrot.slane %v1564_v37, 6 }
  0x80   :  { %1087 = vrot.lane.b32.xlu0 %v5166_v33, %s4649_s7  ;;  %v2508_v33 = vor.u32 %v2507_v26, %v2504_v45  ;;  %v283_v45 = vld [vmem:[#allocation2 + $0x48] sm:$0x7]  ;;  %v5332_v26 = vrot.slane %v2515_v1, 5  ;;  %v5347_v1 = vsel %vm4780_vm4, %v1936_v4, %v1937_v23  ;;  %v1576_v13 = vrot.slane %v1574_v35, 6  ;;  %vm6869_vm1 = vmmov %vm6864_vm0 }
  0x81   :  { %v284_v9 = vsel %vm4963_vm10, %v278_v7, %v283_v45  ;;  %vm6866_vm10 = vcmask 261120   ;;  %v2524_v25 = vrot.slane %v2522_v40, 6  ;;  %v2527_v50 = vrot.slane %v2525_v51, 7 }
  0x82   :  { %1089 = vrot.lane.b32.xlu1 %v5245_v15, %s4649_s7  ;;  %v2510_v54 = vrot.slane %v2508_v33, 4  ;;  %v2509_v19 = vsel %vm4907_vm14, %v2500_v22, %v2508_v33  ;;  %v4570_v28 = vld [vmem:[#allocation3 + $0x8] ss:$12 sps:$4 sm:$0xff]   ;;  %v1571_v33 = vshrl.u32 %v5341_v46, 16  ;;  %285 = vst [vmem:[#allocation2 + $0x48] sm:$0x7] %v284_v9  ;;  %v682_v61 = vsel %vm4838_vm13, %v677_v63, %v5332_v26 }
  0x83   :  { %4382 = vmatmul.mubr.msk.bf16.vlgmr.msra.gmra.mrb[0].mxu1 %vm6866_vm10, %v4570_v28  ;;  %v5372_v22 = vld [vmem:[#allocation2 + $0x38] sm:$0xff]  ;;  %v2190_v63 = vrot.slane %v1937_v23, 4  ;;  %v291_v9 = vshrl.u32 %v4579_v20, 16  ;;  %vm1403_vm10 = vcmask 1044224   ;;  %v1286_v37 = vrot.slane %v1030_v44, 4 }
  0x84   :  { %2248 = vrot.lane.b32.xlu0 %v1932_v48, %s4649_s7  ;;  %v5319_v48 = vsel %vm4772_vm3, %v1280_v0, %v1281_v21  ;;  %v2519_v0 = vsel %vm4907_vm14, %v2510_v54, %v5321_v52  ;;  %v1573_v10 = vrot.slane %v1571_v33, 5  ;;  %4385 = vmatprep.mubr.msk.bf16.mxu1 %vm4653_vm15, %v4652_v42  ;;  %v1567_v54 = vor.u32 %v1566_v8, %v1563_v16  ;;  %v1433_v8 = vld [vmem:[#allocation2 + $0x20] sm:$0xff] }
  0x85   :  { %v5389_v4 = vcombine.low %v5372_v22, %v5372_v22  ;;  %v2859_v21 = vrot.slane %v5192_v47, 7  ;;  %v1287_v33 = vrot.slane %v5302_v59, 5  ;;  %v2520_v35 = vrot.slane %v5321_v52, 4 }
  0x86   :  { %2250 = vrot.lane.b32.xlu1 %v5295_v34, %s4649_s7  ;;  %v5384_v30 = vor.u32 %v1576_v13, %v1573_v10  ;;  %v1568_v53 = vsel %vm5118_vm5, %v1559_v56, %v1567_v54  ;;  %v2528_v56 = vor.u32 %v2527_v50, %v2524_v25  ;;  %v294_v52 = vshll.u32 %v4579_v20, 16 }
  0x87   :  { %1798 = vst.msk [vmem:[#allocation3 + $0x34] sm:$0xf] %vm6867_vm6, %v1568_v53  ;;  %v2860_v27 = vsel %vm5274_vm12, %v2858_v55, %v2859_v21  ;;  %v2861_v47 = vrot.slane %v2859_v21, 4  ;;  %v2191_v23 = vrot.slane %v5389_v4, 6  ;;  %v2532_v28 = vshrl.u32 %v5389_v4, 16 }
  0x88   :  { %1344 = vrot.lane.b32.xlu0 %v5245_v15, %s4651_s13  ;;  %2954 = vst.msk [vmem:[#allocation3 + $0x20] sm:$0xf] %vm6868_vm7, %v2860_v27  ;;  %v2535_v39 = vshll.u32 %v5389_v4, 16  ;;  %v5454_v13 = vsel %vm4772_vm3, %v1286_v37, %v1287_v33  ;;  %v2529_v21 = vsel %vm4907_vm14, %v2520_v35, %v2528_v56  ;;  %vm6870_vm6 = vcmask 261120   ;;  %vm6871_vm7 = vmmov %vm6864_vm0 }
  0x89   :  { %v2534_v59 = vrot.slane %v2532_v28, 6  ;;  %v5473_v53 = vcombine.high %v1433_v8, %v1433_v8  ;;  %v5482_v27 = vrot.slane %v1287_v33, 4  ;;  %v1942_v37 = vrot.slane %v2191_v23, 4 }
  0x8a   :  { %1346 = vrot.lane.b32.xlu1 %v5319_v48, %s4651_s13  ;;  %v5334_v15 = vpop.permute.xlu0 %1071  ;;  %v2537_v38 = vrot.slane %v2535_v39, 7 }
  0x8b   :  { %v1591_v50 = vshrl.u32 %v5473_v53, 16  ;;  %463 = vst.msk [vmem:[#allocation3 + $0x6c] sm:$0xf] %vm6864_vm0, %v5473_v53 }
  0x8c   :  { %v1979_v17 = vpop.permute.xlu1 %1978  ;;  %2686 = vrot.lane.b32.xlu0 %v2509_v19, %s4651_s13  ;;  %v1569_v19 = vrot.slane %v1567_v54, 4  ;;  %v5461_v54 = vcombine.low %v1433_v8, %v1433_v8  ;;  %v5463_v55 = vor.u32 %v2537_v38, %v2534_v59  ;;  %v2864_v38 = vrot.slane %v2862_v6, 4 }
  0x8d   :  { %2053 = vst.msk [vmem:[#allocation3 + $0x4] sm:$0xf] %vm888_vm8, %v1979_v17  ;;  %v1031_v17 = vsel %vm4772_vm3, %v1029_v58, %v1030_v44  ;;  %v296_v58 = vrot.slane %v294_v52, 5  ;;  %v299_v44 = vld [vmem:[#allocation2 + $0x48] sm:$0xf8]  ;;  %v1593_v35 = vrot.slane %v1591_v50, 5 }
  0x8e   :  { %2688 = vrot.lane.b32.xlu1 %v2519_v0, %s4651_s13  ;;  %v2233_v18 = vpop.permute.xlu0 %2232  ;;  %v1578_v7 = vsel %vm5118_vm5, %v1569_v19, %v5384_v30  ;;  %v1581_v20 = vshrl.u32 %v5461_v54, 16  ;;  %462 = vst.msk [vmem:[#allocation3 + $0x60] sm:$0xf] %vm6871_vm7, %v5461_v54  ;;  %vm6875_vm7 = vmmov %vm6864_vm0 }
  0x8f   :  { %2307 = vst.msk [vmem:[#allocation3 + $0x4] sm:$0xf] %vm1146_vm2, %v2233_v18  ;;  %v5441_v18 = vrot.slane %v2525_v51, 5 }
  0x90   :  { %v1981_v41 = vpop.permute.xlu1 %1980  ;;  %833 = vrot.lane.b32.xlu0 %v672_v24, %s4650_s8  ;;  %1799 = vst.msk [vmem:[#allocation3 + $0x40] sm:$0xf] %vm6864_vm0, %v1578_v7  ;;  %v5439_v24 = vsel %vm4780_vm4, %v2190_v63, %v2191_v23  ;;  %v1594_v7 = vshll.u32 %v5473_v53, 16  ;;  %v5518_v23 = vld [vmem:[%s6803_s0 + $0x34] ss:$0 sps:$4 sm:$0xff]  }
  0x91   :  { %2054 = vst.msk [vmem:[#allocation3 + $0x10] sm:$0xf] %vm888_vm8, %v1981_v41  ;;  %v310_v50 = vshll.u32 %v5518_v23, 16 }
  0x92   :  { %835 = vrot.lane.b32.xlu1 %v682_v61, %s4650_s8  ;;  %v1329_v29 = vpop.permute.xlu0 %1328  ;;  %v685_v61 = vrot.slane %v2512_v43, 4  ;;  %v293_v43 = vrot.slane %v291_v9, 4  ;;  %v1579_v9 = vrot.slane %v5384_v30, 4  ;;  %v1036_v30 = vrot.slane %v5389_v4, 5 }
  0x94   :  { %v5400_v45 = vpop.permute.xlu1 %1073  ;;  %1998 = vrot.lane.b32.xlu0 %v5295_v34, %s4650_s8  ;;  %v2863_v34 = vsel %vm5274_vm12, %v2861_v47, %v2862_v6  ;;  %v686_v41 = vor.u32 %v685_v61, %v5332_v26  ;;  %v297_v26 = vor.u32 %v296_v58, %v293_v43  ;;  %v1584_v47 = vshll.u32 %v5461_v54, 16  ;;  %v5538_v6 = vld [vmem:[#allocation2 + $0x40] sm:$0xff] }
  0x95   :  { %2955 = vst.msk [vmem:[#allocation3 + $0x2c] sm:$0xf] %vm6869_vm1, %v2863_v34  ;;  %v1596_v61 = vrot.slane %v1594_v7, 6  ;;  %vm6873_vm1 = vmmov %vm6864_vm0 }
  0x96   :  { %2000 = vrot.lane.b32.xlu1 %v5347_v1, %s4650_s8  ;;  %v1983_v0 = vpop.permute.xlu0 %1982  ;;  %v687_v63 = vrot.slane %v686_v41, 4  ;;  %v2868_v41 = vrot.slane %v5461_v54, 7 }
  0x97   :  { %2055 = vst.msk [vmem:[#allocation3 + $0x1c] sm:$0xf] %vm888_vm8, %v1983_v0  ;;  %v5501_v0 = vrot.slane %v2535_v39, 5  ;;  %v5522_v59 = vor.u32 %v1596_v61, %v1593_v35 }
  0x98   :  { %v2235_v36 = vpop.permute.xlu1 %2234  ;;  %1091 = vrot.lane.b32.xlu0 %v5319_v48, %s4649_s7  ;;  %v695_v48 = vrot.slane %v2522_v40, 4  ;;  %v2530_v40 = vrot.slane %v2528_v56, 4  ;;  %v692_v39 = vsel %vm4838_vm13, %v687_v63, %v5441_v18  ;;  %v5561_v63 = vcombine.low %v5538_v6, %v5538_v6 }
  0x99   :  { %2308 = vst.msk [vmem:[#allocation3 + $0x10] sm:$0xf] %vm1146_vm2, %v2235_v36 }
  0x9a   :  { %1093 = vrot.lane.b32.xlu1 %v1031_v17, %s4649_s7  ;;  %v814_v16 = vpop.permute.xlu0 %813  ;;  %v696_v51 = vor.u32 %v695_v48, %v5441_v18  ;;  %v2539_v34 = vsel %vm4907_vm14, %v2530_v40, %v5463_v55  ;;  %v2865_v18 = vrot.slane %v5341_v46, 7  ;;  %v2555_v35 = vshll.u32 %v5561_v63, 16 }
  0x9b   :  { %889 = vst.msk [vmem:[#allocation3] sm:$0xf] %vm888_vm8, %v814_v16 }
  0x9c   :  { %v1331_v10 = vpop.permute.xlu1 %1330  ;;  %1147 = vst.msk [vmem:[#allocation3] sm:$0xf] %vm1146_vm2, %v5334_v15  ;;  %2252 = vrot.lane.b32.xlu0 %v5347_v1, %s4649_s7  ;;  %v4578_v15 = vld [vmem:[#allocation3 + $0x20] ss:$12 sps:$4 sm:$0xff]   ;;  %v697_v25 = vrot.slane %v696_v51, 4  ;;  %v2866_v46 = vsel %vm5274_vm12, %v2864_v38, %v2865_v18  ;;  %v307_v51 = vshrl.u32 %v5518_v23, 16 }
  0x9d   :  { %1404 = vst.msk [vmem:[#allocation3] sm:$0xf] %vm1403_vm10, %v1329_v29  ;;  %v5470_v29 = vcombine.high %v5372_v22, %v5372_v22  ;;  %4386 = vmatmul.mubr.msk.bf16.gmra.mrb[4].mxu1 %vm6870_vm6, %v4578_v15  ;;  %v300_v22 = vsel %vm4990_vm11, %v297_v26, %v299_v44  ;;  %vm6872_vm11 = vmmov %vm6864_vm0  ;;  %v2867_v44 = vrot.slane %v2865_v18, 4  ;;  %v4588_v15 = vld [vmem:[%s6803_s0 + $0x38] ss:$0 sps:$4 sm:$0xff]   ;;  %v1292_v23 = vrot.slane %v1036_v30, 4 }
  0x9e   :  { %2254 = vrot.lane.b32.xlu1 %v5439_v24, %s4649_s7  ;;  %v816_v1 = vpop.permute.xlu0 %815  ;;  %4389 = vmatprep.mubr.msk.bf16.mxu1 %vm4653_vm15, %v4652_v42  ;;  %301 = vst [vmem:[#allocation2 + $0x48] sm:$0xf8] %v300_v22  ;;  %v702_v52 = vsel %vm4838_vm13, %v697_v25, %v5501_v0  ;;  %2956 = vst.msk [vmem:[#allocation3 + $0x38] sm:$0xf] %vm6873_vm1, %v2866_v46  ;;  %v309_v22 = vrot.slane %v307_v51, 7  ;;  %v2540_v18 = vrot.slane %v5463_v55, 4  ;;  %vm6878_vm1 = vnez %v6816_v5 }
  0x9f   :  { %890 = vst.msk [vmem:[#allocation3 + $0xc] sm:$0xf] %vm888_vm8, %v816_v1  ;;  %v1943_v33 = vrot.slane %v5470_v29, 6  ;;  %v2542_v56 = vshrl.u32 %v5470_v29, 16  ;;  %v2545_v16 = vshll.u32 %v5470_v29, 16  ;;  %v1434_v1 = vld [vmem:[#allocation2 + $0x28] sm:$0xff]  ;;  %vm6874_vm6 = vmmov %vm6864_vm0 }
  0xa0   :  { %v1985_v19 = vpop.permute.xlu1 %1984  ;;  %1148 = vst.msk [vmem:[#allocation3 + $0xc] sm:$0xf] %vm1146_vm2, %v5400_v45  ;;  %1348 = vrot.lane.b32.xlu0 %v1031_v17, %s4651_s13  ;;  %v1583_v45 = vrot.slane %v1581_v20, 5  ;;  %v1586_v17 = vrot.slane %v1584_v47, 6  ;;  %v5566_v7 = vcombine.low %v1434_v1, %v1434_v1  ;;  %v330_v51 = vld [vmem:[#allocation2 + $0x50] sm:$0xe0] }
  0xa1   :  { %2056 = vst.msk [vmem:[#allocation3 + $0x28] sm:$0xf] %vm888_vm8, %v1985_v19  ;;  %v5536_v32 = vsel %vm4780_vm4, %v1942_v37, %v1943_v33  ;;  %v2547_v26 = vrot.slane %v2545_v16, 7  ;;  %v2869_v19 = vsel %vm5274_vm12, %v2867_v44, %v2868_v41  ;;  %v1293_v37 = vrot.slane %v5470_v29, 5  ;;  %v4595_v29 = vld [vmem:[%s6803_s0 + $0x3c] ss:$0 sps:$4 sm:$0xff]  }
  0xa2   :  { %1405 = vst.msk [vmem:[#allocation3 + $0xc] sm:$0xf] %vm1403_vm10, %v1331_v10  ;;  %1350 = vrot.lane.b32.xlu1 %v5454_v13, %s4651_s13  ;;  %v2671_v49 = vpop.permute.xlu0 %2670  ;;  %v1587_v48 = vor.u32 %v1586_v17, %v1583_v45  ;;  %v705_v17 = vrot.slane %v2532_v28, 4  ;;  %v2197_v28 = vrot.slane %v5561_v63, 6  ;;  %v5592_v61 = vrot.slane %v2545_v16, 5 }
  0xa3   :  { %2745 = vst.msk [vmem:[#allocation3 + $0x4] sm:$0xf] %vm1403_vm10, %v2671_v49  ;;  %v5568_v49 = vcombine.high %v1434_v1, %v1434_v1  ;;  %v5622_v31 = vsel %vm4772_vm3, %v1292_v23, %v1293_v37 }
  0xa4   :  { %v2673_v36 = vpop.permute.xlu1 %2672  ;;  %2690 = vrot.lane.b32.xlu0 %v2529_v21, %s4651_s13  ;;  %v1589_v8 = vrot.slane %v1587_v48, 4  ;;  %v1588_v10 = vsel %vm5118_vm5, %v1579_v9, %v1587_v48  ;;  %v2544_v21 = vrot.slane %v2542_v56, 6  ;;  %2957 = vst.msk [vmem:[#allocation3 + $0x44] sm:$0xf] %vm6875_vm7, %v2869_v19  ;;  %v322_v9 = vshrl.u32 %v4588_v15, 16  ;;  %vm6880_vm7 = vmmov %vm6864_vm0 }
  0xa5   :  { %2746 = vst.msk [vmem:[#allocation3 + $0x10] sm:$0xf] %vm1403_vm10, %v2673_v36  ;;  %v2196_v36 = vrot.slane %v1943_v33, 4  ;;  %v314_v33 = vld [vmem:[#allocation2 + $0x50] sm:$0x1f]  ;;  %v706_v16 = vor.u32 %v705_v17, %v5501_v0  ;;  %v1614_v17 = vshll.u32 %v5568_v49, 16 }
  0xa6   :  { %2692 = vrot.lane.b32.xlu1 %v2539_v34, %s4651_s13  ;;  %v818_v43 = vpop.permute.xlu0 %817  ;;  %1800 = vst.msk [vmem:[#allocation3 + $0x4c] sm:$0xf] %vm6872_vm11, %v1588_v10  ;;  %v1598_v40 = vsel %vm5118_vm5, %v1589_v8, %v5522_v59  ;;  %v5578_v34 = vsel %vm4772_vm3, %v5482_v27, %v1036_v30  ;;  %vm6876_vm11 = vmmov %vm6864_vm0  ;;  %v2548_v38 = vor.u32 %v2547_v26, %v2544_v21  ;;  %v2557_v30 = vrot.slane %v2555_v35, 7 }
  0xa7   :  { %891 = vst.msk [vmem:[#allocation3 + $0x18] sm:$0xf] %vm888_vm8, %v818_v43  ;;  %v312_v43 = vor.u32 %v310_v50, %v309_v22  ;;  %v5634_v1 = vrot.slane %v706_v16, 4  ;;  %v1601_v26 = vshrl.u32 %v5566_v7, 16  ;;  %v1948_v54 = vrot.slane %v2197_v28, 4 }
  0xa8   :  { %v820_v58 = vpop.permute.xlu1 %819  ;;  %837 = vrot.lane.b32.xlu0 %v692_v39, %s4650_s8  ;;  %1801 = vst.msk [vmem:[#allocation3 + $0x58] sm:$0xf] %vm6874_vm6, %v1598_v40  ;;  %v715_v39 = vrot.slane %v2542_v56, 4  ;;  %v325_v56 = vshll.u32 %v4588_v15, 16  ;;  %v2550_v44 = vrot.slane %v2548_v38, 4  ;;  %v2549_v40 = vsel %vm4907_vm14, %v2540_v18, %v2548_v38  ;;  %vm6879_vm6 = vmmov %vm6864_vm0 }
  0xa9   :  { %892 = vst.msk [vmem:[#allocation3 + $0x24] sm:$0xf] %vm888_vm8, %v820_v58  ;;  %v4564_v25 = vld [vmem:[#allocation3] ss:$12 sps:$4 sm:$0xff]   ;;  %v315_v8 = vsel %vm5047_vm9, %v312_v43, %v314_v33  ;;  %vm6877_vm9 = vcmask 261120   ;;  %v5632_v15 = vcombine.high %v5538_v6, %v5538_v6  ;;  %v712_v5 = vsel %vm4838_vm13, %v5634_v1, %v5592_v61 }
  0xaa   :  { %839 = vrot.lane.b32.xlu1 %v702_v52, %s4650_s8  ;;  %v1076_v20 = vpop.permute.xlu0 %1075  ;;  %465 = vst.msk [vmem:[#allocation3 + $0x84] sm:$0xf] %vm6864_vm0, %v5568_v49  ;;  %v324_v52 = vrot.slane %v322_v9, 2  ;;  %v716_v0 = vor.u32 %v715_v39, %v5592_v61  ;;  %316 = vst [vmem:[#allocation2 + $0x50] sm:$0x1f] %v315_v8  ;;  %v327_v58 = vrot.slane %v325_v56, 3  ;;  %vm6881_vm0 = vnez %v6818_v11 }
  0xab   :  { %1149 = vst.msk [vmem:[#allocation3 + $0x18] sm:$0xf] %vm1146_vm2, %v1076_v20  ;;  %v4586_v55 = vld [vmem:[#allocation3 + $0x38] ss:$12 sps:$4 sm:$0xff]   ;;  %v1604_v20 = vshll.u32 %v5566_v7, 16  ;;  %v1599_v9 = vrot.slane %v5522_v59, 4 }
  0xac   :  { %v1078_v47 = vpop.permute.xlu1 %1077  ;;  %v4566_v45 = vld [vmem:[#allocation3 + $0x4] ss:$12 sps:$4 sm:$0xff]   ;;  %2002 = vrot.lane.b32.xlu0 %v5439_v24, %s4650_s8  ;;  %v2552_v24 = vshrl.u32 %v5561_v63, 16  ;;  %464 = vst.msk [vmem:[#allocation3 + $0x78] sm:$0xf] %vm6876_vm11, %v5566_v7  ;;  %4390 = vmatmul.mubr.msk.bf16.gmra.mrb[8].mxu1 %vm6877_vm9, %v4586_v55  ;;  %v328_v21 = vor.u32 %v327_v58, %v324_v52  ;;  %v5644_v22 = vrot.slane %v716_v0, 4  ;;  %vm6882_vm11 = vmmov %vm6879_vm6 }
  0xad   :  { %1150 = vst.msk [vmem:[#allocation3 + $0x24] sm:$0xf] %vm1146_vm2, %v1078_v47  ;;  %3439 = vmatprep.mubr.bf16.mxu0 %v4566_v45  ;;  %4393 = vmatprep.mubr.msk.bf16.mxu1 %vm4653_vm15, %v4652_v42  ;;  %v1603_v47 = vrot.slane %v1601_v26, 5  ;;  %v1606_v50 = vrot.slane %v1604_v20, 6  ;;  %v1616_v61 = vrot.slane %v1614_v17, 6  ;;  %v2565_v23 = vshll.u32 %v5632_v15, 16  ;;  %vm6883_vm9 = vmmov %vm6879_vm6 }
  0xae   :  { %2004 = vrot.lane.b32.xlu1 %v5536_v32, %s4650_s8  ;;  %v2237_v27 = vpop.permute.xlu0 %2236  ;;  %3440 = vmatmul.mubr.bf16.vlgmr.msra.gmra.mrb[0].mxu0 %v4564_v25  ;;  %v2554_v4 = vrot.slane %v2552_v24, 6  ;;  %v331_v6 = vsel %vm6878_vm1, %v328_v21, %v330_v51  ;;  %v1611_v25 = vshrl.u32 %v5568_v49, 16  ;;  %v2870_v38 = vrot.slane %v2868_v41, 4  ;;  %v333_v43 = vld [vmem:[#allocation2 + $0x58] sm:$0x3]  ;;  %v5706_v58 = vld [vmem:[#allocation2 + $0x48] sm:$0xff] }
  0xaf   :  { %2309 = vst.msk [vmem:[#allocation3 + $0x1c] sm:$0xf] %vm1146_vm2, %v2237_v27  ;;  %332 = vst [vmem:[#allocation2 + $0x50] sm:$0xe0] %v331_v6  ;;  %v5662_v27 = vrot.slane %v1293_v37, 4  ;;  %v1607_v33 = vor.u32 %v1606_v50, %v1603_v47  ;;  %v2871_v18 = vrot.slane %v5473_v53, 7  ;;  %v5720_v6 = vcombine.low %v5706_v58, %v5706_v58 }
  0xb0   :  { %v2239_v48 = vpop.permute.xlu1 %2238  ;;  %1095 = vrot.lane.b32.xlu0 %v5454_v13, %s4649_s7  ;;  %v5614_v13 = vsel %vm4780_vm4, %v2196_v36, %v2197_v28  ;;  %v5641_v19 = vor.u32 %v2557_v30, %v2554_v4  ;;  %v1949_v36 = vrot.slane %v5632_v15, 6  ;;  %v1613_v39 = vrot.slane %v1611_v25, 5  ;;  %v349_v47 = vld [vmem:[#allocation2 + $0x58] sm:$0x7c] }
  0xb1   :  { %2310 = vst.msk [vmem:[#allocation3 + $0x28] sm:$0xf] %vm1146_vm2, %v2239_v48  ;;  %v2562_v48 = vshrl.u32 %v5632_v15, 16  ;;  %v1608_v56 = vsel %vm5118_vm5, %v1599_v9, %v1607_v33  ;;  %v2874_v4 = vrot.slane %v5566_v7, 7  ;;  %v1042_v53 = vrot.slane %v5561_v63, 5 }
  0xb2   :  { %1097 = vrot.lane.b32.xlu1 %v5578_v34, %s4649_s7  ;;  %v1333_v10 = vpop.permute.xlu0 %1332  ;;  %v2559_v59 = vsel %vm4907_vm14, %v2550_v44, %v5641_v19  ;;  %v5682_v52 = vor.u32 %v1616_v61, %v1613_v39  ;;  %1802 = vst.msk [vmem:[#allocation3 + $0x64] sm:$0xf] %vm6879_vm6, %v1608_v56  ;;  %v2872_v41 = vsel %vm5274_vm12, %v2870_v38, %v2871_v18  ;;  %v2873_v30 = vrot.slane %v2871_v18, 4 }
  0xb3   :  { %1406 = vst.msk [vmem:[#allocation3 + $0x18] sm:$0xf] %vm1403_vm10, %v1333_v10  ;;  %v334_v28 = vsel %vm6881_vm0, %v328_v21, %v333_v43  ;;  %v344_v51 = vshll.u32 %v4595_v29, 16  ;;  %v2567_v26 = vrot.slane %v2565_v23, 7  ;;  %v1045_v9 = vrot.slane %v5632_v15, 5  ;;  %vm6886_vm0 = vmmov %vm6880_vm7 }
  0xb4   :  { %v1335_v46 = vpop.permute.xlu1 %1334  ;;  %2256 = vrot.lane.b32.xlu0 %v5536_v32, %s4649_s7  ;;  %2958 = vst.msk [vmem:[#allocation3 + $0x50] sm:$0xf] %vm6880_vm7, %v2872_v41  ;;  %v2875_v44 = vsel %vm5274_vm12, %v2873_v30, %v2874_v4  ;;  %335 = vst [vmem:[#allocation2 + $0x58] sm:$0x3] %v334_v28  ;;  %v725_v39 = vrot.slane %v2552_v24, 4  ;;  %v5735_v61 = vrot.slane %v2565_v23, 5  ;;  %vm6884_vm1 = vnez %v6820_v14 }
  0xb5   :  { %1407 = vst.msk [vmem:[#allocation3 + $0x24] sm:$0xf] %vm1403_vm10, %v1335_v46  ;;  %v2564_v46 = vrot.slane %v2562_v48, 6  ;;  %v1043_v63 = vsel %vm4772_vm3, %v5662_v27, %v1042_v53  ;;  %v2202_v24 = vrot.slane %v1949_v36, 4  ;;  %v2203_v38 = vrot.slane %v5720_v6, 6 }
  0xb6   :  { %2258 = vrot.lane.b32.xlu1 %v5614_v13, %s4649_s7  ;;  %v2675_v32 = vpop.permute.xlu0 %2674  ;;  %2959 = vst.msk [vmem:[#allocation3 + $0x5c] sm:$0xf] %vm6883_vm9, %v2875_v44  ;;  %v2572_v23 = vshrl.u32 %v5720_v6, 16  ;;  %v2560_v15 = vrot.slane %v5641_v19, 4  ;;  %vm6885_vm6 = vcmask 261120   ;;  %v5783_v28 = vcombine.high %v5706_v58, %v5706_v58  ;;  %vm6888_vm9 = vmmov %vm6886_vm0 }
  0xb7   :  { %2747 = vst.msk [vmem:[#allocation3 + $0x1c] sm:$0xf] %vm1403_vm10, %v2675_v32  ;;  %v5770_v19 = vsel %vm4780_vm4, %v2202_v24, %v2203_v38 }
  0xb8   :  { %v2677_v45 = vpop.permute.xlu1 %2676  ;;  %1352 = vrot.lane.b32.xlu0 %v5578_v34, %s4651_s13  ;;  %v5671_v34 = vrot.slane %v2555_v35, 5  ;;  %v1609_v35 = vrot.slane %v1607_v33, 4  ;;  %v5733_v33 = vor.u32 %v2567_v26, %v2564_v46 }
  0xb9   :  { %2748 = vst.msk [vmem:[#allocation3 + $0x28] sm:$0xf] %vm1403_vm10, %v2677_v45  ;;  %v1950_v45 = vsel %vm4780_vm4, %v1948_v54, %v1949_v36 }
  0xba   :  { %1354 = vrot.lane.b32.xlu1 %v5622_v31, %s4651_s13  ;;  %v822_v37 = vpop.permute.xlu0 %821  ;;  %v722_v55 = vsel %vm4838_vm13, %v5644_v22, %v5671_v34  ;;  %v1618_v8 = vsel %vm5118_vm5, %v1609_v35, %v5682_v52  ;;  %v346_v22 = vrot.slane %v344_v51, 6  ;;  %v726_v36 = vor.u32 %v725_v39, %v5671_v34 }
  0xbb   :  { %893 = vst.msk [vmem:[#allocation3 + $0x30] sm:$0xf] %vm888_vm8, %v822_v37  ;;  %v1619_v51 = vrot.slane %v5682_v52, 4  ;;  %v2569_v58 = vsel %vm4907_vm14, %v2560_v15, %v5733_v33  ;;  %v1954_v39 = vrot.slane %v2203_v38, 4  ;;  %v2087_v15 = vld [vmem:[#allocation2 + $0x50] sm:$0xff] }
  0xbc   :  { %v824_v16 = vpop.permute.xlu1 %823  ;;  %2694 = vrot.lane.b32.xlu0 %v2549_v40, %s4651_s13  ;;  %1803 = vst.msk [vmem:[#allocation3 + $0x70] sm:$0xf] %vm6882_vm11, %v1618_v8  ;;  %v341_v40 = vshrl.u32 %v4595_v29, 16  ;;  %v735_v29 = vrot.slane %v2562_v48, 4  ;;  %v2575_v48 = vshll.u32 %v5720_v6, 16  ;;  %vm6887_vm11 = vmmov %vm6886_vm0 }
  0xbd   :  { %894 = vst.msk [vmem:[#allocation3 + $0x3c] sm:$0xf] %vm888_vm8, %v824_v16  ;;  %v4594_v18 = vld [vmem:[#allocation3 + $0x50] ss:$12 sps:$4 sm:$0xff]   ;;  %v2570_v16 = vrot.slane %v5733_v33, 4 }
  0xbe   :  { %2696 = vrot.lane.b32.xlu1 %v2559_v59, %s4651_s13  ;;  %v1987_v10 = vpop.permute.xlu0 %1986  ;;  %v2981_v0 = vld [vmem:[#allocation3 + $0x18] sm:$0xff]  ;;  %v343_v32 = vrot.slane %v341_v40, 5  ;;  %v1435_v59 = vld [vmem:[#allocation2 + $0x30] sm:$0xff]  ;;  %v736_v35 = vor.u32 %v735_v29, %v5735_v61  ;;  %4394 = vmatmul.mubr.msk.bf16.gmra.mrb[12].mxu1 %vm6885_vm6, %v4594_v18  ;;  %v2577_v41 = vrot.slane %v2575_v48, 7  ;;  %v2877_v18 = vrot.slane %v5568_v49, 7  ;;  %vm6890_vm6 = vmmov %vm6886_vm0 }
  0xbf   :  { %2057 = vst.msk [vmem:[#allocation3 + $0x34] sm:$0xf] %vm888_vm8, %v1987_v10  ;;  %v5748_v14 = vcombine.low %v1435_v59, %v1435_v59  ;;  %v5763_v56 = vcombine.high %v1435_v59, %v1435_v59  ;;  %4397 = vmatprep.mubr.msk.bf16.mxu1 %vm4653_vm15, %v4652_v42  ;;  %v5785_v10 = vrot.slane %v726_v36, 4  ;;  %v1302_v59 = vrot.slane %v5720_v6, 5 }
  0xc0   :  { %v1989_v1 = vpop.permute.xlu1 %1988  ;;  %v2983_v11 = vld [vmem:[#allocation3 + $0x24] sm:$0xff]  ;;  %841 = vrot.lane.b32.xlu0 %v712_v5, %s4650_s8  ;;  %v347_v50 = vor.u32 %v346_v22, %v343_v32  ;;  %v1298_v5 = vrot.slane %v1042_v53, 4  ;;  %v2574_v53 = vrot.slane %v2572_v23, 6  ;;  %v2582_v32 = vshrl.u32 %v5783_v28, 16 }
  0xc1   :  { %v4576_v21 = vld [vmem:[#allocation3 + $0x1c] ss:$12 sps:$4 sm:$0xff]   ;;  %2058 = vst.msk [vmem:[#allocation3 + $0x40] sm:$0xf] %vm888_vm8, %v1989_v1  ;;  %v4199_v20 = vcombine.low %v2981_v0, %v2983_v11  ;;  %v1621_v34 = vshrl.u32 %v5748_v14, 16  ;;  %v1631_v30 = vshrl.u32 %v5763_v56, 16 }
  0xc2   :  { %843 = vrot.lane.b32.xlu1 %v722_v55, %s4650_s8  ;;  %3447 = vmatprep.mubr.bf16.mxu0 %v4576_v21  ;;  %v1080_v25 = vpop.permute.xlu0 %1079  ;;  %v350_v37 = vsel %vm6884_vm1, %v347_v50, %v349_v47  ;;  %v5753_v27 = vsel %vm4772_vm3, %v1298_v5, %v1045_v9  ;;  %466 = vst.msk [vmem:[#allocation3 + $0x90] sm:$0xf] %vm6880_vm7, %v5748_v14  ;;  %v1634_v55 = vshll.u32 %v5763_v56, 16  ;;  %v745_v1 = vrot.slane %v2572_v23, 4  ;;  %vm6889_vm1 = vmmov %vm6886_vm0 }
  0xc3   :  { %3448 = vmatmul.mubr.bf16.gmra.mrb[4].mxu0 %v4199_v20  ;;  %1151 = vst.msk [vmem:[#allocation3 + $0x30] sm:$0xf] %vm1146_vm2, %v1080_v25  ;;  %351 = vst [vmem:[#allocation2 + $0x58] sm:$0x7c] %v350_v37  ;;  %v1623_v0 = vrot.slane %v1621_v34, 5  ;;  %v1633_v44 = vrot.slane %v1631_v30, 5  ;;  %v5795_v20 = vor.u32 %v2577_v41, %v2574_v53 }
  0xc4   :  { %v1082_v17 = vpop.permute.xlu1 %1081  ;;  %2006 = vrot.lane.b32.xlu0 %v5614_v13, %s4650_s8  ;;  %467 = vst.msk [vmem:[#allocation3 + $0x9c] sm:$0xf] %vm6886_vm0, %v5763_v56  ;;  %v1636_v40 = vrot.slane %v1634_v55, 6  ;;  %v1047_v11 = vrot.slane %v1045_v9, 4  ;;  %v2585_v22 = vshll.u32 %v5783_v28, 16  ;;  %v737_v25 = vrot.slane %v736_v35, 4  ;;  %vm6891_vm7 = vmmov %vm6886_vm0 }
  0xc5   :  { %1152 = vst.msk [vmem:[#allocation3 + $0x3c] sm:$0xf] %vm1146_vm2, %v1082_v17  ;;  %v741_v50 = vrot.slane %v2575_v48, 5  ;;  %v732_v17 = vsel %vm4838_vm13, %v5785_v10, %v5735_v61  ;;  %v2206_v5 = vrot.slane %v5783_v28, 6  ;;  %v2579_v61 = vsel %vm4907_vm14, %v2570_v16, %v5795_v20 }
  0xc6   :  { %2008 = vrot.lane.b32.xlu1 %v1950_v45, %s4650_s8  ;;  %v2241_v13 = vpop.permute.xlu0 %2240  ;;  %v5799_v47 = vor.u32 %v1636_v40, %v1633_v44  ;;  %v2587_v24 = vrot.slane %v2585_v22, 7  ;;  %v5823_v6 = vrot.slane %v2585_v22, 5  ;;  %v755_v38 = vrot.slane %v2582_v32, 4 }
  0xc7   :  { %2311 = vst.msk [vmem:[#allocation3 + $0x34] sm:$0xf] %vm1146_vm2, %v2241_v13  ;;  %v746_v37 = vor.u32 %v745_v1, %v741_v50  ;;  %v2876_v23 = vrot.slane %v2874_v4, 4  ;;  %v742_v48 = vsel %vm4838_vm13, %v737_v25, %v741_v50  ;;  %v1304_v36 = vrot.slane %v1302_v59, 4 }
  0xc8   :  { %v2243_v43 = vpop.permute.xlu1 %2242  ;;  %1099 = vrot.lane.b32.xlu0 %v5622_v31, %s4649_s7  ;;  %v1624_v31 = vshll.u32 %v5748_v14, 16  ;;  %v1305_v16 = vrot.slane %v5783_v28, 5  ;;  %v2580_v7 = vrot.slane %v5795_v20, 4  ;;  %v2879_v49 = vrot.slane %v2877_v18, 4 }
  0xc9   :  { %2312 = vst.msk [vmem:[#allocation3 + $0x40] sm:$0xf] %vm1146_vm2, %v2243_v43  ;;  %v2880_v43 = vrot.slane %v5748_v14, 7  ;;  %v5845_v55 = vsel %vm4780_vm4, %v1954_v39, %v2206_v5  ;;  %v5853_v10 = vsel %vm4772_vm3, %v1047_v11, %v1302_v59  ;;  %v2208_v44 = vrot.slane %v2206_v5, 4 }
  0xca   :  { %1101 = vrot.lane.b32.xlu1 %v1043_v63, %s4649_s7  ;;  %v1337_v54 = vpop.permute.xlu0 %1336  ;;  %v1626_v46 = vrot.slane %v1624_v31, 6  ;;  %v5838_v31 = vrot.slane %v746_v37, 4  ;;  %v5862_v40 = vcombine.high %v2087_v15, %v2087_v15  ;;  %v5882_v22 = vrot.slane %v1305_v16, 4 }
  0xcb   :  { %1408 = vst.msk [vmem:[#allocation3 + $0x30] sm:$0xf] %vm1403_vm10, %v1337_v54  ;;  %v2878_v54 = vsel %vm5274_vm12, %v2876_v23, %v2877_v18 }
  0xcc   :  { %v1339_v8 = vpop.permute.xlu1 %1338  ;;  %2260 = vrot.lane.b32.xlu0 %v1950_v45, %s4649_s7  ;;  %v1627_v21 = vor.u32 %v1626_v46, %v1623_v0  ;;  %2960 = vst.msk [vmem:[#allocation3 + $0x68] sm:$0xf] %vm6889_vm1, %v2878_v54  ;;  %v5855_v0 = vcombine.low %v2087_v15, %v2087_v15  ;;  %v2881_v46 = vsel %vm5274_vm12, %v2879_v49, %v2880_v43  ;;  %v1961_v50 = vrot.slane %v5862_v40, 6  ;;  %vm6894_vm1 = vmmov %vm6886_vm0 }
  0xcd   :  { %1409 = vst.msk [vmem:[#allocation3 + $0x3c] sm:$0xf] %vm1403_vm10, %v1339_v8  ;;  %v756_v8 = vor.u32 %v755_v38, %v5823_v6  ;;  %v2602_v39 = vshrl.u32 %v5862_v40, 16 }
  0xce   :  { %2262 = vrot.lane.b32.xlu1 %v5770_v19, %s4649_s7  ;;  %v2679_v26 = vpop.permute.xlu0 %2678  ;;  %v1629_v45 = vrot.slane %v1627_v21, 4  ;;  %v1628_v9 = vsel %vm5118_vm5, %v1619_v51, %v1627_v21  ;;  %2961 = vst.msk [vmem:[#allocation3 + $0x74] sm:$0xf] %vm6890_vm6, %v2881_v46  ;;  %v752_v21 = vsel %vm4838_vm13, %v5838_v31, %v5823_v6  ;;  %v2592_v25 = vshrl.u32 %v5855_v0, 16  ;;  %vm6895_vm6 = vmmov %vm6886_vm0 }
  0xcf   :  { %2749 = vst.msk [vmem:[#allocation3 + $0x34] sm:$0xf] %vm1403_vm10, %v2679_v26  ;;  %v1436_v26 = vld [vmem:[#allocation2 + $0x38] sm:$0xff]  ;;  %v2604_v49 = vrot.slane %v2602_v39, 6 }
  0xd0   :  { %v2681_v52 = vpop.permute.xlu1 %2680  ;;  %1356 = vrot.lane.b32.xlu0 %v1043_v63, %s4651_s13  ;;  %v1638_v33 = vsel %vm5118_vm5, %v1629_v45, %v5799_v47  ;;  %1804 = vst.msk [vmem:[#allocation3 + $0x7c] sm:$0xf] %vm6887_vm11, %v1628_v9  ;;  %v2584_v63 = vrot.slane %v2582_v32, 6  ;;  %v5880_v32 = vrot.slane %v756_v8, 4  ;;  %v2595_v45 = vshll.u32 %v5855_v0, 16 }
  0xd1   :  { %2750 = vst.msk [vmem:[#allocation3 + $0x40] sm:$0xf] %vm1403_vm10, %v2681_v52  ;;  %v2209_v52 = vrot.slane %v5855_v0, 6  ;;  %v5894_v9 = vcombine.low %v1436_v26, %v1436_v26  ;;  %v5898_v59 = vcombine.high %v1436_v26, %v1436_v26  ;;  %v2594_v23 = vrot.slane %v2592_v25, 6 }
  0xd2   :  { %1358 = vrot.lane.b32.xlu1 %v5753_v27, %s4651_s13  ;;  %v826_v29 = vpop.permute.xlu0 %825  ;;  %1805 = vst.msk [vmem:[#allocation3 + $0x88] sm:$0xf] %vm6888_vm9, %v1638_v33  ;;  %v5836_v34 = vor.u32 %v2587_v24, %v2584_v63  ;;  %vm6892_vm11 = vcmask 261120   ;;  %v765_v8 = vrot.slane %v2592_v25, 4  ;;  %vm6893_vm9 = vmmov %vm6886_vm0  ;;  %v2882_v25 = vrot.slane %v2880_v43, 4 }
  0xd3   :  { %895 = vst.msk [vmem:[#allocation3 + $0x48] sm:$0xf] %vm888_vm8, %v826_v29  ;;  %v2088_v29 = vld [vmem:[#allocation2 + $0x58] sm:$0xff]  ;;  %v1644_v37 = vshll.u32 %v5894_v9, 16  ;;  %v5910_v63 = vsel %vm4780_vm4, %v2208_v44, %v2209_v52  ;;  %v1654_v38 = vshll.u32 %v5898_v59, 16 }
  0xd4   :  { %v828_v13 = vpop.permute.xlu1 %827  ;;  %2698 = vrot.lane.b32.xlu0 %v2569_v58, %s4651_s13  ;;  %v5867_v58 = vsel %vm4772_vm3, %v1304_v36, %v1305_v16  ;;  %v2590_v1 = vrot.slane %v5836_v34, 4  ;;  %v5873_v11 = vsel %vm4907_vm14, %v2580_v7, %v5836_v34  ;;  %468 = vst.msk [vmem:[#allocation3 + $0xa8] sm:$0xf] %vm6891_vm7, %v5894_v9  ;;  %v2597_v36 = vrot.slane %v2595_v45, 7  ;;  %vm6896_vm7 = vmmov %vm6886_vm0 }
  0xd5   :  { %896 = vst.msk [vmem:[#allocation3 + $0x54] sm:$0xf] %vm888_vm8, %v828_v13  ;;  %v4601_v24 = vld [vmem:[#allocation3 + $0x68] ss:$12 sps:$4 sm:$0xff]   ;;  %v1651_v13 = vshrl.u32 %v5898_v59, 16  ;;  %v1646_v18 = vrot.slane %v1644_v37, 6  ;;  %v5923_v54 = vcombine.low %v2088_v29, %v2088_v29 }
  0xd6   :  { %2700 = vrot.lane.b32.xlu1 %v2579_v61, %s4651_s13  ;;  %v1991_v4 = vpop.permute.xlu0 %1990  ;;  %v2985_v35 = vld [vmem:[#allocation3 + $0x30] sm:$0xff]  ;;  %v1641_v61 = vshrl.u32 %v5894_v9, 16  ;;  %469 = vst.msk [vmem:[#allocation3 + $0xb4] sm:$0xf] %vm6886_vm0, %v5898_v59  ;;  %v5919_v16 = vrot.slane %v2595_v45, 5  ;;  %4398 = vmatmul.mubr.msk.bf16.gmra.mrb[16].mxu1 %vm6892_vm11, %v4601_v24  ;;  %v2598_v45 = vor.u32 %v2597_v36, %v2594_v23  ;;  %v1311_v23 = vrot.slane %v5862_v40, 5  ;;  %vm6897_vm11 = vmmov %vm6886_vm0 }
  0xd7   :  { %2059 = vst.msk [vmem:[#allocation3 + $0x4c] sm:$0xf] %vm888_vm8, %v1991_v4  ;;  %v1653_v7 = vrot.slane %v1651_v13, 5  ;;  %v1656_v4 = vrot.slane %v1654_v38, 6  ;;  %4401 = vmatprep.mubr.msk.bf16.mxu1 %vm4653_vm15, %v4652_v42  ;;  %v2612_v46 = vshrl.u32 %v5923_v54, 16  ;;  %v2615_v44 = vshll.u32 %v5923_v54, 16 }
  0xd8   :  { %v1993_v53 = vpop.permute.xlu1 %1992  ;;  %v2987_v41 = vld [vmem:[#allocation3 + $0x3c] sm:$0xff]  ;;  %845 = vrot.lane.b32.xlu0 %v732_v17, %s4650_s8  ;;  %v1054_v17 = vrot.slane %v5855_v0, 5  ;;  %v766_v43 = vor.u32 %v765_v8, %v5919_v16  ;;  %v2214_v38 = vrot.slane %v1961_v50, 4 }
  0xd9   :  { %v4584_v30 = vld [vmem:[#allocation3 + $0x34] ss:$12 sps:$4 sm:$0xff]   ;;  %2060 = vst.msk [vmem:[#allocation3 + $0x58] sm:$0xf] %vm888_vm8, %v1993_v53  ;;  %v4202_v28 = vcombine.low %v2985_v35, %v2987_v41  ;;  %v2617_v37 = vrot.slane %v2615_v44, 7 }
  0xda   :  { %847 = vrot.lane.b32.xlu1 %v742_v48, %s4650_s8  ;;  %3455 = vmatprep.mubr.bf16.mxu0 %v4584_v30  ;;  %v1084_v51 = vpop.permute.xlu0 %1083  ;;  %v1643_v48 = vrot.slane %v1641_v61, 5  ;;  %v775_v30 = vrot.slane %v2602_v39, 4  ;;  %v2886_v61 = vrot.slane %v5894_v9, 7 }
  0xdb   :  { %3456 = vmatmul.mubr.bf16.gmra.mrb[8].mxu0 %v4202_v28  ;;  %1153 = vst.msk [vmem:[#allocation3 + $0x48] sm:$0xf] %vm1146_vm2, %v1084_v51  ;;  %v5932_v28 = vor.u32 %v1656_v4, %v1653_v7  ;;  %v5991_v7 = vrot.slane %v2615_v44, 5  ;;  %v5993_v4 = vrot.slane %v766_v43, 4 }
  0xdc   :  { %v1086_v20 = vpop.permute.xlu1 %1085  ;;  %2010 = vrot.lane.b32.xlu0 %v5770_v19, %s4650_s8  ;;  %v2605_v19 = vshll.u32 %v5862_v40, 16  ;;  %v1647_v41 = vor.u32 %v1646_v18, %v1643_v48  ;;  %v2215_v18 = vrot.slane %v5923_v54, 6 }
  0xdd   :  { %1154 = vst.msk [vmem:[#allocation3 + $0x54] sm:$0xf] %vm1146_vm2, %v1086_v20 }
  0xde   :  { %2012 = vrot.lane.b32.xlu1 %v5845_v55, %s4650_s8  ;;  %v2245_v5 = vpop.permute.xlu0 %2244  ;;  %v2607_v53 = vrot.slane %v2605_v19, 7  ;;  %v1649_v51 = vrot.slane %v1647_v41, 4 }
  0xdf   :  { %2313 = vst.msk [vmem:[#allocation3 + $0x4c] sm:$0xf] %vm1146_vm2, %v2245_v5 }
  0xe0   :  { %v2247_v33 = vpop.permute.xlu1 %2246  ;;  %1103 = vrot.lane.b32.xlu0 %v5753_v27, %s4649_s7  ;;  %v1639_v27 = vrot.slane %v5799_v47, 4  ;;  %v5930_v47 = vrot.slane %v2605_v19, 5  ;;  %v2608_v39 = vor.u32 %v2607_v53, %v2604_v49  ;;  %v1658_v19 = vsel %vm5118_vm5, %v1649_v51, %v5932_v28  ;;  %v1437_v53 = vld [vmem:[#allocation2 + $0x40] sm:$0xff] }
  0xe1   :  { %2314 = vst.msk [vmem:[#allocation3 + $0x58] sm:$0xf] %vm1146_vm2, %v2247_v33  ;;  %v2883_v33 = vrot.slane %v5763_v56, 7  ;;  %v2614_v56 = vrot.slane %v2612_v46, 6 }
  0xe2   :  { %1105 = vrot.lane.b32.xlu1 %v5853_v10, %s4649_s7  ;;  %v1341_v15 = vpop.permute.xlu0 %1340  ;;  %v1648_v26 = vsel %vm5118_vm5, %v1639_v27, %v1647_v41  ;;  %v776_v14 = vor.u32 %v775_v30, %v5930_v47  ;;  %1807 = vst.msk [vmem:[#allocation3 + $0xa0] sm:$0xf] %vm6894_vm1, %v1658_v19  ;;  %v1310_v27 = vrot.slane %v1054_v17, 4  ;;  %vm6899_vm1 = vmmov %vm6886_vm0 }
  0xe3   :  { %1410 = vst.msk [vmem:[#allocation3 + $0x48] sm:$0xf] %vm1403_vm10, %v1341_v15  ;;  %v2884_v24 = vsel %vm5274_vm12, %v2882_v25, %v2883_v33  ;;  %v2885_v13 = vrot.slane %v2883_v33, 4  ;;  %v2600_v15 = vrot.slane %v2598_v45, 4  ;;  %v5997_v49 = vor.u32 %v2617_v37, %v2614_v56 }
  0xe4   :  { %v1343_v35 = vpop.permute.xlu1 %1342  ;;  %2264 = vrot.lane.b32.xlu0 %v5845_v55, %s4649_s7  ;;  %v1960_v55 = vrot.slane %v2209_v52, 4  ;;  %1806 = vst.msk [vmem:[#allocation3 + $0x94] sm:$0xf] %vm6893_vm9, %v1648_v26  ;;  %v5952_v52 = vcombine.high %v2088_v29, %v2088_v29  ;;  %v2599_v29 = vsel %vm4907_vm14, %v2590_v1, %v2598_v45  ;;  %v5987_v1 = vsel %vm4772_vm3, %v5882_v22, %v1054_v17  ;;  %v6038_v45 = vld [vmem:[#allocation2 + $0x60] sm:$0xff] }
  0xe5   :  { %1411 = vst.msk [vmem:[#allocation3 + $0x54] sm:$0xf] %vm1403_vm10, %v1343_v35  ;;  %v2887_v34 = vsel %vm5274_vm12, %v2885_v13, %v2886_v61  ;;  %v5989_v36 = vrot.slane %v776_v14, 4  ;;  %v2610_v35 = vrot.slane %v2608_v39, 4  ;;  %v762_v22 = vsel %vm4838_vm13, %v5880_v32, %v5919_v16 }
  0xe6   :  { %2266 = vrot.lane.b32.xlu1 %v5910_v63, %s4649_s7  ;;  %v2683_v20 = vpop.permute.xlu0 %2682  ;;  %2962 = vst.msk [vmem:[#allocation3 + $0x80] sm:$0xf] %vm6895_vm6, %v2884_v24  ;;  %v1967_v0 = vrot.slane %v5952_v52, 6  ;;  %v6008_v30 = vsel %vm4780_vm4, %v1960_v55, %v1961_v50  ;;  %v6013_v26 = vsel %vm4780_vm4, %v2214_v38, %v2215_v18  ;;  %v6021_v40 = vsel %vm4907_vm14, %v2600_v15, %v2608_v39  ;;  %vm6900_vm6 = vmmov %vm6886_vm0 }
  0xe7   :  { %2751 = vst.msk [vmem:[#allocation3 + $0x4c] sm:$0xf] %vm1403_vm10, %v2683_v20  ;;  %v6017_v20 = vsel %vm4772_vm3, %v1310_v27, %v1311_v23  ;;  %v782_v50 = vsel %vm4838_vm13, %v5989_v36, %v5991_v7  ;;  %v772_v16 = vsel %vm4838_vm13, %v5993_v4, %v5930_v47  ;;  %v6040_v55 = vcombine.low %v1437_v53, %v1437_v53 }
  0xe8   :  { %v2685_v5 = vpop.permute.xlu1 %2684  ;;  %1360 = vrot.lane.b32.xlu0 %v5853_v10, %s4651_s13  ;;  %2963 = vst.msk [vmem:[#allocation3 + $0x8c] sm:$0xf] %vm6896_vm7, %v2887_v34  ;;  %v6046_v6 = vsel %vm4907_vm14, %v2610_v35, %v5997_v49  ;;  %v6061_v33 = vcombine.low %v6038_v45, %v6038_v45  ;;  %v1314_v37 = vrot.slane %v5923_v54, 5  ;;  %vm6898_vm9 = vcmask 261120   ;;  %vm6901_vm7 = vmmov %vm6886_vm0 }
  0xe9   :  { %2752 = vst.msk [vmem:[#allocation3 + $0x58] sm:$0xf] %vm1403_vm10, %v2685_v5  ;;  %v1661_v5 = vshrl.u32 %v6040_v55, 16  ;;  %v1664_v39 = vshll.u32 %v6040_v55, 16  ;;  %v2220_v27 = vrot.slane %v1967_v0, 4  ;;  %v2625_v35 = vshll.u32 %v5952_v52, 16 }
  0xea   :  { %1362 = vrot.lane.b32.xlu1 %v5867_v58, %s4651_s13  ;;  %v830_v10 = vpop.permute.xlu0 %829  ;;  %470 = vst.msk [vmem:[#allocation3 + $0xc0] sm:$0xf] %vm6886_vm0, %v6040_v55  ;;  %v2221_v34 = vrot.slane %v6061_v33, 6 }
  0xeb   :  { %897 = vst.msk [vmem:[#allocation3 + $0x60] sm:$0xf] %vm888_vm8, %v830_v10  ;;  %v1663_v24 = vrot.slane %v1661_v5, 5  ;;  %v1666_v13 = vrot.slane %v1664_v39, 6  ;;  %v1659_v10 = vrot.slane %v5932_v28, 4  ;;  %v2622_v28 = vshrl.u32 %v5952_v52, 16 }
  0xec   :  { %v832_v48 = vpop.permute.xlu1 %831  ;;  %2702 = vrot.lane.b32.xlu0 %v5873_v11, %s4651_s13  ;;  %v1966_v11 = vrot.slane %v2215_v18, 4  ;;  %v6108_v39 = vld [vmem:[#allocation2 + $0x60] sm:$0x1f] }
  0xed   :  { %898 = vst.msk [vmem:[#allocation3 + $0x6c] sm:$0xf] %vm888_vm8, %v832_v48  ;;  %v1667_v15 = vor.u32 %v1666_v13, %v1663_v24  ;;  %v2624_v9 = vrot.slane %v2622_v28, 6  ;;  %v6138_v13 = vcombine.low %v6108_v39, %v6108_v39 }
  0xee   :  { %2704 = vrot.lane.b32.xlu1 %v2599_v29, %s4651_s13  ;;  %v1995_v41 = vpop.permute.xlu0 %1994  ;;  %v2989_v17 = vld [vmem:[#allocation3 + $0x48] sm:$0xff]  ;;  %v6050_v31 = vsel %vm4780_vm4, %v1966_v11, %v1967_v0  ;;  %v1059_v29 = vrot.slane %v1311_v23, 4  ;;  %v1316_v11 = vrot.slane %v1314_v37, 4  ;;  %v1317_v0 = vrot.slane %v5952_v52, 5 }
  0xef   :  { %2061 = vst.msk [vmem:[#allocation3 + $0x64] sm:$0xf] %vm888_vm8, %v1995_v41  ;;  %v4608_v14 = vld [vmem:[#allocation3 + $0x80] ss:$12 sps:$4 sm:$0xff]   ;;  %v1668_v41 = vsel %vm5118_vm5, %v1659_v10, %v1667_v15 }
  0xf0   :  { %v1997_v8 = vpop.permute.xlu1 %1996  ;;  %v2991_v44 = vld [vmem:[#allocation3 + $0x54] sm:$0xff]  ;;  %849 = vrot.lane.b32.xlu0 %v752_v21, %s4650_s8  ;;  %v6052_v21 = vcombine.high %v1437_v53, %v1437_v53  ;;  %4402 = vmatmul.mubr.msk.bf16.gmra.mrb[20].mxu1 %vm6898_vm9, %v4608_v14  ;;  %v1669_v53 = vrot.slane %v1667_v15, 4  ;;  %1808 = vst.msk [vmem:[#allocation3 + $0xac] sm:$0xf] %vm6899_vm1, %v1668_v41  ;;  %v6147_v15 = vrot.slane %v2625_v35, 5  ;;  %vm6903_vm9 = vmmov %vm6886_vm0 }
  0xf1   :  { %v4592_v51 = vld [vmem:[#allocation3 + $0x4c] ss:$12 sps:$4 sm:$0xff]   ;;  %2062 = vst.msk [vmem:[#allocation3 + $0x70] sm:$0xf] %vm888_vm8, %v1997_v8  ;;  %v4205_v32 = vcombine.low %v2989_v17, %v2991_v44  ;;  %4405 = vmatprep.mubr.msk.bf16.mxu1 %vm4653_vm15, %v4652_v42  ;;  %v2635_v17 = vshll.u32 %v6061_v33, 16  ;;  %v2888_v8 = vrot.slane %v2886_v61, 4  ;;  %v6098_v44 = vsel %vm4772_vm3, %v1059_v29, %v1314_v37  ;;  %vm6904_vm1 = vmmov %vm6886_vm0 }
  0xf2   :  { %851 = vrot.lane.b32.xlu1 %v762_v22, %s4650_s8  ;;  %3463 = vmatprep.mubr.bf16.mxu0 %v4592_v51  ;;  %v1088_v25 = vpop.permute.xlu0 %1087  ;;  %v1671_v43 = vshrl.u32 %v6052_v21, 16  ;;  %v1674_v56 = vshll.u32 %v6052_v21, 16  ;;  %471 = vst.msk [vmem:[#allocation3 + $0xcc] sm:$0xf] %vm6897_vm11, %v6052_v21  ;;  %v2632_v22 = vshrl.u32 %v6061_v33, 16  ;;  %v2627_v61 = vrot.slane %v2625_v35, 7  ;;  %vm6902_vm11 = vmmov %vm6886_vm0 }
  0xf3   :  { %3464 = vmatmul.mubr.bf16.gmra.mrb[12].mxu0 %v4205_v32  ;;  %1155 = vst.msk [vmem:[#allocation3 + $0x60] sm:$0xf] %vm1146_vm2, %v1088_v25  ;;  %v2889_v32 = vrot.slane %v5898_v59, 7  ;;  %v2892_v25 = vrot.slane %v6040_v55, 7  ;;  %v6118_v59 = vsel %vm4780_vm4, %v2220_v27, %v2221_v34  ;;  %v6124_v55 = vsel %vm4772_vm3, %v1316_v11, %v1317_v0 }
  0xf4   :  { %v1090_v19 = vpop.permute.xlu1 %1089  ;;  %2014 = vrot.lane.b32.xlu0 %v5910_v63, %s4650_s8  ;;  %v1673_v38 = vrot.slane %v1671_v43, 5  ;;  %v1676_v48 = vrot.slane %v1674_v56, 6  ;;  %v6132_v56 = vrot.slane %v2635_v17, 7  ;;  %v2620_v37 = vrot.slane %v5997_v49, 4 }
  0xf5   :  { %1156 = vst.msk [vmem:[#allocation3 + $0x6c] sm:$0xf] %vm1146_vm2, %v1090_v19  ;;  %v1438_v19 = vld [vmem:[#allocation2 + $0x48] sm:$0xff]  ;;  %v2890_v14 = vsel %vm5274_vm12, %v2888_v8, %v2889_v32  ;;  %v2891_v43 = vrot.slane %v2889_v32, 4  ;;  %v6145_v27 = vor.u32 %v2627_v61, %v2624_v9  ;;  %v2895_v17 = vrot.slane %v6052_v21, 7  ;;  %v1440_v21 = vld [vmem:[#allocation2 + $0x58] sm:$0xff] }
  0xf6   :  { %2016 = vrot.lane.b32.xlu1 %v6008_v30, %s4650_s8  ;;  %v2249_v18 = vpop.permute.xlu0 %2248  ;;  %v6081_v23 = vor.u32 %v1676_v48, %v1673_v38  ;;  %2964 = vst.msk [vmem:[#allocation3 + $0x98] sm:$0xf] %vm6901_vm7, %v2890_v14  ;;  %v4079_v29 = vcombine.low %v1438_v19, %v1438_v19  ;;  %v6142_v38 = vcombine.high %v1438_v19, %v1438_v19  ;;  %v1439_v48 = vld [vmem:[#allocation2 + $0x50] sm:$0xff]  ;;  %vm6906_vm7 = vmmov %vm6886_vm0  ;;  %v4639_v52 = vld [vmem:[#allocation2 + $0x68] ss:$0 sps:$4 sm:$0x33]  }
  0xf7   :  { %2315 = vst.msk [vmem:[#allocation3 + $0x64] sm:$0xf] %vm1146_vm2, %v2249_v18  ;;  %v2893_v10 = vsel %vm5274_vm12, %v2891_v43, %v2892_v25  ;;  %v2897_v19 = vrot.slane %v2895_v17, 4  ;;  %v6167_v14 = vcombine.high %v1439_v48, %v1439_v48  ;;  %v6334_v49 = vcombine.high %v6038_v45, %v6038_v45 }
  0xf8   :  { %v2251_v63 = vpop.permute.xlu1 %2250  ;;  %1107 = vrot.lane.b32.xlu0 %v5867_v58, %s4649_s7  ;;  %v1678_v51 = vsel %vm5118_vm5, %v1669_v53, %v6081_v23  ;;  %2965 = vst.msk [vmem:[#allocation3 + $0xa4] sm:$0xf] %vm6886_vm0, %v2893_v10  ;;  %v1681_v11 = vshrl.u32 %v4079_v29, 16  ;;  %v1684_v53 = vshll.u32 %v4079_v29, 16  ;;  %v1691_v41 = vshrl.u32 %v6142_v38, 16 }
  0xf9   :  { %2316 = vst.msk [vmem:[#allocation3 + $0x70] sm:$0xf] %vm1146_vm2, %v2251_v63  ;;  %v2894_v63 = vrot.slane %v2892_v25, 4  ;;  %v1679_v35 = vrot.slane %v6081_v23, 4  ;;  %v2898_v8 = vrot.slane %v4079_v29, 7  ;;  %v2901_v4 = vrot.slane %v6142_v38, 7 }
  0xfa   :  { %1109 = vrot.lane.b32.xlu1 %v5987_v1, %s4649_s7  ;;  %v1345_v58 = vpop.permute.xlu0 %1344  ;;  %1809 = vst.msk [vmem:[#allocation3 + $0xb8] sm:$0xf] %vm6900_vm6, %v1678_v51  ;;  %v1683_v51 = vrot.slane %v1681_v11, 5  ;;  %v1686_v32 = vrot.slane %v1684_v53, 6  ;;  %v1693_v25 = vrot.slane %v1691_v41, 5  ;;  %vm6905_vm6 = vmmov %vm6886_vm0  ;;  %v2907_v54 = vrot.slane %v6167_v14, 7 }
  0xfb   :  { %1412 = vst.msk [vmem:[#allocation3 + $0x60] sm:$0xf] %vm1403_vm10, %v1345_v58  ;;  %v2896_v61 = vsel %vm5274_vm12, %v2894_v63, %v2895_v17  ;;  %v2900_v63 = vrot.slane %v2898_v8, 4  ;;  %v6190_v17 = vcombine.high %v1440_v21, %v1440_v21  ;;  %v1972_v45 = vrot.slane %v2221_v34, 4 }
  0xfc   :  { %v1347_v5 = vpop.permute.xlu1 %1346  ;;  %2268 = vrot.lane.b32.xlu0 %v6008_v30, %s4649_s7  ;;  %v6130_v30 = vrot.slane %v2632_v22, 6  ;;  %v1694_v22 = vshll.u32 %v6142_v38, 16  ;;  %473 = vst.msk [vmem:[#allocation3 + $0xe4] sm:$0xf] %vm6902_vm11, %v6142_v38  ;;  %v1687_v23 = vor.u32 %v1686_v32, %v1683_v51  ;;  %vm6907_vm11 = vmmov %vm6886_vm0 }
  0xfd   :  { %1413 = vst.msk [vmem:[#allocation3 + $0x6c] sm:$0xf] %vm1403_vm10, %v1347_v5  ;;  %v1731_v36 = vshrl.u32 %v6190_v17, 16 }
  0xfe   :  { %2270 = vrot.lane.b32.xlu1 %v6013_v26, %s4649_s7  ;;  %v2687_v24 = vpop.permute.xlu0 %2686  ;;  %472 = vst.msk [vmem:[#allocation3 + $0xd8] sm:$0xf] %vm6903_vm9, %v4079_v29  ;;  %v1696_v5 = vrot.slane %v1694_v22, 6  ;;  %v2899_v29 = vsel %vm5274_vm12, %v2897_v19, %v2898_v8  ;;  %v1689_v41 = vrot.slane %v1687_v23, 4  ;;  %v1688_v22 = vsel %vm5118_vm5, %v1679_v35, %v1687_v23 }
  0xff   :  { %2753 = vst.msk [vmem:[#allocation3 + $0x64] sm:$0xf] %vm1403_vm10, %v2687_v24  ;;  %v4617_v53 = vld [vmem:[#allocation3 + $0x98] ss:$12 sps:$4 sm:$0xff]   ;;  %v6195_v32 = vor.u32 %v6132_v56, %v6130_v30  ;;  %vm6908_vm9 = vcmask 261120  }
 0x100   :  { %v2689_v18 = vpop.permute.xlu1 %2688  ;;  %1364 = vrot.lane.b32.xlu0 %v5987_v1, %s4651_s13  ;;  %v6162_v1 = vcombine.low %v1439_v48, %v1439_v48  ;;  %v1697_v43 = vor.u32 %v1696_v5, %v1693_v25  ;;  %2966 = vst.msk [vmem:[#allocation3 + $0xb0] sm:$0xf] %vm6905_vm6, %v2896_v61  ;;  %v1711_v48 = vshrl.u32 %v6167_v14, 16  ;;  %4406 = vmatmul.mubr.msk.bf16.gmra.mrb[24].mxu1 %vm6908_vm9, %v4617_v53  ;;  %vm6910_vm6 = vmmov %vm6886_vm0  ;;  %v1441_v53 = vld [vmem:[#allocation2 + $0x60] sm:$0xff] }
 0x101   :  { %2754 = vst.msk [vmem:[#allocation3 + $0x70] sm:$0xf] %vm1403_vm10, %v2689_v18  ;;  %v1714_v18 = vshll.u32 %v6167_v14, 16  ;;  %4409 = vmatprep.mubr.msk.bf16.mxu1 %vm4653_vm15, %v4652_v42  ;;  %vm6913_vm9 = vmmov %vm6886_vm0 }
 0x102   :  { %1366 = vrot.lane.b32.xlu1 %v6017_v20, %s4651_s13  ;;  %v834_v58 = vpop.permute.xlu0 %833  ;;  %474 = vst.msk [vmem:[#allocation3 + $0xf0] sm:$0xf] %vm6904_vm1, %v6162_v1  ;;  %v1701_v24 = vshrl.u32 %v6162_v1, 16  ;;  %v1704_v10 = vshll.u32 %v6162_v1, 16  ;;  %v1713_v35 = vrot.slane %v1711_v48, 5  ;;  %v1698_v30 = vsel %vm5118_vm5, %v1689_v41, %v1697_v43  ;;  %vm6909_vm1 = vmmov %vm6886_vm0 }
 0x103   :  { %899 = vst.msk [vmem:[#allocation3 + $0x78] sm:$0xf] %vm888_vm8, %v834_v58  ;;  %v1716_v56 = vrot.slane %v1714_v18, 6  ;;  %v1699_v61 = vrot.slane %v1697_v43, 4 }
 0x104   :  { %v836_v9 = vpop.permute.xlu1 %835  ;;  %2706 = vrot.lane.b32.xlu0 %v6021_v40, %s4651_s13  ;;  %475 = vst.msk [vmem:[#allocation3 + $0xfc] sm:$0xf] %vm6906_vm7, %v6167_v14  ;;  %v1703_v25 = vrot.slane %v1701_v24, 5  ;;  %v1706_v5 = vrot.slane %v1704_v10, 6  ;;  %vm6911_vm7 = vmmov %vm6886_vm0  ;;  %v2902_v10 = vsel %vm5274_vm12, %v2900_v63, %v2901_v4  ;;  %v6241_v63 = vrot.slane %v2612_v46, 4 }
 0x105   :  { %900 = vst.msk [vmem:[#allocation3 + $0x84] sm:$0xf] %vm888_vm8, %v836_v9  ;;  %v1717_v23 = vor.u32 %v1716_v56, %v1713_v35 }
 0x106   :  { %2708 = vrot.lane.b32.xlu1 %v6046_v6, %s4651_s13  ;;  %v1999_v40 = vpop.permute.xlu0 %1998  ;;  %v2993_v11 = vld [vmem:[#allocation3 + $0x60] sm:$0xff]  ;;  %2967 = vst.msk [vmem:[#allocation3 + $0xbc] sm:$0xf] %vm6886_vm0, %v2899_v29  ;;  %v6188_v6 = vcombine.low %v1440_v21, %v1440_v21  ;;  %v1707_v47 = vor.u32 %v1706_v5, %v1703_v25  ;;  %v2903_v29 = vrot.slane %v2901_v4, 4 }
 0x107   :  { %2063 = vst.msk [vmem:[#allocation3 + $0x7c] sm:$0xf] %vm888_vm8, %v1999_v40  ;;  %v1733_v40 = vrot.slane %v1731_v36, 5  ;;  %v4654_v36 = vmov 0.0|0.0  }
 0x108   :  { %v2001_v58 = vpop.permute.xlu1 %2000  ;;  %v2995_v8 = vld [vmem:[#allocation3 + $0x6c] sm:$0xff]  ;;  %1810 = vst.msk [vmem:[#allocation3 + $0xc4] sm:$0xf] %vm6907_vm11, %v1688_v22  ;;  %853 = vrot.lane.b32.xlu0 %v772_v16, %s4650_s8  ;;  %v2904_v16 = vrot.slane %v6162_v1, 7  ;;  %v1721_v19 = vshrl.u32 %v6188_v6, 16  ;;  %v1724_v43 = vshll.u32 %v6188_v6, 16  ;;  %v1708_v1 = vsel %vm5118_vm5, %v1699_v61, %v1707_v47  ;;  %vm6912_vm11 = vmmov %vm6886_vm0  ;;  %4433 = vmatprep.subr.bf16.mxu1 %v4654_v36 }
 0x109   :  { %v4599_v51 = vld [vmem:[#allocation3 + $0x64] ss:$12 sps:$4 sm:$0xff]   ;;  %2064 = vst.msk [vmem:[#allocation3 + $0x88] sm:$0xf] %vm888_vm8, %v2001_v58  ;;  %v4208_v9 = vcombine.low %v2993_v11, %v2995_v8  ;;  %v1709_v38 = vrot.slane %v1707_v47, 4  ;;  %v1719_v58 = vrot.slane %v1717_v23, 4  ;;  %4469 = vmatprep.subr.bf16.mxu0 %v4654_v36 }
 0x10a   :  { %477 = vst.msk [vmem:[#allocation3 + $0x114] sm:$0xf] %vm6909_vm1, %v6190_v17  ;;  %855 = vrot.lane.b32.xlu1 %v782_v50, %s4650_s8  ;;  %3471 = vmatprep.mubr.bf16.mxu0 %v4599_v51  ;;  %v1092_v21 = vpop.permute.xlu0 %1091  ;;  %v1734_v50 = vshll.u32 %v6190_v17, 16  ;;  %v1723_v48 = vrot.slane %v1721_v19, 5  ;;  %v1726_v18 = vrot.slane %v1724_v43, 6  ;;  %v2905_v22 = vsel %vm5274_vm12, %v2903_v29, %v2904_v16  ;;  %vm6914_vm1 = vmmov %vm6886_vm0 }
 0x10b   :  { %476 = vst.msk [vmem:[#allocation3 + $0x108] sm:$0xf] %vm6910_vm6, %v6188_v6  ;;  %3472 = vmatmul.mubr.bf16.gmra.mrb[16].mxu0 %v4208_v9  ;;  %v2906_v5 = vrot.slane %v2904_v16, 4  ;;  %v2910_v35 = vrot.slane %v6188_v6, 7  ;;  %v6252_v9 = vcombine.low %v1441_v53, %v1441_v53  ;;  %vm6915_vm6 = vcmask 261120  }
 0x10c   :  { %1811 = vst.msk [vmem:[#allocation3 + $0xd0] sm:$0xf] %vm6911_vm7, %v1698_v30  ;;  %v1094_v24 = vpop.permute.xlu1 %1093  ;;  %2018 = vrot.lane.b32.xlu0 %v6013_v26, %s4650_s8  ;;  %v1736_v11 = vrot.slane %v1734_v50, 6  ;;  %v1718_v26 = vsel %vm5118_vm5, %v1709_v38, %v1717_v23  ;;  %v1727_v51 = vor.u32 %v1726_v18, %v1723_v48  ;;  %v6254_v30 = vcombine.high %v1441_v53, %v1441_v53  ;;  %vm6916_vm7 = vmmov %vm6886_vm0 }
 0x10d   :  { %1157 = vst.msk [vmem:[#allocation3 + $0x78] sm:$0xf] %vm1146_vm2, %v1092_v21  ;;  %1158 = vst.msk [vmem:[#allocation3 + $0x84] sm:$0xf] %vm1146_vm2, %v1094_v24  ;;  %v4623_v41 = vld [vmem:[#allocation3 + $0xb0] ss:$12 sps:$4 sm:$0xff]   ;;  %v2908_v61 = vsel %vm5274_vm12, %v2906_v5, %v2907_v54  ;;  %v2629_v5 = vsel %vm4907_vm14, %v2620_v37, %v6145_v27 }
 0x10e   :  { %1812 = vst.msk [vmem:[#allocation3 + $0xdc] sm:$0xf] %vm6886_vm0, %v1708_v1  ;;  %2020 = vrot.lane.b32.xlu1 %v6050_v31, %s4650_s8  ;;  %v2253_v8 = vpop.permute.xlu0 %2252  ;;  %v1737_v25 = vor.u32 %v1736_v11, %v1733_v40  ;;  %4410 = vmatmul.mubr.msk.bf16.gmra.mrb[28].mxu1 %vm6915_vm6, %v4623_v41  ;;  %v1729_v56 = vrot.slane %v1727_v51, 4  ;;  %v1728_v14 = vsel %vm5118_vm5, %v1719_v58, %v1727_v51  ;;  %v2909_v47 = vrot.slane %v2907_v54, 4  ;;  %vm6920_vm6 = vmmov %vm6886_vm0  ;;  %v6336_v37 = vld [vmem:[#allocation2 + $0x60] sm:$0x1f] }
 0x10f   :  { %2968 = vst.msk [vmem:[#allocation3 + $0xc8] sm:$0xf] %vm6912_vm11, %v2902_v10  ;;  %4413 = vmatprep.mubr.msk.bf16.mxu1 %vm4653_vm15, %v4652_v42  ;;  %v1744_v6 = vshll.u32 %v6252_v9, 16  ;;  %v1751_v4 = vshrl.u32 %v6254_v30, 16  ;;  %v1754_v16 = vshll.u32 %v6254_v30, 16  ;;  %v795_v21 = vrot.slane %v2622_v28, 4  ;;  %vm6917_vm11 = vmmov %vm6886_vm0 }
 0x110   :  { %1813 = vst.msk [vmem:[#allocation3 + $0xe8] sm:$0xf] %vm6913_vm9, %v1718_v26  ;;  %v2255_v46 = vpop.permute.xlu1 %2254  ;;  %1111 = vrot.lane.b32.xlu0 %v6017_v20, %s4649_s7  ;;  %v1741_v20 = vshrl.u32 %v6252_v9, 16  ;;  %v1738_v23 = vsel %vm5118_vm5, %v1729_v56, %v1737_v25  ;;  %v2911_v43 = vsel %vm5274_vm12, %v2909_v47, %v2910_v35  ;;  %v2913_v50 = vrot.slane %v6190_v17, 7  ;;  %vm6918_vm9 = vmmov %vm6886_vm0 }
 0x111   :  { %2969 = vst.msk [vmem:[#allocation3 + $0xd4] sm:$0xf] %vm6914_vm1, %v2905_v22  ;;  %v1746_v38 = vrot.slane %v1744_v6, 6  ;;  %v1753_v1 = vrot.slane %v1751_v4, 5  ;;  %v1756_v10 = vrot.slane %v1754_v16, 6  ;;  %v1739_v29 = vrot.slane %v1737_v25, 4  ;;  %vm6919_vm1 = vmmov %vm6886_vm0 }
 0x112   :  { %2317 = vst.msk [vmem:[#allocation3 + $0x7c] sm:$0xf] %vm1146_vm2, %v2253_v8  ;;  %2318 = vst.msk [vmem:[#allocation3 + $0x88] sm:$0xf] %vm1146_vm2, %v2255_v46  ;;  %1113 = vrot.lane.b32.xlu1 %v6098_v44, %s4649_s7  ;;  %v1349_v19 = vpop.permute.xlu0 %1348  ;;  %v1743_v28 = vrot.slane %v1741_v20, 5  ;;  %v2912_v48 = vrot.slane %v2910_v35, 4  ;;  %v786_v11 = vor.u32 %v6241_v63, %v5991_v7  ;;  %v4032_v20 = vcombine.low %v6336_v37, %v6336_v37 }
 0x113   :  { %1814 = vst.msk [vmem:[#allocation3 + $0xf4] sm:$0xf] %vm6916_vm7, %v1728_v14  ;;  %v2915_v18 = vrot.slane %v2913_v50, 4  ;;  %v2916_v17 = vrot.slane %v6252_v9, 7  ;;  %v2630_v40 = vrot.slane %v6145_v27, 4  ;;  %v6295_v26 = vor.u32 %v1756_v10, %v1753_v1 }
 0x114   :  { %2970 = vst.msk [vmem:[#allocation3 + $0xe0] sm:$0xf] %vm6886_vm0, %v2908_v61  ;;  %v1351_v24 = vpop.permute.xlu1 %1350  ;;  %2272 = vrot.lane.b32.xlu0 %v6050_v31, %s4649_s7  ;;  %v1747_v41 = vor.u32 %v1746_v38, %v1743_v28  ;;  %v796_v31 = vor.u32 %v795_v21, %v6147_v15  ;;  %v799_v58 = vshll.u32 %v6138_v13, 16  ;;  %v2914_v8 = vsel %vm5274_vm12, %v2912_v48, %v2913_v50  ;;  %v6350_v6 = vld [vmem:[#allocation2 + $0x68] sm:$0x3f] }
 0x115   :  { %1414 = vst.msk [vmem:[#allocation3 + $0x78] sm:$0xf] %vm1403_vm10, %v1349_v19  ;;  %1415 = vst.msk [vmem:[#allocation3 + $0x84] sm:$0xf] %vm1403_vm10, %v1351_v24  ;;  %v2917_v51 = vsel %vm5274_vm12, %v2915_v18, %v2916_v17  ;;  %vm6921_vm7 = vcmask 261120   ;;  %v787_v54 = vrot.slane %v786_v11, 4  ;;  %v2639_v35 = vsel %vm4907_vm14, %v2630_v40, %v6195_v32 }
 0x116   :  { %1815 = vst.msk [vmem:[#allocation3 + $0x100] sm:$0xf] %vm6917_vm11, %v1738_v23  ;;  %2274 = vrot.lane.b32.xlu1 %v6118_v59, %s4649_s7  ;;  %v2691_v22 = vpop.permute.xlu0 %2690  ;;  %v1749_v7 = vrot.slane %v1747_v41, 4  ;;  %v1748_v63 = vsel %vm5118_vm5, %v1739_v29, %v1747_v41  ;;  %v797_v56 = vrot.slane %v796_v31, 4  ;;  %v6330_v14 = vrot.slane %v799_v58, 5  ;;  %vm6922_vm11 = vmmov %vm6886_vm0 }
 0x117   :  { %2971 = vst.msk [vmem:[#allocation3 + $0xec] sm:$0xf] %vm6918_vm9, %v2911_v43  ;;  %v792_v47 = vsel %vm4838_vm13, %v787_v54, %v6147_v15  ;;  %v6352_v4 = vld [vmem:[#allocation2 + $0x68] sm:$0x7f]  ;;  %v1973_v23 = vrot.slane %v6334_v49, 6  ;;  %v4139_v24 = vcombine.low %v6350_v6, %v6350_v6  ;;  %vm6923_vm9 = vmmov %vm6921_vm7  ;;  %v6367_v28 = vrot.slane %v1317_v0, 4 }
 0x118   :  { %v4628_v53 = vld [vmem:[#allocation3 + $0xc8] ss:$12 sps:$4 sm:$0xff]   ;;  %v2693_v25 = vpop.permute.xlu1 %2692  ;;  %2755 = vst.msk [vmem:[#allocation3 + $0x7c] sm:$0xf] %vm1403_vm10, %v2691_v22  ;;  %1368 = vrot.lane.b32.xlu0 %v6098_v44, %s4651_s13  ;;  %v1758_v44 = vsel %vm5118_vm5, %v1749_v7, %v6295_v26  ;;  %v802_v19 = vsel %vm4838_vm13, %v797_v56, %v6330_v14  ;;  %v6369_v38 = vrot.slane %v4032_v20, 5  ;;  %v4166_v1 = vcombine.low %v6352_v4, %v6352_v4 }
 0x119   :  { %2972 = vst.msk [vmem:[#allocation3 + $0xf8] sm:$0xf] %vm6919_vm1, %v2914_v8  ;;  %4414 = vmatmul.mubr.msk.bf16.gmra.mrb[32].mxu1 %vm6921_vm7, %v4628_v53  ;;  %v2642_v10 = vshrl.u32 %v6334_v49, 16  ;;  %v1974_v48 = vsel %vm4780_vm4, %v1972_v45, %v1973_v23  ;;  %v2645_v18 = vshll.u32 %v6334_v49, 16  ;;  %v6380_v40 = vrot.slane %v1973_v23, 4  ;;  %vm6924_vm1 = vmmov %vm6921_vm7 }
 0x11a   :  { %2973 = vst.msk [vmem:[#allocation3 + $0x104] sm:$0xf] %vm6920_vm6, %v2917_v51  ;;  %1370 = vrot.lane.b32.xlu1 %v6124_v55, %s4651_s13  ;;  %4417 = vmatprep.mubr.msk.bf16.mxu1 %vm4653_vm15, %v4652_v42  ;;  %v838_v46 = vpop.permute.xlu0 %837  ;;  %v6385_v11 = vrot.slane %v4139_v24, 6  ;;  %v1320_v53 = vrot.slane %v6061_v33, 5  ;;  %v1761_v22 = vshrl.u32 %v4639_v52, 16  ;;  %v1764_v31 = vshll.u32 %v4639_v52, 16  ;;  %vm6925_vm6 = vmmov %vm6886_vm0 }
 0x11b   :  { %2756 = vst.msk [vmem:[#allocation3 + $0x88] sm:$0xf] %vm1403_vm10, %v2693_v25  ;;  %v1067_v58 = vsel %vm4772_vm3, %v6367_v28, %v6369_v38  ;;  %v2644_v8 = vrot.slane %v2642_v10, 6  ;;  %v2652_v51 = vshrl.u32 %v4166_v1, 16  ;;  %v803_v25 = vshrl.u32 %v6138_v13, 16  ;;  %vm6926_vm7 = vmmov %vm6886_vm0 }
 0x11c   :  { %1816 = vst.msk [vmem:[#allocation3 + $0x10c] sm:$0xf] %vm6886_vm0, %v1748_v63  ;;  %v840_v27 = vpop.permute.xlu1 %839  ;;  %2710 = vrot.lane.b32.xlu0 %v2629_v5, %s4651_s13  ;;  %v2655_v63 = vshll.u32 %v4166_v1, 16  ;;  %v1763_v5 = vrot.slane %v1761_v22, 5  ;;  %v1766_v54 = vrot.slane %v1764_v31, 6  ;;  %v2228_v13 = vsel %vm4780_vm4, %v6380_v40, %v6385_v11 }
 0x11d   :  { %1817 = vst.msk [vmem:[#allocation3 + $0x118] sm:$0xf] %vm6922_vm11, %v1758_v44  ;;  %v1323_v44 = vrot.slane %v6334_v49, 5  ;;  %v2919_v20 = vrot.slane %v6254_v30, 7  ;;  %v1321_v2 = vsel %vm4772_vm3, %v6367_v28, %v1320_v53  ;;  %v2640_v30 = vrot.slane %v6195_v32, 4  ;;  %vm6928_vm11 = vmmov %vm6924_vm1 }
 0x11e   :  { %901 = vst.msk [vmem:[#allocation3 + $0x90] sm:$0xf] %vm888_vm8, %v838_v46  ;;  %902 = vst.msk [vmem:[#allocation3 + $0x9c] sm:$0xf] %vm888_vm8, %v840_v27  ;;  %v4633_v61 = vld [vmem:[#allocation3 + $0xe0] ss:$12 sps:$4 sm:$0xff]   ;;  %2712 = vrot.lane.b32.xlu1 %v2639_v35, %s4651_s13  ;;  %v2003_v16 = vpop.permute.xlu0 %2002  ;;  %v1767_v56 = vor.u32 %v1766_v54, %v1763_v5  ;;  %v4033_v52 = vcombine.high %v6336_v37, %v6336_v37 }
 0x11f   :  { %v2997_v21 = vld [vmem:[#allocation3 + $0x78] sm:$0xff]  ;;  %2065 = vst.msk [vmem:[#allocation3 + $0x94] sm:$0xf] %vm888_vm8, %v2003_v16  ;;  %v1322_v46 = vrot.slane %v1320_v53, 4  ;;  %v1759_v35 = vrot.slane %v6295_v26, 4 }
 0x120   :  { %v2005_v43 = vpop.permute.xlu1 %2004  ;;  %857 = vrot.lane.b32.xlu0 %v792_v47, %s4650_s8  ;;  %v6405_v27 = vld [vmem:[#allocation2 + $0x68] sm:$0x7f]  ;;  %v805_v47 = vrot.slane %v803_v25, 4  ;;  %v2229_v25 = vrot.slane %v6385_v11, 4 }
 0x121   :  { %2066 = vst.msk [vmem:[#allocation3 + $0xa0] sm:$0xf] %vm888_vm8, %v2005_v43  ;;  %4418 = vmatmul.mubr.msk.bf16.gmra.mrb[36].mxu1 %vm6923_vm9, %v4633_v61  ;;  %v4638_v41 = vld [vmem:[#allocation3 + $0xf8] ss:$12 sps:$4 sm:$0xff]   ;;  %v4007_v61 = vcombine.high %v6108_v39, %v6108_v39  ;;  %v4192_v45 = vcombine.low %v6405_v27, %v6405_v27  ;;  %v1768_v23 = vsel %vm5118_vm5, %v1759_v35, %v1767_v56  ;;  %v2918_v39 = vrot.slane %v2916_v17, 4  ;;  %vm6927_vm5 = vmmov %vm6886_vm0 }
 0x122   :  { %v2999_v15 = vld [vmem:[#allocation3 + $0x84] sm:$0xff]  ;;  %859 = vrot.lane.b32.xlu1 %v802_v19, %s4650_s8  ;;  %v1096_v29 = vpop.permute.xlu0 %1095  ;;  %4421 = vmatprep.mubr.msk.bf16.mxu1 %vm4653_vm15, %v4652_v42  ;;  %v2654_v19 = vrot.slane %v2652_v51, 6  ;;  %1818 = vst.msk [vmem:[#allocation3 + $0x124] sm:$0xf] %vm6925_vm6, %v1768_v23  ;;  %v806_v24 = vor.u32 %v805_v47, %v6330_v14  ;;  %v1324_v28 = vsel %vm4772_vm3, %v1322_v46, %v1323_v44 }
 0x123   :  { %v4606_v34 = vld [vmem:[#allocation3 + $0x7c] ss:$12 sps:$4 sm:$0xff]   ;;  %v4211_v50 = vcombine.low %v2997_v21, %v2999_v15  ;;  %1159 = vst.msk [vmem:[#allocation3 + $0x90] sm:$0xf] %vm1146_vm2, %v1096_v29  ;;  %v2657_v21 = vrot.slane %v2655_v63, 7  ;;  %v2921_v15 = vrot.slane %v2919_v20, 4  ;;  %v2920_v17 = vsel %vm5274_vm12, %v2918_v39, %v2919_v20 }
 0x124   :  { %3479 = vmatprep.mubr.bf16.mxu0 %v4606_v34  ;;  %v1098_v0 = vpop.permute.xlu1 %1097  ;;  %2022 = vrot.lane.b32.xlu0 %v6118_v59, %s4650_s8  ;;  %v2647_v59 = vrot.slane %v2645_v18, 7  ;;  %v6422_v34 = vrot.slane %v4192_v45, 7  ;;  %v809_v9 = vshll.u32 %v4007_v61, 16  ;;  %v4167_v14 = vcombine.high %v6352_v4, %v6352_v4  ;;  %2974 = vst.msk [vmem:[#allocation3 + $0x110] sm:$0xf] %vm6927_vm5, %v2920_v17 }
 0x125   :  { %3480 = vmatmul.mubr.bf16.gmra.mrb[20].mxu0 %v4211_v50  ;;  %1160 = vst.msk [vmem:[#allocation3 + $0x9c] sm:$0xf] %vm1146_vm2, %v1098_v0  ;;  %v4614_v50 = vld [vmem:[#allocation2 + $0x68] ss:$0 sps:$4 sm:$0x33]   ;;  %v6441_v29 = vor.u32 %v2657_v21, %v2654_v19  ;;  %v4140_v18 = vcombine.high %v6350_v6, %v6350_v6  ;;  %v807_v53 = vrot.slane %v806_v24, 4  ;;  %v4193_v37 = vcombine.high %v6405_v27, %v6405_v27 }
 0x126   :  { %2024 = vrot.lane.b32.xlu1 %v1974_v48, %s4650_s8  ;;  %v2257_v7 = vpop.permute.xlu0 %2256  ;;  %v2648_v26 = vor.u32 %v2647_v59, %v2644_v8  ;;  %v2923_v1 = vsel %vm5274_vm12, %v2921_v15, %v6422_v34  ;;  %v1976_v0 = vrot.slane %v4614_v50, 6  ;;  %v2665_v8 = vshll.u32 %v4167_v14, 16  ;;  %v4618_v6 = vld [vmem:[#allocation2 + $0x68] ss:$0 sps:$4 sm:$0x11]  }
 0x127   :  { %2319 = vst.msk [vmem:[#allocation3 + $0x94] sm:$0xf] %vm1146_vm2, %v2257_v7  ;;  %v2230_v7 = vrot.slane %v4140_v18, 6  ;;  %v1068_v59 = vrot.slane %v6369_v38, 4  ;;  %v1069_v63 = vrot.slane %v4033_v52, 5  ;;  %v2924_v11 = vrot.slane %v6422_v34, 4 }
 0x128   :  { %v2259_v33 = vpop.permute.xlu1 %2258  ;;  %1115 = vrot.lane.b32.xlu0 %v6124_v55, %s4649_s7  ;;  %v4640_v55 = vld [vmem:[#allocation2 + $0x60] ss:$0 sps:$4 sm:$0xff]   ;;  %v2650_v32 = vrot.slane %v2648_v26, 4  ;;  %2975 = vst.msk [vmem:[#allocation3 + $0x11c] sm:$0xf] %vm6886_vm0, %v2923_v1  ;;  %v2649_v4 = vsel %vm4907_vm14, %v2640_v30, %v2648_v26  ;;  %v1977_v5 = vsel %vm4780_vm4, %v6380_v40, %v1976_v0  ;;  %v2667_v56 = vrot.slane %v2665_v8, 7 }
 0x129   :  { %2320 = vst.msk [vmem:[#allocation3 + $0xa0] sm:$0xf] %vm1146_vm2, %v2259_v33  ;;  %4422 = vmatmul.mubr.msk.bf16.gmra.mrb[40].mxu1 %vm6924_vm1, %v4638_v41  ;;  %v811_v41 = vrot.slane %v809_v9, 5  ;;  %v2925_v27 = vrot.slane %v4193_v37, 7  ;;  %v1325_v45 = vrot.slane %v1323_v44, 4  ;;  %v1326_v20 = vrot.slane %v4618_v6, 5 }
 0x12a   :  { %1117 = vrot.lane.b32.xlu1 %v1067_v58, %s4649_s7  ;;  %4425 = vmatprep.mubr.msk.bf16.mxu1 %vm4653_vm15, %v4652_v42  ;;  %v1353_v16 = vpop.permute.xlu0 %1352  ;;  %478 = vst.msk [vmem:[#allocation3 + $0x120] sm:$0xf] %vm6926_vm7, %v4640_v55  ;;  %v2659_v31 = vsel %vm4907_vm14, %v2650_v32, %v6441_v29  ;;  %v2662_v58 = vshrl.u32 %v4167_v14, 16  ;;  %v1070_v55 = vsel %vm4772_vm3, %v1068_v59, %v1069_v63  ;;  %v2660_v3 = vrot.slane %v6441_v29, 4 }
 0x12b   :  { %1416 = vst.msk [vmem:[#allocation3 + $0x90] sm:$0xf] %vm1403_vm10, %v1353_v16  ;;  %v812_v54 = vsel %vm4838_vm13, %v807_v53, %v811_v41  ;;  %v2926_v40 = vsel %vm5274_vm12, %v2924_v11, %v2925_v27  ;;  %vm6929_vm13 = vmmov %vm6886_vm0  ;;  %v2231_v26 = vsel %vm4780_vm4, %v2229_v25, %v2230_v7  ;;  %v1327_v49 = vsel %vm4772_vm3, %v1325_v45, %v1326_v20 }
 0x12c   :  { %v1355_v43 = vpop.permute.xlu1 %1354  ;;  %2276 = vrot.lane.b32.xlu0 %v1974_v48, %s4649_s7  ;;  %v2664_v35 = vrot.slane %v2662_v58, 6  ;;  %2976 = vst.msk [vmem:[#allocation3 + $0x128] sm:$0xf] %vm6929_vm13, %v2926_v40  ;;  %vm6930_vm4 = vmmov %vm6924_vm1  ;;  %vm3899_vm3 = vcmask 523264  }
 0x12d   :  { %1417 = vst.msk [vmem:[#allocation3 + $0x9c] sm:$0xf] %vm1403_vm10, %v1355_v43 }
 0x12e   :  { %2278 = vrot.lane.b32.xlu1 %v2228_v13, %s4649_s7  ;;  %v2695_v10 = vpop.permute.xlu0 %2694  ;;  %v2668_v19 = vor.u32 %v2667_v56, %v2664_v35 }
 0x12f   :  { %2757 = vst.msk [vmem:[#allocation3 + $0x94] sm:$0xf] %vm1403_vm10, %v2695_v10  ;;  %v4644_v33 = vld [vmem:[#allocation3 + $0x110] ss:$12 sps:$4 sm:$0xff]  }
 0x130   :  { %v2697_v48 = vpop.permute.xlu1 %2696  ;;  %1372 = vrot.lane.b32.xlu0 %v1321_v2, %s4651_s13  ;;  %v2669_v62 = vsel %vm4907_vm14, %v2660_v3, %v2668_v19  ;;  %v6547_v19 = vld [vmem:[%s6805_s2] ss:$0 sm:$0xff]  ;;  %vm3715_vm14 = vcmask 588800  }
 0x131   :  { %2758 = vst.msk [vmem:[#allocation3 + $0xa0] sm:$0xf] %vm1403_vm10, %v2697_v48  ;;  %4426 = vmatmul.mubr.msk.bf16.gmra.mrb[44].mxu1 %vm6928_vm11, %v4644_v33 }
 0x132   :  { %1374 = vrot.lane.b32.xlu1 %v1324_v28, %s4651_s13  ;;  %v842_v22 = vpop.permute.xlu0 %841  ;;  %4429 = vmatprep.mubr.msk.bf16.mxu1 %vm4653_vm15, %v4652_v42  ;;  %vm3788_vm15 = vcmask 516096  }
 0x133   :  { %903 = vst.msk [vmem:[#allocation3 + $0xa8] sm:$0xf] %vm888_vm8, %v842_v22  ;;  %v4647_v43 = vld [vmem:[#allocation3 + $0x128] ss:$0 sps:$4 sm:$0xff]  }
 0x134   :  { %v844_v51 = vpop.permute.xlu1 %843  ;;  %2714 = vrot.lane.b32.xlu0 %v2649_v4, %s4651_s13 }
 0x135   :  { %904 = vst.msk [vmem:[#allocation3 + $0xb4] sm:$0xf] %vm888_vm8, %v844_v51 }
 0x136   :  { %2716 = vrot.lane.b32.xlu1 %v2659_v31, %s4651_s13  ;;  %v2007_v13 = vpop.permute.xlu0 %2006  ;;  %v3001_v46 = vld [vmem:[#allocation3 + $0x90] sm:$0xff] }
 0x137   :  { %2067 = vst.msk [vmem:[#allocation3 + $0xac] sm:$0xf] %vm888_vm8, %v2007_v13 }
 0x138   :  { %v2009_v61 = vpop.permute.xlu1 %2008  ;;  %v3003_v38 = vld [vmem:[#allocation3 + $0x9c] sm:$0xff]  ;;  %861 = vrot.lane.b32.xlu0 %v812_v54, %s4650_s8 }
 0x139   :  { %v4615_v47 = vld [vmem:[#allocation3 + $0x94] ss:$12 sps:$4 sm:$0xff]   ;;  %2068 = vst.msk [vmem:[#allocation3 + $0xb8] sm:$0xf] %vm888_vm8, %v2009_v61  ;;  %v4214_v60 = vcombine.low %v3001_v46, %v3003_v38  ;;  %4430 = vmatmul.mubr.msk.bf16.gmra.mrb[48].mxu1 %vm6930_vm4, %v4647_v43 }
 0x13a   :  { %2026 = vrot.lane.b32.xlu1 %v1977_v5, %s4650_s8  ;;  %3487 = vmatprep.mubr.bf16.mxu0 %v4615_v47  ;;  %v1100_v16 = vpop.permute.xlu0 %1099 }
 0x13b   :  { %3488 = vmatmul.mubr.bf16.gmra.mrb[24].mxu0 %v4214_v60  ;;  %1161 = vst.msk [vmem:[#allocation3 + $0xa8] sm:$0xf] %vm1146_vm2, %v1100_v16 }
 0x13c   :  { %v1102_v21 = vpop.permute.xlu1 %1101  ;;  %1119 = vrot.lane.b32.xlu0 %v1070_v55, %s4649_s7 }
 0x13d   :  { %1162 = vst.msk [vmem:[#allocation3 + $0xb4] sm:$0xf] %vm1146_vm2, %v1102_v21 }
 0x13e   :  { %2280 = vrot.lane.b32.xlu1 %v2231_v26, %s4649_s7  ;;  %v2261_v44 = vpop.permute.xlu0 %2260 }
 0x13f   :  { %2321 = vst.msk [vmem:[#allocation3 + $0xac] sm:$0xf] %vm1146_vm2, %v2261_v44 }
 0x140   :  { %v2263_v23 = vpop.permute.xlu1 %2262  ;;  %1376 = vrot.lane.b32.xlu0 %v1327_v49, %s4651_s13 }
 0x141   :  { %2322 = vst.msk [vmem:[#allocation3 + $0xb8] sm:$0xf] %vm1146_vm2, %v2263_v23 }
 0x142   :  { %2718 = vrot.lane.b32.xlu1 %v2669_v62, %s4651_s13  ;;  %v1357_v39 = vpop.permute.xlu0 %1356 }
 0x143   :  { %1418 = vst.msk [vmem:[#allocation3 + $0xa8] sm:$0xf] %vm1403_vm10, %v1357_v39 }
 0x144   :  { %v1359_v15 = vpop.permute.xlu1 %1358 }
 0x145   :  { %1419 = vst.msk [vmem:[#allocation3 + $0xb4] sm:$0xf] %vm1403_vm10, %v1359_v15 }
 0x146   :  { %v2699_v57 = vpop.permute.xlu0 %2698 }
 0x147   :  { %2759 = vst.msk [vmem:[#allocation3 + $0xac] sm:$0xf] %vm1403_vm10, %v2699_v57 }
 0x148   :  { %v2701_v12 = vpop.permute.xlu1 %2700 }
 0x149   :  { %2760 = vst.msk [vmem:[#allocation3 + $0xb8] sm:$0xf] %vm1403_vm10, %v2701_v12 }
 0x14a   :  { %v846_v34 = vpop.permute.xlu0 %845 }
 0x14b   :  { %905 = vst.msk [vmem:[#allocation3 + $0xc0] sm:$0xf] %vm888_vm8, %v846_v34 }
 0x14c   :  { %v848_v2 = vpop.permute.xlu1 %847 }
 0x14d   :  { %906 = vst.msk [vmem:[#allocation3 + $0xcc] sm:$0xf] %vm888_vm8, %v848_v2 }
 0x14e   :  { %v2011_v30 = vpop.permute.xlu0 %2010  ;;  %v3005_v50 = vld [vmem:[#allocation3 + $0xa8] sm:$0xff] }
 0x14f   :  { %2069 = vst.msk [vmem:[#allocation3 + $0xc4] sm:$0xf] %vm888_vm8, %v2011_v30 }
 0x150   :  { %v2013_v24 = vpop.permute.xlu1 %2012  ;;  %v3007_v9 = vld [vmem:[#allocation3 + $0xb4] sm:$0xff] }
 0x151   :  { %v4621_v17 = vld [vmem:[#allocation3 + $0xac] ss:$12 sps:$4 sm:$0xff]   ;;  %2070 = vst.msk [vmem:[#allocation3 + $0xd0] sm:$0xf] %vm888_vm8, %v2013_v24  ;;  %v4217_v1 = vcombine.low %v3005_v50, %v3007_v9 }
 0x152   :  { %3495 = vmatprep.mubr.bf16.mxu0 %v4621_v17  ;;  %v1104_v10 = vpop.permute.xlu0 %1103 }
 0x153   :  { %3496 = vmatmul.mubr.bf16.gmra.mrb[28].mxu0 %v4217_v1  ;;  %1163 = vst.msk [vmem:[#allocation3 + $0xc0] sm:$0xf] %vm1146_vm2, %v1104_v10 }
 0x154   :  { %v1106_v28 = vpop.permute.xlu1 %1105 }
 0x155   :  { %1164 = vst.msk [vmem:[#allocation3 + $0xcc] sm:$0xf] %vm1146_vm2, %v1106_v28 }
 0x156   :  { %v2265_v32 = vpop.permute.xlu0 %2264  ;;  %v6520_v4 = vpop.f32.mrb[0].mxu1 }
 0x157   :  { %2323 = vst.msk [vmem:[#allocation3 + $0xc4] sm:$0xf] %vm1146_vm2, %v2265_v32  ;;  %v4383_v0 = vpop.f32.mrb[1].mxu1 }
 0x158   :  { %v2267_v29 = vpop.permute.xlu1 %2266  ;;  %v6522_v41 = vpop.f32.mrb[2].mxu1 }
 0x159   :  { %2324 = vst.msk [vmem:[#allocation3 + $0xd0] sm:$0xf] %vm1146_vm2, %v2267_v29  ;;  %v4384_v31 = vpop.f32.mrb[3].mxu1 }
 0x15a   :  { %v1361_v14 = vpop.permute.xlu0 %1360 }
 0x15b   :  { %1420 = vst.msk [vmem:[#allocation3 + $0xc0] sm:$0xf] %vm1403_vm10, %v1361_v14 }
 0x15c   :  { %v1363_v48 = vpop.permute.xlu1 %1362 }
 0x15d   :  { %1421 = vst.msk [vmem:[#allocation3 + $0xcc] sm:$0xf] %vm1403_vm10, %v1363_v48 }
 0x15e   :  { %v2703_v18 = vpop.permute.xlu0 %2702 }
 0x15f   :  { %2761 = vst.msk [vmem:[#allocation3 + $0xc4] sm:$0xf] %vm1403_vm10, %v2703_v18 }
 0x160   :  { %v2705_v52 = vpop.permute.xlu1 %2704 }
 0x161   :  { %2762 = vst.msk [vmem:[#allocation3 + $0xd0] sm:$0xf] %vm1403_vm10, %v2705_v52 }
 0x162   :  { %v850_v53 = vpop.permute.xlu0 %849 }
 0x163   :  { %907 = vst.msk [vmem:[#allocation3 + $0xd8] sm:$0xf] %vm888_vm8, %v850_v53 }
 0x164   :  { %v852_v22 = vpop.permute.xlu1 %851 }
 0x165   :  { %908 = vst.msk [vmem:[#allocation3 + $0xe4] sm:$0xf] %vm888_vm8, %v852_v22 }
 0x166   :  { %v2015_v58 = vpop.permute.xlu0 %2014  ;;  %v3009_v8 = vld [vmem:[#allocation3 + $0xc0] sm:$0xff] }
 0x167   :  { %2071 = vst.msk [vmem:[#allocation3 + $0xdc] sm:$0xf] %vm888_vm8, %v2015_v58 }
 0x168   :  { %v2017_v51 = vpop.permute.xlu1 %2016  ;;  %v3011_v6 = vld [vmem:[#allocation3 + $0xcc] sm:$0xff] }
 0x169   :  { %v4626_v37 = vld [vmem:[#allocation3 + $0xc4] ss:$12 sps:$4 sm:$0xff]   ;;  %2072 = vst.msk [vmem:[#allocation3 + $0xe8] sm:$0xf] %vm888_vm8, %v2017_v51  ;;  %v4220_v25 = vcombine.low %v3009_v8, %v3011_v6 }
 0x16a   :  { %3503 = vmatprep.mubr.bf16.mxu0 %v4626_v37  ;;  %v1108_v7 = vpop.permute.xlu0 %1107 }
 0x16b   :  { %3504 = vmatmul.mubr.bf16.gmra.mrb[32].mxu0 %v4220_v25  ;;  %1165 = vst.msk [vmem:[#allocation3 + $0xd8] sm:$0xf] %vm1146_vm2, %v1108_v7 }
 0x16c   :  { %v1110_v59 = vpop.permute.xlu1 %1109 }
 0x16d   :  { %1166 = vst.msk [vmem:[#allocation3 + $0xe4] sm:$0xf] %vm1146_vm2, %v1110_v59 }
 0x16e   :  { %v2269_v63 = vpop.permute.xlu0 %2268 }
 0x16f   :  { %2325 = vst.msk [vmem:[#allocation3 + $0xdc] sm:$0xf] %vm1146_vm2, %v2269_v63 }
 0x170   :  { %v2271_v5 = vpop.permute.xlu1 %2270  ;;  %v6532_v33 = vpop.f32.mrb[4].mxu1 }
 0x171   :  { %2326 = vst.msk [vmem:[#allocation3 + $0xe8] sm:$0xf] %vm1146_vm2, %v2271_v5  ;;  %v4387_v46 = vpop.f32.mrb[5].mxu1 }
 0x172   :  { %v1365_v54 = vpop.permute.xlu0 %1364  ;;  %v6536_v35 = vpop.f32.mrb[6].mxu1 }
 0x173   :  { %1422 = vst.msk [vmem:[#allocation3 + $0xd8] sm:$0xf] %vm1403_vm10, %v1365_v54  ;;  %v4388_v56 = vpop.f32.mrb[7].mxu1 }
 0x174   :  { %v1367_v13 = vpop.permute.xlu1 %1366 }
 0x175   :  { %1423 = vst.msk [vmem:[#allocation3 + $0xe4] sm:$0xf] %vm1403_vm10, %v1367_v13 }
 0x176   :  { %v2707_v11 = vpop.permute.xlu0 %2706 }
 0x177   :  { %2763 = vst.msk [vmem:[#allocation3 + $0xdc] sm:$0xf] %vm1403_vm10, %v2707_v11 }
 0x178   :  { %v2709_v27 = vpop.permute.xlu1 %2708 }
 0x179   :  { %2764 = vst.msk [vmem:[#allocation3 + $0xe8] sm:$0xf] %vm1403_vm10, %v2709_v27 }
 0x17a   :  { %v854_v61 = vpop.permute.xlu0 %853 }
 0x17b   :  { %909 = vst.msk [vmem:[#allocation3 + $0xf0] sm:$0xf] %vm888_vm8, %v854_v61 }
 0x17c   :  { %v856_v38 = vpop.permute.xlu1 %855 }
 0x17d   :  { %910 = vst.msk [vmem:[#allocation3 + $0xfc] sm:$0xf] %vm888_vm8, %v856_v38 }
 0x17e   :  { %v2019_v47 = vpop.permute.xlu0 %2018  ;;  %v3013_v60 = vld [vmem:[#allocation3 + $0xd8] sm:$0xff] }
 0x17f   :  { %2073 = vst.msk [vmem:[#allocation3 + $0xf4] sm:$0xf] %vm888_vm8, %v2019_v47  ;;  %v6552_v15 = vpop.f32.mrb[8].mxu1 }
 0x180   :  { %v2021_v40 = vpop.permute.xlu1 %2020  ;;  %v3015_v55 = vld [vmem:[#allocation3 + $0xe4] sm:$0xff]  ;;  %v4391_v2 = vpop.f32.mrb[9].mxu1 }
 0x181   :  { %v4631_v45 = vld [vmem:[#allocation3 + $0xdc] ss:$12 sps:$4 sm:$0xff]   ;;  %2074 = vst.msk [vmem:[#allocation3 + $0x100] sm:$0xf] %vm888_vm8, %v2021_v40  ;;  %v4223_v20 = vcombine.low %v3013_v60, %v3015_v55  ;;  %v4284_v16 = vpop.f32.mrb[0].mxu0  ;;  %v6558_v30 = vpop.f32.mrb[10].mxu1 }
 0x182   :  { %3511 = vmatprep.mubr.bf16.mxu0 %v4631_v45  ;;  %v1112_v26 = vpop.permute.xlu0 %1111  ;;  %v4285_v3 = vpop.f32.mrb[1].mxu0 }
 0x183   :  { %3512 = vmatmul.mubr.bf16.gmra.mrb[36].mxu0 %v4223_v20  ;;  %1167 = vst.msk [vmem:[#allocation3 + $0xf0] sm:$0xf] %vm1146_vm2, %v1112_v26  ;;  %v4286_v49 = vadd.f32 %v4285_v3, %v4284_v16  ;;  %v4287_v44 = vpop.f32.mrb[2].mxu0  ;;  %v4392_v9 = vpop.f32.mrb[11].mxu1 }
 0x184   :  { %v1114_v21 = vpop.permute.xlu1 %1113  ;;  %v4288_v62 = vpop.f32.mrb[3].mxu0 }
 0x185   :  { %1168 = vst.msk [vmem:[#allocation3 + $0xfc] sm:$0xf] %vm1146_vm2, %v1114_v21  ;;  %v4289_v23 = vadd.f32 %v4288_v62, %v4287_v44  ;;  %v3442_v43 = vadd.f32 %v4286_v49, %v6547_v19 }
 0x186   :  { %v2273_v39 = vpop.permute.xlu0 %2272 }
 0x187   :  { %v3578_v57 = vadd.f32 %v6520_v4, %v3442_v43  ;;  %2327 = vst.msk [vmem:[#allocation3 + $0xf4] sm:$0xf] %vm1146_vm2, %v2273_v39  ;;  %v3445_v34 = vadd.f32 %v4289_v23, %v6547_v19 }
 0x188   :  { %v2275_v12 = vpop.permute.xlu1 %2274 }
 0x189   :  { %2328 = vst.msk [vmem:[#allocation3 + $0x100] sm:$0xf] %vm1146_vm2, %v2275_v12  ;;  %v3679_v50 = vmax.f32 %v3578_v57, 0.0  ;;  %v3581_v24 = vadd.f32 %v6522_v41, %v3445_v34 }
 0x18a   :  { %v1369_v17 = vpop.permute.xlu0 %1368 }
 0x18b   :  { %3900 = vst.msk [vmem:[%s6806_s4] sm:$0xff] %vm3899_vm3, %v3679_v50  ;;  %v3680_v1 = vmax.f32 %v3581_v24, 0.0  ;;  %v3791_v28 = vmul.f32 %v3679_v50, %v3679_v50 }
 0x18c   :  { %v1371_v10 = vpop.permute.xlu1 %1370  ;;  %1424 = vst.msk [vmem:[#allocation3 + $0xf0] sm:$0xf] %vm1403_vm10, %v1369_v17 }
 0x18d   :  { %1425 = vst.msk [vmem:[#allocation3 + $0xfc] sm:$0xf] %vm1403_vm10, %v1371_v10  ;;  %v4434_v32 = vpack.c.bf16 %v3680_v1, %v3679_v50  ;;  %v3792_v29 = vmul.f32 %v3680_v1, %v3680_v1 }
 0x18e   :  { %3901 = vst.msk [vmem:[%s6806_s4 + $0x8] sm:$0xff] %vm3899_vm3, %v3680_v1  ;;  %v2711_v14 = vpop.permute.xlu0 %2710 }
 0x18f   :  { %2765 = vst.msk [vmem:[#allocation3 + $0xf4] sm:$0xf] %vm1403_vm10, %v2711_v14  ;;  %4435 = vmatpush1.bf16.msra.mxu1 %v4434_v32  ;;  %v4470_v18 = vpack.c.bf16 %v3792_v29, %v3791_v28 }
 0x190   :  { %v2713_v48 = vpop.permute.xlu1 %2712  ;;  %4436 = vmatprep.subr.bf16.mxu1 %v4654_v36 }
 0x191   :  { %2766 = vst.msk [vmem:[#allocation3 + $0x100] sm:$0xf] %vm1403_vm10, %v2713_v48  ;;  %4471 = vmatpush1.bf16.msra.mxu0 %v4470_v18  ;;  %v6583_v46 = vpop.f32.mrb[12].mxu1 }
 0x192   :  { %v858_v52 = vpop.permute.xlu0 %857  ;;  %4472 = vmatprep.subr.bf16.mxu0 %v4654_v36  ;;  %v4395_v56 = vpop.f32.mrb[13].mxu1 }
 0x193   :  { %911 = vst.msk [vmem:[#allocation3 + $0x108] sm:$0xf] %vm888_vm8, %v858_v52  ;;  %v6587_v61 = vpop.f32.mrb[14].mxu1 }
 0x194   :  { %v860_v4 = vpop.permute.xlu1 %859  ;;  %v4396_v47 = vpop.f32.mrb[15].mxu1 }
 0x195   :  { %912 = vst.msk [vmem:[#allocation3 + $0x114] sm:$0xf] %vm888_vm8, %v860_v4 }
 0x196   :  { %v4290_v0 = vpop.f32.mrb[4].mxu0  ;;  %v2023_v53 = vpop.permute.xlu0 %2022  ;;  %v3017_v22 = vld [vmem:[#allocation3 + $0xf0] sm:$0xff] }
 0x197   :  { %v4291_v41 = vpop.f32.mrb[5].mxu0  ;;  %2075 = vst.msk [vmem:[#allocation3 + $0x10c] sm:$0xf] %vm888_vm8, %v2023_v53 }
 0x198   :  { %v2025_v31 = vpop.permute.xlu1 %2024  ;;  %v4292_v58 = vadd.f32 %v4291_v41, %v4290_v0  ;;  %v4293_v8 = vpop.f32.mrb[6].mxu0  ;;  %v3019_v51 = vld [vmem:[#allocation3 + $0xfc] sm:$0xff] }
 0x199   :  { %v4636_v6 = vld [vmem:[#allocation3 + $0xf4] ss:$12 sps:$4 sm:$0xff]   ;;  %2076 = vst.msk [vmem:[#allocation3 + $0x118] sm:$0xf] %vm888_vm8, %v2025_v31  ;;  %v4294_v37 = vpop.f32.mrb[7].mxu0  ;;  %v4226_v25 = vcombine.low %v3017_v22, %v3019_v51 }
 0x19a   :  { %v4295_v7 = vadd.f32 %v4294_v37, %v4293_v8  ;;  %3519 = vmatprep.mubr.bf16.mxu0 %v4636_v6  ;;  %v3450_v59 = vadd.f32 %v4292_v58, %v6547_v19  ;;  %v1116_v63 = vpop.permute.xlu0 %1115 }
 0x19b   :  { %3520 = vmatmul.mubr.bf16.gmra.mrb[40].mxu0 %v4226_v25  ;;  %1169 = vst.msk [vmem:[#allocation3 + $0x108] sm:$0xf] %vm1146_vm2, %v1116_v63 }
 0x19c   :  { %v3586_v5 = vadd.f32 %v6532_v33, %v3450_v59  ;;  %v1118_v54 = vpop.permute.xlu1 %1117  ;;  %v3453_v13 = vadd.f32 %v4295_v7, %v6547_v19 }
 0x19d   :  { %1170 = vst.msk [vmem:[#allocation3 + $0x114] sm:$0xf] %vm1146_vm2, %v1118_v54 }
 0x19e   :  { %v3681_v11 = vmax.f32 %v3586_v5, 0.0  ;;  %v3589_v27 = vadd.f32 %v6536_v35, %v3453_v13  ;;  %v2277_v38 = vpop.permute.xlu0 %2276 }
 0x19f   :  { %2329 = vst.msk [vmem:[#allocation3 + $0x10c] sm:$0xf] %vm1146_vm2, %v2277_v38 }
 0x1a0   :  { %3902 = vst.msk [vmem:[%s6806_s4 + $0x10] sm:$0xff] %vm3899_vm3, %v3681_v11  ;;  %v3682_v33 = vmax.f32 %v3589_v27, 0.0  ;;  %v2279_v60 = vpop.permute.xlu1 %2278  ;;  %v3793_v40 = vmul.f32 %v3681_v11, %v3681_v11 }
 0x1a1   :  { %2330 = vst.msk [vmem:[#allocation3 + $0x118] sm:$0xf] %vm1146_vm2, %v2279_v60 }
 0x1a2   :  { %v4437_v55 = vpack.c.bf16 %v3682_v33, %v3681_v11  ;;  %v3794_v45 = vmul.f32 %v3682_v33, %v3682_v33  ;;  %3903 = vst.msk [vmem:[%s6806_s4 + $0x18] sm:$0xff] %vm3899_vm3, %v3682_v33  ;;  %v1373_v35 = vpop.permute.xlu0 %1372 }
 0x1a3   :  { %1426 = vst.msk [vmem:[#allocation3 + $0x108] sm:$0xf] %vm1403_vm10, %v1373_v35 }
 0x1a4   :  { %v1375_v20 = vpop.permute.xlu1 %1374  ;;  %4438 = vmatpush1.bf16.msra.mxu1 %v4437_v55  ;;  %v4473_v16 = vpack.c.bf16 %v3794_v45, %v3793_v40 }
 0x1a5   :  { %1427 = vst.msk [vmem:[#allocation3 + $0x114] sm:$0xf] %vm1403_vm10, %v1375_v20  ;;  %4439 = vmatprep.subr.bf16.mxu1 %v4654_v36 }
 0x1a6   :  { %4474 = vmatpush1.bf16.msra.mxu0 %v4473_v16  ;;  %v2715_v26 = vpop.permute.xlu0 %2714 }
 0x1a7   :  { %4475 = vmatprep.subr.bf16.mxu0 %v4654_v36  ;;  %2767 = vst.msk [vmem:[#allocation3 + $0x10c] sm:$0xf] %vm1403_vm10, %v2715_v26 }
 0x1a8   :  { %v2717_v3 = vpop.permute.xlu1 %2716 }
 0x1a9   :  { %2768 = vst.msk [vmem:[#allocation3 + $0x118] sm:$0xf] %vm1403_vm10, %v2717_v3  ;;  %v3609_v48 = vpop.f32.mrb[16].mxu1 }
 0x1aa   :  { %v862_v21 = vpop.permute.xlu0 %861  ;;  %v4399_v18 = vpop.f32.mrb[17].mxu1 }
 0x1ab   :  { %913 = vst.msk [vmem:[#allocation3 + $0x120] sm:$0xf] %vm888_vm8, %v862_v21  ;;  %v3612_v4 = vpop.f32.mrb[18].mxu1 }
 0x1ac   :  { %v2027_v49 = vpop.permute.xlu1 %2026 }
 0x1ad   :  { %2077 = vst.msk [vmem:[#allocation3 + $0x124] sm:$0xf] %vm888_vm8, %v2027_v49 }
 0x1ae   :  { %v4296_v44 = vpop.f32.mrb[8].mxu0  ;;  %v1120_v62 = vpop.permute.xlu0 %1119  ;;  %v3021_v43 = vld [vmem:[#allocation3 + $0x108] sm:$0xff] }
 0x1af   :  { %v4297_v23 = vpop.f32.mrb[9].mxu0  ;;  %1171 = vst.msk [vmem:[#allocation3 + $0x120] sm:$0xf] %vm1146_vm2, %v1120_v62 }
 0x1b0   :  { %v2281_v39 = vpop.permute.xlu1 %2280  ;;  %v4298_v57 = vadd.f32 %v4297_v23, %v4296_v44  ;;  %v4299_v12 = vpop.f32.mrb[10].mxu0  ;;  %v3023_v34 = vld [vmem:[#allocation3 + $0x114] sm:$0xff] }
 0x1b1   :  { %v4641_v2 = vld [vmem:[#allocation3 + $0x10c] ss:$12 sps:$4 sm:$0xff]   ;;  %2331 = vst.msk [vmem:[#allocation3 + $0x124] sm:$0xf] %vm1146_vm2, %v2281_v39  ;;  %v4300_v50 = vpop.f32.mrb[11].mxu0  ;;  %v4229_v24 = vcombine.low %v3021_v43, %v3023_v34 }
 0x1b2   :  { %v4301_v9 = vadd.f32 %v4300_v50, %v4299_v12  ;;  %3527 = vmatprep.mubr.bf16.mxu0 %v4641_v2  ;;  %v3458_v17 = vadd.f32 %v4298_v57, %v6547_v19  ;;  %v1377_v1 = vpop.permute.xlu0 %1376 }
 0x1b3   :  { %3528 = vmatmul.mubr.bf16.gmra.mrb[44].mxu0 %v4229_v24  ;;  %1428 = vst.msk [vmem:[#allocation3 + $0x120] sm:$0xf] %vm1403_vm10, %v1377_v1 }
 0x1b4   :  { %v3594_v10 = vadd.f32 %v6552_v15, %v3458_v17  ;;  %v2719_v28 = vpop.permute.xlu1 %2718  ;;  %v3461_v32 = vadd.f32 %v4301_v9, %v6547_v19  ;;  %v4400_v15 = vpop.f32.mrb[19].mxu1 }
 0x1b5   :  { %2769 = vst.msk [vmem:[#allocation3 + $0x124] sm:$0xf] %vm1403_vm10, %v2719_v28 }
 0x1b6   :  { %v3683_v29 = vmax.f32 %v3594_v10, 0.0  ;;  %v3597_v14 = vadd.f32 %v6558_v30, %v3461_v32 }
 0x1b8   :  { %3904 = vst.msk [vmem:[%s6806_s4 + $0x20] sm:$0xff] %vm3899_vm3, %v3683_v29  ;;  %v3684_v52 = vmax.f32 %v3597_v14, 0.0  ;;  %v3795_v0 = vmul.f32 %v3683_v29, %v3683_v29 }
 0x1ba   :  { %v4440_v53 = vpack.c.bf16 %v3684_v52, %v3683_v29  ;;  %v3796_v41 = vmul.f32 %v3684_v52, %v3684_v52  ;;  %3905 = vst.msk [vmem:[%s6806_s4 + $0x28] sm:$0xff] %vm3899_vm3, %v3684_v52 }
 0x1bc   :  { %4441 = vmatpush1.bf16.msra.mxu1 %v4440_v53  ;;  %v3025_v30 = vld [vmem:[#allocation3 + $0x120] sm:$0xff]  ;;  %v4476_v22 = vpack.c.bf16 %v3796_v41, %v3795_v0 }
 0x1bd   :  { %v4233_v31 = vcombine.high %v3025_v30, %v3025_v30  ;;  %v4232_v58 = vcombine.low %v3025_v30, %v3025_v30  ;;  %4442 = vmatprep.subr.bf16.mxu1 %v4654_v36 }
 0x1be   :  { %4477 = vmatpush1.bf16.msra.mxu0 %v4476_v22 }
 0x1bf   :  { %3535 = vmatprep.mubr.bf16.mxu0 %v4233_v31  ;;  %4478 = vmatprep.subr.bf16.mxu0 %v4654_v36 }
 0x1c0   :  { %3536 = vmatmul.mubr.bf16.gmra.mrb[48].mxu0 %v4232_v58 }
 0x1c3   :  { %v6625_v7 = vpop.f32.mrb[20].mxu1 }
 0x1c4   :  { %v4403_v5 = vpop.f32.mrb[21].mxu1 }
 0x1c5   :  { %v6628_v54 = vpop.f32.mrb[22].mxu1 }
 0x1c6   :  { %v4302_v8 = vpop.f32.mrb[12].mxu0  ;;  %v4404_v11 = vpop.f32.mrb[23].mxu1 }
 0x1c7   :  { %v4303_v51 = vpop.f32.mrb[13].mxu0 }
 0x1c8   :  { %v4304_v6 = vadd.f32 %v4303_v51, %v4302_v8  ;;  %v4305_v37 = vpop.f32.mrb[14].mxu0 }
 0x1c9   :  { %v4306_v25 = vpop.f32.mrb[15].mxu0 }
 0x1ca   :  { %v4307_v59 = vadd.f32 %v4306_v25, %v4305_v37  ;;  %v3466_v63 = vadd.f32 %v4304_v6, %v6547_v19 }
 0x1cc   :  { %v3602_v13 = vadd.f32 %v6583_v46, %v3466_v63  ;;  %v3469_v56 = vadd.f32 %v4307_v59, %v6547_v19 }
 0x1ce   :  { %v3685_v27 = vmax.f32 %v3602_v13, 0.0  ;;  %v3605_v38 = vadd.f32 %v6587_v61, %v3469_v56 }
 0x1d0   :  { %3906 = vst.msk [vmem:[%s6806_s4 + $0x30] sm:$0xff] %vm3899_vm3, %v3685_v27  ;;  %v3686_v47 = vmax.f32 %v3605_v38, 0.0  ;;  %v3797_v33 = vmul.f32 %v3685_v27, %v3685_v27 }
 0x1d2   :  { %v4443_v60 = vpack.c.bf16 %v3686_v47, %v3685_v27  ;;  %v3798_v40 = vmul.f32 %v3686_v47, %v3686_v47  ;;  %3907 = vst.msk [vmem:[%s6806_s4 + $0x38] sm:$0xff] %vm3899_vm3, %v3686_v47 }
 0x1d3   :  { %v6643_v61 = vpop.f32.mrb[24].mxu1 }
 0x1d4   :  { %4444 = vmatpush1.bf16.msra.mxu1 %v4443_v60  ;;  %v4479_v46 = vpack.c.bf16 %v3798_v40, %v3797_v33  ;;  %v4407_v55 = vpop.f32.mrb[25].mxu1 }
 0x1d5   :  { %4445 = vmatprep.subr.bf16.mxu1 %v4654_v36  ;;  %v6645_v35 = vpop.f32.mrb[26].mxu1 }
 0x1d6   :  { %4480 = vmatpush1.bf16.msra.mxu0 %v4479_v46  ;;  %v4408_v16 = vpop.f32.mrb[27].mxu1 }
 0x1d7   :  { %4481 = vmatprep.subr.bf16.mxu0 %v4654_v36 }
 0x1de   :  { %v4308_v45 = vpop.f32.mrb[16].mxu0 }
 0x1df   :  { %v4309_v20 = vpop.f32.mrb[17].mxu0 }
 0x1e0   :  { %v4310_v26 = vadd.f32 %v4309_v20, %v4308_v45  ;;  %v4311_v3 = vpop.f32.mrb[18].mxu0 }
 0x1e1   :  { %v4312_v21 = vpop.f32.mrb[19].mxu0  ;;  %v6649_v43 = vpop.f32.mrb[28].mxu1 }
 0x1e2   :  { %v4313_v49 = vadd.f32 %v4312_v21, %v4311_v3  ;;  %v3474_v44 = vadd.f32 %v4310_v26, %v6547_v19  ;;  %v4411_v39 = vpop.f32.mrb[29].mxu1 }
 0x1e3   :  { %v6651_v34 = vpop.f32.mrb[30].mxu1 }
 0x1e4   :  { %v3610_v62 = vadd.f32 %v3609_v48, %v3474_v44  ;;  %v3477_v23 = vadd.f32 %v4313_v49, %v6547_v19  ;;  %v4412_v2 = vpop.f32.mrb[31].mxu1  ;;  %v3706_v49 = vlaneseq }
 0x1e6   :  { %v3687_v57 = vmax.f32 %v3610_v62, 0.0  ;;  %v3613_v12 = vadd.f32 %v3612_v4, %v3477_v23  ;;  %v3707_v39 = vshrl.u32 %v3706_v49, 7 }
 0x1e8   :  { %3908 = vst.msk [vmem:[%s6806_s4 + $0x40] sm:$0xff] %vm3899_vm3, %v3687_v57  ;;  %v3688_v50 = vmax.f32 %v3613_v12, 0.0  ;;  %v3799_v24 = vmul.f32 %v3687_v57, %v3687_v57 }
 0x1ea   :  { %v4446_v9 = vpack.c.bf16 %v3688_v50, %v3687_v57  ;;  %v3800_v17 = vmul.f32 %v3688_v50, %v3688_v50  ;;  %3909 = vst.msk [vmem:[%s6806_s4 + $0x48] sm:$0xff] %vm3899_vm3, %v3688_v50  ;;  %v3704_v50 = vld [vmem:[%s6807_s3] sm:$0x3] }
 0x1ec   :  { %4447 = vmatpush1.bf16.msra.mxu1 %v4446_v9  ;;  %v4482_v1 = vpack.c.bf16 %v3800_v17, %v3799_v24  ;;  %v6661_v10 = vpop.f32.mrb[32].mxu1  ;;  %v3708_v24 = vsub.s32 0, %v3707_v39 }
 0x1ed   :  { %4448 = vmatprep.subr.bf16.mxu1 %v4654_v36  ;;  %v4415_v28 = vpop.f32.mrb[33].mxu1 }
 0x1ee   :  { %4483 = vmatpush1.bf16.msra.mxu0 %v4482_v1  ;;  %v6664_v32 = vpop.f32.mrb[34].mxu1  ;;  %v3790_v1 = vld [vmem:[%s6807_s3] sm:$0x3]  ;;  %v6714_v28 = vrot.slane %v3704_v50, %v3708_v24 }
 0x1ef   :  { %4484 = vmatprep.subr.bf16.mxu0 %v4654_v36  ;;  %v4416_v29 = vpop.f32.mrb[35].mxu1 }
 0x1f4   :  { %v6667_v14 = vpop.f32.mrb[36].mxu1 }
 0x1f5   :  { %v4419_v48 = vpop.f32.mrb[37].mxu1 }
 0x1f6   :  { %v6669_v52 = vpop.f32.mrb[38].mxu1  ;;  %v6716_v48 = vrot.slane %v3790_v1, %v3708_v24 }
 0x1f7   :  { %v4420_v15 = vpop.f32.mrb[39].mxu1 }
 0x1f8   :  { %v4314_v18 = vpop.f32.mrb[20].mxu0 }
 0x1f9   :  { %v4315_v4 = vpop.f32.mrb[21].mxu0 }
 0x1fa   :  { %v4316_v0 = vadd.f32 %v4315_v4, %v4314_v18  ;;  %v4317_v53 = vpop.f32.mrb[22].mxu0 }
 0x1fb   :  { %v4318_v41 = vpop.f32.mrb[23].mxu0 }
 0x1fc   :  { %v4319_v30 = vadd.f32 %v4318_v41, %v4317_v53  ;;  %v3482_v22 = vadd.f32 %v4316_v0, %v6547_v19  ;;  %v6674_v8 = vpop.f32.mrb[40].mxu1 }
 0x1fd   :  { %v4423_v51 = vpop.f32.mrb[41].mxu1 }
 0x1fe   :  { %v3618_v31 = vadd.f32 %v6625_v7, %v3482_v22  ;;  %v3485_v58 = vadd.f32 %v4319_v30, %v6547_v19  ;;  %v6677_v25 = vpop.f32.mrb[42].mxu1 }
 0x1ff   :  { %v4424_v59 = vpop.f32.mrb[43].mxu1 }
 0x200   :  { %v3689_v6 = vmax.f32 %v3618_v31, 0.0  ;;  %v3621_v37 = vadd.f32 %v6628_v54, %v3485_v58 }
 0x202   :  { %3910 = vst.msk [vmem:[%s6806_s4 + $0x50] sm:$0xff] %vm3899_vm3, %v3689_v6  ;;  %v3690_v63 = vmax.f32 %v3621_v37, 0.0  ;;  %v3801_v5 = vmul.f32 %v3689_v6, %v3689_v6 }
 0x204   :  { %v4449_v13 = vpack.c.bf16 %v3690_v63, %v3689_v6  ;;  %v3802_v7 = vmul.f32 %v3690_v63, %v3690_v63  ;;  %3911 = vst.msk [vmem:[%s6806_s4 + $0x58] sm:$0xff] %vm3899_vm3, %v3690_v63  ;;  %v6689_v54 = vpop.f32.mrb[44].mxu1 }
 0x205   :  { %v4427_v11 = vpop.f32.mrb[45].mxu1 }
 0x206   :  { %4450 = vmatpush1.bf16.msra.mxu1 %v4449_v13  ;;  %v4485_v56 = vpack.c.bf16 %v3802_v7, %v3801_v5  ;;  %v6691_v27 = vpop.f32.mrb[46].mxu1 }
 0x207   :  { %4451 = vmatprep.subr.bf16.mxu1 %v4654_v36  ;;  %v4428_v47 = vpop.f32.mrb[47].mxu1 }
 0x208   :  { %4486 = vmatpush1.bf16.msra.mxu0 %v4485_v56 }
 0x209   :  { %4487 = vmatprep.subr.bf16.mxu0 %v4654_v36 }
 0x20c   :  { %v6697_v21 = vpop.f32.mrb[48].mxu1 }
 0x20d   :  { %v4431_v44 = vpop.f32.mrb[49].mxu1 }
 0x20e   :  { %v4320_v38 = vpop.f32.mrb[24].mxu0  ;;  %v3676_v23 = vpop.f32.mrb[50].mxu1 }
 0x20f   :  { %v4321_v33 = vpop.f32.mrb[25].mxu0  ;;  %v4432_v57 = vpop.f32.mrb[51].mxu1 }
 0x210   :  { %v4322_v60 = vadd.f32 %v4321_v33, %v4320_v38  ;;  %v4323_v40 = vpop.f32.mrb[26].mxu0 }
 0x211   :  { %v4324_v46 = vpop.f32.mrb[27].mxu0 }
 0x212   :  { %v4325_v55 = vadd.f32 %v4324_v46, %v4323_v40  ;;  %v3490_v45 = vadd.f32 %v4322_v60, %v6547_v19 }
 0x214   :  { %v3626_v20 = vadd.f32 %v6643_v61, %v3490_v45  ;;  %v3493_v16 = vadd.f32 %v4325_v55, %v6547_v19 }
 0x216   :  { %v3691_v26 = vmax.f32 %v3626_v20, 0.0  ;;  %v3629_v3 = vadd.f32 %v6645_v35, %v3493_v16  ;;  %v3712_v35 = vsub.s32 1, %v3707_v39 }
 0x218   :  { %3912 = vst.msk [vmem:[%s6806_s4 + $0x60] sm:$0xff] %vm3899_vm3, %v3691_v26  ;;  %v3692_v62 = vmax.f32 %v3629_v3, 0.0  ;;  %v3803_v12 = vmul.f32 %v3691_v26, %v3691_v26  ;;  %v3713_v17 = vrot.slane %v3704_v50, %v3712_v35  ;;  %v3824_v29 = vrot.slane %v3790_v1, %v3712_v35 }
 0x21a   :  { %v4452_v61 = vpack.c.bf16 %v3692_v62, %v3691_v26  ;;  %v3804_v2 = vmul.f32 %v3692_v62, %v3692_v62  ;;  %3913 = vst.msk [vmem:[%s6806_s4 + $0x68] sm:$0xff] %vm3899_vm3, %v3692_v62  ;;  %4266 = vmatprep.mubr.msk.f32.mxu1 %vm3715_vm14, %v3713_v17  ;;  %4267 = vmatprep.mubr.msk.f32.mxu0 %vm3715_vm14, %v3824_v29 }
 0x21c   :  { %4453 = vmatpush1.bf16.msra.mxu1 %v4452_v61  ;;  %v4488_v9 = vpack.c.bf16 %v3804_v2, %v3803_v12 }
 0x21d   :  { %4454 = vmatprep.subr.bf16.mxu1 %v4654_v36 }
 0x21e   :  { %4489 = vmatpush1.bf16.msra.mxu0 %v4488_v9 }
 0x21f   :  { %4490 = vmatprep.subr.bf16.mxu0 %v4654_v36 }
 0x226   :  { %v4326_v18 = vpop.f32.mrb[28].mxu0 }
 0x227   :  { %v4327_v4 = vpop.f32.mrb[29].mxu0 }
 0x228   :  { %v4328_v15 = vadd.f32 %v4327_v4, %v4326_v18  ;;  %v4329_v0 = vpop.f32.mrb[30].mxu0 }
 0x229   :  { %v4330_v53 = vpop.f32.mrb[31].mxu0 }
 0x22a   :  { %v4331_v41 = vadd.f32 %v4330_v53, %v4329_v0  ;;  %v3498_v30 = vadd.f32 %v4328_v15, %v6547_v19 }
 0x22c   :  { %v3634_v22 = vadd.f32 %v6649_v43, %v3498_v30  ;;  %v3501_v31 = vadd.f32 %v4331_v41, %v6547_v19 }
 0x22e   :  { %v3693_v58 = vmax.f32 %v3634_v22, 0.0  ;;  %v3637_v51 = vadd.f32 %v6651_v34, %v3501_v31 }
 0x230   :  { %3914 = vst.msk [vmem:[%s6806_s4 + $0x70] sm:$0xff] %vm3899_vm3, %v3693_v58  ;;  %v3694_v6 = vmax.f32 %v3637_v51, 0.0  ;;  %v3805_v37 = vmul.f32 %v3693_v58, %v3693_v58 }
 0x232   :  { %v4455_v59 = vpack.c.bf16 %v3694_v6, %v3693_v58  ;;  %v3806_v63 = vmul.f32 %v3694_v6, %v3694_v6  ;;  %3915 = vst.msk [vmem:[%s6806_s4 + $0x78] sm:$0xff] %vm3899_vm3, %v3694_v6 }
 0x234   :  { %4456 = vmatpush1.bf16.msra.mxu1 %v4455_v59  ;;  %v4491_v43 = vpack.c.bf16 %v3806_v63, %v3805_v37 }
 0x235   :  { %4457 = vmatprep.subr.bf16.mxu1 %v4654_v36 }
 0x236   :  { %4492 = vmatpush1.bf16.msra.mxu0 %v4491_v43 }
 0x237   :  { %4493 = vmatprep.subr.bf16.mxu0 %v4654_v36 }
 0x23e   :  { %v4332_v34 = vpop.f32.mrb[32].mxu0 }
 0x23f   :  { %v4333_v5 = vpop.f32.mrb[33].mxu0 }
 0x240   :  { %v4334_v13 = vadd.f32 %v4333_v5, %v4332_v34  ;;  %v4335_v7 = vpop.f32.mrb[34].mxu0 }
 0x241   :  { %v4336_v56 = vpop.f32.mrb[35].mxu0 }
 0x242   :  { %v4337_v11 = vadd.f32 %v4336_v56, %v4335_v7  ;;  %v3506_v38 = vadd.f32 %v4334_v13, %v6547_v19 }
 0x244   :  { %v3642_v47 = vadd.f32 %v6661_v10, %v3506_v38  ;;  %v3509_v33 = vadd.f32 %v4337_v11, %v6547_v19 }
 0x246   :  { %v3695_v60 = vmax.f32 %v3642_v47, 0.0  ;;  %v3645_v40 = vadd.f32 %v6664_v32, %v3509_v33 }
 0x248   :  { %3916 = vst.msk [vmem:[%s6806_s4 + $0x80] sm:$0xff] %vm3899_vm3, %v3695_v60  ;;  %v3696_v46 = vmax.f32 %v3645_v40, 0.0  ;;  %v3807_v55 = vmul.f32 %v3695_v60, %v3695_v60 }
 0x24a   :  { %v4458_v45 = vpack.c.bf16 %v3696_v46, %v3695_v60  ;;  %v3808_v20 = vmul.f32 %v3696_v46, %v3696_v46  ;;  %3917 = vst.msk [vmem:[%s6806_s4 + $0x88] sm:$0xff] %vm3899_vm3, %v3696_v46 }
 0x24c   :  { %4459 = vmatpush1.bf16.msra.mxu1 %v4458_v45  ;;  %v4494_v10 = vpack.c.bf16 %v3808_v20, %v3807_v55 }
 0x24d   :  { %4460 = vmatprep.subr.bf16.mxu1 %v4654_v36 }
 0x24e   :  { %4495 = vmatpush1.bf16.msra.mxu0 %v4494_v10 }
 0x24f   :  { %4496 = vmatprep.subr.bf16.mxu0 %v4654_v36 }
 0x256   :  { %v4338_v32 = vpop.f32.mrb[36].mxu0 }
 0x257   :  { %v4339_v16 = vpop.f32.mrb[37].mxu0 }
 0x258   :  { %v4340_v26 = vadd.f32 %v4339_v16, %v4338_v32  ;;  %v4341_v3 = vpop.f32.mrb[38].mxu0 }
 0x259   :  { %v4342_v49 = vpop.f32.mrb[39].mxu0 }
 0x25a   :  { %v4343_v44 = vadd.f32 %v4342_v49, %v4341_v3  ;;  %v3514_v62 = vadd.f32 %v4340_v26, %v6547_v19 }
 0x25c   :  { %v3650_v23 = vadd.f32 %v6667_v14, %v3514_v62  ;;  %v3517_v39 = vadd.f32 %v4343_v44, %v6547_v19 }
 0x25e   :  { %v3697_v57 = vmax.f32 %v3650_v23, 0.0  ;;  %v3653_v12 = vadd.f32 %v6669_v52, %v3517_v39 }
 0x260   :  { %3918 = vst.msk [vmem:[%s6806_s4 + $0x90] sm:$0xff] %vm3899_vm3, %v3697_v57  ;;  %v3698_v61 = vmax.f32 %v3653_v12, 0.0  ;;  %v3809_v2 = vmul.f32 %v3697_v57, %v3697_v57 }
 0x262   :  { %v4461_v35 = vpack.c.bf16 %v3698_v61, %v3697_v57  ;;  %v3810_v50 = vmul.f32 %v3698_v61, %v3698_v61  ;;  %3919 = vst.msk [vmem:[%s6806_s4 + $0x98] sm:$0xff] %vm3899_vm3, %v3698_v61 }
 0x264   :  { %4462 = vmatpush1.bf16.msra.mxu1 %v4461_v35  ;;  %v4497_v14 = vpack.c.bf16 %v3810_v50, %v3809_v2 }
 0x265   :  { %4463 = vmatprep.subr.bf16.mxu1 %v4654_v36 }
 0x266   :  { %4498 = vmatpush1.bf16.msra.mxu0 %v4497_v14 }
 0x267   :  { %4499 = vmatprep.subr.bf16.mxu0 %v4654_v36 }
 0x26e   :  { %v4344_v52 = vpop.f32.mrb[40].mxu0 }
 0x26f   :  { %v4345_v24 = vpop.f32.mrb[41].mxu0 }
 0x270   :  { %v4346_v9 = vadd.f32 %v4345_v24, %v4344_v52  ;;  %v4347_v17 = vpop.f32.mrb[42].mxu0 }
 0x271   :  { %v4348_v1 = vpop.f32.mrb[43].mxu0 }
 0x272   :  { %v4349_v29 = vadd.f32 %v4348_v1, %v4347_v17  ;;  %v3522_v18 = vadd.f32 %v4346_v9, %v6547_v19 }
 0x274   :  { %v3658_v4 = vadd.f32 %v6674_v8, %v3522_v18  ;;  %v3525_v15 = vadd.f32 %v4349_v29, %v6547_v19 }
 0x276   :  { %v3699_v0 = vmax.f32 %v3658_v4, 0.0  ;;  %v3661_v53 = vadd.f32 %v6677_v25, %v3525_v15 }
 0x278   :  { %3920 = vst.msk [vmem:[%s6806_s4 + $0xa0] sm:$0xff] %vm3899_vm3, %v3699_v0  ;;  %v3700_v41 = vmax.f32 %v3661_v53, 0.0  ;;  %v3811_v30 = vmul.f32 %v3699_v0, %v3699_v0 }
 0x27a   :  { %v4464_v22 = vpack.c.bf16 %v3700_v41, %v3699_v0  ;;  %v3812_v31 = vmul.f32 %v3700_v41, %v3700_v41  ;;  %3921 = vst.msk [vmem:[%s6806_s4 + $0xa8] sm:$0xff] %vm3899_vm3, %v3700_v41 }
 0x27c   :  { %4465 = vmatpush1.bf16.msra.mxu1 %v4464_v22  ;;  %v4500_v8 = vpack.c.bf16 %v3812_v31, %v3811_v30 }
 0x27d   :  { %4466 = vmatprep.subr.bf16.mxu1 %v4654_v36 }
 0x27e   :  { %4501 = vmatpush1.bf16.msra.mxu0 %v4500_v8 }
 0x27f   :  { %4502 = vmatprep.subr.bf16.mxu0 %v4654_v36 }
 0x286   :  { %v4350_v25 = vpop.f32.mrb[44].mxu0 }
 0x287   :  { %v4351_v58 = vpop.f32.mrb[45].mxu0 }
 0x288   :  { %v4352_v51 = vadd.f32 %v4351_v58, %v4350_v25  ;;  %v4353_v6 = vpop.f32.mrb[46].mxu0 }
 0x289   :  { %v4354_v37 = vpop.f32.mrb[47].mxu0 }
 0x28a   :  { %v3530_v59 = vadd.f32 %v4352_v51, %v6547_v19  ;;  %v4355_v63 = vadd.f32 %v4354_v37, %v4353_v6 }
 0x28c   :  { %v3666_v43 = vadd.f32 %v6689_v54, %v3530_v59  ;;  %v3533_v34 = vadd.f32 %v4355_v63, %v6547_v19 }
 0x28e   :  { %v3701_v5 = vmax.f32 %v3666_v43, 0.0  ;;  %v3669_v13 = vadd.f32 %v6691_v27, %v3533_v34 }
 0x290   :  { %3922 = vst.msk [vmem:[%s6806_s4 + $0xb0] sm:$0xff] %vm3899_vm3, %v3701_v5  ;;  %v3702_v36 = vmax.f32 %v3669_v13, 0.0  ;;  %v3813_v7 = vmul.f32 %v3701_v5, %v3701_v5 }
 0x292   :  { %v4467_v56 = vpack.c.bf16 %v3702_v36, %v3701_v5  ;;  %v3814_v11 = vmul.f32 %v3702_v36, %v3702_v36  ;;  %3923 = vst.msk [vmem:[%s6806_s4 + $0xb8] sm:$0xff] %vm3899_vm3, %v3702_v36 }
 0x293   :  { %v4356_v54 = vpop.f32.mrb[48].mxu0 }
 0x294   :  { %v4357_v38 = vpop.f32.mrb[49].mxu0  ;;  %4468 = vmatpush1.bf16.msra.mxu1 %v4467_v56  ;;  %v4503_v47 = vpack.c.bf16 %v3814_v11, %v3813_v7 }
 0x295   :  { %v4358_v33 = vadd.f32 %v4357_v38, %v4356_v54  ;;  %v4359_v27 = vpop.f32.mrb[50].mxu0  ;;  %3766 = vmatprep.subr.mxu1 %v4652_v42 }
 0x296   :  { %v4360_v60 = vpop.f32.mrb[51].mxu0  ;;  %4504 = vmatpush1.bf16.msra.mxu0 %v4503_v47 }
 0x297   :  { %v3538_v40 = vadd.f32 %v4358_v33, %v6547_v19  ;;  %3876 = vmatprep.subr.mxu0 %v4652_v42 }
 0x299   :  { %v3674_v46 = vadd.f32 %v6697_v21, %v3538_v40 }
 0x29b   :  { %v3703_v55 = vmax.f32 %v3674_v46, 0.0 }
 0x29d   :  { %v3815_v45 = vmul.f32 %v3703_v55, %v3703_v55  ;;  %3924 = vst.msk [vmem:[%s6806_s4 + $0xc0] sm:$0xff] %vm3899_vm3, %v3703_v55  ;;  %3767 = vmatpush1.msra.mxu1 %v3703_v55 }
 0x29e   :  { %3783 = vmatmul.mubr.f32.vlgmr.msra.gmra.mrb[52].mxu1 %v6714_v28 }
 0x29f   :  { %3877 = vmatpush1.msra.mxu0 %v3815_v45 }
 0x2a0   :  { %3893 = vmatmul.mubr.f32.vlgmr.msra.gmra.mrb[52].mxu0 %v6716_v48 }
 0x371   :  { %v3784_v20 = vpop.f32.mrb[52].mxu1 }
 0x372   :  { %3789 = vst.msk [vmem:[%s6808_s5] sm:$0x1] %vm3788_vm15, %v3784_v20  ;;  %v3786_v42 = vpop.f32.mrb[53].mxu1 }
 0x373   :  { %v3894_v19 = vpop.f32.mrb[52].mxu0 }
 0x374   :  { %3898 = vst.msk [vmem:[%s6808_s5 + $0x1] sm:$0x1] %vm3788_vm15, %v3894_v19  ;;  %v3896_v21 = vpop.f32.mrb[53].mxu0 }

// kernel: _lambda_.2
= control target key start
LH: loop header
LB: loop body
LE: loop exit
PB: predicated region body
PF: predicated region fallthrough
CT: control target
= control target key end

     0   :  { %v9508_v1 = vmov 0   ;;  %vm93_vm0 = vsmask.f32 5390  ;;  %vm92_vm1 = vcmask 1045507   ;;  %vm159_vm2 = vcmask 1047558   ;;  %s11711_s1 = inlined_call_operand.vmem [shape: bf16[4608,128], index: 1, kind: input, shape index: {}]   ;;  %s11712_s0 = inlined_call_operand.vmem [shape: bf16[2,16,512], index: 0, kind: input, shape index: {}]   ;;  %s11713_s2 = inlined_call_operand.vmem [shape: f32[1,128], index: 2, kind: input, shape index: {}]   ;;  %s11714_s4 = inlined_call_operand.vmem [shape: f32[1,72,128], index: 4, kind: output, shape index: {0}]   ;;  %s11715_s3 = inlined_call_operand.vmem [shape: f32[1,72], index: 3, kind: input, shape index: {}]   ;;  %s11716_s5 = inlined_call_operand.vmem [shape: f32[1,2,128], index: 5, kind: output, shape index: {1}]  }
   0x1   :  { %v9046_v0 = vld [vmem:[%s11711_s1 + $0x40] sm:$0xff]   ;;  %21 = vst [vmem:[#allocation2 + $0x8] sm:$0xff] %v9508_v1  ;;  %20 = vst [vmem:[#allocation2] sm:$0xff] %v9508_v1  ;;  %v9050_v5 = vld [vmem:[%s11711_s1 + $0x48] sm:$0xff]   ;;  %vm174_vm3 = vcmask 1040384   ;;  %vm300_vm4 = vcmask 1046532  }
   0x2   :  { %22 = vst [vmem:[#allocation2 + $0x10] sm:$0xff] %v9508_v1  ;;  %23 = vst [vmem:[#allocation2 + $0x18] sm:$0xff] %v9508_v1  ;;  %v9047_v2 = vld [vmem:[%s11711_s1 + $0xc0] sm:$0xff]   ;;  %8128 = vmatprep.subr.bf16.mxu0 %v9046_v0  ;;  %v9051_v6 = vld [vmem:[%s11711_s1 + $0xc8] sm:$0xff]   ;;  %vm160_vm5 = vsmask.f32 7962 }
   0x3   :  { %24 = vst [vmem:[#allocation2 + $0x20] sm:$0xff] %v9508_v1  ;;  %25 = vst [vmem:[#allocation2 + $0x28] sm:$0xff] %v9508_v1  ;;  %v9048_v3 = vld [vmem:[%s11711_s1] sm:$0xff]   ;;  %8174 = vmatprep.subr.bf16.mxu1 %v9047_v2  ;;  %v9052_v7 = vld [vmem:[%s11711_s1 + $0x8] sm:$0xff]   ;;  %vm427_vm6 = vcmask 1042432   ;;  %vm237_vm11 = vcmask 1043457  }
   0x4   :  { %26 = vst [vmem:[#allocation2 + $0x30] sm:$0xff] %v9508_v1  ;;  %27 = vst [vmem:[#allocation2 + $0x38] sm:$0xff] %v9508_v1  ;;  %v9049_v4 = vld [vmem:[%s11711_s1 + $0x80] sm:$0xff]   ;;  %8129 = vmatpush3.bf16.msra.mxu0 %v9048_v3  ;;  %v9053_v8 = vld [vmem:[%s11711_s1 + $0x88] sm:$0xff]   ;;  %vm175_vm7 = vsmask.f32 256 }
   0x5   :  { %28 = vst [vmem:[#allocation2 + $0x40] sm:$0xff] %v9508_v1  ;;  %29 = vst [vmem:[#allocation2 + $0x48] sm:$0xff] %v9508_v1  ;;  %8175 = vmatpush3.bf16.msra.mxu1 %v9049_v4  ;;  %8130 = vmatprep.subr.bf16.mxu0 %v9050_v5  ;;  %v9054_v9 = vld [vmem:[%s11711_s1 + $0x50] sm:$0xff]   ;;  %v9058_v13 = vld [vmem:[%s11711_s1 + $0x58] sm:$0xff]   ;;  %vm238_vm13 = vsmask.f32 3334 }
   0x6   :  { %30 = vst [vmem:[#allocation2 + $0x50] sm:$0xff] %v9508_v1  ;;  %31 = vst [vmem:[#allocation2 + $0x58] sm:$0xff] %v9508_v1  ;;  %8176 = vmatprep.subr.bf16.mxu1 %v9051_v6  ;;  %v9055_v10 = vld [vmem:[%s11711_s1 + $0xd0] sm:$0xff]   ;;  %v9059_v14 = vld [vmem:[%s11711_s1 + $0xd8] sm:$0xff]   ;;  %vm301_vm14 = vsmask.f32 6418 }
   0x7   :  { %32 = vst [vmem:[#allocation2 + $0x60] sm:$0xff] %v9508_v1  ;;  %33 = vst [vmem:[#allocation2 + $0x68] sm:$0xff] %v9508_v1  ;;  %v9056_v11 = vld [vmem:[%s11711_s1 + $0x10] sm:$0xff]   ;;  %v9060_v15 = vld [vmem:[%s11711_s1 + $0x18] sm:$0xff]  }
   0x8   :  { %34 = vst [vmem:[#allocation2 + $0x70] sm:$0xff] %v9508_v1  ;;  %35 = vst [vmem:[#allocation2 + $0x78] sm:$0xff] %v9508_v1  ;;  %8131 = vmatpush3.bf16.msra.mxu0 %v9052_v7  ;;  %v9057_v12 = vld [vmem:[%s11711_s1 + $0x90] sm:$0xff]   ;;  %v9061_v16 = vld [vmem:[%s11711_s1 + $0x98] sm:$0xff]  }
   0x9   :  { %36 = vst [vmem:[#allocation2 + $0x80] sm:$0xff] %v9508_v1  ;;  %37 = vst [vmem:[#allocation2 + $0x88] sm:$0xff] %v9508_v1  ;;  %8177 = vmatpush3.bf16.msra.mxu1 %v9053_v8  ;;  %8132 = vmatprep.subr.bf16.mxu0 %v9054_v9  ;;  %v9062_v17 = vld [vmem:[%s11711_s1 + $0x60] sm:$0xff]   ;;  %v9066_v21 = vld [vmem:[%s11711_s1 + $0x68] sm:$0xff]  }
   0xa   :  { %38 = vst [vmem:[#allocation2 + $0x90] sm:$0xff] %v9508_v1  ;;  %39 = vst [vmem:[#allocation2 + $0x98] sm:$0xff] %v9508_v1  ;;  %8178 = vmatprep.subr.bf16.mxu1 %v9055_v10  ;;  %v9063_v18 = vld [vmem:[%s11711_s1 + $0xe0] sm:$0xff]   ;;  %v9067_v22 = vld [vmem:[%s11711_s1 + $0xe8] sm:$0xff]  }
   0xb   :  { %40 = vst [vmem:[#allocation2 + $0xa0] sm:$0xff] %v9508_v1  ;;  %41 = vst [vmem:[#allocation2 + $0xa8] sm:$0xff] %v9508_v1  ;;  %v9064_v19 = vld [vmem:[%s11711_s1 + $0x20] sm:$0xff]   ;;  %v9068_v23 = vld [vmem:[%s11711_s1 + $0x28] sm:$0xff]  }
   0xc   :  { %42 = vst [vmem:[#allocation2 + $0xb0] sm:$0xff] %v9508_v1  ;;  %43 = vst [vmem:[#allocation2 + $0xb8] sm:$0xff] %v9508_v1  ;;  %8133 = vmatpush3.bf16.msra.mxu0 %v9056_v11  ;;  %v9065_v20 = vld [vmem:[%s11711_s1 + $0xa0] sm:$0xff]   ;;  %v9069_v24 = vld [vmem:[%s11711_s1 + $0xa8] sm:$0xff]  }
   0xd   :  { %8179 = vmatpush3.bf16.msra.mxu1 %v9057_v12  ;;  %8134 = vmatprep.subr.bf16.mxu0 %v9058_v13  ;;  %v9070_v25 = vld [vmem:[%s11711_s1 + $0x70] sm:$0xff]   ;;  %v9074_v29 = vld [vmem:[%s11711_s1 + $0x78] sm:$0xff]   ;;  %v44_v33 = vld [vmem:[%s11712_s0] sm:$0x33] }
   0xe   :  { %8180 = vmatprep.subr.bf16.mxu1 %v9059_v14  ;;  %v9071_v26 = vld [vmem:[%s11711_s1 + $0xf0] sm:$0xff]   ;;  %v9075_v30 = vld [vmem:[%s11711_s1 + $0xf8] sm:$0xff]   ;;  %v7408_v34 = vcombine.high %v44_v33, %v44_v33  ;;  %v107_v35 = vld [vmem:[%s11712_s0] sm:$0xcc]  ;;  %v7407_v36 = vcombine.low %v44_v33, %v44_v33 }
   0xf   :  { %v9072_v27 = vld [vmem:[%s11711_s1 + $0x30] sm:$0xff]   ;;  %v9076_v31 = vld [vmem:[%s11711_s1 + $0x38] sm:$0xff]   ;;  %v7412_v37 = vcombine.high %v107_v35, %v107_v35  ;;  %v45_v38 = vld [vmem:[%s11712_s0 + $0x8] sm:$0x33]  ;;  %v7411_v40 = vcombine.low %v107_v35, %v107_v35 }
  0x10   :  { %8135 = vmatpush3.bf16.msra.mxu0 %v9060_v15  ;;  %v9073_v28 = vld [vmem:[%s11711_s1 + $0xb0] sm:$0xff]   ;;  %v9077_v32 = vld [vmem:[%s11711_s1 + $0xb8] sm:$0xff]   ;;  %v108_v39 = vld [vmem:[%s11712_s0 + $0x8] sm:$0xcc]  ;;  %v65_v41 = vshrl.u32 %v7408_v34, 16  ;;  %v68_v42 = vshll.u32 %v7408_v34, 16  ;;  %v7410_v43 = vcombine.high %v45_v38, %v45_v38 }
  0x11   :  { %8181 = vmatpush3.bf16.msra.mxu1 %v9061_v16  ;;  %8136 = vmatprep.subr.bf16.mxu0 %v9062_v17  ;;  %v7414_v44 = vcombine.high %v108_v39, %v108_v39  ;;  %v128_v45 = vshrl.u32 %v7412_v37, 16  ;;  %v131_v46 = vshll.u32 %v7412_v37, 16  ;;  %v57_v47 = vshrl.u32 %v7407_v36, 16  ;;  %vm9652_vm8 = vmor %vm427_vm6, %vm300_vm4  ;;  %v98_v55 = vld [vmem:[#allocation2 + $0x8] sm:$0x38]  ;;  %v9094_v2 = vld [vmem:[%s11711_s1 + $0x140] sm:$0xff]  }
  0x12   :  { %8182 = vmatprep.subr.bf16.mxu1 %v9063_v18  ;;  %v60_v48 = vshll.u32 %v7407_v36, 16  ;;  %v67_v49 = vrot.slane %v65_v41, 4  ;;  %v70_v50 = vrot.slane %v68_v42, 5  ;;  %v81_v51 = vshrl.u32 %v7410_v43, 16  ;;  %vm9658_vm9 = vmand %vm92_vm1, %vm93_vm0  ;;  %v165_v62 = vld [vmem:[#allocation2 + $0x8] sm:$0xc0] }
  0x13   :  { %v84_v52 = vshll.u32 %v7410_v43, 16  ;;  %v130_v56 = vrot.slane %v128_v45, 3  ;;  %v133_v57 = vrot.slane %v131_v46, 4  ;;  %v144_v58 = vshrl.u32 %v7414_v44, 16  ;;  %vm9664_vm10 = vmand %vm159_vm2, %vm160_vm5  ;;  %v104_v4 = vld [vmem:[#allocation2 + $0x18] sm:$0x38] }
  0x14   :  { %8137 = vmatpush3.bf16.msra.mxu0 %v9064_v19  ;;  %v147_v59 = vshll.u32 %v7414_v44, 16  ;;  %v71_v60 = vor.u32 %v70_v50, %v67_v49  ;;  %v83_v63 = vrot.slane %v81_v51, 4  ;;  %v59_v1 = vrot.slane %v57_v47, 4  ;;  %v9095_v8 = vld [vmem:[%s11711_s1 + $0x1c0] sm:$0xff]   ;;  %v171_v11 = vld [vmem:[#allocation2 + $0x18] sm:$0xc0]  ;;  %vm9683_vm12 = vmand %vm174_vm3, %vm175_vm7 }
  0x15   :  { %8183 = vmatpush3.bf16.msra.mxu1 %v9065_v20  ;;  %8138 = vmatprep.subr.bf16.mxu0 %v9066_v21  ;;  %v86_v0 = vrot.slane %v84_v52, 5  ;;  %v134_v3 = vor.u32 %v133_v57, %v130_v56  ;;  %v9671_v5 = vrot.slane %v144_v58, 3  ;;  %v62_v7 = vrot.slane %v60_v48, 5  ;;  %v95_v12 = vld [vmem:[#allocation2] sm:$0x38]  ;;  %vm9723_vm15 = vmand %vm237_vm11, %vm238_vm13  ;;  %v9145_v19 = vld [vmem:[%s11711_s1 + $0x1b8] sm:$0xff]  }
  0x16   :  { %8184 = vmatprep.subr.bf16.mxu1 %v9067_v22  ;;  %v149_v6 = vrot.slane %v147_v59, 4  ;;  %v99_v9 = vsel %vm9658_vm9, %v71_v60, %v98_v55  ;;  %v120_v13 = vshrl.u32 %v7411_v40, 16  ;;  %v123_v14 = vshll.u32 %v7411_v40, 16  ;;  %v180_v20 = vld [vmem:[#allocation2 + $0x28] sm:$0x1]  ;;  %vm9734_vm0 = vmand %vm300_vm4, %vm301_vm14  ;;  %v9246_v53 = vld [vmem:[%s11711_s1 + $0x338] sm:$0xff]  }
  0x17   :  { %v87_v10 = vor.u32 %v86_v0, %v83_v63  ;;  %100 = vst [vmem:[#allocation2 + $0x8] sm:$0x38] %v99_v9  ;;  %v166_v15 = vsel %vm9664_vm10, %v134_v3, %v165_v62  ;;  %v63_v17 = vor.u32 %v62_v7, %v59_v1  ;;  %v7409_v18 = vcombine.low %v45_v38, %v45_v38  ;;  %v101_v33 = vld [vmem:[#allocation2 + $0x10] sm:$0x38]  ;;  %v186_v41 = vld [vmem:[#allocation2 + $0x38] sm:$0x1] }
  0x18   :  { %8139 = vmatpush3.bf16.msra.mxu0 %v9068_v23  ;;  %v150_v16 = vor.u32 %v149_v6, %v9671_v5  ;;  %167 = vst [vmem:[#allocation2 + $0x8] sm:$0xc0] %v166_v15  ;;  %v9689_v22 = vrot.slane %v120_v13, 3  ;;  %v125_v23 = vrot.slane %v123_v14, 4  ;;  %v181_v36 = vsel %vm9683_vm12, %v130_v56, %v180_v20  ;;  %v9711_v46 = vld [vmem:[%s11712_s0 + $0x18] sm:$0x33] }
  0x19   :  { %8185 = vmatpush3.bf16.msra.mxu1 %v9069_v24  ;;  %8140 = vmatprep.subr.bf16.mxu0 %v9070_v25  ;;  %v105_v21 = vsel %vm9658_vm9, %v87_v10, %v104_v4  ;;  %v7413_v24 = vcombine.low %v108_v39, %v108_v39  ;;  %v189_v25 = vld [vmem:[%s11712_s0 + $0x10] sm:$0x33]  ;;  %v168_v39 = vld [vmem:[#allocation2 + $0x10] sm:$0xc0]  ;;  %182 = vst [vmem:[#allocation2 + $0x28] sm:$0x1] %v181_v36 }
  0x1a   :  { %8186 = vmatprep.subr.bf16.mxu1 %v9071_v26  ;;  %106 = vst [vmem:[#allocation2 + $0x18] sm:$0x38] %v105_v21  ;;  %v172_v26 = vsel %vm9664_vm10, %v150_v16, %v171_v11  ;;  %v7416_v40 = vcombine.high %v189_v25, %v189_v25  ;;  %v9716_v47 = vld [vmem:[%s11712_s0 + $0x18] sm:$0xcc]  ;;  %v243_v52 = vld [vmem:[#allocation2 + $0x28] sm:$0xe]  ;;  %v187_v1 = vsel %vm9683_vm12, %v9671_v5, %v186_v41 }
  0x1b   :  { %173 = vst [vmem:[#allocation2 + $0x18] sm:$0xc0] %v172_v26  ;;  %v136_v34 = vshrl.u32 %v7413_v24, 16  ;;  %v139_v35 = vshll.u32 %v7413_v24, 16  ;;  %v177_v57 = vld [vmem:[#allocation2 + $0x20] sm:$0x1]  ;;  %v7418_v7 = vcombine.high %v9711_v46, %v9711_v46  ;;  %v7422_v9 = vcombine.high %v9716_v47, %v9716_v47 }
  0x1c   :  { %8141 = vmatpush3.bf16.msra.mxu0 %v9072_v27  ;;  %v96_v27 = vsel %vm9658_vm9, %v63_v17, %v95_v12  ;;  %v210_v49 = vshrl.u32 %v7416_v40, 16  ;;  %v213_v50 = vshll.u32 %v7416_v40, 16  ;;  %v306_v0 = vld [vmem:[#allocation2 + $0x28] sm:$0x70]  ;;  %188 = vst [vmem:[#allocation2 + $0x38] sm:$0x1] %v187_v1  ;;  %v178_v10 = vsel %vm9683_vm12, %v9689_v22, %v177_v57 }
  0x1d   :  { %8187 = vmatpush3.bf16.msra.mxu1 %v9073_v28  ;;  %8142 = vmatprep.subr.bf16.mxu0 %v9074_v29  ;;  %v162_v28 = vld [vmem:[#allocation2] sm:$0xc0]  ;;  %v73_v29 = vshrl.u32 %v7409_v18, 16  ;;  %97 = vst [vmem:[#allocation2] sm:$0x38] %v96_v27  ;;  %v9706_v43 = vrot.slane %v136_v34, 3  ;;  %v7415_v11 = vcombine.low %v189_v25, %v189_v25 }
  0x1e   :  { %8188 = vmatprep.subr.bf16.mxu1 %v9075_v30  ;;  %v76_v30 = vshll.u32 %v7409_v18, 16  ;;  %v141_v44 = vrot.slane %v139_v35, 4  ;;  %v212_v60 = vrot.slane %v210_v49, 6  ;;  %v215_v62 = vrot.slane %v213_v50, 7  ;;  %v183_v12 = vld [vmem:[#allocation2 + $0x30] sm:$0x1] }
  0x1f   :  { %v75_v37 = vrot.slane %v73_v29, 4  ;;  %v579_v58 = vld [vmem:[#allocation2 + $0x8] sm:$0xff]  ;;  %v9096_v13 = vld [vmem:[%s11711_s1 + $0x100] sm:$0xff]   ;;  %v226_v15 = vshrl.u32 %v7418_v7, 16  ;;  %v229_v16 = vshll.u32 %v7418_v7, 16  ;;  %v289_v21 = vshrl.u32 %v7422_v9, 16 }
  0x20   :  { %8143 = vmatpush3.bf16.msra.mxu0 %v9076_v31  ;;  %v252_v31 = vld [vmem:[%s11712_s0 + $0x10] sm:$0xcc]  ;;  %v78_v38 = vrot.slane %v76_v30, 5  ;;  %v142_v51 = vor.u32 %v141_v44, %v9706_v43  ;;  %5957 = vmatprep.mubr.bf16.mxu0 %v579_v58  ;;  %v216_v5 = vor.u32 %v215_v62, %v212_v60  ;;  %179 = vst [vmem:[#allocation2 + $0x20] sm:$0x1] %v178_v10  ;;  %v205_v29 = vshll.u32 %v7415_v11, 16 }
  0x21   :  { %8189 = vmatpush3.bf16.msra.mxu1 %v9077_v32  ;;  %8220 = vmatprep.subr.bf16.mxu0 %v9094_v2  ;;  %v126_v32 = vor.u32 %v125_v23, %v9689_v22  ;;  %v7420_v45 = vcombine.high %v252_v31, %v252_v31  ;;  %v7419_v17 = vcombine.low %v252_v31, %v252_v31  ;;  %v249_v20 = vld [vmem:[#allocation2 + $0x38] sm:$0xe]  ;;  %v292_v23 = vshll.u32 %v7422_v9, 16  ;;  %v9097_v30 = vld [vmem:[%s11711_s1 + $0x180] sm:$0xff]   ;;  %v9098_v36 = vld [vmem:[%s11711_s1 + $0x148] sm:$0xff]  }
  0x22   :  { %8266 = vmatprep.subr.bf16.mxu1 %v9095_v8  ;;  %v79_v48 = vor.u32 %v78_v38, %v75_v37  ;;  %v169_v2 = vsel %vm9664_vm10, %v142_v51, %v168_v39  ;;  %v9740_v8 = vld [vmem:[#allocation2 + $0x18] sm:$0xff]  ;;  %v244_v18 = vsel %vm9723_vm15, %v216_v5, %v243_v52  ;;  %v202_v22 = vshrl.u32 %v7415_v11, 16  ;;  %v240_v34 = vld [vmem:[#allocation2 + $0x20] sm:$0xe]  ;;  %v9099_v37 = vld [vmem:[%s11711_s1 + $0x1c8] sm:$0xff]  }
  0x23   :  { %v163_v42 = vsel %vm9664_vm10, %v126_v32, %v162_v28  ;;  %v273_v55 = vshrl.u32 %v7420_v45, 16  ;;  %v276_v56 = vshll.u32 %v7420_v45, 16  ;;  %170 = vst [vmem:[#allocation2 + $0x10] sm:$0xc0] %v169_v2  ;;  %6029 = vmatprep.mubr.bf16.mxu1 %v9740_v8  ;;  %245 = vst [vmem:[#allocation2 + $0x28] sm:$0xe] %v244_v18  ;;  %v184_v41 = vsel %vm9683_vm12, %v9706_v43, %v183_v12 }
  0x24   :  { %164 = vst [vmem:[#allocation2] sm:$0xc0] %v163_v42  ;;  %v102_v59 = vsel %vm9658_vm9, %v79_v48, %v101_v33  ;;  %v228_v26 = vrot.slane %v226_v15, 6  ;;  %v231_v27 = vrot.slane %v229_v16, 7  ;;  %v312_v28 = vld [vmem:[#allocation2 + $0x38] sm:$0x70]  ;;  %v7417_v48 = vcombine.low %v9711_v46, %v9711_v46 }
  0x25   :  { %103 = vst [vmem:[#allocation2 + $0x10] sm:$0x38] %v102_v59  ;;  %v275_v3 = vrot.slane %v273_v55, 5  ;;  %v278_v4 = vrot.slane %v276_v56, 6  ;;  %vm364_vm1 = vcmask 1047557   ;;  %v291_v31 = vrot.slane %v289_v21, 5 }
  0x26   :  { %v294_v32 = vrot.slane %v292_v23, 6  ;;  %v204_v33 = vrot.slane %v202_v22, 6  ;;  %v265_v35 = vshrl.u32 %v7419_v17, 16  ;;  %v232_v38 = vor.u32 %v231_v27, %v228_v26  ;;  %v303_v45 = vld [vmem:[#allocation2 + $0x20] sm:$0x70]  ;;  %v9100_v50 = vld [vmem:[%s11711_s1 + $0x108] sm:$0xff]  }
  0x27   :  { %v279_v14 = vor.u32 %v278_v4, %v275_v3  ;;  %v207_v39 = vrot.slane %v205_v29, 7  ;;  %v268_v40 = vshll.u32 %v7419_v17, 16  ;;  %185 = vst [vmem:[#allocation2 + $0x30] sm:$0x1] %v184_v41  ;;  %v7421_v49 = vcombine.low %v9716_v47, %v9716_v47  ;;  %v7423_v58 = vld [vmem:[%s11712_s0 + $0x20] sm:$0x33] }
  0x28   :  { %v295_v42 = vor.u32 %v294_v32, %v291_v31  ;;  %v267_v44 = vrot.slane %v265_v35, 5  ;;  %v250_v43 = vsel %vm9723_vm15, %v232_v38, %v249_v20  ;;  %v218_v56 = vshrl.u32 %v7417_v48, 16  ;;  %v7424_v2 = vld [vmem:[%s11712_s0 + $0x28] sm:$0x33]  ;;  %v9106_v3 = vld [vmem:[%s11711_s1 + $0x150] sm:$0xff]  }
  0x29   :  { %v307_v25 = vsel %vm9734_vm0, %v279_v14, %v306_v0  ;;  %v208_v52 = vor.u32 %v207_v39, %v204_v33  ;;  %v270_v55 = vrot.slane %v268_v40, 6  ;;  %251 = vst [vmem:[#allocation2 + $0x38] sm:$0xe] %v250_v43  ;;  %v221_v47 = vshll.u32 %v7417_v48, 16  ;;  %v9101_v0 = vld [vmem:[%s11711_s1 + $0x188] sm:$0xff]   ;;  %v9107_v9 = vld [vmem:[%s11711_s1 + $0x1d0] sm:$0xff]  }
  0x2a   :  { %308 = vst [vmem:[#allocation2 + $0x28] sm:$0x70] %v307_v25  ;;  %v313_v46 = vsel %vm9734_vm0, %v295_v42, %v312_v28  ;;  %v281_v57 = vshrl.u32 %v7421_v49, 16  ;;  %v284_v62 = vshll.u32 %v7421_v49, 16  ;;  %v7426_v1 = vcombine.high %v7423_v58, %v7423_v58  ;;  %v246_v12 = vld [vmem:[#allocation2 + $0x30] sm:$0xe] }
  0x2b   :  { %v9753_v24 = vld [vmem:[#allocation2] sm:$0xff]  ;;  %314 = vst [vmem:[#allocation2 + $0x38] sm:$0x70] %v313_v46  ;;  %v241_v59 = vsel %vm9723_vm15, %v208_v52, %v240_v34  ;;  %v271_v60 = vor.u32 %v270_v55, %v267_v44  ;;  %v220_v4 = vrot.slane %v218_v56, 6  ;;  %v223_v7 = vrot.slane %v221_v47, 7  ;;  %v9108_v33 = vld [vmem:[%s11711_s1 + $0x110] sm:$0xff]  }
  0x2c   :  { %5958 = vmatmul.mubr.bf16.vlgmr.msra.gmra.mrb[0].mxu0 %v9753_v24  ;;  %v9777_v51 = vld [vmem:[#allocation2 + $0x10] sm:$0xff]  ;;  %242 = vst [vmem:[#allocation2 + $0x20] sm:$0xe] %v241_v59  ;;  %v283_v5 = vrot.slane %v281_v57, 5  ;;  %vm365_vm2 = vsmask.f32 7446  ;;  %v7428_v20 = vcombine.high %v7424_v2, %v7424_v2  ;;  %v7425_v21 = vcombine.low %v7423_v58, %v7423_v58 }
  0x2d   :  { %8221 = vmatpush3.bf16.msra.mxu0 %v9096_v13  ;;  %6030 = vmatmul.mubr.bf16.vlgmr.msra.gmra.mrb[0].mxu1 %v9777_v51  ;;  %v304_v11 = vsel %vm9734_vm0, %v271_v60, %v303_v45  ;;  %v286_v13 = vrot.slane %v284_v62, 6  ;;  %v337_v14 = vshrl.u32 %v7426_v1, 16  ;;  %v340_v15 = vshll.u32 %v7426_v1, 16  ;;  %v309_v17 = vld [vmem:[#allocation2 + $0x30] sm:$0x70]  ;;  %vm9814_vm4 = vmand %vm364_vm1, %vm365_vm2  ;;  %v9110_v55 = vld [vmem:[%s11711_s1 + $0x158] sm:$0xff]  }
  0x2e   :  { %8222 = vmatprep.subr.bf16.mxu0 %v9098_v36  ;;  %8267 = vmatpush3.bf16.msra.mxu1 %v9097_v30  ;;  %305 = vst [vmem:[#allocation2 + $0x20] sm:$0x70] %v304_v11  ;;  %v224_v16 = vor.u32 %v223_v7, %v220_v4  ;;  %v370_v18 = vld [vmem:[#allocation2 + $0x48] sm:$0xe0]  ;;  %v7427_v23 = vcombine.low %v7424_v2, %v7424_v2  ;;  %v353_v30 = vshrl.u32 %v7428_v20, 16  ;;  %v356_v31 = vshll.u32 %v7428_v20, 16 }
  0x2f   :  { %8268 = vmatprep.subr.bf16.mxu1 %v9099_v37  ;;  %v287_v22 = vor.u32 %v286_v13, %v283_v5  ;;  %v339_v25 = vrot.slane %v337_v14, 2  ;;  %v342_v26 = vrot.slane %v340_v15, 3  ;;  %v9808_v27 = vcombine.low %v9777_v51, %v9740_v8  ;;  %v376_v35 = vld [vmem:[#allocation2 + $0x58] sm:$0xe0]  ;;  %v367_v42 = vld [vmem:[#allocation2 + $0x40] sm:$0xe0] }
  0x30   :  { %v247_v28 = vsel %vm9723_vm15, %v224_v16, %v246_v12  ;;  %v329_v32 = vshrl.u32 %v7425_v21, 16  ;;  %v332_v36 = vshll.u32 %v7425_v21, 16  ;;  %v345_v37 = vshrl.u32 %v7427_v23, 16  ;;  %v9109_v45 = vld [vmem:[%s11711_s1 + $0x190] sm:$0xff]   ;;  %v9111_v59 = vld [vmem:[%s11711_s1 + $0x1d8] sm:$0xff]   ;;  %v9127_v20 = vld [vmem:[%s11711_s1 + $0x1e0] sm:$0xff]  }
  0x31   :  { %8223 = vmatpush3.bf16.msra.mxu0 %v9100_v50  ;;  %v9801_v10 = vld [vmem:[#allocation2 + $0x28] sm:$0xff]  ;;  %248 = vst [vmem:[#allocation2 + $0x30] sm:$0xe] %v247_v28  ;;  %v310_v34 = vsel %vm9734_vm0, %v287_v22, %v309_v17  ;;  %v343_v63 = vor.u32 %v342_v26, %v339_v25  ;;  %v355_v39 = vrot.slane %v353_v30, 2  ;;  %v358_v40 = vrot.slane %v356_v31, 3  ;;  %v9112_v62 = vld [vmem:[%s11711_s1 + $0x118] sm:$0xff]  }
  0x32   :  { %8224 = vmatprep.subr.bf16.mxu0 %v9106_v3  ;;  %5965 = vmatprep.mubr.bf16.mxu0 %v9801_v10  ;;  %v9823_v38 = vld [vmem:[#allocation2 + $0x38] sm:$0xff]  ;;  %311 = vst [vmem:[#allocation2 + $0x30] sm:$0x70] %v310_v34  ;;  %v331_v41 = vrot.slane %v329_v32, 2  ;;  %v348_v44 = vshll.u32 %v7427_v23, 16  ;;  %v334_v48 = vrot.slane %v332_v36, 3 }
  0x33   :  { %8269 = vmatpush3.bf16.msra.mxu1 %v9101_v0  ;;  %6037 = vmatprep.mubr.bf16.mxu1 %v9823_v38  ;;  %v371_v6 = vsel %vm9814_vm4, %v343_v63, %v370_v18  ;;  %v347_v49 = vrot.slane %v345_v37, 2  ;;  %v373_v50 = vld [vmem:[#allocation2 + $0x50] sm:$0xe0]  ;;  %v359_v43 = vor.u32 %v358_v40, %v355_v39  ;;  %v826_v47 = vshrl.u32 %v9808_v27, 16  ;;  %v9113_v1 = vld [vmem:[%s11711_s1 + $0x198] sm:$0xff]   ;;  %v9126_v3 = vld [vmem:[%s11711_s1 + $0x160] sm:$0xff]  }
  0x34   :  { %8270 = vmatprep.subr.bf16.mxu1 %v9107_v9  ;;  %372 = vst [vmem:[#allocation2 + $0x48] sm:$0xe0] %v371_v6  ;;  %v350_v52 = vrot.slane %v348_v44, 3  ;;  %v335_v56 = vor.u32 %v334_v48, %v331_v41  ;;  %v7429_v2 = vld [vmem:[%s11712_s0 + $0x20] sm:$0xcc]  ;;  %v829_v11 = vshll.u32 %v9808_v27, 16 }
  0x35   :  { %8225 = vmatpush3.bf16.msra.mxu0 %v9108_v33  ;;  %v9834_v46 = vld [vmem:[#allocation2 + $0x20] sm:$0xff]  ;;  %v377_v57 = vsel %vm9814_vm4, %v359_v43, %v376_v35  ;;  %v7432_v5 = vcombine.high %v7429_v2, %v7429_v2  ;;  %v9865_v9 = vrot.slane %v826_v47, 4  ;;  %vm428_vm5 = vsmask.f32 2306  ;;  %v7435_v12 = vld [vmem:[%s11712_s0 + $0x30] sm:$0x33] }
  0x36   :  { %5966 = vmatmul.mubr.bf16.gmra.mrb[4].mxu0 %v9834_v46  ;;  %v351_v58 = vor.u32 %v350_v52, %v347_v49  ;;  %8226 = vmatprep.subr.bf16.mxu0 %v9110_v55  ;;  %378 = vst [vmem:[#allocation2 + $0x58] sm:$0xe0] %v377_v57  ;;  %v368_v60 = vsel %vm9814_vm4, %v335_v56, %v367_v42  ;;  %v7441_v13 = vld [vmem:[%s11712_s0 + $0x30] sm:$0xcc]  ;;  %v9884_v21 = vld [vmem:[%s11712_s0 + $0x28] sm:$0xcc]  ;;  %vm9900_vm11 = vmand %vm427_vm6, %vm428_vm5 }
  0x37   :  { %8271 = vmatpush3.bf16.msra.mxu1 %v9109_v45  ;;  %369 = vst [vmem:[#allocation2 + $0x40] sm:$0xe0] %v368_v60  ;;  %v9861_v4 = vcombine.low %v9834_v46, %v9801_v10  ;;  %v400_v15 = vshrl.u32 %v7432_v5, 16  ;;  %v403_v16 = vshll.u32 %v7432_v5, 16  ;;  %v7438_v17 = vcombine.high %v7435_v12, %v7435_v12  ;;  %v9889_v23 = vld [vmem:[%s11712_s0 + $0x38] sm:$0x33] }
  0x38   :  { %v374_v0 = vsel %vm9814_vm4, %v351_v58, %v373_v50  ;;  %8272 = vmatprep.subr.bf16.mxu1 %v9111_v59  ;;  %v7444_v18 = vcombine.high %v7441_v13, %v7441_v13  ;;  %v9891_v22 = vcombine.low %v7429_v2, %v7429_v2  ;;  %v9893_v25 = vcombine.low %v7435_v12, %v7435_v12  ;;  %v433_v32 = vld [vmem:[#allocation2 + $0x68] sm:$0x7]  ;;  %v9913_v40 = vld [vmem:[%s11712_s0 + $0x38] sm:$0xcc]  ;;  %v9128_v41 = vld [vmem:[%s11711_s1 + $0x120] sm:$0xff]  }
  0x39   :  { %v9863_v7 = vld [vmem:[#allocation2 + $0x30] sm:$0xff]  ;;  %375 = vst [vmem:[#allocation2 + $0x50] sm:$0xe0] %v374_v0  ;;  %8227 = vmatpush3.bf16.msra.mxu0 %v9112_v62  ;;  %v9895_v26 = vcombine.low %v7441_v13, %v7441_v13  ;;  %v845_v28 = vshll.u32 %v9861_v4, 16  ;;  %v402_v29 = vrot.slane %v400_v15, 1  ;;  %v405_v30 = vrot.slane %v403_v16, 2 }
  0x3a   :  { %6038 = vmatmul.mubr.bf16.gmra.mrb[4].mxu1 %v9863_v7  ;;  %8228 = vmatprep.subr.bf16.mxu0 %v9126_v3  ;;  %v463_v33 = vshrl.u32 %v7438_v17, 16  ;;  %v466_v34 = vshll.u32 %v7438_v17, 16  ;;  %v523_v35 = vshrl.u32 %v7444_v18, 16  ;;  %v526_v36 = vshll.u32 %v7444_v18, 16  ;;  %v493_v48 = vld [vmem:[#allocation2 + $0x68] sm:$0x38] }
  0x3b   :  { %v9875_v14 = vld [vmem:[#allocation2 + $0x48] sm:$0xff]  ;;  %8273 = vmatpush3.bf16.msra.mxu1 %v9113_v1  ;;  %v7434_v37 = vcombine.high %v9884_v21, %v9884_v21  ;;  %v7440_v39 = vcombine.high %v9889_v23, %v9889_v23  ;;  %v406_v44 = vor.u32 %v405_v30, %v402_v29  ;;  %v7446_v49 = vcombine.high %v9913_v40, %v9913_v40  ;;  %v9129_v50 = vld [vmem:[%s11711_s1 + $0x1a0] sm:$0xff]   ;;  %v439_v15 = vld [vmem:[#allocation2 + $0x78] sm:$0x7] }
  0x3c   :  { %5973 = vmatprep.mubr.bf16.mxu0 %v9875_v14  ;;  %8274 = vmatprep.subr.bf16.mxu1 %v9127_v20  ;;  %v465_v45 = vrot.slane %v463_v33, 4  ;;  %v468_v6 = vrot.slane %v466_v34, 5  ;;  %v9929_v52 = vrot.slane %v523_v35, 3  ;;  %v528_v55 = vrot.slane %v526_v36, 4  ;;  %v9130_v57 = vld [vmem:[%s11711_s1 + $0x168] sm:$0xff]  }
  0x3d   :  { %v9904_v63 = vld [vmem:[#allocation2 + $0x58] sm:$0xff]  ;;  %v416_v56 = vshrl.u32 %v7434_v37, 16  ;;  %v419_v47 = vshll.u32 %v7434_v37, 16  ;;  %v434_v58 = vsel %vm9900_vm11, %v406_v44, %v433_v32  ;;  %v557_v60 = vld [vmem:[#allocation2 + $0x68] sm:$0xc0]  ;;  %v479_v62 = vshrl.u32 %v7440_v39, 16  ;;  %8229 = vmatpush3.bf16.msra.mxu0 %v9128_v41 }
  0x3e   :  { %6045 = vmatprep.mubr.bf16.mxu1 %v9904_v63  ;;  %v9919_v42 = vld [vmem:[#allocation2 + $0x40] sm:$0xff]  ;;  %v469_v59 = vor.u32 %v468_v6, %v465_v45  ;;  %v482_v0 = vshll.u32 %v7440_v39, 16  ;;  %435 = vst [vmem:[#allocation2 + $0x68] sm:$0x7] %v434_v58  ;;  %v529_v1 = vor.u32 %v528_v55, %v9929_v52  ;;  %v539_v5 = vshrl.u32 %v7446_v49, 16  ;;  %8230 = vmatprep.subr.bf16.mxu0 %v9130_v57  ;;  %v9131_v12 = vld [vmem:[%s11711_s1 + $0x1e8] sm:$0xff]  }
  0x3f   :  { %5974 = vmatmul.mubr.bf16.gmra.mrb[8].mxu0 %v9919_v42  ;;  %8275 = vmatpush3.bf16.msra.mxu1 %v9129_v50  ;;  %v418_v2 = vrot.slane %v416_v56, 1  ;;  %v421_v3 = vrot.slane %v419_v47, 2  ;;  %v481_v16 = vrot.slane %v479_v62, 4  ;;  %v542_v18 = vshll.u32 %v7446_v49, 16  ;;  %v9132_v20 = vld [vmem:[%s11711_s1 + $0x128] sm:$0xff]  }
  0x40   :  { %v9927_v43 = vld [vmem:[#allocation2 + $0x50] sm:$0xff]  ;;  %v494_v13 = vsel %vm9658_vm9, %v469_v59, %v493_v48  ;;  %v484_v17 = vrot.slane %v482_v0, 5  ;;  %v558_v29 = vsel %vm9664_vm10, %v529_v1, %v557_v60  ;;  %v499_v32 = vld [vmem:[#allocation2 + $0x78] sm:$0x38]  ;;  %v9948_v33 = vrot.slane %v539_v5, 3  ;;  %8276 = vmatprep.subr.bf16.mxu1 %v9131_v12  ;;  %v9133_v44 = vld [vmem:[%s11711_s1 + $0x1a8] sm:$0xff]  }
  0x41   :  { %495 = vst [vmem:[#allocation2 + $0x68] sm:$0x38] %v494_v13  ;;  %v422_v30 = vor.u32 %v421_v3, %v418_v2  ;;  %v563_v34 = vld [vmem:[#allocation2 + $0x78] sm:$0xc0]  ;;  %v392_v35 = vshrl.u32 %v9891_v22, 16  ;;  %v544_v37 = vrot.slane %v542_v18, 4  ;;  %8231 = vmatpush3.bf16.msra.mxu0 %v9132_v20  ;;  %v7433_v62 = vcombine.low %v9884_v21, %v9884_v21 }
  0x42   :  { %6046 = vmatmul.mubr.bf16.gmra.mrb[8].mxu1 %v9927_v43  ;;  %559 = vst [vmem:[#allocation2 + $0x68] sm:$0xc0] %v558_v29  ;;  %v485_v36 = vor.u32 %v484_v17, %v481_v16  ;;  %v395_v39 = vshll.u32 %v9891_v22, 16  ;;  %v455_v41 = vshrl.u32 %v9893_v25, 16  ;;  %v430_v48 = vld [vmem:[#allocation2 + $0x60] sm:$0x7]  ;;  %v7439_v5 = vcombine.low %v9889_v23, %v9889_v23 }
  0x43   :  { %v440_v45 = vsel %vm9900_vm11, %v422_v30, %v439_v15  ;;  %v394_v6 = vrot.slane %v392_v35, 1  ;;  %v458_v49 = vshll.u32 %v9893_v25, 16  ;;  %v515_v50 = vshrl.u32 %v9895_v26, 16  ;;  %v9138_v22 = vld [vmem:[%s11711_s1 + $0x170] sm:$0xff]   ;;  %v490_v58 = vld [vmem:[#allocation2 + $0x60] sm:$0x38]  ;;  %8277 = vmatpush3.bf16.msra.mxu1 %v9133_v44 }
  0x44   :  { %441 = vst [vmem:[#allocation2 + $0x78] sm:$0x7] %v440_v45  ;;  %v500_v55 = vsel %vm9658_vm9, %v485_v36, %v499_v32  ;;  %v545_v56 = vor.u32 %v544_v37, %v9948_v33  ;;  %v397_v47 = vrot.slane %v395_v39, 2  ;;  %v457_v57 = vrot.slane %v455_v41, 4  ;;  %8232 = vmatprep.subr.bf16.mxu0 %v9138_v22  ;;  %v9139_v0 = vld [vmem:[%s11711_s1 + $0x1f0] sm:$0xff]   ;;  %v9142_v39 = vld [vmem:[%s11711_s1 + $0x178] sm:$0xff]  }
  0x45   :  { %501 = vst [vmem:[#allocation2 + $0x78] sm:$0x38] %v500_v55  ;;  %v460_v59 = vrot.slane %v458_v49, 5  ;;  %v9966_v60 = vrot.slane %v515_v50, 3  ;;  %v518_v25 = vshll.u32 %v9895_v26, 16  ;;  %v7445_v12 = vcombine.low %v9913_v40, %v9913_v40  ;;  %8278 = vmatprep.subr.bf16.mxu1 %v9139_v0  ;;  %v9140_v16 = vld [vmem:[%s11711_s1 + $0x130] sm:$0xff]  }
  0x46   :  { %v564_v1 = vsel %vm9664_vm10, %v545_v56, %v563_v34  ;;  %v398_v2 = vor.u32 %v397_v47, %v394_v6  ;;  %v554_v3 = vld [vmem:[#allocation2 + $0x60] sm:$0xc0]  ;;  %v408_v21 = vshrl.u32 %v7433_v62, 16  ;;  %v411_v15 = vshll.u32 %v7433_v62, 16  ;;  %v436_v18 = vld [vmem:[#allocation2 + $0x70] sm:$0x7]  ;;  %8233 = vmatpush3.bf16.msra.mxu0 %v9140_v16 }
  0x47   :  { %565 = vst [vmem:[#allocation2 + $0x78] sm:$0xc0] %v564_v1  ;;  %v461_v26 = vor.u32 %v460_v59, %v457_v57  ;;  %v520_v13 = vrot.slane %v518_v25, 4  ;;  %v471_v20 = vshrl.u32 %v7439_v5, 16  ;;  %v474_v29 = vshll.u32 %v7439_v5, 16  ;;  %v9141_v40 = vld [vmem:[%s11711_s1 + $0x1b0] sm:$0xff]   ;;  %8234 = vmatprep.subr.bf16.mxu0 %v9142_v39 }
  0x48   :  { %v431_v17 = vsel %vm9900_vm11, %v398_v2, %v430_v48  ;;  %v531_v23 = vshrl.u32 %v7445_v12, 16  ;;  %v410_v35 = vrot.slane %v408_v21, 1  ;;  %v413_v36 = vrot.slane %v411_v15, 2  ;;  %v496_v37 = vld [vmem:[#allocation2 + $0x70] sm:$0x38]  ;;  %8279 = vmatpush3.bf16.msra.mxu1 %v9141_v40  ;;  %v9143_v47 = vld [vmem:[%s11711_s1 + $0x1f8] sm:$0xff]  }
  0x49   :  { %v9988_v30 = vld [vmem:[#allocation2 + $0x68] sm:$0xff]  ;;  %432 = vst [vmem:[#allocation2 + $0x60] sm:$0x7] %v431_v17  ;;  %v491_v32 = vsel %vm9658_vm9, %v461_v26, %v490_v58  ;;  %v521_v34 = vor.u32 %v520_v13, %v9966_v60  ;;  %v473_v41 = vrot.slane %v471_v20, 4  ;;  %v476_v44 = vrot.slane %v474_v29, 5  ;;  %8280 = vmatprep.subr.bf16.mxu1 %v9143_v47 }
  0x4a   :  { %5981 = vmatprep.mubr.bf16.mxu0 %v9988_v30  ;;  %492 = vst [vmem:[#allocation2 + $0x60] sm:$0x38] %v491_v32  ;;  %v533_v45 = vrot.slane %v531_v23, 3  ;;  %v534_v6 = vshll.u32 %v7445_v12, 16  ;;  %v414_v49 = vor.u32 %v413_v36, %v410_v35  ;;  %v560_v50 = vld [vmem:[#allocation2 + $0x70] sm:$0xc0]  ;;  %v7470_v12 = vcombine.low %v9863_v7, %v9823_v38 }
  0x4b   :  { %v555_v48 = vsel %vm9664_vm10, %v521_v34, %v554_v3  ;;  %v477_v22 = vor.u32 %v476_v44, %v473_v41  ;;  %v569_v56 = vld [vmem:[#allocation2 + $0x88] sm:$0x1]  ;;  %v575_v59 = vld [vmem:[#allocation2 + $0x98] sm:$0x1]  ;;  %v566_v25 = vld [vmem:[#allocation2 + $0x80] sm:$0x1]  ;;  %v10044_v20 = vcombine.low %v9919_v42, %v9875_v14  ;;  %v10048_v27 = vcombine.high %v9863_v7, %v9823_v38 }
  0x4c   :  { %556 = vst [vmem:[#allocation2 + $0x60] sm:$0xc0] %v555_v48  ;;  %v536_v55 = vrot.slane %v534_v6, 4  ;;  %v437_v57 = vsel %vm9900_vm11, %v414_v49, %v436_v18  ;;  %v570_v58 = vsel %vm9683_vm12, %v9929_v52, %v569_v56  ;;  %v572_v62 = vld [vmem:[#allocation2 + $0x90] sm:$0x1]  ;;  %v576_v31 = vsel %vm9683_vm12, %v9948_v33, %v575_v59  ;;  %v709_v61 = vld [vmem:[#allocation2 + $0x8] sm:$0xff]  ;;  %8281 = vmatpush3.bf16.msra.mxu1 %v9145_v19 }
  0x4d   :  { %vm808_vm6 = vsmask.f32 3328  ;;  %438 = vst [vmem:[#allocation2 + $0x70] sm:$0x7] %v437_v57  ;;  %v497_v1 = vsel %vm9658_vm9, %v477_v22, %v496_v37  ;;  %571 = vst [vmem:[#allocation2 + $0x88] sm:$0x1] %v570_v58  ;;  %v567_v52 = vsel %vm9683_vm12, %v9966_v60, %v566_v25  ;;  %v573_v54 = vsel %vm9683_vm12, %v533_v45, %v572_v62 }
  0x4e   :  { %v10007_v0 = vld [vmem:[#allocation2 + $0x78] sm:$0xff]  ;;  %v537_v2 = vor.u32 %v536_v55, %v533_v45  ;;  %498 = vst [vmem:[#allocation2 + $0x70] sm:$0x38] %v497_v1  ;;  %577 = vst [vmem:[#allocation2 + $0x98] sm:$0x1] %v576_v31  ;;  %v7468_v33 = vcombine.high %v9777_v51, %v9740_v8  ;;  %v831_v8 = vrot.slane %v829_v11, 5  ;;  %v7465_v26 = vcombine.low %v9753_v24, %v709_v61 }
  0x4f   :  { %6053 = vmatprep.mubr.bf16.mxu1 %v10007_v0  ;;  %568 = vst [vmem:[#allocation2 + $0x80] sm:$0x1] %v567_v52  ;;  %574 = vst [vmem:[#allocation2 + $0x90] sm:$0x1] %v573_v54  ;;  %v9144_v60 = vld [vmem:[%s11711_s1 + $0x138] sm:$0xff]   ;;  %v7467_v13 = vcombine.high %v9753_v24, %v709_v61  ;;  %v7471_v18 = vcombine.high %v9834_v46, %v9801_v10  ;;  %v847_v24 = vrot.slane %v845_v28, 5 }
  0x50   :  { %v561_v3 = vsel %vm9664_vm10, %v537_v2, %v560_v50  ;;  %vm809_vm9 = vsmask.f32 7440  ;;  %8235 = vmatpush3.bf16.msra.mxu0 %v9144_v60  ;;  %v835_v21 = vshll.u32 %v7468_v33, 16  ;;  %v849_v15 = vshrl.u32 %v7468_v33, 16  ;;  %v9149_v55 = vld [vmem:[%s11711_s1 + $0x2c0] sm:$0xff]  }
  0x51   :  { %562 = vst [vmem:[#allocation2 + $0x70] sm:$0xc0] %v561_v3  ;;  %v832_v17 = vor.u32 %v831_v8, %v9865_v9  ;;  %v10054_v29 = vcombine.low %v9927_v43, %v9904_v63  ;;  %v10058_v10 = vcombine.high %v9919_v42, %v9875_v14  ;;  %v10062_v46 = vcombine.high %v9927_v43, %v9904_v63  ;;  %vm10068_vm10 = vmor %vm808_vm6, %vm809_vm9  ;;  %v9148_v14 = vld [vmem:[%s11711_s1 + $0x240] sm:$0xff]  }
  0x52   :  { %v812_v7 = vshrl.u32 %v7465_v26, 16  ;;  %v815_v28 = vshll.u32 %v7465_v26, 16  ;;  %v821_v23 = vshll.u32 %v7467_v13, 16  ;;  %v839_v40 = vshrl.u32 %v7467_v13, 16  ;;  %8312 = vmatprep.subr.bf16.mxu0 %v9148_v14  ;;  %8358 = vmatprep.subr.bf16.mxu1 %v9149_v55  ;;  %v10244_v38 = vld [vmem:[#allocation2 + $0x20] ss:$8 sps:$4 sm:$0xff]  }
  0x53   :  { %v10024_v5 = vld [vmem:[#allocation2 + $0x60] sm:$0xff]  ;;  %v833_v63 = vrot.slane %v832_v17, 4  ;;  %v837_v42 = vrot.slane %v835_v21, 5  ;;  %v851_v43 = vrot.slane %v849_v15, 4  ;;  %v855_v32 = vshll.u32 %v7470_v12, 16 }
  0x54   :  { %5982 = vmatmul.mubr.bf16.gmra.mrb[12].mxu0 %v10024_v5  ;;  %v9134_v51 = vld [vmem:[#allocation2 + $0x88] ss:$0 sps:$4 sm:$0xff]   ;;  %v814_v34 = vrot.slane %v812_v7, 4  ;;  %v817_v35 = vrot.slane %v815_v28, 5  ;;  %v823_v36 = vrot.slane %v821_v23, 5  ;;  %v841_v37 = vrot.slane %v839_v40, 4 }
  0x55   :  { %v9135_v16 = vld [vmem:[#allocation2 + $0x98] ss:$0 sps:$4 sm:$0xff]   ;;  %5989 = vmatprep.mubr.bf16.mxu0 %v9134_v51  ;;  %v10078_v41 = vsel %vm10068_vm10, %v833_v63, %v837_v42  ;;  %v852_v44 = vor.u32 %v851_v43, %v837_v42  ;;  %v857_v45 = vrot.slane %v855_v32, 5  ;;  %v859_v6 = vshrl.u32 %v9861_v4, 16  ;;  %v9150_v51 = vld [vmem:[%s11711_s1 + $0x200] sm:$0xff]   ;;  %v9153_v63 = vld [vmem:[%s11711_s1 + $0x2c8] sm:$0xff]  }
  0x56   :  { %v9136_v11 = vld [vmem:[#allocation2 + $0x80] ss:$0 sps:$4 sm:$0xff]   ;;  %v9137_v39 = vld [vmem:[#allocation2 + $0x90] ss:$0 sps:$4 sm:$0xff]   ;;  %v818_v48 = vor.u32 %v817_v35, %v814_v34  ;;  %v842_v49 = vor.u32 %v841_v37, %v823_v36  ;;  %v865_v50 = vshll.u32 %v7471_v18, 16  ;;  %v879_v22 = vshrl.u32 %v7471_v18, 16 }
  0x57   :  { %v853_v56 = vrot.slane %v852_v44, 4  ;;  %v861_v47 = vrot.slane %v859_v6, 4  ;;  %v885_v57 = vshll.u32 %v10044_v20, 16  ;;  %v869_v58 = vshrl.u32 %v7470_v12, 16  ;;  %v9151_v40 = vld [vmem:[%s11711_s1 + $0x280] sm:$0xff]   ;;  %v9154_v42 = vld [vmem:[%s11711_s1 + $0x208] sm:$0xff]  }
  0x58   :  { %v10064_v9 = vld [vmem:[#allocation2 + $0x70] sm:$0xff]  ;;  %v819_v59 = vrot.slane %v818_v48, 4  ;;  %v843_v25 = vrot.slane %v842_v49, 4  ;;  %v867_v62 = vrot.slane %v865_v50, 5  ;;  %v881_v1 = vrot.slane %v879_v22, 4 }
  0x59   :  { %6054 = vmatmul.mubr.bf16.gmra.mrb[12].mxu1 %v10064_v9  ;;  %v858_v4 = vsel %vm10068_vm10, %v853_v56, %v857_v45  ;;  %v862_v2 = vor.u32 %v861_v47, %v847_v24  ;;  %v10087_v31 = vrot.slane %v885_v57, 5  ;;  %v871_v52 = vrot.slane %v869_v58, 4  ;;  %v9157_v58 = vld [vmem:[%s11711_s1 + $0x2d0] sm:$0xff]  }
  0x5a   :  { %6061 = vmatprep.mubr.bf16.mxu1 %v9135_v16  ;;  %v824_v54 = vsel %vm10068_vm10, %v819_v59, %v823_v36  ;;  %v848_v3 = vsel %vm10068_vm10, %v843_v25, %v847_v24  ;;  %v7641_v33 = vcombine.high %v10078_v41, %v858_v4  ;;  %v10096_v60 = vcombine.low %v10024_v5, %v9988_v30  ;;  %v9152_v16 = vld [vmem:[%s11711_s1 + $0x248] sm:$0xff]  }
  0x5b   :  { %v7638_v19 = vcombine.low %v824_v54, %v848_v3  ;;  %v7639_v61 = vcombine.high %v824_v54, %v848_v3  ;;  %v863_v12 = vrot.slane %v862_v2, 4  ;;  %v882_v8 = vor.u32 %v881_v1, %v867_v62  ;;  %v9160_v1 = vld [vmem:[%s11711_s1 + $0x258] sm:$0xff]  }
  0x5c   :  { %5990 = vmatmul.mubr.bf16.gmra.mrb[16].mxu0 %v9136_v11  ;;  %v872_v26 = vor.u32 %v871_v52, %v857_v45  ;;  %v875_v13 = vshll.u32 %v10048_v27, 16  ;;  %v889_v21 = vshrl.u32 %v10048_v27, 16  ;;  %v895_v15 = vshll.u32 %v10054_v29, 16 }
  0x5d   :  { %6101 = vmatprep.mubr.bf16.mxu0 %v7639_v61  ;;  %v7640_v17 = vcombine.low %v10078_v41, %v858_v4  ;;  %v868_v18 = vsel %vm10068_vm10, %v863_v12, %v867_v62  ;;  %v883_v11 = vrot.slane %v882_v8, 4  ;;  %v10112_v24 = vcombine.low %v10064_v9, %v10007_v0  ;;  %v9156_v41 = vld [vmem:[%s11711_s1 + $0x250] sm:$0xff]  }
  0x5e   :  { %v873_v7 = vrot.slane %v872_v26, 4  ;;  %v877_v27 = vrot.slane %v875_v13, 5  ;;  %v891_v28 = vrot.slane %v889_v21, 4  ;;  %v897_v23 = vrot.slane %v895_v15, 5 }
  0x5f   :  { %v888_v14 = vsel %vm10068_vm10, %v883_v11, %v10087_v31  ;;  %v899_v43 = vshrl.u32 %v10044_v20, 16  ;;  %v905_v32 = vshll.u32 %v10058_v10, 16  ;;  %v919_v34 = vshrl.u32 %v10058_v10, 16  ;;  %v9155_v10 = vld [vmem:[%s11711_s1 + $0x288] sm:$0xff]   ;;  %v9163_v11 = vld [vmem:[%s11711_s1 + $0x298] sm:$0xff]  }
  0x60   :  { %v7675_v35 = vcombine.high %v868_v18, %v888_v14  ;;  %v10131_v36 = vsel %vm10068_vm10, %v873_v7, %v877_v27  ;;  %v892_v37 = vor.u32 %v891_v28, %v877_v27  ;;  %v925_v20 = vshll.u32 %v10096_v60, 16  ;;  %v9164_v7 = vld [vmem:[#allocation2 + $0x80] ss:$8 sps:$4 sm:$0xff]  }
  0x61   :  { %6062 = vmatmul.mubr.bf16.gmra.mrb[16].mxu1 %v9137_v39  ;;  %v7674_v39 = vcombine.low %v868_v18, %v888_v14  ;;  %v901_v44 = vrot.slane %v899_v43, 4  ;;  %v907_v45 = vrot.slane %v905_v32, 5  ;;  %v921_v6 = vrot.slane %v919_v34, 4  ;;  %v9168_v14 = vld [vmem:[%s11711_s1 + $0x260] sm:$0xff]  }
  0x62   :  { %6173 = vmatprep.mubr.bf16.mxu1 %v7641_v33  ;;  %v893_v48 = vrot.slane %v892_v37, 4  ;;  %v909_v49 = vshrl.u32 %v10054_v29, 16  ;;  %v915_v50 = vshll.u32 %v10062_v46, 16  ;;  %v929_v22 = vshrl.u32 %v10062_v46, 16  ;;  %v9158_v29 = vld [vmem:[%s11711_s1 + $0x210] sm:$0xff]  }
  0x63   :  { %v902_v55 = vor.u32 %v901_v44, %v10087_v31  ;;  %v922_v56 = vor.u32 %v921_v6, %v907_v45  ;;  %v927_v47 = vrot.slane %v925_v20, 5  ;;  %v935_v57 = vshll.u32 %v10112_v24, 16  ;;  %v9159_v33 = vld [vmem:[%s11711_s1 + $0x290] sm:$0xff]  }
  0x64   :  { %6102 = vmatmul.mubr.bf16.vlgmr.msra.gmra.mrb[20].mxu0 %v7638_v19  ;;  %v898_v59 = vsel %vm10068_vm10, %v893_v48, %v897_v23  ;;  %v911_v46 = vrot.slane %v909_v49, 4  ;;  %v917_v25 = vrot.slane %v915_v50, 5  ;;  %v931_v62 = vrot.slane %v929_v22, 4  ;;  %v9169_v48 = vld [vmem:[%s11711_s1 + $0x2e0] sm:$0xff]  }
  0x65   :  { %8313 = vmatpush3.bf16.msra.mxu0 %v9150_v51  ;;  %6109 = vmatprep.mubr.bf16.mxu0 %v7675_v35  ;;  %v7677_v4 = vcombine.high %v10131_v36, %v898_v59  ;;  %v903_v2 = vrot.slane %v902_v55, 4  ;;  %v923_v31 = vrot.slane %v922_v56, 4  ;;  %v937_v3 = vrot.slane %v935_v57, 5  ;;  %v9162_v51 = vld [vmem:[%s11711_s1 + $0x218] sm:$0xff]   ;;  %v9171_v22 = vld [vmem:[%s11711_s1 + $0x2a0] sm:$0xff]  }
  0x66   :  { %8314 = vmatprep.subr.bf16.mxu0 %v9152_v16  ;;  %v912_v52 = vor.u32 %v911_v46, %v897_v23  ;;  %v932_v54 = vor.u32 %v931_v62, %v917_v25  ;;  %v7479_v19 = vcombine.high %v10024_v5, %v9988_v30  ;;  %v7676_v61 = vcombine.low %v10131_v36, %v898_v59  ;;  %v9161_v16 = vld [vmem:[%s11711_s1 + $0x2d8] sm:$0xff]   ;;  %v9174_v62 = vld [vmem:[%s11711_s1 + $0x228] sm:$0xff]  }
  0x67   :  { %v908_v12 = vsel %vm10068_vm10, %v903_v2, %v907_v45  ;;  %v928_v8 = vsel %vm10068_vm10, %v923_v31, %v927_v47  ;;  %v939_v26 = vshrl.u32 %v10096_v60, 16  ;;  %v7480_v5 = vcombine.high %v10064_v9, %v10007_v0  ;;  %v9166_v23 = vld [vmem:[#allocation2 + $0x90] ss:$8 sps:$4 sm:$0xff]   ;;  %v9175_v2 = vld [vmem:[%s11711_s1 + $0x2a8] sm:$0xff]  }
  0x68   :  { %v7711_v13 = vcombine.high %v908_v12, %v928_v8  ;;  %v913_v21 = vrot.slane %v912_v52, 4  ;;  %v933_v30 = vrot.slane %v932_v54, 4  ;;  %v7710_v15 = vcombine.low %v908_v12, %v928_v8  ;;  %v9176_v31 = vld [vmem:[#allocation2 + $0x84] ss:$8 sps:$4 sm:$0x11]   ;;  %v9178_v54 = vld [vmem:[%s11711_s1 + $0x270] sm:$0xff]  }
  0x69   :  { %6174 = vmatmul.mubr.bf16.vlgmr.msra.gmra.mrb[20].mxu1 %v7640_v17  ;;  %8315 = vmatpush3.bf16.msra.mxu0 %v9154_v42  ;;  %v941_v17 = vrot.slane %v939_v26, 4  ;;  %v945_v0 = vshll.u32 %v7479_v19, 16  ;;  %v959_v9 = vshrl.u32 %v7479_v19, 16  ;;  %v965_v43 = vshll.u32 %v9164_v7, 16 }
  0x6a   :  { %8359 = vmatpush3.bf16.msra.mxu1 %v9151_v40  ;;  %8316 = vmatprep.subr.bf16.mxu0 %v9156_v41  ;;  %v918_v18 = vsel %vm10068_vm10, %v913_v21, %v917_v25  ;;  %v938_v60 = vsel %vm10068_vm10, %v933_v30, %v937_v3  ;;  %v949_v40 = vshrl.u32 %v10112_v24, 16  ;;  %v955_v32 = vshll.u32 %v7480_v5, 16  ;;  %v9173_v25 = vld [vmem:[%s11711_s1 + $0x2e8] sm:$0xff]   ;;  %v9177_v19 = vld [vmem:[#allocation2 + $0x94] ss:$8 sps:$4 sm:$0x11]  }
  0x6b   :  { %8360 = vmatprep.subr.bf16.mxu1 %v9153_v63  ;;  %6181 = vmatprep.mubr.bf16.mxu1 %v7677_v4  ;;  %v7713_v27 = vcombine.high %v918_v18, %v938_v60  ;;  %v942_v28 = vor.u32 %v941_v17, %v927_v47  ;;  %v947_v63 = vrot.slane %v945_v0, 5  ;;  %v961_v42 = vrot.slane %v959_v9, 4  ;;  %v9172_v47 = vld [vmem:[%s11711_s1 + $0x268] sm:$0xff]   ;;  %v9181_v17 = vld [vmem:[%s11711_s1 + $0x2b0] sm:$0xff]  }
  0x6c   :  { %6110 = vmatmul.mubr.bf16.gmra.mrb[24].mxu0 %v7674_v39  ;;  %v951_v35 = vrot.slane %v949_v40, 4  ;;  %v969_v36 = vshrl.u32 %v7480_v5, 16  ;;  %v975_v37 = vshll.u32 %v9166_v23, 16  ;;  %v967_v41 = vrot.slane %v965_v43, 5  ;;  %v9180_v5 = vld [vmem:[%s11711_s1 + $0x230] sm:$0xff]   ;;  %v9185_v40 = vld [vmem:[%s11711_s1 + $0x2b8] sm:$0xff]  }
  0x6d   :  { %8317 = vmatpush3.bf16.msra.mxu0 %v9158_v29  ;;  %6117 = vmatprep.mubr.bf16.mxu0 %v7711_v13  ;;  %v943_v34 = vrot.slane %v942_v28, 4  ;;  %v962_v39 = vor.u32 %v961_v42, %v947_v63  ;;  %v957_v44 = vrot.slane %v955_v32, 5  ;;  %v7712_v24 = vcombine.low %v918_v18, %v938_v60  ;;  %v9179_v13 = vld [vmem:[%s11711_s1 + $0x2f0] sm:$0xff]   ;;  %v9182_v18 = vld [vmem:[%s11711_s1 + $0x278] sm:$0xff]   ;;  %v9188_v42 = vld [vmem:[#allocation2 + $0x4] ss:$8 sps:$4 sm:$0xff]  }
  0x6e   :  { %8361 = vmatpush3.bf16.msra.mxu1 %v9155_v10  ;;  %8318 = vmatprep.subr.bf16.mxu0 %v9160_v1  ;;  %v952_v45 = vor.u32 %v951_v35, %v937_v3  ;;  %v971_v6 = vrot.slane %v969_v36, 4  ;;  %v977_v20 = vrot.slane %v975_v37, 5  ;;  %v9170_v10 = vld [vmem:[%s11711_s1 + $0x220] sm:$0xff]   ;;  %v979_v1 = vshrl.u32 %v9164_v7, 16  ;;  %v9184_v28 = vld [vmem:[%s11711_s1 + $0x238] sm:$0xff]  }
  0x6f   :  { %8362 = vmatprep.subr.bf16.mxu1 %v9157_v58  ;;  %v948_v49 = vsel %vm10068_vm10, %v943_v34, %v947_v63  ;;  %v963_v50 = vrot.slane %v962_v39, 4  ;;  %v989_v52 = vshrl.u32 %v9166_v23, 16  ;;  %v985_v12 = vshll.u32 %v9176_v31, 16  ;;  %v9186_v63 = vld [vmem:[#allocation2] ss:$8 sps:$4 sm:$0xee]  }
  0x70   :  { %v953_v55 = vrot.slane %v952_v45, 4  ;;  %v972_v56 = vor.u32 %v971_v6, %v957_v44  ;;  %v995_v26 = vshll.u32 %v9177_v19, 16  ;;  %v7505_v43 = vrot.slane %v9186_v63, 9  ;;  %v9191_v34 = vld [vmem:[#allocation2 + $0x10] ss:$8 sps:$4 sm:$0xee]  }
  0x71   :  { %6182 = vmatmul.mubr.bf16.gmra.mrb[24].mxu1 %v7676_v61  ;;  %8319 = vmatpush3.bf16.msra.mxu0 %v9162_v51  ;;  %v968_v57 = vsel %vm10068_vm10, %v963_v50, %v967_v41  ;;  %v991_v8 = vrot.slane %v989_v52, 4  ;;  %v987_v21 = vrot.slane %v985_v12, 5  ;;  %v1138_v32 = vrot.slane %v9188_v42, 5  ;;  %v9193_v36 = vld [vmem:[#allocation2 + $0x14] ss:$8 sps:$4 sm:$0xff]   ;;  %v9205_v12 = vld [vmem:[%s11711_s1 + $0x380] sm:$0xff]  }
  0x72   :  { %8363 = vmatpush3.bf16.msra.mxu1 %v9159_v33  ;;  %6189 = vmatprep.mubr.bf16.mxu1 %v7713_v27  ;;  %v7747_v58 = vcombine.high %v948_v49, %v968_v57  ;;  %v958_v29 = vsel %vm10068_vm10, %v953_v55, %v957_v44  ;;  %v973_v59 = vrot.slane %v972_v56, 4  ;;  %v7746_v46 = vcombine.low %v948_v49, %v968_v57  ;;  %v10247_v37 = vld [vmem:[#allocation2 + $0x30] ss:$8 sps:$4 sm:$0xff]   ;;  %v10259_v50 = vld [vmem:[#allocation2 + $0x34] ss:$8 sps:$4 sm:$0xff]   ;;  %v9202_v55 = vld [vmem:[%s11711_s1 + $0x340] sm:$0xff]  }
  0x73   :  { %8364 = vmatprep.subr.bf16.mxu1 %v9161_v16  ;;  %8320 = vmatprep.subr.bf16.mxu0 %v9168_v14  ;;  %v981_v33 = vrot.slane %v979_v1, 4  ;;  %v992_v30 = vor.u32 %v991_v8, %v977_v20  ;;  %v997_v16 = vrot.slane %v995_v26, 5  ;;  %v1145_v35 = vrot.slane %v10244_v38, 5  ;;  %v9204_v1 = vld [vmem:[%s11711_s1 + $0x300] sm:$0xff]   ;;  %v9206_v8 = vld [vmem:[%s11711_s1 + $0x348] sm:$0xff]   ;;  %v9216_v42 = vld [vmem:[%s11711_s1 + $0x350] sm:$0xff]  }
  0x74   :  { %6118 = vmatmul.mubr.bf16.gmra.mrb[28].mxu0 %v7710_v15  ;;  %v978_v4 = vsel %vm10068_vm10, %v973_v59, %v977_v20  ;;  %v1139_v39 = vsel %vm9652_vm8, %v7505_v43, %v1138_v32  ;;  %v7506_v44 = vrot.slane %v9191_v34, 9  ;;  %v1142_v45 = vrot.slane %v9193_v36, 5  ;;  %v10254_v20 = vld [vmem:[#allocation2 + $0x40] ss:$8 sps:$4 sm:$0xff]   ;;  %v9217_v43 = vld [vmem:[%s11711_s1 + $0x3d0] sm:$0xff]  }
  0x75   :  { %8321 = vmatpush3.bf16.msra.mxu0 %v9170_v10  ;;  %6125 = vmatprep.mubr.bf16.mxu0 %v7747_v58  ;;  %v7749_v3 = vcombine.high %v958_v29, %v978_v4  ;;  %v7748_v61 = vcombine.low %v958_v29, %v978_v4  ;;  %v982_v51 = vor.u32 %v981_v33, %v967_v41  ;;  %v993_v60 = vrot.slane %v992_v30, 4  ;;  %v9203_v29 = vld [vmem:[%s11711_s1 + $0x3c0] sm:$0xff]   ;;  %v9207_v26 = vld [vmem:[%s11711_s1 + $0x3c8] sm:$0xff]  }
  0x76   :  { %8365 = vmatpush3.bf16.msra.mxu1 %v9163_v11  ;;  %8322 = vmatprep.subr.bf16.mxu0 %v9172_v47  ;;  %v9183_v11 = vld [vmem:[%s11711_s1 + $0x2f8] sm:$0xff]   ;;  %v1144_v41 = vrot.slane %v1138_v32, 4  ;;  %v1148_v6 = vrot.slane %v10247_v37, 5  ;;  %v1143_v57 = vsel %vm9652_vm8, %v7506_v44, %v1142_v45  ;;  %v1147_v58 = vrot.slane %v1142_v45, 4  ;;  %v9208_v30 = vld [vmem:[%s11711_s1 + $0x308] sm:$0xff]  }
  0x77   :  { %8366 = vmatprep.subr.bf16.mxu1 %v9169_v48  ;;  %v983_v15 = vrot.slane %v982_v51, 4  ;;  %v998_v9 = vsel %vm10068_vm10, %v993_v60, %v997_v16  ;;  %v1150_v48 = vrot.slane %v1145_v35, 4  ;;  %v10304_v60 = vld [vmem:[#allocation2 + $0x44] ss:$8 sps:$4 sm:$0xff]   ;;  %vm1328_vm12 = vcmask 1044484  }
  0x78   :  { %v7785_v23 = vcombine.high %v998_v9, %v998_v9  ;;  %v7784_v14 = vcombine.low %v998_v9, %v998_v9  ;;  %v1146_v10 = vsel %vm9652_vm8, %v1144_v41, %v1145_v35  ;;  %v1149_v4 = vsel %vm9652_vm8, %v1147_v58, %v1148_v6  ;;  %v10309_v9 = vld [vmem:[#allocation2 + $0x54] ss:$8 sps:$4 sm:$0xff]  }
  0x79   :  { %6190 = vmatmul.mubr.bf16.gmra.mrb[28].mxu1 %v7712_v24  ;;  %8323 = vmatpush3.bf16.msra.mxu0 %v9174_v62  ;;  %v988_v7 = vsel %vm10068_vm10, %v983_v15, %v987_v21  ;;  %v10251_v24 = vld [vmem:[#allocation2 + $0x24] ss:$8 sps:$4 sm:$0xff]   ;;  %v7642_v56 = vcombine.low %v1139_v39, %v1146_v10  ;;  %v7643_v47 = vcombine.high %v1139_v39, %v1146_v10  ;;  %v1153_v62 = vrot.slane %v1148_v6, 4  ;;  %v9218_v35 = vld [vmem:[%s11711_s1 + $0x310] sm:$0xff]   ;;  %v9220_v10 = vld [vmem:[%s11711_s1 + $0x358] sm:$0xff]  }
  0x7a   :  { %8367 = vmatpush3.bf16.msra.mxu1 %v9171_v22  ;;  %6197 = vmatprep.mubr.bf16.mxu1 %v7749_v3  ;;  %v7783_v0 = vcombine.high %v988_v7, %v988_v7  ;;  %v7782_v27 = vcombine.low %v988_v7, %v988_v7  ;;  %v1151_v49 = vrot.slane %v10251_v24, 5  ;;  %v10261_v22 = vld [vmem:[#allocation2 + $0x50] ss:$8 sps:$4 sm:$0xff]   ;;  %v7644_v52 = vcombine.low %v1143_v57, %v1149_v4  ;;  %v9209_v15 = vld [vmem:[%s11711_s1 + $0x388] sm:$0xff]  }
  0x7b   :  { %8368 = vmatprep.subr.bf16.mxu1 %v9173_v25  ;;  %8324 = vmatprep.subr.bf16.mxu0 %v9178_v54  ;;  %v1157_v25 = vrot.slane %v10254_v20, 5  ;;  %v1160_v31 = vrot.slane %v10261_v22, 5  ;;  %v7645_v54 = vcombine.high %v1143_v57, %v1149_v4  ;;  %v1345_v7 = vrot.slane %v10251_v24, 7  ;;  %v9219_v41 = vld [vmem:[%s11711_s1 + $0x390] sm:$0xff]   ;;  %v9222_v58 = vld [vmem:[%s11711_s1 + $0x318] sm:$0xff]  }
  0x7c   :  { %6126 = vmatmul.mubr.bf16.gmra.mrb[32].mxu0 %v7746_v46  ;;  %v1152_v59 = vsel %vm9652_vm8, %v1150_v48, %v1151_v49  ;;  %v1156_v46 = vrot.slane %v1151_v49, 4  ;;  %v9228_v4 = vld [vmem:[#allocation2 + $0x90] ss:$8 sps:$4 sm:$0xff]   ;;  %vm1969_vm14 = vcmask 1045508   ;;  %vm2171_vm0 = vsmask.f32 1280 }
  0x7d   :  { %8325 = vmatpush3.bf16.msra.mxu0 %v9180_v5  ;;  %6133 = vmatprep.mubr.bf16.mxu0 %v7783_v0  ;;  %v1162_v5 = vrot.slane %v1157_v25, 4  ;;  %v1165_v16 = vrot.slane %v1160_v31, 4  ;;  %vm2172_vm1 = vsmask.f32 5392  ;;  %vm9510_vm4 = vmmov 0  }
  0x7e   :  { %8369 = vmatpush3.bf16.msra.mxu1 %v9175_v2  ;;  %8326 = vmatprep.subr.bf16.mxu0 %v9182_v18  ;;  %v1154_v2 = vrot.slane %v10259_v50, 5  ;;  %v1158_v3 = vsel %vm9652_vm8, %v1156_v46, %v1157_v25  ;;  %v1342_v18 = vrot.slane %v10247_v37, 7  ;;  %v10358_v25 = vld [vmem:[#allocation2 + $0x64] ss:$8 sps:$4 sm:$0xff]   ;;  %vm11244_vm2 = vmor %vm2171_vm0, %vm2172_vm1  ;;  %vm7231_vm5 = vcmask 588800  }
  0x7f   :  { %8370 = vmatprep.subr.bf16.mxu1 %v9179_v13  ;;  %v7679_v33 = vcombine.high %v1152_v59, %v1158_v3  ;;  %v7678_v21 = vcombine.low %v1152_v59, %v1158_v3  ;;  %v9223_v59 = vld [vmem:[%s11711_s1 + $0x398] sm:$0xff]   ;;  %v9230_v3 = vld [vmem:[%s11711_s1 + $0x360] sm:$0xff]  }
  0x80   :  { %v1155_v19 = vsel %vm9652_vm8, %v1153_v62, %v1154_v2  ;;  %v9225_v62 = vld [vmem:[#allocation2 + $0x80] ss:$8 sps:$4 sm:$0xff]  }
  0x81   :  { %6198 = vmatmul.mubr.bf16.gmra.mrb[32].mxu1 %v7748_v61  ;;  %8327 = vmatpush3.bf16.msra.mxu0 %v9184_v28  ;;  %v1159_v61 = vrot.slane %v1154_v2, 4  ;;  %v1351_v28 = vrot.slane %v10254_v20, 7  ;;  %v1175_v2 = vrot.slane %v10358_v25, 5 }
  0x82   :  { %8371 = vmatpush3.bf16.msra.mxu1 %v9181_v17  ;;  %6205 = vmatprep.mubr.bf16.mxu1 %v7785_v23  ;;  %v1339_v17 = vrot.slane %v10244_v38, 7  ;;  %v1163_v23 = vrot.slane %v10304_v60, 5  ;;  %v9256_v38 = vld [vmem:[%s11711_s1 + $0x400] sm:$0xff]  }
  0x83   :  { %8372 = vmatprep.subr.bf16.mxu1 %v9183_v11  ;;  %8404 = vmatprep.subr.bf16.mxu0 %v9202_v55  ;;  %v1161_v51 = vsel %vm9652_vm8, %v1159_v61, %v1160_v31  ;;  %v10306_v11 = vld [vmem:[#allocation2 + $0x60] ss:$8 sps:$4 sm:$0xff]   ;;  %v1181_v31 = vrot.slane %v9225_v62, 5  ;;  %v1180_v61 = vrot.slane %v1175_v2, 4  ;;  %v1354_v62 = vrot.slane %v10261_v22, 7 }
  0x84   :  { %6134 = vmatmul.mubr.bf16.gmra.mrb[36].mxu0 %v7782_v27  ;;  %v7681_v13 = vcombine.high %v1155_v19, %v1161_v51  ;;  %v7680_v0 = vcombine.low %v1155_v19, %v1161_v51  ;;  %v10311_v27 = vld [vmem:[#allocation2 + $0x70] ss:$8 sps:$4 sm:$0xff]   ;;  %v1164_v32 = vsel %vm9652_vm8, %v1162_v5, %v1163_v23  ;;  %v1168_v34 = vrot.slane %v1163_v23, 4  ;;  %v9250_v22 = vld [vmem:[#allocation2 + $0x4] ss:$8 sps:$4 sm:$0xff]  }
  0x85   :  { %6245 = vmatprep.mubr.bf16.mxu0 %v7643_v47  ;;  %v1172_v63 = vrot.slane %v10311_v27, 5  ;;  %v10343_v49 = vrot.slane %v1339_v17, 4  ;;  %v10350_v47 = vrot.slane %v1345_v7, 4 }
  0x86   :  { %8373 = vmatpush3.bf16.msra.mxu1 %v9185_v40  ;;  %v1169_v40 = vrot.slane %v10306_v11, 5 }
  0x87   :  { %8450 = vmatprep.subr.bf16.mxu1 %v9203_v29  ;;  %v1177_v46 = vrot.slane %v1172_v63, 4 }
  0x88   :  { %v1170_v44 = vsel %vm9652_vm8, %v1168_v34, %v1169_v40  ;;  %v1174_v29 = vrot.slane %v1169_v40, 4  ;;  %v9235_v40 = vld [vmem:[%s11711_s1 + $0x3e8] sm:$0xff]   ;;  %v9239_v34 = vld [vmem:[#allocation2 + $0x94] ss:$8 sps:$4 sm:$0x11]  }
  0x89   :  { %6206 = vmatmul.mubr.bf16.gmra.mrb[36].mxu1 %v7784_v14  ;;  %v1166_v14 = vrot.slane %v10309_v9, 5  ;;  %v7715_v45 = vcombine.high %v1164_v32, %v1170_v44  ;;  %v7714_v48 = vcombine.low %v1164_v32, %v1170_v44  ;;  %v9238_v32 = vld [vmem:[#allocation2 + $0x84] ss:$8 sps:$4 sm:$0x11]   ;;  %v9242_v44 = vld [vmem:[%s11711_s1 + $0x330] sm:$0xff]  }
  0x8a   :  { %6317 = vmatprep.mubr.bf16.mxu1 %v7645_v54  ;;  %v1184_v54 = vrot.slane %v9228_v4, 5  ;;  %v1176_v19 = vsel %vm9652_vm8, %v1174_v29, %v1175_v2  ;;  %v1356_v4 = vrot.slane %v1351_v28, 4  ;;  %v9247_v2 = vld [vmem:[%s11711_s1 + $0x3b8] sm:$0xff]  }
  0x8b   :  { %v1167_v36 = vsel %vm9652_vm8, %v1165_v16, %v1166_v14  ;;  %v1171_v39 = vrot.slane %v1166_v14, 4  ;;  %v1348_v16 = vrot.slane %v10259_v50, 7  ;;  %v1186_v14 = vrot.slane %v1181_v31, 4  ;;  %v9257_v50 = vld [vmem:[%s11711_s1 + $0x480] sm:$0xff]  }
  0x8c   :  { %6246 = vmatmul.mubr.bf16.vlgmr.msra.gmra.mrb[40].mxu0 %v7642_v56  ;;  %v9221_v56 = vld [vmem:[%s11711_s1 + $0x3d8] sm:$0xff]  }
  0x8d   :  { %8405 = vmatpush3.bf16.msra.mxu0 %v9204_v1  ;;  %6253 = vmatprep.mubr.bf16.mxu0 %v7679_v33  ;;  %v1173_v6 = vsel %vm9652_vm8, %v1171_v39, %v1172_v63  ;;  %v10360_v1 = vld [vmem:[#allocation2 + $0x74] ss:$8 sps:$4 sm:$0xff]   ;;  %v9231_v33 = vld [vmem:[%s11711_s1 + $0x3e0] sm:$0xff]   ;;  %v9236_v63 = vld [vmem:[%s11711_s1 + $0x328] sm:$0xff]  }
  0x8e   :  { %8406 = vmatprep.subr.bf16.mxu0 %v9206_v8  ;;  %v7717_v55 = vcombine.high %v1167_v36, %v1173_v6  ;;  %v7716_v57 = vcombine.low %v1167_v36, %v1173_v6  ;;  %v1187_v36 = vrot.slane %v9238_v32, 5  ;;  %v9241_v39 = vld [vmem:[%s11711_s1 + $0x3f0] sm:$0xff]   ;;  %v1359_v32 = vrot.slane %v1354_v62, 4 }
  0x8f   :  { %v9243_v6 = vld [vmem:[%s11711_s1 + $0x3b0] sm:$0xff]  }
  0x91   :  { %6318 = vmatmul.mubr.bf16.vlgmr.msra.gmra.mrb[40].mxu1 %v7644_v52  ;;  %8407 = vmatpush3.bf16.msra.mxu0 %v9208_v30  ;;  %v1178_v52 = vrot.slane %v10360_v1, 5 }
  0x92   :  { %8451 = vmatpush3.bf16.msra.mxu1 %v9205_v12  ;;  %6325 = vmatprep.mubr.bf16.mxu1 %v7681_v13  ;;  %v9232_v12 = vld [vmem:[%s11711_s1 + $0x320] sm:$0xff]   ;;  %v1182_v13 = vsel %vm9652_vm8, %v1180_v61, %v1181_v31  ;;  %v1357_v31 = vrot.slane %v10304_v60, 7  ;;  %v9253_v60 = vld [vmem:[#allocation2 + $0x14] ss:$8 sps:$4 sm:$0xff]  }
  0x93   :  { %8452 = vmatprep.subr.bf16.mxu1 %v9207_v26  ;;  %8408 = vmatprep.subr.bf16.mxu0 %v9216_v42  ;;  %v1179_v8 = vsel %vm9652_vm8, %v1177_v46, %v1178_v52  ;;  %v1183_v51 = vrot.slane %v1178_v52, 4  ;;  %v9233_v26 = vld [vmem:[%s11711_s1 + $0x3a0] sm:$0xff]   ;;  %v7750_v5 = vcombine.low %v1176_v19, %v1182_v13  ;;  %v1189_v42 = vrot.slane %v1184_v54, 4  ;;  %v9245_v46 = vld [vmem:[%s11711_s1 + $0x3f8] sm:$0xff]  }
  0x94   :  { %6254 = vmatmul.mubr.bf16.gmra.mrb[44].mxu0 %v7678_v21  ;;  %v7751_v21 = vcombine.high %v1176_v19, %v1182_v13  ;;  %v9248_v52 = vld [vmem:[#allocation2] ss:$8 sps:$4 sm:$0x88]   ;;  %v9251_v19 = vld [vmem:[#allocation2 + $0x10] ss:$8 sps:$4 sm:$0x88]  }
  0x95   :  { %8409 = vmatpush3.bf16.msra.mxu0 %v9218_v35  ;;  %6261 = vmatprep.mubr.bf16.mxu0 %v7715_v45  ;;  %v1185_v30 = vsel %vm9652_vm8, %v1183_v51, %v1184_v54  ;;  %v9240_v35 = vld [vmem:[%s11711_s1 + $0x370] sm:$0xff]   ;;  %v1188_v45 = vsel %vm9652_vm8, %v1186_v14, %v1187_v36  ;;  %v9254_v54 = vld [vmem:[%s11711_s1 + $0x440] sm:$0xff]   ;;  %v7527_v61 = vrot.slane %v9248_v52, 11  ;;  %v7528_v13 = vrot.slane %v9251_v19, 11  ;;  %v9261_v36 = vld [vmem:[%s11711_s1 + $0x488] sm:$0xff]  }
  0x96   :  { %8453 = vmatpush3.bf16.msra.mxu1 %v9209_v15  ;;  %8410 = vmatprep.subr.bf16.mxu0 %v9220_v10  ;;  %v9234_v15 = vld [vmem:[%s11711_s1 + $0x368] sm:$0xff]   ;;  %v7752_v23 = vcombine.low %v1179_v8, %v1185_v30  ;;  %v7787_v10 = vcombine.high %v1188_v45, %v1188_v45  ;;  %v9255_v51 = vld [vmem:[%s11711_s1 + $0x4c0] sm:$0xff]  }
  0x97   :  { %8454 = vmatprep.subr.bf16.mxu1 %v9217_v43  ;;  %v9237_v43 = vld [vmem:[%s11711_s1 + $0x3a8] sm:$0xff]  }
  0x99   :  { %6326 = vmatmul.mubr.bf16.gmra.mrb[44].mxu1 %v7680_v0  ;;  %8411 = vmatpush3.bf16.msra.mxu0 %v9222_v58  ;;  %v7753_v0 = vcombine.high %v1179_v8, %v1185_v30  ;;  %v1353_v58 = vrot.slane %v1348_v16, 4 }
  0x9a   :  { %8455 = vmatpush3.bf16.msra.mxu1 %v9219_v41  ;;  %6333 = vmatprep.mubr.bf16.mxu1 %v7717_v55  ;;  %v1190_v41 = vrot.slane %v9239_v34, 5 }
  0x9b   :  { %8456 = vmatprep.subr.bf16.mxu1 %v9221_v56  ;;  %8412 = vmatprep.subr.bf16.mxu0 %v9230_v3  ;;  %v7786_v56 = vcombine.low %v1188_v45, %v1188_v45 }
  0x9c   :  { %6262 = vmatmul.mubr.bf16.gmra.mrb[48].mxu0 %v7714_v48  ;;  %v1347_v48 = vrot.slane %v1342_v18, 4  ;;  %v1191_v55 = vsel %vm9652_vm8, %v1189_v42, %v1190_v41  ;;  %vm10438_vm8 = vmor %vm174_vm3, %vm1328_vm12  ;;  %v1369_v41 = vrot.slane %v10358_v25, 7  ;;  %v1372_v25 = vrot.slane %v10360_v1, 7  ;;  %v9268_v1 = vld [vmem:[%s11711_s1 + $0x418] sm:$0xff]  }
  0x9d   :  { %8413 = vmatpush3.bf16.msra.mxu0 %v9232_v12  ;;  %6269 = vmatprep.mubr.bf16.mxu0 %v7751_v21  ;;  %v7789_v29 = vcombine.high %v1191_v55, %v1191_v55  ;;  %v1346_v12 = vsel %vm10438_vm8, %v10343_v49, %v1345_v7  ;;  %v1352_v8 = vsel %vm10438_vm8, %v10350_v47, %v1351_v28  ;;  %v1336_v21 = vrot.slane %v9253_v60, 7 }
  0x9e   :  { %8457 = vmatpush3.bf16.msra.mxu1 %v9223_v59  ;;  %8414 = vmatprep.subr.bf16.mxu0 %v9234_v15  ;;  %v7788_v59 = vcombine.low %v1191_v55, %v1191_v55  ;;  %v1363_v7 = vrot.slane %v10306_v11, 7  ;;  %v7683_v28 = vcombine.high %v1346_v12, %v1352_v8  ;;  %v1349_v49 = vsel %vm10438_vm8, %v1347_v48, %v1348_v16  ;;  %v9264_v48 = vld [vmem:[%s11711_s1 + $0x410] sm:$0xff]  }
  0x9f   :  { %8458 = vmatprep.subr.bf16.mxu1 %v9231_v33  ;;  %v1332_v33 = vrot.slane %v9250_v22, 7  ;;  %v1355_v47 = vsel %vm10438_vm8, %v1353_v58, %v1354_v62  ;;  %v1337_v15 = vsel %vm10438_vm8, %v7528_v13, %v1336_v21  ;;  %v1341_v11 = vrot.slane %v1336_v21, 4  ;;  %v9265_v55 = vld [vmem:[%s11711_s1 + $0x490] sm:$0xff]   ;;  %v9277_v13 = vld [vmem:[%s11711_s1 + $0x4a0] sm:$0xff]   ;;  %v9278_v21 = vld [vmem:[%s11711_s1 + $0x468] sm:$0xff]  }
  0xa0   :  { %v1362_v16 = vrot.slane %v1357_v31, 4  ;;  %v7685_v42 = vcombine.high %v1349_v49, %v1355_v47  ;;  %v1358_v34 = vsel %vm10438_vm8, %v1356_v4, %v1357_v31  ;;  %v1377_v62 = vrot.slane %v1372_v25, 4  ;;  %v9270_v4 = vld [vmem:[#allocation2 + $0x80] ss:$8 sps:$4 sm:$0xff]  }
  0xa1   :  { %6334 = vmatmul.mubr.bf16.gmra.mrb[48].mxu1 %v7716_v57  ;;  %8415 = vmatpush3.bf16.msra.mxu0 %v9236_v63  ;;  %v9244_v57 = vld [vmem:[%s11711_s1 + $0x378] sm:$0xff]   ;;  %v1333_v24 = vsel %vm10438_vm8, %v7527_v61, %v1332_v33  ;;  %v1375_v52 = vrot.slane %v9270_v4, 7  ;;  %v9275_v61 = vld [vmem:[%s11711_s1 + $0x4e0] sm:$0xff]   ;;  %vm1522_vm3 = vsmask.f32 4368 }
  0xa2   :  { %8459 = vmatpush3.bf16.msra.mxu1 %v9233_v26  ;;  %6341 = vmatprep.mubr.bf16.mxu1 %v7753_v0  ;;  %v1338_v26 = vrot.slane %v1332_v33, 4  ;;  %v1343_v0 = vsel %vm10438_vm8, %v1341_v11, %v1342_v18  ;;  %v1366_v18 = vrot.slane %v10311_v27, 7  ;;  %v9263_v27 = vld [vmem:[%s11711_s1 + $0x4d0] sm:$0xff]   ;;  %vm10620_vm13 = vmor %vm175_vm7, %vm1522_vm3  ;;  %vm1968_vm7 = vcmask 1041408  }
  0xa3   :  { %8460 = vmatprep.subr.bf16.mxu1 %v9235_v40  ;;  %8416 = vmatprep.subr.bf16.mxu0 %v9240_v35  ;;  %v1360_v40 = vrot.slane %v10309_v9, 7  ;;  %v7648_v14 = vcombine.low %v1337_v15, %v1343_v0  ;;  %v7649_v63 = vcombine.high %v1337_v15, %v1343_v0  ;;  %v1364_v9 = vsel %vm10438_vm8, %v1362_v16, %v1363_v7  ;;  %v9262_v35 = vld [vmem:[%s11711_s1 + $0x450] sm:$0xff]   ;;  %vm10980_vm15 = vmor %vm1968_vm7, %vm1969_vm14 }
  0xa4   :  { %6270 = vmatmul.mubr.bf16.gmra.mrb[52].mxu0 %v7750_v5  ;;  %v1340_v20 = vsel %vm10438_vm8, %v1338_v26, %v1339_v17  ;;  %v9258_v17 = vld [vmem:[%s11711_s1 + $0x448] sm:$0xff]   ;;  %v1371_v58 = vrot.slane %v1366_v18, 4  ;;  %v7718_v31 = vcombine.low %v1358_v34, %v1364_v9  ;;  %v9283_v15 = vld [vmem:[#allocation2 + $0x94] ss:$8 sps:$4 sm:$0x77]  }
  0xa5   :  { %8417 = vmatpush3.bf16.msra.mxu0 %v9242_v44  ;;  %6277 = vmatprep.mubr.bf16.mxu0 %v7787_v10  ;;  %v7646_v30 = vcombine.low %v1333_v24, %v1340_v20  ;;  %v7647_v5 = vcombine.high %v1333_v24, %v1340_v20  ;;  %v1365_v37 = vrot.slane %v1360_v40, 4  ;;  %v7719_v44 = vcombine.high %v1358_v34, %v1364_v9  ;;  %v9284_v11 = vld [vmem:[%s11711_s1 + $0x470] sm:$0xff]   ;;  %v10588_v9 = vld [vmem:[#allocation2 + $0x20] sm:$0xff] }
  0xa6   :  { %8461 = vmatpush3.bf16.msra.mxu1 %v9237_v43  ;;  %8418 = vmatprep.subr.bf16.mxu0 %v9244_v57  ;;  %v9260_v43 = vld [vmem:[%s11711_s1 + $0x408] sm:$0xff]   ;;  %v1361_v45 = vsel %vm10438_vm8, %v1359_v32, %v1360_v40  ;;  %v1368_v10 = vrot.slane %v1363_v7, 4  ;;  %v9266_v57 = vld [vmem:[%s11711_s1 + $0x458] sm:$0xff]   ;;  %v1373_v33 = vsel %vm10438_vm8, %v1371_v58, %v1372_v25  ;;  %v1380_v20 = vrot.slane %v1375_v52, 4  ;;  %v9286_v16 = vld [vmem:[%s11711_s1 + $0x430] sm:$0xff]  }
  0xa7   :  { %8462 = vmatprep.subr.bf16.mxu1 %v9241_v39  ;;  %v7682_v39 = vcombine.low %v1346_v12, %v1352_v8  ;;  %v9276_v12 = vld [vmem:[%s11711_s1 + $0x420] sm:$0xff]   ;;  %v9279_v7 = vld [vmem:[%s11711_s1 + $0x4e8] sm:$0xff]   ;;  %v9287_v40 = vld [vmem:[%s11711_s1 + $0x4b0] sm:$0xff]  }
  0xa8   :  { %v1370_v22 = vsel %vm10438_vm8, %v1368_v10, %v1369_v41  ;;  %v9289_v32 = vld [vmem:[%s11711_s1 + $0x4f8] sm:$0xff]  }
  0xa9   :  { %6342 = vmatmul.mubr.bf16.gmra.mrb[52].mxu1 %v7752_v23  ;;  %8419 = vmatpush3.bf16.msra.mxu0 %v9246_v53  ;;  %v9259_v23 = vld [vmem:[%s11711_s1 + $0x4c8] sm:$0xff]   ;;  %v9269_v53 = vld [vmem:[%s11711_s1 + $0x498] sm:$0xff]  }
  0xaa   :  { %8463 = vmatpush3.bf16.msra.mxu1 %v9243_v6  ;;  %6349 = vmatprep.mubr.bf16.mxu1 %v7789_v29  ;;  %v1367_v6 = vsel %vm10438_vm8, %v1365_v37, %v1366_v18  ;;  %v9290_v37 = vld [vmem:[%s11711_s1 + $0x438] sm:$0xff]  }
  0xab   :  { %8464 = vmatprep.subr.bf16.mxu1 %v9245_v46  ;;  %8496 = vmatprep.subr.bf16.mxu0 %v9254_v54  ;;  %v7721_v29 = vcombine.high %v1361_v45, %v1367_v6  ;;  %v1374_v46 = vrot.slane %v1369_v41, 4  ;;  %v9274_v54 = vld [vmem:[%s11711_s1 + $0x460] sm:$0xff]   ;;  %v7720_v8 = vcombine.low %v1361_v45, %v1367_v6  ;;  %v9291_v18 = vld [vmem:[%s11711_s1 + $0x4b8] sm:$0xff]  }
  0xac   :  { %6278 = vmatmul.mubr.bf16.gmra.mrb[56].mxu0 %v7786_v56  ;;  %v7684_v56 = vcombine.low %v1349_v49, %v1355_v47  ;;  %v9281_v47 = vld [vmem:[%s11711_s1 + $0x4a8] sm:$0xff]   ;;  %v10598_v10 = vld [vmem:[#allocation2 + $0x38] sm:$0xff] }
  0xad   :  { %6389 = vmatprep.mubr.bf16.mxu0 %v7647_v5  ;;  %v1376_v60 = vsel %vm10438_vm8, %v1374_v46, %v1375_v52  ;;  %v9296_v58 = vld [vmem:[#allocation2 + $0x10] ss:$8 sps:$4 sm:$0x88]  }
  0xae   :  { %8465 = vmatpush3.bf16.msra.mxu1 %v9247_v2  ;;  %v9272_v2 = vld [vmem:[#allocation2 + $0x90] ss:$8 sps:$4 sm:$0xff]   ;;  %v7754_v5 = vcombine.low %v1370_v22, %v1376_v60  ;;  %v1538_v52 = vshrl.u32 %v9296_v58, 16 }
  0xaf   :  { %8542 = vmatprep.subr.bf16.mxu1 %v9255_v51  ;;  %v1378_v19 = vrot.slane %v9272_v2, 7  ;;  %v7755_v51 = vcombine.high %v1370_v22, %v1376_v60  ;;  %v10616_v2 = vld [vmem:[#allocation2 + $0x48] sm:$0xff] }
  0xb1   :  { %6350 = vmatmul.mubr.bf16.gmra.mrb[56].mxu1 %v7788_v59  ;;  %v9267_v59 = vld [vmem:[%s11711_s1 + $0x4d8] sm:$0xff]   ;;  %v1379_v26 = vsel %vm10438_vm8, %v1377_v62, %v1378_v19  ;;  %v1383_v49 = vrot.slane %v1378_v19, 4  ;;  %v9304_v19 = vld [vmem:[%s11711_s1 + $0x540] sm:$0xff]  }
  0xb2   :  { %6461 = vmatprep.mubr.bf16.mxu1 %v7649_v63  ;;  %v7757_v24 = vcombine.high %v1373_v33, %v1379_v26  ;;  %v7756_v0 = vcombine.low %v1373_v33, %v1379_v26  ;;  %v10635_v26 = vld [vmem:[#allocation2 + $0x58] sm:$0xff] }
  0xb4   :  { %6390 = vmatmul.mubr.bf16.vlgmr.msra.gmra.mrb[60].mxu0 %v7646_v30  ;;  %v9282_v30 = vld [vmem:[#allocation2 + $0x84] ss:$8 sps:$4 sm:$0x77]  }
  0xb5   :  { %6397 = vmatprep.mubr.bf16.mxu0 %v7683_v28  ;;  %8497 = vmatpush3.bf16.msra.mxu0 %v9256_v38  ;;  %v9280_v28 = vld [vmem:[%s11711_s1 + $0x428] sm:$0xff]   ;;  %v1381_v38 = vrot.slane %v9282_v30, 7 }
  0xb6   :  { %8498 = vmatprep.subr.bf16.mxu0 %v9258_v17  ;;  %v1384_v17 = vrot.slane %v9283_v15, 7 }
  0xb8   :  { %v1385_v63 = vsel %vm10438_vm8, %v1383_v49, %v1384_v17 }
  0xb9   :  { %6462 = vmatmul.mubr.bf16.vlgmr.msra.gmra.mrb[60].mxu1 %v7648_v14  ;;  %8499 = vmatpush3.bf16.msra.mxu0 %v9260_v43  ;;  %v7793_v43 = vcombine.high %v1385_v63, %v1385_v63 }
  0xba   :  { %6469 = vmatprep.mubr.bf16.mxu1 %v7685_v42  ;;  %8543 = vmatpush3.bf16.msra.mxu1 %v9257_v50  ;;  %v9285_v50 = vld [vmem:[%s11711_s1 + $0x4f0] sm:$0xff]   ;;  %v9288_v42 = vld [vmem:[%s11711_s1 + $0x478] sm:$0xff]  }
  0xbb   :  { %8544 = vmatprep.subr.bf16.mxu1 %v9259_v23  ;;  %8500 = vmatprep.subr.bf16.mxu0 %v9262_v35  ;;  %v1382_v23 = vsel %vm10438_vm8, %v1380_v20, %v1381_v38  ;;  %v10590_v35 = vld [vmem:[#allocation2 + $0x28] sm:$0xff]  ;;  %v9305_v20 = vld [vmem:[%s11711_s1 + $0x5c0] sm:$0xff]  }
  0xbc   :  { %6398 = vmatmul.mubr.bf16.gmra.mrb[64].mxu0 %v7682_v39  ;;  %v7791_v14 = vcombine.high %v1382_v23, %v1382_v23  ;;  %v7790_v34 = vcombine.low %v1382_v23, %v1382_v23  ;;  %v9294_v39 = vld [vmem:[#allocation2 + $0x4] ss:$8 sps:$4 sm:$0xff]   ;;  %v10594_v41 = vcombine.low %v10588_v9, %v10590_v35  ;;  %v10602_v25 = vcombine.high %v10588_v9, %v10590_v35 }
  0xbd   :  { %6405 = vmatprep.mubr.bf16.mxu0 %v7719_v44  ;;  %8501 = vmatpush3.bf16.msra.mxu0 %v9264_v48  ;;  %v10596_v44 = vld [vmem:[#allocation2 + $0x30] sm:$0xff]  ;;  %v1530_v6 = vshrl.u32 %v9294_v39, 16  ;;  %v1533_v48 = vshll.u32 %v9294_v39, 16  ;;  %v9309_v39 = vld [vmem:[%s11711_s1 + $0x5c8] sm:$0xff]  }
  0xbe   :  { %8545 = vmatpush3.bf16.msra.mxu1 %v9261_v36  ;;  %8502 = vmatprep.subr.bf16.mxu0 %v9266_v57  ;;  %v9292_v36 = vld [vmem:[#allocation2] ss:$8 sps:$4 sm:$0x88]   ;;  %v1555_v57 = vshll.u32 %v10594_v41, 16  ;;  %v10614_v46 = vcombine.high %v10596_v44, %v10598_v10  ;;  %v1570_v30 = vshrl.u32 %v10602_v25, 16 }
  0xbf   :  { %8546 = vmatprep.subr.bf16.mxu1 %v9263_v27  ;;  %v7792_v27 = vcombine.low %v1385_v63, %v1385_v63  ;;  %v1525_v45 = vshrl.u32 %v9292_v36, 16  ;;  %v1532_v62 = vrot.slane %v1530_v6, 7 }
  0xc0   :  { %v1572_v23 = vrot.slane %v1570_v30, 7  ;;  %v1579_v6 = vshrl.u32 %v10614_v46, 16 }
  0xc1   :  { %6470 = vmatmul.mubr.bf16.gmra.mrb[64].mxu1 %v7684_v56  ;;  %8503 = vmatpush3.bf16.msra.mxu0 %v9268_v1  ;;  %v1552_v56 = vshrl.u32 %v10594_v41, 16  ;;  %v7549_v1 = vrot.slane %v1525_v45, 11  ;;  %v1550_v60 = vrot.slane %v1532_v62, 4 }
  0xc2   :  { %6477 = vmatprep.mubr.bf16.mxu1 %v7721_v29  ;;  %8547 = vmatpush3.bf16.msra.mxu1 %v9265_v55  ;;  %v9298_v55 = vld [vmem:[#allocation2 + $0x14] ss:$8 sps:$4 sm:$0xff]   ;;  %v10608_v29 = vcombine.low %v10596_v44, %v10598_v10  ;;  %v1586_v36 = vrot.slane %v1572_v23, 4 }
  0xc3   :  { %8548 = vmatprep.subr.bf16.mxu1 %v9267_v59  ;;  %8504 = vmatprep.subr.bf16.mxu0 %v9274_v54  ;;  %v10610_v59 = vld [vmem:[#allocation2 + $0x40] sm:$0xff]  ;;  %v1546_v4 = vshll.u32 %v9298_v55, 16  ;;  %v1554_v22 = vrot.slane %v1552_v56, 7 }
  0xc4   :  { %6406 = vmatmul.mubr.bf16.gmra.mrb[68].mxu0 %v7718_v31  ;;  %v1561_v54 = vshrl.u32 %v10608_v29, 16  ;;  %v1564_v33 = vshll.u32 %v10608_v29, 16  ;;  %v9345_v31 = vld [vmem:[%s11711_s1 + $0x5b8] sm:$0xff]  }
  0xc5   :  { %6413 = vmatprep.mubr.bf16.mxu0 %v7755_v51  ;;  %8505 = vmatpush3.bf16.msra.mxu0 %v9276_v12  ;;  %v10633_v51 = vld [vmem:[#allocation2 + $0x50] sm:$0xff] }
  0xc6   :  { %8549 = vmatpush3.bf16.msra.mxu1 %v9269_v53  ;;  %8506 = vmatprep.subr.bf16.mxu0 %v9278_v21  ;;  %v1543_v53 = vshrl.u32 %v9298_v55, 16  ;;  %v10637_v21 = vrot.slane %v1561_v54, 7  ;;  %v9310_v55 = vld [vmem:[%s11711_s1 + $0x508] sm:$0xff]   ;;  %v10698_v54 = vcombine.high %v10633_v51, %v10635_v26 }
  0xc7   :  { %8550 = vmatprep.subr.bf16.mxu1 %v9275_v61  ;;  %v1535_v61 = vor.u32 %v1533_v48, %v1532_v62  ;;  %v1582_v48 = vshll.u32 %v10614_v46, 16 }
  0xc8   :  { %v1545_v12 = vrot.slane %v1543_v53, 7  ;;  %v1566_v15 = vor.u32 %v1564_v33, %v10637_v21  ;;  %v1577_v45 = vrot.slane %v10637_v21, 4  ;;  %v1581_v53 = vrot.slane %v1579_v6, 7 }
  0xc9   :  { %6478 = vmatmul.mubr.bf16.gmra.mrb[68].mxu1 %v7720_v8  ;;  %8507 = vmatpush3.bf16.msra.mxu0 %v9280_v28  ;;  %v10631_v8 = vcombine.low %v10610_v59, %v10616_v2  ;;  %v1536_v28 = vsel %vm10620_vm13, %v7549_v1, %v1535_v61  ;;  %v10686_v1 = vcombine.high %v10610_v59, %v10616_v2 }
  0xca   :  { %6485 = vmatprep.mubr.bf16.mxu1 %v7757_v24  ;;  %8551 = vmatpush3.bf16.msra.mxu1 %v9277_v13  ;;  %v1557_v13 = vor.u32 %v1555_v57, %v1554_v22  ;;  %v7550_v24 = vrot.slane %v1538_v52, 11  ;;  %v1548_v49 = vor.u32 %v1546_v4, %v1545_v12  ;;  %v9311_v4 = vld [vmem:[%s11711_s1 + $0x588] sm:$0xff]   ;;  %v1584_v21 = vor.u32 %v1582_v48, %v1581_v53 }
  0xcb   :  { %8552 = vmatprep.subr.bf16.mxu1 %v9279_v7  ;;  %8508 = vmatprep.subr.bf16.mxu0 %v9284_v11  ;;  %v1568_v7 = vrot.slane %v1554_v22, 4  ;;  %v1573_v11 = vshll.u32 %v10602_v25, 16  ;;  %v1588_v38 = vshrl.u32 %v10631_v8, 16  ;;  %v10693_v22 = vld [vmem:[#allocation2 + $0x60] sm:$0xff] }
  0xcc   :  { %6414 = vmatmul.mubr.bf16.gmra.mrb[72].mxu0 %v7754_v5  ;;  %v1558_v5 = vsel %vm10620_vm13, %v1550_v60, %v1557_v13  ;;  %v10700_v60 = vld [vmem:[#allocation2 + $0x68] sm:$0xff]  ;;  %v10703_v13 = vld [vmem:[#allocation2 + $0x70] sm:$0xff] }
  0xcd   :  { %6421 = vmatprep.mubr.bf16.mxu0 %v7791_v14  ;;  %8509 = vmatpush3.bf16.msra.mxu0 %v9286_v16  ;;  %v7650_v17 = vcombine.low %v1536_v28, %v1558_v5  ;;  %v7651_v16 = vcombine.high %v1536_v28, %v1558_v5  ;;  %v9308_v14 = vld [vmem:[%s11711_s1 + $0x548] sm:$0xff]   ;;  %v1609_v28 = vshll.u32 %v10686_v1, 16 }
  0xce   :  { %8553 = vmatpush3.bf16.msra.mxu1 %v9281_v47  ;;  %8510 = vmatprep.subr.bf16.mxu0 %v9288_v42  ;;  %v1559_v47 = vrot.slane %v1545_v12, 4  ;;  %v10663_v42 = vrot.slane %v1588_v38, 7  ;;  %v1606_v12 = vshrl.u32 %v10686_v1, 16  ;;  %v1585_v38 = vsel %vm10620_vm13, %v1577_v45, %v1584_v21  ;;  %v9320_v45 = vld [vmem:[%s11711_s1 + $0x558] sm:$0xff]   ;;  %v10767_v21 = vld [vmem:[#allocation2 + $0x80] sm:$0xff] }
  0xcf   :  { %8554 = vmatprep.subr.bf16.mxu1 %v9285_v50  ;;  %v9306_v50 = vld [vmem:[%s11711_s1 + $0x500] sm:$0xff]  }
  0xd0   :  { %v1567_v63 = vsel %vm10620_vm13, %v1559_v47, %v1566_v15  ;;  %v1604_v52 = vrot.slane %v10663_v42, 4  ;;  %v1608_v47 = vrot.slane %v1606_v12, 7  ;;  %v9316_v15 = vld [vmem:[%s11711_s1 + $0x550] sm:$0xff]   ;;  %v9323_v12 = vld [vmem:[%s11711_s1 + $0x598] sm:$0xff]  }
  0xd1   :  { %6486 = vmatmul.mubr.bf16.gmra.mrb[72].mxu1 %v7756_v0  ;;  %8511 = vmatpush3.bf16.msra.mxu0 %v9290_v37  ;;  %v1549_v0 = vsel %vm10620_vm13, %v7550_v24, %v1548_v49  ;;  %v10705_v24 = vld [vmem:[#allocation2 + $0x78] sm:$0xff] }
  0xd2   :  { %6493 = vmatprep.mubr.bf16.mxu1 %v7793_v43  ;;  %8555 = vmatpush3.bf16.msra.mxu1 %v9287_v40  ;;  %v9307_v40 = vld [vmem:[%s11711_s1 + $0x580] sm:$0xff]   ;;  %v1591_v43 = vshll.u32 %v10631_v8, 16  ;;  %v7652_v37 = vcombine.low %v1549_v0, %v1567_v63  ;;  %v10714_v30 = vcombine.low %v10703_v13, %v10705_v24 }
  0xd3   :  { %8556 = vmatprep.subr.bf16.mxu1 %v9289_v32  ;;  %8588 = vmatprep.subr.bf16.mxu0 %v9304_v19  ;;  %v10668_v32 = vcombine.low %v10633_v51, %v10635_v26 }
  0xd4   :  { %6422 = vmatmul.mubr.bf16.gmra.mrb[76].mxu0 %v7790_v34  ;;  %v1575_v34 = vor.u32 %v1573_v11, %v1572_v23  ;;  %v9317_v11 = vld [vmem:[%s11711_s1 + $0x5d0] sm:$0xff]  }
  0xd5   :  { %6533 = vmatprep.mubr.bf16.mxu0 %v7651_v16  ;;  %v1597_v57 = vshrl.u32 %v10668_v32, 16  ;;  %v1600_v58 = vshll.u32 %v10668_v32, 16  ;;  %v1615_v16 = vshrl.u32 %v10698_v54, 16 }
  0xd6   :  { %8557 = vmatpush3.bf16.msra.mxu1 %v9291_v18  ;;  %v7653_v18 = vcombine.high %v1549_v0, %v1567_v63  ;;  %v1576_v56 = vsel %vm10620_vm13, %v1568_v7, %v1575_v34  ;;  %v1595_v7 = vrot.slane %v1581_v53, 4  ;;  %v9318_v0 = vld [vmem:[%s11711_s1 + $0x510] sm:$0xff]   ;;  %v1618_v63 = vshll.u32 %v10698_v54, 16 }
  0xd7   :  { %8634 = vmatprep.subr.bf16.mxu1 %v9305_v20  ;;  %v1599_v19 = vrot.slane %v1597_v57, 7  ;;  %v10709_v20 = vcombine.low %v10693_v22, %v10700_v60  ;;  %v10751_v57 = vcombine.high %v10693_v22, %v10700_v60  ;;  %v10758_v53 = vcombine.high %v10703_v13, %v10705_v24 }
  0xd9   :  { %6494 = vmatmul.mubr.bf16.gmra.mrb[76].mxu1 %v7792_v27  ;;  %v1593_v27 = vor.u32 %v1591_v43, %v10663_v42  ;;  %v1602_v49 = vor.u32 %v1600_v58, %v1599_v19  ;;  %v1613_v5 = vrot.slane %v1599_v19, 4 }
  0xda   :  { %6605 = vmatprep.mubr.bf16.mxu1 %v7653_v18  ;;  %v1617_v18 = vrot.slane %v1615_v16, 7 }
  0xdb   :  { %v1594_v62 = vsel %vm10620_vm13, %v1586_v36, %v1593_v27  ;;  %v1603_v23 = vsel %vm10620_vm13, %v1595_v7, %v1602_v49  ;;  %v1633_v36 = vshrl.u32 %v10714_v30, 16  ;;  %v9319_v27 = vld [vmem:[%s11711_s1 + $0x590] sm:$0xff]   ;;  %v10769_v7 = vld [vmem:[#allocation2 + $0x88] sm:$0xff] }
  0xdc   :  { %6534 = vmatmul.mubr.bf16.vlgmr.msra.gmra.mrb[80].mxu0 %v7650_v17  ;;  %v7687_v33 = vcombine.high %v1576_v56, %v1594_v62  ;;  %v7686_v61 = vcombine.low %v1576_v56, %v1594_v62  ;;  %v1627_v17 = vshll.u32 %v10709_v20, 16  ;;  %v7689_v42 = vcombine.high %v1585_v38, %v1603_v23  ;;  %v9321_v56 = vld [vmem:[%s11711_s1 + $0x5d8] sm:$0xff]  }
  0xdd   :  { %8589 = vmatpush3.bf16.msra.mxu0 %v9306_v50  ;;  %v1624_v50 = vshrl.u32 %v10709_v20, 16  ;;  %v7688_v43 = vcombine.low %v1585_v38, %v1603_v23  ;;  %v1620_v48 = vor.u32 %v1618_v63, %v1617_v18  ;;  %v1635_v58 = vrot.slane %v1633_v36, 7  ;;  %v9322_v62 = vld [vmem:[%s11711_s1 + $0x518] sm:$0xff]   ;;  %v9329_v36 = vld [vmem:[%s11711_s1 + $0x5e0] sm:$0xff]  }
  0xde   :  { %8590 = vmatprep.subr.bf16.mxu0 %v9308_v14  ;;  %6541 = vmatprep.mubr.bf16.mxu0 %v7687_v33  ;;  %v1622_v14 = vrot.slane %v1608_v47, 4  ;;  %v10774_v49 = vcombine.low %v10767_v21, %v10769_v7  ;;  %v1654_v23 = vshll.u32 %v10758_v53, 16 }
  0xdf   :  { %v1649_v38 = vrot.slane %v1635_v58, 4 }
  0xe1   :  { %6606 = vmatmul.mubr.bf16.vlgmr.msra.gmra.mrb[80].mxu1 %v7652_v37  ;;  %8591 = vmatpush3.bf16.msra.mxu0 %v9310_v55  ;;  %v10733_v37 = vrot.slane %v1624_v50, 7  ;;  %v1631_v55 = vrot.slane %v1617_v18, 4  ;;  %v9328_v50 = vld [vmem:[%s11711_s1 + $0x560] sm:$0xff]  }
  0xe2   :  { %8635 = vmatpush3.bf16.msra.mxu1 %v9307_v40  ;;  %v1611_v40 = vor.u32 %v1609_v28, %v1608_v47  ;;  %8592 = vmatprep.subr.bf16.mxu0 %v9316_v15  ;;  %v1642_v47 = vshrl.u32 %v10751_v57, 16  ;;  %v10778_v15 = vld [vmem:[#allocation2 + $0x90] sm:$0xff] }
  0xe3   :  { %8636 = vmatprep.subr.bf16.mxu1 %v9309_v39  ;;  %v1636_v39 = vshll.u32 %v10714_v30, 16  ;;  %6613 = vmatprep.mubr.bf16.mxu1 %v7689_v42  ;;  %v1629_v6 = vor.u32 %v1627_v17, %v10733_v37  ;;  %v1640_v28 = vrot.slane %v10733_v37, 4  ;;  %v1660_v42 = vshrl.u32 %v10774_v49, 16 }
  0xe4   :  { %6542 = vmatmul.mubr.bf16.gmra.mrb[84].mxu0 %v7686_v61  ;;  %v1612_v34 = vsel %vm10620_vm13, %v1604_v52, %v1611_v40  ;;  %v1621_v52 = vsel %vm10620_vm13, %v1613_v5, %v1620_v48  ;;  %v1645_v5 = vshll.u32 %v10751_v57, 16  ;;  %v1644_v63 = vrot.slane %v1642_v47, 7  ;;  %v9332_v47 = vld [vmem:[%s11711_s1 + $0x568] sm:$0xff]  }
  0xe5   :  { %8593 = vmatpush3.bf16.msra.mxu0 %v9318_v0  ;;  %v1638_v19 = vor.u32 %v1636_v39, %v1635_v58  ;;  %v1651_v0 = vshrl.u32 %v10758_v53, 16  ;;  %v9330_v39 = vld [vmem:[%s11711_s1 + $0x520] sm:$0xff]   ;;  %v7547_v48 = vcombine.high %v10767_v21, %v10769_v7 }
  0xe6   :  { %8637 = vmatpush3.bf16.msra.mxu1 %v9311_v4  ;;  %8594 = vmatprep.subr.bf16.mxu0 %v9320_v45  ;;  %v1630_v4 = vsel %vm10620_vm13, %v1622_v14, %v1629_v6  ;;  %v1658_v45 = vrot.slane %v1644_v63, 4  ;;  %v1662_v6 = vrot.slane %v1660_v42, 7 }
  0xe7   :  { %8638 = vmatprep.subr.bf16.mxu1 %v9317_v11  ;;  %v7723_v33 = vcombine.high %v1612_v34, %v1630_v4  ;;  %v7722_v61 = vcombine.low %v1612_v34, %v1630_v4  ;;  %v10780_v11 = vld [vmem:[#allocation2 + $0x98] sm:$0xff]  ;;  %v1639_v17 = vsel %vm10620_vm13, %v1631_v55, %v1638_v19  ;;  %v1653_v37 = vrot.slane %v1651_v0, 7 }
  0xe8   :  { %v10789_v16 = vcombine.low %v10778_v15, %v10780_v11  ;;  %v7725_v40 = vcombine.high %v1621_v52, %v1639_v17  ;;  %v7724_v14 = vcombine.low %v1621_v52, %v1639_v17  ;;  %v9331_v52 = vld [vmem:[%s11711_s1 + $0x5a0] sm:$0xff]   ;;  %v7548_v19 = vcombine.high %v10778_v15, %v10780_v11 }
  0xe9   :  { %6614 = vmatmul.mubr.bf16.gmra.mrb[84].mxu1 %v7688_v43  ;;  %8595 = vmatpush3.bf16.msra.mxu0 %v9322_v62  ;;  %v1663_v43 = vshll.u32 %v10774_v49, 16  ;;  %v1656_v55 = vor.u32 %v1654_v23, %v1653_v37  ;;  %v1681_v17 = vshll.u32 %v7547_v48, 16 }
  0xea   :  { %8639 = vmatpush3.bf16.msra.mxu1 %v9319_v27  ;;  %6549 = vmatprep.mubr.bf16.mxu0 %v7723_v33  ;;  %v1669_v18 = vshrl.u32 %v10789_v16, 16  ;;  %v1672_v34 = vshll.u32 %v10789_v16, 16  ;;  %v1647_v27 = vor.u32 %v1645_v5, %v1644_v63  ;;  %v1676_v33 = vrot.slane %v1662_v6, 4 }
  0xeb   :  { %8640 = vmatprep.subr.bf16.mxu1 %v9321_v56  ;;  %8596 = vmatprep.subr.bf16.mxu0 %v9328_v50  ;;  %v1667_v56 = vrot.slane %v1653_v37, 4  ;;  %v1665_v4 = vor.u32 %v1663_v43, %v1662_v6  ;;  %v1678_v5 = vshrl.u32 %v7547_v48, 16  ;;  %v9333_v50 = vld [vmem:[%s11711_s1 + $0x5e8] sm:$0xff]   ;;  %v9340_v6 = vld [vmem:[%s11711_s1 + $0x530] sm:$0xff]  }
  0xec   :  { %6550 = vmatmul.mubr.bf16.gmra.mrb[88].mxu0 %v7722_v61  ;;  %6621 = vmatprep.mubr.bf16.mxu1 %v7725_v40  ;;  %v1671_v58 = vrot.slane %v1669_v18, 7  ;;  %v1648_v62 = vsel %vm10620_vm13, %v1640_v28, %v1647_v27  ;;  %v1657_v61 = vsel %vm10620_vm13, %v1649_v38, %v1656_v55  ;;  %v9334_v40 = vld [vmem:[%s11711_s1 + $0x528] sm:$0xff]   ;;  %v1687_v18 = vshrl.u32 %v7548_v19, 16  ;;  %v9339_v27 = vld [vmem:[%s11711_s1 + $0x5f0] sm:$0xff]  }
  0xed   :  { %8597 = vmatpush3.bf16.msra.mxu0 %v9330_v39  ;;  %v1666_v28 = vsel %vm10620_vm13, %v1658_v45, %v1665_v4  ;;  %v9335_v43 = vld [vmem:[%s11711_s1 + $0x5a8] sm:$0xff]   ;;  %v1690_v39 = vshll.u32 %v7548_v19, 16  ;;  %v9342_v4 = vld [vmem:[%s11711_s1 + $0x578] sm:$0xff]  }
  0xee   :  { %8641 = vmatpush3.bf16.msra.mxu1 %v9323_v12  ;;  %v1674_v12 = vor.u32 %v1672_v34, %v1671_v58  ;;  %v7759_v0 = vcombine.high %v1648_v62, %v1666_v28  ;;  %v7758_v38 = vcombine.low %v1648_v62, %v1666_v28  ;;  %8598 = vmatprep.subr.bf16.mxu0 %v9332_v47  ;;  %v1685_v37 = vrot.slane %v1671_v58, 4  ;;  %v9338_v34 = vld [vmem:[%s11711_s1 + $0x570] sm:$0xff]   ;;  %v9344_v28 = vld [vmem:[%s11711_s1 + $0x538] sm:$0xff]  }
  0xef   :  { %8642 = vmatprep.subr.bf16.mxu1 %v9329_v36  ;;  %v1689_v45 = vrot.slane %v1687_v18, 7  ;;  %v9341_v58 = vld [vmem:[%s11711_s1 + $0x5b0] sm:$0xff]   ;;  %v9348_v18 = vld [vmem:[%s11711_s1 + $0x640] sm:$0xff]  }
  0xf0   :  { %v1675_v23 = vsel %vm10620_vm13, %v1667_v56, %v1674_v12  ;;  %6557 = vmatprep.mubr.bf16.mxu0 %v7759_v0  ;;  %v1730_v0 = vld [vmem:[#allocation2] sm:$0xf0] }
  0xf1   :  { %6622 = vmatmul.mubr.bf16.gmra.mrb[88].mxu1 %v7724_v14  ;;  %v1680_v14 = vrot.slane %v1678_v5, 7  ;;  %v7761_v63 = vcombine.high %v1657_v61, %v1675_v23  ;;  %v7760_v42 = vcombine.low %v1657_v61, %v1675_v23  ;;  %8599 = vmatpush3.bf16.msra.mxu0 %v9334_v40  ;;  %v1692_v56 = vor.u32 %v1690_v39, %v1689_v45  ;;  %v9343_v61 = vld [vmem:[%s11711_s1 + $0x5f8] sm:$0xff]   ;;  %v1731_v23 = vld [vmem:[#allocation2 + $0x8] sm:$0xf0]  ;;  %v9349_v39 = vld [vmem:[%s11711_s1 + $0x6c0] sm:$0xff]  }
  0xf2   :  { %8643 = vmatpush3.bf16.msra.mxu1 %v9331_v52  ;;  %8600 = vmatprep.subr.bf16.mxu0 %v9338_v34 }
  0xf3   :  { %8644 = vmatprep.subr.bf16.mxu1 %v9333_v50  ;;  %v1683_v36 = vor.u32 %v1681_v17, %v1680_v14  ;;  %6629 = vmatprep.mubr.bf16.mxu1 %v7761_v63  ;;  %v8105_v14 = vcombine.high %v1731_v23, %v10594_v41  ;;  %v1732_v63 = vld [vmem:[#allocation2 + $0x10] sm:$0xf0] }
  0xf4   :  { %6558 = vmatmul.mubr.bf16.gmra.mrb[92].mxu0 %v7758_v38 }
  0xf5   :  { %v1684_v48 = vsel %vm10620_vm13, %v1676_v33, %v1683_v36  ;;  %8601 = vmatpush3.bf16.msra.mxu0 %v9340_v6  ;;  %v1693_v33 = vsel %vm10620_vm13, %v1685_v37, %v1692_v56  ;;  %v9350_v56 = vld [vmem:[%s11711_s1 + $0x600] sm:$0xff]  }
  0xf6   :  { %8645 = vmatpush3.bf16.msra.mxu1 %v9335_v43  ;;  %v7795_v55 = vcombine.high %v1684_v48, %v1684_v48  ;;  %v7794_v19 = vcombine.low %v1684_v48, %v1684_v48  ;;  %v7797_v47 = vcombine.high %v1693_v33, %v1693_v33  ;;  %v7796_v5 = vcombine.low %v1693_v33, %v1693_v33 }
  0xf7   :  { %8646 = vmatprep.subr.bf16.mxu1 %v9339_v27  ;;  %8602 = vmatprep.subr.bf16.mxu0 %v9342_v4  ;;  %v7551_v43 = vcombine.high %v1730_v0, %v1731_v23  ;;  %v8109_v33 = vcombine.high %v10590_v35, %v10631_v8  ;;  %v9353_v35 = vld [vmem:[%s11711_s1 + $0x6c8] sm:$0xff]   ;;  %v9356_v23 = vld [vmem:[%s11711_s1 + $0x650] sm:$0xff]  }
  0xf8   :  { %6565 = vmatprep.mubr.bf16.mxu0 %v7795_v55 }
  0xf9   :  { %6630 = vmatmul.mubr.bf16.gmra.mrb[92].mxu1 %v7760_v42  ;;  %v1733_v42 = vld [vmem:[#allocation2 + $0x18] sm:$0xf0]  ;;  %8603 = vmatpush3.bf16.msra.mxu0 %v9344_v28  ;;  %v8104_v55 = vcombine.low %v7551_v43, %v10588_v9 }
  0xfa   :  { %8647 = vmatpush3.bf16.msra.mxu1 %v9341_v58  ;;  %6637 = vmatprep.mubr.bf16.mxu1 %v7797_v47  ;;  %v8107_v37 = vcombine.high %v1733_v42, %v10608_v29  ;;  %v7552_v36 = vcombine.high %v1732_v63, %v1733_v42  ;;  %v10869_v29 = vld [vmem:[%s11713_s2] ss:$0 sm:$0xff]  ;;  %v9352_v47 = vld [vmem:[%s11711_s1 + $0x648] sm:$0xff]   ;;  %v9357_v63 = vld [vmem:[%s11711_s1 + $0x6d0] sm:$0xff]  }
  0xfb   :  { %8648 = vmatprep.subr.bf16.mxu1 %v9343_v61  ;;  %8680 = vmatprep.subr.bf16.mxu0 %v9348_v18  ;;  %v8111_v61 = vcombine.high %v10598_v10, %v10668_v32  ;;  %v9354_v10 = vld [vmem:[%s11711_s1 + $0x608] sm:$0xff]   ;;  %v9358_v18 = vld [vmem:[%s11711_s1 + $0x610] sm:$0xff]  }
  0xfc   :  { %6566 = vmatmul.mubr.bf16.gmra.mrb[96].mxu0 %v7794_v19  ;;  %v9351_v19 = vld [vmem:[%s11711_s1 + $0x680] sm:$0xff]  }
  0xfd   :  { %6677 = vmatprep.mubr.bf16.mxu0 %v8105_v14 }
  0xfe   :  { %8649 = vmatpush3.bf16.msra.mxu1 %v9345_v31  ;;  %v9355_v31 = vld [vmem:[%s11711_s1 + $0x688] sm:$0xff]  }
  0xff   :  { %v8144_v62 = vpop.f32.mrb[0].mxu0  ;;  %8726 = vmatprep.subr.bf16.mxu1 %v9349_v39  ;;  %v8110_v39 = vcombine.low %v10614_v46, %v10633_v51 }
 0x100   :  { %v8190_v52 = vpop.f32.mrb[0].mxu1  ;;  %v8145_v12 = vpop.f32.mrb[1].mxu0 }
 0x101   :  { %v8146_v50 = vadd.f32 %v8145_v12, %v8144_v62  ;;  %v8191_v17 = vpop.f32.mrb[1].mxu1  ;;  %v8147_v40 = vpop.f32.mrb[2].mxu0  ;;  %6638 = vmatmul.mubr.bf16.gmra.mrb[96].mxu1 %v7796_v5 }
 0x102   :  { %v8192_v38 = vadd.f32 %v8191_v17, %v8190_v52  ;;  %v8193_v34 = vpop.f32.mrb[2].mxu1  ;;  %v8148_v27 = vpop.f32.mrb[3].mxu0  ;;  %6749 = vmatprep.mubr.bf16.mxu1 %v8107_v37  ;;  %v8106_v52 = vcombine.low %v7552_v36, %v10596_v44  ;;  %v8108_v37 = vcombine.low %v10602_v25, %v10610_v59  ;;  %v8115_v25 = vcombine.high %v10635_v26, %v10714_v30  ;;  %v9360_v59 = vld [vmem:[%s11711_s1 + $0x658] sm:$0xff]  }
 0x103   :  { %v8149_v41 = vadd.f32 %v8148_v27, %v8147_v40  ;;  %v8194_v45 = vpop.f32.mrb[3].mxu1  ;;  %v5960_v58 = vadd.f32 %v8146_v50, %v10869_v29  ;;  %v8113_v27 = vcombine.high %v10616_v2, %v10709_v20  ;;  %v9361_v2 = vld [vmem:[%s11711_s1 + $0x6d8] sm:$0xff]  }
 0x104   :  { %v8195_v6 = vadd.f32 %v8194_v45, %v8193_v34  ;;  %6678 = vmatmul.mubr.bf16.vlgmr.msra.gmra.mrb[100].mxu0 %v8104_v55  ;;  %v9362_v26 = vld [vmem:[%s11711_s1 + $0x618] sm:$0xff]  }
 0x105   :  { %v5963_v62 = vadd.f32 %v8149_v41, %v10869_v29  ;;  %v10885_v12 = vadd.f32 %v8192_v38, %v5960_v58  ;;  %6685 = vmatprep.mubr.bf16.mxu0 %v8109_v33  ;;  %8681 = vmatpush3.bf16.msra.mxu0 %v9350_v56  ;;  %v9359_v41 = vld [vmem:[%s11711_s1 + $0x690] sm:$0xff]   ;;  %v9363_v56 = vld [vmem:[%s11711_s1 + $0x698] sm:$0xff]  }
 0x106   :  { %8682 = vmatprep.subr.bf16.mxu0 %v9352_v47  ;;  %v9366_v47 = vld [vmem:[%s11711_s1 + $0x620] sm:$0xff]  }
 0x107   :  { %v10890_v5 = vadd.f32 %v8195_v6, %v5963_v62  ;;  %v9364_v62 = vld [vmem:[%s11711_s1 + $0x660] sm:$0xff]  }
 0x109   :  { %v8150_v48 = vpop.f32.mrb[4].mxu0  ;;  %6750 = vmatmul.mubr.bf16.vlgmr.msra.gmra.mrb[100].mxu1 %v8106_v52  ;;  %8683 = vmatpush3.bf16.msra.mxu0 %v9354_v10  ;;  %v8116_v10 = vcombine.low %v10751_v57, %v10767_v21  ;;  %v8127_v57 = vcombine.high %v10780_v11, %v10780_v11 }
 0x10a   :  { %v8151_v9 = vpop.f32.mrb[5].mxu0  ;;  %6757 = vmatprep.mubr.bf16.mxu1 %v8111_v61  ;;  %8727 = vmatpush3.bf16.msra.mxu1 %v9351_v19  ;;  %v9365_v19 = vld [vmem:[%s11711_s1 + $0x6e0] sm:$0xff]   ;;  %v8112_v61 = vcombine.low %v10686_v1, %v10693_v22  ;;  %v8119_v1 = vcombine.high %v10705_v24, %v10789_v16  ;;  %v9368_v22 = vld [vmem:[%s11711_s1 + $0x668] sm:$0xff]   ;;  %v9376_v24 = vld [vmem:[%s11711_s1 + $0x670] sm:$0xff]  }
 0x10b   :  { %v8152_v44 = vadd.f32 %v8151_v9, %v8150_v48  ;;  %v8153_v50 = vpop.f32.mrb[6].mxu0  ;;  %8728 = vmatprep.subr.bf16.mxu1 %v9353_v35  ;;  %8684 = vmatprep.subr.bf16.mxu0 %v9356_v23  ;;  %v8117_v35 = vcombine.high %v10700_v60, %v10774_v49  ;;  %v9370_v60 = vld [vmem:[%s11711_s1 + $0x628] sm:$0xff]   ;;  %v9377_v16 = vld [vmem:[%s11711_s1 + $0x6f0] sm:$0xff]  }
 0x10c   :  { %v8154_v0 = vpop.f32.mrb[7].mxu0  ;;  %6686 = vmatmul.mubr.bf16.gmra.mrb[104].mxu0 %v8108_v37 }
 0x10d   :  { %v8196_v4 = vpop.f32.mrb[4].mxu1  ;;  %v5968_v32 = vadd.f32 %v8152_v44, %v10869_v29  ;;  %v8155_v40 = vadd.f32 %v8154_v0, %v8153_v50  ;;  %6693 = vmatprep.mubr.bf16.mxu0 %v8113_v27  ;;  %8685 = vmatpush3.bf16.msra.mxu0 %v9358_v18  ;;  %v9379_v0 = vld [vmem:[%s11711_s1 + $0x6b0] sm:$0xff]   ;;  %v9384_v18 = vld [vmem:[#allocation2 + $0x4] ss:$8 sps:$4 sm:$0xcc]  }
 0x10e   :  { %v8197_v28 = vpop.f32.mrb[5].mxu1  ;;  %8729 = vmatpush3.bf16.msra.mxu1 %v9355_v31  ;;  %8686 = vmatprep.subr.bf16.mxu0 %v9360_v59  ;;  %v8125_v31 = vcombine.high %v10769_v7, %v10769_v7  ;;  %v9381_v7 = vld [vmem:[%s11711_s1 + $0x6f8] sm:$0xff]   ;;  %v11016_v27 = vld [vmem:[#allocation2 + $0x24] ss:$8 sps:$4 sm:$0xff]   ;;  %v8124_v59 = vcombine.high %v10767_v21, %v10767_v21 }
 0x10f   :  { %v8198_v8 = vadd.f32 %v8197_v28, %v8196_v4  ;;  %v8199_v17 = vpop.f32.mrb[6].mxu1  ;;  %v5971_v34 = vadd.f32 %v8155_v40, %v10869_v29  ;;  %8730 = vmatprep.subr.bf16.mxu1 %v9357_v63  ;;  %v8114_v28 = vcombine.low %v10698_v54, %v10703_v13  ;;  %v9369_v54 = vld [vmem:[%s11711_s1 + $0x6e8] sm:$0xff]  }
 0x110   :  { %v8200_v14 = vpop.f32.mrb[7].mxu1  ;;  %v9371_v13 = vld [vmem:[%s11711_s1 + $0x6a8] sm:$0xff]  }
 0x111   :  { %v10905_v38 = vadd.f32 %v8198_v8, %v5968_v32  ;;  %v8201_v42 = vadd.f32 %v8200_v14, %v8199_v17  ;;  %6758 = vmatmul.mubr.bf16.gmra.mrb[104].mxu1 %v8110_v39  ;;  %v9367_v8 = vld [vmem:[%s11711_s1 + $0x6a0] sm:$0xff]   ;;  %8687 = vmatpush3.bf16.msra.mxu0 %v9362_v26  ;;  %v9378_v32 = vld [vmem:[%s11711_s1 + $0x630] sm:$0xff]   ;;  %v8118_v17 = vcombine.low %v10758_v53, %v10778_v15  ;;  %v9380_v14 = vld [vmem:[%s11711_s1 + $0x678] sm:$0xff]  }
 0x112   :  { %v8156_v43 = vpop.f32.mrb[8].mxu0  ;;  %6765 = vmatprep.mubr.bf16.mxu1 %v8115_v25  ;;  %8731 = vmatpush3.bf16.msra.mxu1 %v9359_v41  ;;  %v8126_v26 = vcombine.high %v10778_v15, %v10778_v15 }
 0x113   :  { %v8157_v45 = vpop.f32.mrb[9].mxu0  ;;  %v10928_v6 = vadd.f32 %v8201_v42, %v5971_v34  ;;  %8732 = vmatprep.subr.bf16.mxu1 %v9361_v2  ;;  %8688 = vmatprep.subr.bf16.mxu0 %v9364_v62  ;;  %v9382_v42 = vld [vmem:[%s11711_s1 + $0x638] sm:$0xff]   ;;  %v11013_v34 = vld [vmem:[#allocation2 + $0x20] ss:$8 sps:$4 sm:$0xff]  }
 0x114   :  { %v8158_v48 = vadd.f32 %v8157_v45, %v8156_v43  ;;  %v8159_v20 = vpop.f32.mrb[10].mxu0  ;;  %6694 = vmatmul.mubr.bf16.gmra.mrb[108].mxu0 %v8112_v61  ;;  %v9383_v43 = vld [vmem:[%s11711_s1 + $0x6b8] sm:$0xff]   ;;  %v7589_v45 = vrot.slane %v9384_v18, 10  ;;  %v1973_v25 = vrot.slane %v11013_v34, 6 }
 0x115   :  { %v8202_v36 = vpop.f32.mrb[8].mxu1  ;;  %v8160_v58 = vpop.f32.mrb[11].mxu0  ;;  %6701 = vmatprep.mubr.bf16.mxu0 %v8117_v35  ;;  %8689 = vmatpush3.bf16.msra.mxu0 %v9366_v47  ;;  %v11029_v62 = vld [vmem:[#allocation2 + $0x34] ss:$8 sps:$4 sm:$0xff]   ;;  %v11039_v35 = vld [vmem:[#allocation2 + $0x44] ss:$8 sps:$4 sm:$0xff]  }
 0x116   :  { %v8203_v46 = vpop.f32.mrb[9].mxu1  ;;  %v5976_v30 = vadd.f32 %v8158_v48, %v10869_v29  ;;  %v8161_v52 = vadd.f32 %v8160_v58, %v8159_v20  ;;  %8733 = vmatpush3.bf16.msra.mxu1 %v9363_v56  ;;  %8690 = vmatprep.subr.bf16.mxu0 %v9368_v22  ;;  %v9388_v20 = vld [vmem:[#allocation2 + $0x14] ss:$8 sps:$4 sm:$0xcc]   ;;  %v1979_v56 = vrot.slane %v1973_v25, 4 }
 0x117   :  { %v8204_v51 = vadd.f32 %v8203_v46, %v8202_v36  ;;  %v8205_v55 = vpop.f32.mrb[10].mxu1  ;;  %8734 = vmatprep.subr.bf16.mxu1 %v9365_v19  ;;  %v11027_v58 = vld [vmem:[#allocation2 + $0x30] ss:$8 sps:$4 sm:$0xff]  }
 0x118   :  { %v8206_v33 = vpop.f32.mrb[11].mxu1  ;;  %v5979_v44 = vadd.f32 %v8161_v52, %v10869_v29  ;;  %v1977_v47 = vrot.slane %v11027_v58, 6 }
 0x119   :  { %v10943_v4 = vadd.f32 %v8204_v51, %v5976_v30  ;;  %v8207_v9 = vadd.f32 %v8206_v33, %v8205_v55  ;;  %6766 = vmatmul.mubr.bf16.gmra.mrb[108].mxu1 %v8114_v28  ;;  %8691 = vmatpush3.bf16.msra.mxu0 %v9370_v60  ;;  %v1980_v51 = vrot.slane %v11016_v27, 6  ;;  %v1974_v55 = vsel %vm10980_vm15, %v7589_v45, %v1973_v25  ;;  %v11043_v60 = vld [vmem:[#allocation2 + $0x50] ss:$8 sps:$4 sm:$0xff]  }
 0x11a   :  { %6773 = vmatprep.mubr.bf16.mxu1 %v8119_v1  ;;  %8735 = vmatpush3.bf16.msra.mxu1 %v9367_v8  ;;  %v7590_v33 = vrot.slane %v9388_v20, 10 }
 0x11b   :  { %v10966_v50 = vadd.f32 %v8207_v9, %v5979_v44  ;;  %8736 = vmatprep.subr.bf16.mxu1 %v9369_v54  ;;  %8692 = vmatprep.subr.bf16.mxu0 %v9376_v24  ;;  %v11033_v9 = vld [vmem:[#allocation2 + $0x40] ss:$8 sps:$4 sm:$0xff]   ;;  %v1985_v61 = vrot.slane %v1980_v51, 4  ;;  %v1981_v15 = vsel %vm10980_vm15, %v1979_v56, %v1980_v51  ;;  %v1983_v44 = vrot.slane %v11029_v62, 6 }
 0x11c   :  { %6702 = vmatmul.mubr.bf16.gmra.mrb[112].mxu0 %v8116_v10  ;;  %v7659_v1 = vcombine.high %v1974_v55, %v1981_v15  ;;  %v1978_v24 = vsel %vm10980_vm15, %v7590_v33, %v1977_v47 }
 0x11d   :  { %6709 = vmatprep.mubr.bf16.mxu0 %v8125_v31  ;;  %8693 = vmatpush3.bf16.msra.mxu0 %v9378_v32  ;;  %v1986_v32 = vrot.slane %v11033_v9, 6 }
 0x11e   :  { %8737 = vmatpush3.bf16.msra.mxu1 %v9371_v13  ;;  %8694 = vmatprep.subr.bf16.mxu0 %v9380_v14  ;;  %v11045_v13 = vld [vmem:[#allocation2 + $0x54] ss:$8 sps:$4 sm:$0xff]  }
 0x11f   :  { %8738 = vmatprep.subr.bf16.mxu1 %v9377_v16  ;;  %v1982_v16 = vrot.slane %v1977_v47, 4 }
 0x121   :  { %6774 = vmatmul.mubr.bf16.gmra.mrb[112].mxu1 %v8118_v17  ;;  %8695 = vmatpush3.bf16.msra.mxu0 %v9382_v42  ;;  %v1992_v17 = vrot.slane %v11039_v35, 6  ;;  %v1984_v14 = vsel %vm10980_vm15, %v1982_v16, %v1983_v44  ;;  %v9398_v42 = vld [vmem:[%s11711_s1 + $0x740] sm:$0xff]  }
 0x122   :  { %6781 = vmatprep.mubr.bf16.mxu1 %v8127_v57  ;;  %8739 = vmatpush3.bf16.msra.mxu1 %v9379_v0  ;;  %v1989_v57 = vrot.slane %v11043_v60, 6 }
 0x123   :  { %8740 = vmatprep.subr.bf16.mxu1 %v9381_v7  ;;  %v11058_v7 = vsel %vm10980_vm15, %v1985_v61, %v1986_v32  ;;  %8772 = vmatprep.subr.bf16.mxu0 %v9398_v42 }
 0x124   :  { %6710 = vmatmul.mubr.bf16.gmra.mrb[116].mxu0 %v8124_v59  ;;  %v1994_v59 = vrot.slane %v1989_v57, 4 }
 0x125   :  { %6821 = vmatprep.mubr.bf16.mxu0 %v7659_v1  ;;  %v1997_v1 = vrot.slane %v1992_v17, 4 }
 0x126   :  { %8741 = vmatpush3.bf16.msra.mxu1 %v9383_v43  ;;  %v7661_v43 = vcombine.high %v1978_v24, %v1984_v14 }
 0x127   :  { %v8162_v23 = vpop.f32.mrb[12].mxu0 }
 0x128   :  { %v8163_v40 = vpop.f32.mrb[13].mxu0 }
 0x129   :  { %v8164_v53 = vadd.f32 %v8163_v40, %v8162_v23  ;;  %v8165_v63 = vpop.f32.mrb[14].mxu0  ;;  %6782 = vmatmul.mubr.bf16.gmra.mrb[116].mxu1 %v8126_v26  ;;  %v1988_v23 = vrot.slane %v1983_v44, 4  ;;  %v1995_v40 = vrot.slane %v11045_v13, 6  ;;  %v9405_v44 = vld [vmem:[%s11711_s1 + $0x788] sm:$0xff]  }
 0x12a   :  { %v8166_v11 = vpop.f32.mrb[15].mxu0  ;;  %6893 = vmatprep.mubr.bf16.mxu1 %v7661_v43 }
 0x12b   :  { %v8167_v37 = vadd.f32 %v8166_v11, %v8165_v63  ;;  %v5984_v39 = vadd.f32 %v8164_v53, %v10869_v29  ;;  %v1991_v63 = vrot.slane %v1986_v32, 4  ;;  %v7658_v11 = vcombine.low %v1974_v55, %v1981_v15 }
 0x12c   :  { %v8208_v36 = vpop.f32.mrb[12].mxu1  ;;  %v1990_v25 = vsel %vm10980_vm15, %v1988_v23, %v1989_v57  ;;  %v1996_v20 = vsel %vm10980_vm15, %v1994_v59, %v1995_v40 }
 0x12d   :  { %v8209_v41 = vpop.f32.mrb[13].mxu1  ;;  %v5987_v2 = vadd.f32 %v8167_v37, %v10869_v29  ;;  %v1993_v45 = vsel %vm10980_vm15, %v1991_v63, %v1992_v17  ;;  %6822 = vmatmul.mubr.bf16.vlgmr.msra.gmra.mrb[120].mxu0 %v7658_v11  ;;  %v7697_v55 = vcombine.high %v1990_v25, %v1996_v20  ;;  %v7696_v23 = vcombine.low %v1990_v25, %v1996_v20 }
 0x12e   :  { %v8210_v48 = vadd.f32 %v8209_v41, %v8208_v36  ;;  %v8211_v46 = vpop.f32.mrb[14].mxu1  ;;  %v9400_v36 = vld [vmem:[%s11711_s1 + $0x700] sm:$0xff]   ;;  %v7694_v16 = vcombine.low %v11058_v7, %v1993_v45 }
 0x12f   :  { %v8212_v30 = vpop.f32.mrb[15].mxu1  ;;  %v8168_v19 = vpop.f32.mrb[16].mxu0  ;;  %8773 = vmatpush3.bf16.msra.mxu0 %v9400_v36 }
 0x130   :  { %v11031_v21 = vadd.f32 %v8210_v48, %v5984_v39  ;;  %v8213_v52 = vadd.f32 %v8212_v30, %v8211_v46  ;;  %v8169_v28 = vpop.f32.mrb[17].mxu0  ;;  %v7660_v39 = vcombine.low %v1978_v24, %v1984_v14  ;;  %v7695_v46 = vcombine.high %v11058_v7, %v1993_v45  ;;  %v9402_v30 = vld [vmem:[%s11711_s1 + $0x748] sm:$0xff]   ;;  %v9412_v7 = vld [vmem:[%s11711_s1 + $0x750] sm:$0xff]  }
 0x131   :  { %v8170_v22 = vadd.f32 %v8169_v28, %v8168_v19  ;;  %v8171_v54 = vpop.f32.mrb[18].mxu0  ;;  %v9404_v19 = vld [vmem:[%s11711_s1 + $0x708] sm:$0xff]   ;;  %8774 = vmatprep.subr.bf16.mxu0 %v9402_v30  ;;  %v9415_v45 = vld [vmem:[%s11711_s1 + $0x790] sm:$0xff]  }
 0x132   :  { %v11041_v8 = vadd.f32 %v8213_v52, %v5987_v2  ;;  %v8172_v10 = vpop.f32.mrb[19].mxu0  ;;  %v9401_v2 = vld [vmem:[%s11711_s1 + $0x780] sm:$0xff]   ;;  %v9403_v52 = vld [vmem:[%s11711_s1 + $0x7c8] sm:$0xff]   ;;  %6894 = vmatmul.mubr.bf16.vlgmr.msra.gmra.mrb[120].mxu1 %v7660_v39  ;;  %6829 = vmatprep.mubr.bf16.mxu0 %v7695_v46  ;;  %v9414_v39 = vld [vmem:[%s11711_s1 + $0x710] sm:$0xff]  }
 0x133   :  { %v5992_v0 = vadd.f32 %v8170_v22, %v10869_v29  ;;  %v9399_v29 = vld [vmem:[%s11711_s1 + $0x7c0] sm:$0xff]   ;;  %6901 = vmatprep.mubr.bf16.mxu1 %v7697_v55  ;;  %8775 = vmatpush3.bf16.msra.mxu0 %v9404_v19  ;;  %v9416_v55 = vld [vmem:[%s11711_s1 + $0x758] sm:$0xff]  }
 0x134   :  { %v8214_v31 = vpop.f32.mrb[16].mxu1  ;;  %8818 = vmatprep.subr.bf16.mxu1 %v9399_v29  ;;  %v11094_v54 = vld [vmem:[#allocation2 + $0x60] ss:$8 sps:$4 sm:$0xff]   ;;  %v11096_v24 = vld [vmem:[#allocation2 + $0x64] ss:$8 sps:$4 sm:$0xff]   ;;  %8776 = vmatprep.subr.bf16.mxu0 %v9412_v7 }
 0x135   :  { %v8215_v53 = vpop.f32.mrb[17].mxu1  ;;  %8819 = vmatpush3.bf16.msra.mxu1 %v9401_v2  ;;  %v1998_v17 = vrot.slane %v11094_v54, 6  ;;  %v2004_v14 = vrot.slane %v11096_v24, 6  ;;  %6830 = vmatmul.mubr.bf16.gmra.mrb[124].mxu0 %v7694_v16 }
 0x136   :  { %v8216_v37 = vadd.f32 %v8215_v53, %v8214_v31  ;;  %v8217_v18 = vpop.f32.mrb[18].mxu1  ;;  %8820 = vmatprep.subr.bf16.mxu1 %v9403_v52  ;;  %v11100_v31 = vld [vmem:[#allocation2 + $0x70] ss:$8 sps:$4 sm:$0xff]   ;;  %v11104_v53 = vld [vmem:[#allocation2 + $0x74] ss:$8 sps:$4 sm:$0xff]  }
 0x137   :  { %v8218_v41 = vpop.f32.mrb[19].mxu1  ;;  %v8236_v51 = vpop.f32.mrb[20].mxu0  ;;  %v1999_v29 = vsel %vm10980_vm15, %v1997_v1, %v1998_v17  ;;  %v2003_v11 = vrot.slane %v1998_v17, 4  ;;  %v2007_v43 = vrot.slane %v11104_v53, 6  ;;  %8777 = vmatpush3.bf16.msra.mxu0 %v9414_v39  ;;  %v2009_v16 = vrot.slane %v2004_v14, 4  ;;  %v9428_v39 = vld [vmem:[%s11711_s1 + $0x720] sm:$0xff]  }
 0x138   :  { %v11073_v48 = vadd.f32 %v8216_v37, %v5992_v0  ;;  %v8237_v26 = vpop.f32.mrb[21].mxu0  ;;  %v2000_v0 = vrot.slane %v1995_v40, 4  ;;  %v9413_v40 = vld [vmem:[%s11711_s1 + $0x7d0] sm:$0xff]   ;;  %8778 = vmatprep.subr.bf16.mxu0 %v9416_v55 }
 0x139   :  { %v8238_v56 = vadd.f32 %v8237_v26, %v8236_v51  ;;  %v8239_v33 = vpop.f32.mrb[22].mxu0  ;;  %8821 = vmatpush3.bf16.msra.mxu1 %v9405_v44  ;;  %v2005_v41 = vsel %vm10980_vm15, %v2003_v11, %v2004_v14  ;;  %v11153_v17 = vld [vmem:[#allocation2 + $0x94] ss:$8 sps:$4 sm:$0xff]   ;;  %v9426_v11 = vld [vmem:[%s11711_s1 + $0x760] sm:$0xff]  }
 0x13a   :  { %v8240_v61 = vpop.f32.mrb[23].mxu0  ;;  %8822 = vmatprep.subr.bf16.mxu1 %v9413_v40  ;;  %6902 = vmatmul.mubr.bf16.gmra.mrb[124].mxu1 %v7696_v23  ;;  %v7731_v59 = vcombine.high %v1999_v29, %v2005_v41  ;;  %v11149_v23 = vld [vmem:[#allocation2 + $0x84] ss:$8 sps:$4 sm:$0xff]  }
 0x13b   :  { %v6104_v47 = vadd.f32 %v8238_v56, %v10885_v12  ;;  %v8241_v28 = vadd.f32 %v8240_v61, %v8239_v33  ;;  %v7730_v56 = vcombine.low %v1999_v29, %v2005_v41  ;;  %v9417_v33 = vld [vmem:[%s11711_s1 + $0x7d8] sm:$0xff]   ;;  %v2019_v29 = vrot.slane %v11153_v17, 6 }
 0x13c   :  { %v8282_v15 = vpop.f32.mrb[20].mxu1  ;;  %6837 = vmatprep.mubr.bf16.mxu0 %v7731_v59 }
 0x13d   :  { %v8283_v22 = vpop.f32.mrb[21].mxu1  ;;  %v6107_v12 = vadd.f32 %v8241_v28, %v10890_v5  ;;  %v2001_v5 = vrot.slane %v11100_v31, 6  ;;  %8823 = vmatpush3.bf16.msra.mxu1 %v9415_v45  ;;  %v9419_v28 = vld [vmem:[%s11711_s1 + $0x798] sm:$0xff]   ;;  %6838 = vmatmul.mubr.bf16.gmra.mrb[128].mxu0 %v7730_v56  ;;  %v9430_v56 = vld [vmem:[%s11711_s1 + $0x768] sm:$0xff]  }
 0x13e   :  { %v8284_v10 = vadd.f32 %v8283_v22, %v8282_v15  ;;  %v8285_v32 = vpop.f32.mrb[22].mxu1  ;;  %v9418_v15 = vld [vmem:[%s11711_s1 + $0x718] sm:$0xff]   ;;  %8824 = vmatprep.subr.bf16.mxu1 %v9417_v33 }
 0x13f   :  { %v8286_v57 = vpop.f32.mrb[23].mxu1  ;;  %v2002_v18 = vsel %vm10980_vm15, %v2000_v0, %v2001_v5  ;;  %v2006_v36 = vrot.slane %v2001_v5, 4  ;;  %v8242_v25 = vpop.f32.mrb[24].mxu0  ;;  %8779 = vmatpush3.bf16.msra.mxu0 %v9418_v15  ;;  %v11147_v0 = vld [vmem:[#allocation2 + $0x80] ss:$8 sps:$4 sm:$0xff]   ;;  %v2016_v5 = vrot.slane %v11149_v23, 6 }
 0x140   :  { %v11109_v63 = vadd.f32 %v8284_v10, %v6104_v47  ;;  %v8287_v42 = vadd.f32 %v8286_v57, %v8285_v32  ;;  %v8243_v51 = vpop.f32.mrb[25].mxu0  ;;  %v2012_v57 = vrot.slane %v2007_v43, 4  ;;  %v2010_v14 = vrot.slane %v11147_v0, 6  ;;  %8780 = vmatprep.subr.bf16.mxu0 %v9426_v11  ;;  %v9436_v11 = vld [vmem:[%s11711_s1 + $0x770] sm:$0xff]  }
 0x141   :  { %v2008_v46 = vsel %vm10980_vm15, %v2006_v36, %v2007_v43  ;;  %v8244_v26 = vadd.f32 %v8243_v51, %v8242_v25  ;;  %v8245_v19 = vpop.f32.mrb[26].mxu0  ;;  %8825 = vmatpush3.bf16.msra.mxu1 %v9419_v28  ;;  %v9427_v43 = vld [vmem:[%s11711_s1 + $0x7e0] sm:$0xff]  }
 0x142   :  { %v11118_v37 = vadd.f32 %v8287_v42, %v6107_v12  ;;  %v7733_v20 = vcombine.high %v2002_v18, %v2008_v46  ;;  %v7732_v47 = vcombine.low %v2002_v18, %v2008_v46  ;;  %v8246_v1 = vpop.f32.mrb[27].mxu0  ;;  %v2015_v36 = vrot.slane %v2010_v14, 4  ;;  %8826 = vmatprep.subr.bf16.mxu1 %v9427_v43  ;;  %v9429_v25 = vld [vmem:[%s11711_s1 + $0x7a0] sm:$0xff]  }
 0x143   :  { %v6112_v44 = vadd.f32 %v8244_v26, %v10905_v38  ;;  %v8247_v32 = vadd.f32 %v8246_v1, %v8245_v19  ;;  %v11151_v38 = vld [vmem:[#allocation2 + $0x90] ss:$8 sps:$4 sm:$0xff]   ;;  %8781 = vmatpush3.bf16.msra.mxu0 %v9428_v39  ;;  %v9433_v1 = vld [vmem:[%s11711_s1 + $0x7a8] sm:$0xff]  }
 0x144   :  { %v8288_v2 = vpop.f32.mrb[24].mxu1  ;;  %6909 = vmatprep.mubr.bf16.mxu1 %v7733_v20  ;;  %v2013_v40 = vrot.slane %v11151_v38, 6  ;;  %v2017_v59 = vsel %vm10980_vm15, %v2015_v36, %v2016_v5  ;;  %8782 = vmatprep.subr.bf16.mxu0 %v9430_v56  ;;  %v9441_v56 = vld [vmem:[%s11711_s1 + $0x7f8] sm:$0xff]  }
 0x145   :  { %v8289_v30 = vpop.f32.mrb[25].mxu1  ;;  %6910 = vmatmul.mubr.bf16.gmra.mrb[128].mxu1 %v7732_v47  ;;  %v6115_v42 = vadd.f32 %v8247_v32, %v10928_v6  ;;  %v2011_v6 = vsel %vm10980_vm15, %v2009_v16, %v2010_v14  ;;  %v2021_v32 = vrot.slane %v2016_v5, 4  ;;  %v9437_v5 = vld [vmem:[%s11711_s1 + $0x7f0] sm:$0xff]  }
 0x146   :  { %v8290_v52 = vadd.f32 %v8289_v30, %v8288_v2  ;;  %v8291_v61 = vpop.f32.mrb[26].mxu1  ;;  %v2014_v41 = vsel %vm10980_vm15, %v2012_v57, %v2013_v40  ;;  %v2018_v45 = vrot.slane %v2013_v40, 4  ;;  %v7767_v51 = vcombine.high %v2011_v6, %v2017_v59  ;;  %8827 = vmatpush3.bf16.msra.mxu1 %v9429_v25  ;;  %v9435_v40 = vld [vmem:[#allocation2 + $0xb0] ss:$8 sps:$4 sm:$0x33]  }
 0x147   :  { %v8292_v22 = vpop.f32.mrb[27].mxu1  ;;  %v8248_v7 = vpop.f32.mrb[28].mxu0  ;;  %v7766_v26 = vcombine.low %v2011_v6, %v2017_v59  ;;  %v2025_v36 = vrot.slane %v9435_v40, 6  ;;  %v9439_v25 = vld [vmem:[%s11711_s1 + $0x7b0] sm:$0xff]  }
 0x148   :  { %v11145_v10 = vadd.f32 %v8290_v52, %v6112_v44  ;;  %v8293_v12 = vadd.f32 %v8292_v22, %v8291_v61  ;;  %v8249_v2 = vpop.f32.mrb[29].mxu0  ;;  %v2020_v20 = vsel %vm10980_vm15, %v2018_v45, %v2019_v29  ;;  %v9431_v61 = vld [vmem:[%s11711_s1 + $0x7e8] sm:$0xff]   ;;  %6845 = vmatprep.mubr.bf16.mxu0 %v7767_v51 }
 0x149   :  { %v8250_v30 = vadd.f32 %v8249_v2, %v8248_v7  ;;  %v7769_v52 = vcombine.high %v2014_v41, %v2020_v20  ;;  %v7768_v33 = vcombine.low %v2014_v41, %v2020_v20  ;;  %v8251_v15 = vpop.f32.mrb[30].mxu0  ;;  %v9432_v44 = vld [vmem:[%s11711_s1 + $0x728] sm:$0xff]   ;;  %6846 = vmatmul.mubr.bf16.gmra.mrb[132].mxu0 %v7766_v26  ;;  %8828 = vmatprep.subr.bf16.mxu1 %v9431_v61  ;;  %v9440_v2 = vld [vmem:[%s11711_s1 + $0x778] sm:$0xff]  }
 0x14a   :  { %v11166_v18 = vadd.f32 %v8293_v12, %v6115_v42  ;;  %v8252_v22 = vpop.f32.mrb[31].mxu0  ;;  %8783 = vmatpush3.bf16.msra.mxu0 %v9432_v44  ;;  %8829 = vmatpush3.bf16.msra.mxu1 %v9433_v1  ;;  %v9434_v42 = vld [vmem:[#allocation2 + $0xa0] ss:$8 sps:$4 sm:$0x33]  }
 0x14b   :  { %v6120_v28 = vadd.f32 %v8250_v30, %v10943_v4  ;;  %6917 = vmatprep.mubr.bf16.mxu1 %v7769_v52  ;;  %v8253_v57 = vadd.f32 %v8252_v22, %v8251_v15  ;;  %v2024_v4 = vrot.slane %v2019_v29, 4  ;;  %v2022_v43 = vrot.slane %v9434_v42, 6  ;;  %8784 = vmatprep.subr.bf16.mxu0 %v9436_v11  ;;  %v9438_v29 = vld [vmem:[%s11711_s1 + $0x730] sm:$0xff]   ;;  %v9443_v15 = vld [vmem:[%s11711_s1 + $0x7b8] sm:$0xff]  }
 0x14c   :  { %v8294_v46 = vpop.f32.mrb[28].mxu1  ;;  %8830 = vmatprep.subr.bf16.mxu1 %v9437_v5  ;;  %v2212_v42 = vshrl.u32 %v11016_v27, 16  ;;  %v2205_v5 = vshll.u32 %v11027_v58, 16 }
 0x14d   :  { %v8295_v55 = vpop.f32.mrb[29].mxu1  ;;  %6918 = vmatmul.mubr.bf16.gmra.mrb[132].mxu1 %v7768_v33  ;;  %v6123_v14 = vadd.f32 %v8253_v57, %v10966_v50  ;;  %v2023_v50 = vsel %vm10980_vm15, %v2021_v32, %v2022_v43  ;;  %v2026_v41 = vsel %vm10980_vm15, %v2024_v4, %v2025_v36  ;;  %v9444_v32 = vld [vmem:[#allocation2 + $0x4] ss:$8 sps:$4 sm:$0xcc]   ;;  %v2215_v4 = vshll.u32 %v11016_v27, 16 }
 0x14e   :  { %v8296_v19 = vadd.f32 %v8295_v55, %v8294_v46  ;;  %v8297_v47 = vpop.f32.mrb[30].mxu1  ;;  %v7803_v39 = vcombine.high %v2023_v50, %v2023_v50  ;;  %v7802_v45 = vcombine.low %v2023_v50, %v2023_v50  ;;  %8785 = vmatpush3.bf16.msra.mxu0 %v9438_v29  ;;  %v7805_v51 = vcombine.high %v2026_v41, %v2026_v41 }
 0x14f   :  { %v8298_v16 = vpop.f32.mrb[31].mxu1  ;;  %v8254_v59 = vpop.f32.mrb[32].mxu0  ;;  %v7804_v20 = vcombine.low %v2026_v41, %v2026_v41  ;;  %8831 = vmatpush3.bf16.msra.mxu1 %v9439_v25  ;;  %8786 = vmatprep.subr.bf16.mxu0 %v9440_v2  ;;  %v2175_v40 = vshrl.u32 %v9444_v32, 16  ;;  %v2178_v11 = vshll.u32 %v9444_v32, 16  ;;  %v2202_v43 = vshrl.u32 %v11027_v58, 16 }
 0x150   :  { %v11195_v12 = vadd.f32 %v8296_v19, %v6120_v28  ;;  %v8299_v7 = vadd.f32 %v8298_v16, %v8297_v47  ;;  %v8255_v26 = vpop.f32.mrb[33].mxu0  ;;  %6853 = vmatprep.mubr.bf16.mxu0 %v7803_v39  ;;  %v9442_v19 = vld [vmem:[%s11711_s1 + $0x738] sm:$0xff]   ;;  %6925 = vmatprep.mubr.bf16.mxu1 %v7805_v51  ;;  %v2184_v28 = vshrl.u32 %v11013_v34, 16  ;;  %v2214_v50 = vrot.slane %v2212_v42, 6 }
 0x151   :  { %v8256_v49 = vadd.f32 %v8255_v26, %v8254_v59  ;;  %v8257_v52 = vpop.f32.mrb[34].mxu0  ;;  %6854 = vmatmul.mubr.bf16.gmra.mrb[136].mxu0 %v7802_v45  ;;  %8832 = vmatprep.subr.bf16.mxu1 %v9441_v56  ;;  %v2217_v39 = vrot.slane %v2215_v4, 7  ;;  %v9445_v41 = vld [vmem:[#allocation2 + $0x14] ss:$8 sps:$4 sm:$0xcc]   ;;  %v2180_v45 = vrot.slane %v2178_v11, 7 }
 0x152   :  { %v11204_v6 = vadd.f32 %v8299_v7, %v6123_v14  ;;  %v8258_v47 = vpop.f32.mrb[35].mxu0  ;;  %8787 = vmatpush3.bf16.msra.mxu0 %v9442_v19  ;;  %v2187_v7 = vshll.u32 %v11013_v34, 16  ;;  %v2204_v34 = vrot.slane %v2202_v43, 6  ;;  %v2207_v25 = vrot.slane %v2205_v5, 7 }
 0x153   :  { %v6128_v61 = vadd.f32 %v8256_v49, %v11031_v21  ;;  %v8259_v1 = vadd.f32 %v8258_v47, %v8257_v52  ;;  %8833 = vmatpush3.bf16.msra.mxu1 %v9443_v15  ;;  %v2186_v21 = vrot.slane %v2184_v28, 6  ;;  %v11240_v2 = vor.u32 %v2217_v39, %v2214_v50 }
 0x154   :  { %v8300_v46 = vpop.f32.mrb[32].mxu1  ;;  %v2189_v29 = vrot.slane %v2187_v7, 7  ;;  %v2193_v51 = vshrl.u32 %v9445_v41, 16  ;;  %v2222_v56 = vshrl.u32 %v11029_v62, 16  ;;  %v2225_v52 = vshll.u32 %v11029_v62, 16 }
 0x155   :  { %v8301_v30 = vpop.f32.mrb[33].mxu1  ;;  %6926 = vmatmul.mubr.bf16.gmra.mrb[136].mxu1 %v7804_v20  ;;  %v6131_v57 = vadd.f32 %v8259_v1, %v11041_v8  ;;  %v2177_v8 = vrot.slane %v2175_v40, 6  ;;  %v2196_v20 = vshll.u32 %v9445_v41, 16  ;;  %v9446_v1 = vld [vmem:[%s11711_s1 + $0x840] sm:$0xff]   ;;  %v2230_v43 = vrot.slane %v11240_v2, 4 }
 0x156   :  { %v8302_v55 = vadd.f32 %v8301_v30, %v8300_v46  ;;  %v8303_v33 = vpop.f32.mrb[34].mxu1  ;;  %v2190_v27 = vor.u32 %v2189_v29, %v2186_v21  ;;  %v2195_v15 = vrot.slane %v2193_v51, 6  ;;  %v2227_v7 = vrot.slane %v2225_v52, 7  ;;  %8864 = vmatprep.subr.bf16.mxu0 %v9446_v1 }
 0x157   :  { %v8304_v44 = vpop.f32.mrb[35].mxu1  ;;  %v8260_v14 = vpop.f32.mrb[36].mxu0  ;;  %v2181_v49 = vor.u32 %v2180_v45, %v2177_v8  ;;  %v2198_v47 = vrot.slane %v2196_v20, 7  ;;  %v2232_v5 = vshrl.u32 %v11033_v9, 16  ;;  %v9450_v20 = vld [vmem:[%s11711_s1 + $0x848] sm:$0xff]   ;;  %v2265_v1 = vshll.u32 %v11045_v13, 16 }
 0x158   :  { %v8305_v22 = vadd.f32 %v8304_v44, %v8303_v33  ;;  %v11230_v16 = vadd.f32 %v8302_v55, %v6128_v61  ;;  %v8261_v46 = vpop.f32.mrb[37].mxu0  ;;  %v2208_v55 = vor.u32 %v2207_v25, %v2204_v34  ;;  %v2210_v61 = vrot.slane %v2190_v27, 4 }
 0x159   :  { %v8263_v30 = vpop.f32.mrb[38].mxu0  ;;  %v8262_v44 = vadd.f32 %v8261_v46, %v8260_v14  ;;  %v2182_v32 = vrot.slane %v2181_v49, 4  ;;  %v2199_v42 = vor.u32 %v2198_v47, %v2195_v15  ;;  %v2234_v25 = vrot.slane %v2232_v5, 6 }
 0x15a   :  { %v11238_v36 = vadd.f32 %v8305_v22, %v6131_v57  ;;  %v8264_v19 = vpop.f32.mrb[39].mxu0  ;;  %v9447_v22 = vld [vmem:[%s11711_s1 + $0x8c0] sm:$0xff]   ;;  %v2220_v21 = vrot.slane %v2208_v55, 4  ;;  %v2224_v57 = vrot.slane %v2222_v56, 6  ;;  %v2219_v62 = vsel %vm11244_vm2, %v2210_v61, %v11240_v2  ;;  %v9451_v56 = vld [vmem:[%s11711_s1 + $0x8c8] sm:$0xff]  }
 0x15b   :  { %v6136_v4 = vadd.f32 %v8262_v44, %v11073_v48  ;;  %v2191_v40 = vsel %vm11244_vm2, %v2182_v32, %v2190_v27  ;;  %8910 = vmatprep.subr.bf16.mxu1 %v9447_v22  ;;  %v2200_v39 = vrot.slane %v2199_v42, 4  ;;  %v9448_v48 = vld [vmem:[%s11711_s1 + $0x800] sm:$0xff]   ;;  %v2252_v46 = vshrl.u32 %v11039_v35, 16  ;;  %v9453_v42 = vld [vmem:[%s11711_s1 + $0x888] sm:$0xff]  }
 0x15c   :  { %v8306_v59 = vpop.f32.mrb[36].mxu1  ;;  %v11262_v11 = vor.u32 %v2227_v7, %v2224_v57  ;;  %v7662_v29 = vcombine.low %v2191_v40, %v2219_v62  ;;  %v7663_v50 = vcombine.high %v2191_v40, %v2219_v62  ;;  %v9449_v27 = vld [vmem:[%s11711_s1 + $0x880] sm:$0xff]   ;;  %v2255_v30 = vshll.u32 %v11039_v35, 16 }
 0x15d   :  { %v8307_v26 = vpop.f32.mrb[37].mxu1  ;;  %v2242_v49 = vshrl.u32 %v11043_v60, 16  ;;  %v2254_v15 = vrot.slane %v2252_v46, 6  ;;  %v2262_v35 = vshrl.u32 %v11045_v13, 16 }
 0x15e   :  { %v8309_v33 = vpop.f32.mrb[38].mxu1  ;;  %v8308_v14 = vadd.f32 %v8307_v26, %v8306_v59  ;;  %v2229_v34 = vsel %vm11244_vm2, %v2220_v21, %v11262_v11  ;;  %v2235_v59 = vshll.u32 %v11033_v9, 16  ;;  %6965 = vmatprep.mubr.bf16.mxu0 %v7663_v50  ;;  %v2209_v26 = vsel %vm11244_vm2, %v2200_v39, %v2208_v55 }
 0x15f   :  { %v8310_v28 = vpop.f32.mrb[39].mxu1  ;;  %v8328_v8 = vpop.f32.mrb[40].mxu0  ;;  %v2240_v9 = vrot.slane %v11262_v11, 4  ;;  %v7664_v33 = vcombine.low %v2209_v26, %v2229_v34  ;;  %v7665_v19 = vcombine.high %v2209_v26, %v2229_v34  ;;  %6966 = vmatmul.mubr.bf16.vlgmr.msra.gmra.mrb[140].mxu0 %v7662_v29  ;;  %v2257_v47 = vrot.slane %v2255_v30, 7 }
 0x160   :  { %v11266_v41 = vadd.f32 %v8308_v14, %v6136_v4  ;;  %v8329_v2 = vpop.f32.mrb[41].mxu0  ;;  %v2237_v61 = vrot.slane %v2235_v59, 7  ;;  %v2244_v44 = vrot.slane %v2242_v49, 6  ;;  %v2245_v55 = vshll.u32 %v11043_v60, 16  ;;  %8865 = vmatpush3.bf16.msra.mxu0 %v9448_v48  ;;  %v9452_v60 = vld [vmem:[%s11711_s1 + $0x808] sm:$0xff]  }
 0x161   :  { %v8331_v52 = vpop.f32.mrb[42].mxu0  ;;  %7037 = vmatprep.mubr.bf16.mxu1 %v7665_v19  ;;  %v8330_v22 = vadd.f32 %v8329_v2, %v8328_v8  ;;  %8866 = vmatprep.subr.bf16.mxu0 %v9450_v20  ;;  %v11293_v57 = vor.u32 %v2257_v47, %v2254_v15  ;;  %v2264_v62 = vrot.slane %v2262_v35, 6  ;;  %v2267_v14 = vrot.slane %v2265_v1, 7  ;;  %v9454_v8 = vld [vmem:[%s11711_s1 + $0x850] sm:$0xff]   ;;  %v9458_v35 = vld [vmem:[%s11711_s1 + $0x858] sm:$0xff]  }
 0x162   :  { %v2238_v28 = vor.u32 %v2237_v61, %v2234_v25  ;;  %7038 = vmatmul.mubr.bf16.vlgmr.msra.gmra.mrb[140].mxu1 %v7664_v33  ;;  %v2247_v7 = vrot.slane %v2245_v55, 7  ;;  %v8332_v11 = vpop.f32.mrb[43].mxu0  ;;  %v2272_v34 = vshrl.u32 %v11094_v54, 16  ;;  %v9455_v25 = vld [vmem:[%s11711_s1 + $0x8d0] sm:$0xff]   ;;  %v2275_v30 = vshll.u32 %v11094_v54, 16 }
 0x163   :  { %8911 = vmatpush3.bf16.msra.mxu1 %v9449_v27  ;;  %v6248_v40 = vadd.f32 %v8330_v22, %v11109_v63  ;;  %v8333_v50 = vadd.f32 %v8332_v11, %v8331_v52  ;;  %v2270_v48 = vrot.slane %v11293_v57, 4  ;;  %v2292_v49 = vshrl.u32 %v11096_v24, 16 }
 0x164   :  { %v8374_v45 = vpop.f32.mrb[40].mxu1  ;;  %v2239_v13 = vsel %vm11244_vm2, %v2230_v43, %v2238_v28  ;;  %v2250_v4 = vrot.slane %v2238_v28, 4  ;;  %v2248_v29 = vor.u32 %v2247_v7, %v2244_v44  ;;  %8912 = vmatprep.subr.bf16.mxu1 %v9451_v56  ;;  %8867 = vmatpush3.bf16.msra.mxu0 %v9452_v60  ;;  %v2274_v26 = vrot.slane %v2272_v34, 6  ;;  %v9457_v56 = vld [vmem:[%s11711_s1 + $0x890] sm:$0xff]  }
 0x165   :  { %v8375_v51 = vpop.f32.mrb[41].mxu1  ;;  %8868 = vmatprep.subr.bf16.mxu0 %v9454_v8  ;;  %v6251_v20 = vadd.f32 %v8333_v50, %v11118_v37  ;;  %v2295_v52 = vshll.u32 %v11096_v24, 16  ;;  %v2282_v37 = vshrl.u32 %v11100_v31, 16  ;;  %v2277_v47 = vrot.slane %v2275_v30, 7  ;;  %v9461_v50 = vld [vmem:[%s11711_s1 + $0x898] sm:$0xff]  }
 0x166   :  { %v8376_v32 = vadd.f32 %v8375_v51, %v8374_v45  ;;  %v8377_v21 = vpop.f32.mrb[42].mxu1  ;;  %v2259_v43 = vsel %vm11244_vm2, %v2250_v4, %v11293_v57  ;;  %v11311_v45 = vor.u32 %v2267_v14, %v2264_v62  ;;  %v2249_v46 = vsel %vm11244_vm2, %v2240_v9, %v2248_v29  ;;  %v9456_v51 = vld [vmem:[%s11711_s1 + $0x810] sm:$0xff]  }
 0x167   :  { %v8378_v5 = vpop.f32.mrb[43].mxu1  ;;  %v7699_v59 = vcombine.high %v2239_v13, %v2259_v43  ;;  %v2260_v27 = vrot.slane %v2248_v29, 4  ;;  %v7698_v2 = vcombine.low %v2239_v13, %v2259_v43  ;;  %8913 = vmatpush3.bf16.msra.mxu1 %v9453_v42  ;;  %v8334_v19 = vpop.f32.mrb[44].mxu0  ;;  %v2294_v28 = vrot.slane %v2292_v49, 6 }
 0x168   :  { %v8379_v39 = vadd.f32 %v8378_v5, %v8377_v21  ;;  %v11313_v63 = vadd.f32 %v8376_v32, %v6248_v40  ;;  %v2280_v33 = vrot.slane %v11311_v45, 4  ;;  %8914 = vmatprep.subr.bf16.mxu1 %v9455_v25  ;;  %v8335_v55 = vpop.f32.mrb[45].mxu0  ;;  %v2297_v24 = vrot.slane %v2295_v52, 7  ;;  %8869 = vmatpush3.bf16.msra.mxu0 %v9456_v51  ;;  %v9459_v21 = vld [vmem:[%s11711_s1 + $0x8d8] sm:$0xff]   ;;  %v9462_v51 = vld [vmem:[%s11711_s1 + $0x860] sm:$0xff]  }
 0x169   :  { %6973 = vmatprep.mubr.bf16.mxu0 %v7699_v59  ;;  %v2269_v9 = vsel %vm11244_vm2, %v2260_v27, %v11311_v45  ;;  %v2284_v1 = vrot.slane %v2282_v37, 6  ;;  %v2285_v22 = vshll.u32 %v11100_v31, 16  ;;  %v2278_v57 = vor.u32 %v2277_v47, %v2274_v26  ;;  %8870 = vmatprep.subr.bf16.mxu0 %v9458_v35  ;;  %v8337_v31 = vpop.f32.mrb[46].mxu0  ;;  %v9460_v40 = vld [vmem:[%s11711_s1 + $0x818] sm:$0xff]  }
 0x16a   :  { %v7701_v54 = vcombine.high %v2249_v46, %v2269_v9  ;;  %6974 = vmatmul.mubr.bf16.gmra.mrb[144].mxu0 %v7698_v2  ;;  %v7700_v61 = vcombine.low %v2249_v46, %v2269_v9  ;;  %v11336_v15 = vadd.f32 %v8379_v39, %v6251_v20  ;;  %v2302_v7 = vshrl.u32 %v11104_v53, 16 }
 0x16b   :  { %v2305_v62 = vshll.u32 %v11104_v53, 16  ;;  %8915 = vmatpush3.bf16.msra.mxu1 %v9457_v56  ;;  %v8336_v60 = vadd.f32 %v8335_v55, %v8334_v19  ;;  %v11347_v42 = vor.u32 %v2297_v24, %v2294_v28  ;;  %v2287_v13 = vrot.slane %v2285_v22, 7  ;;  %v9463_v56 = vld [vmem:[%s11711_s1 + $0x8e0] sm:$0xff]  }
 0x16c   :  { %v8380_v44 = vpop.f32.mrb[44].mxu1  ;;  %7045 = vmatprep.mubr.bf16.mxu1 %v7701_v54  ;;  %v2279_v11 = vsel %vm11244_vm2, %v2270_v48, %v2278_v57  ;;  %v2290_v5 = vrot.slane %v2278_v57, 4  ;;  %v2304_v29 = vrot.slane %v2302_v7, 6  ;;  %8916 = vmatprep.subr.bf16.mxu1 %v9459_v21  ;;  %v8338_v48 = vpop.f32.mrb[47].mxu0  ;;  %v2312_v59 = vshrl.u32 %v11147_v0, 16  ;;  %v9464_v19 = vld [vmem:[%s11711_s1 + $0x820] sm:$0xff]  }
 0x16d   :  { %v8381_v32 = vpop.f32.mrb[45].mxu1  ;;  %7046 = vmatmul.mubr.bf16.gmra.mrb[144].mxu1 %v7700_v61  ;;  %v2307_v53 = vrot.slane %v2305_v62, 7  ;;  %v2288_v39 = vor.u32 %v2287_v13, %v2284_v1  ;;  %v6256_v8 = vadd.f32 %v8336_v60, %v11145_v10  ;;  %8871 = vmatpush3.bf16.msra.mxu0 %v9460_v40  ;;  %v2310_v25 = vrot.slane %v11347_v42, 4  ;;  %v9466_v62 = vld [vmem:[%s11711_s1 + $0x868] sm:$0xff]  }
 0x16e   :  { %v8382_v4 = vadd.f32 %v8381_v32, %v8380_v44  ;;  %v8383_v14 = vpop.f32.mrb[46].mxu1  ;;  %v2299_v43 = vsel %vm11244_vm2, %v2290_v5, %v11347_v42  ;;  %v8339_v26 = vadd.f32 %v8338_v48, %v8337_v31  ;;  %v2314_v49 = vrot.slane %v2312_v59, 6  ;;  %8872 = vmatprep.subr.bf16.mxu0 %v9462_v51  ;;  %v9470_v51 = vld [vmem:[#allocation2 + $0xa0] ss:$8 sps:$4 sm:$0x77]  }
 0x16f   :  { %v11361_v45 = vor.u32 %v2307_v53, %v2304_v29  ;;  %8917 = vmatpush3.bf16.msra.mxu1 %v9461_v50  ;;  %v8384_v34 = vpop.f32.mrb[47].mxu1  ;;  %v7735_v46 = vcombine.high %v2279_v11, %v2299_v43  ;;  %v2289_v27 = vsel %vm11244_vm2, %v2280_v33, %v2288_v39  ;;  %v2300_v2 = vrot.slane %v2288_v39, 4  ;;  %v8340_v24 = vpop.f32.mrb[48].mxu0 }
 0x170   :  { %v7734_v10 = vcombine.low %v2279_v11, %v2299_v43  ;;  %v11370_v20 = vadd.f32 %v8382_v4, %v6256_v8  ;;  %v8385_v30 = vadd.f32 %v8384_v34, %v8383_v14  ;;  %v2315_v52 = vshll.u32 %v11147_v0, 16  ;;  %8918 = vmatprep.subr.bf16.mxu1 %v9463_v56  ;;  %v9465_v0 = vld [vmem:[%s11711_s1 + $0x8a0] sm:$0xff]   ;;  %v8341_v57 = vpop.f32.mrb[49].mxu0  ;;  %v9468_v43 = vld [vmem:[%s11711_s1 + $0x828] sm:$0xff]  }
 0x171   :  { %6981 = vmatprep.mubr.bf16.mxu0 %v7735_v46  ;;  %v2309_v9 = vsel %vm11244_vm2, %v2300_v2, %v11361_v45  ;;  %v2332_v33 = vshrl.u32 %v11149_v23, 16  ;;  %v2335_v37 = vshll.u32 %v11149_v23, 16  ;;  %v6259_v47 = vadd.f32 %v8339_v26, %v11166_v18  ;;  %8873 = vmatpush3.bf16.msra.mxu0 %v9464_v19  ;;  %v8343_v11 = vpop.f32.mrb[50].mxu0  ;;  %v9472_v19 = vld [vmem:[%s11711_s1 + $0x870] sm:$0xff]  }
 0x172   :  { %v7737_v54 = vcombine.high %v2289_v27, %v2309_v9  ;;  %6982 = vmatmul.mubr.bf16.gmra.mrb[148].mxu0 %v7734_v10  ;;  %v7736_v61 = vcombine.low %v2289_v27, %v2309_v9  ;;  %v2320_v44 = vrot.slane %v11361_v45, 4  ;;  %v2317_v55 = vrot.slane %v2315_v52, 7  ;;  %8874 = vmatprep.subr.bf16.mxu0 %v9466_v62  ;;  %v8344_v45 = vpop.f32.mrb[51].mxu0 }
 0x173   :  { %v2334_v35 = vrot.slane %v2332_v33, 6  ;;  %v2337_v23 = vrot.slane %v2335_v37, 7  ;;  %v2322_v28 = vshrl.u32 %v11151_v38, 16  ;;  %v11390_v22 = vadd.f32 %v8385_v30, %v6259_v47  ;;  %8919 = vmatpush3.bf16.msra.mxu1 %v9465_v0  ;;  %v9471_v37 = vld [vmem:[#allocation2 + $0xb0] ss:$8 sps:$4 sm:$0x77]  }
 0x174   :  { %v8386_v1 = vpop.f32.mrb[48].mxu1  ;;  %7053 = vmatprep.mubr.bf16.mxu1 %v7737_v54  ;;  %v2325_v18 = vshll.u32 %v11151_v38, 16  ;;  %v2342_v32 = vshrl.u32 %v11153_v17, 16  ;;  %v2345_v21 = vshll.u32 %v11153_v17, 16  ;;  %v2318_v60 = vor.u32 %v2317_v55, %v2314_v49  ;;  %v9467_v38 = vld [vmem:[%s11711_s1 + $0x8e8] sm:$0xff]  }
 0x175   :  { %v8387_v7 = vpop.f32.mrb[49].mxu1  ;;  %7054 = vmatmul.mubr.bf16.gmra.mrb[148].mxu1 %v7736_v61  ;;  %v11398_v42 = vor.u32 %v2337_v23, %v2334_v35  ;;  %v2324_v13 = vrot.slane %v2322_v28, 6  ;;  %v8342_v4 = vadd.f32 %v8341_v57, %v8340_v24  ;;  %8920 = vmatprep.subr.bf16.mxu1 %v9467_v38  ;;  %v2352_v52 = vshrl.u32 %v9470_v51, 16  ;;  %v9473_v35 = vld [vmem:[%s11711_s1 + $0x8f0] sm:$0xff]  }
 0x176   :  { %v2327_v31 = vrot.slane %v2325_v18, 7  ;;  %v2344_v14 = vrot.slane %v2342_v32, 6  ;;  %v2347_v17 = vrot.slane %v2345_v21, 7  ;;  %v8388_v40 = vadd.f32 %v8387_v7, %v8386_v1  ;;  %v8389_v50 = vpop.f32.mrb[50].mxu1  ;;  %8875 = vmatpush3.bf16.msra.mxu0 %v9468_v43  ;;  %v9474_v18 = vld [vmem:[%s11711_s1 + $0x830] sm:$0xff]  }
 0x177   :  { %v2319_v5 = vsel %vm11244_vm2, %v2310_v25, %v2318_v60  ;;  %v2330_v29 = vrot.slane %v2318_v60, 4  ;;  %v6264_v53 = vadd.f32 %v8342_v4, %v11195_v12  ;;  %v9469_v25 = vld [vmem:[%s11711_s1 + $0x8a8] sm:$0xff]   ;;  %v8345_v12 = vadd.f32 %v8344_v45, %v8343_v11  ;;  %v8390_v59 = vpop.f32.mrb[51].mxu1  ;;  %8876 = vmatprep.subr.bf16.mxu0 %v9472_v19  ;;  %v8346_v23 = vpop.f32.mrb[52].mxu0  ;;  %v9475_v32 = vld [vmem:[%s11711_s1 + $0x8b0] sm:$0xff]   ;;  %v9478_v11 = vld [vmem:[%s11711_s1 + $0x838] sm:$0xff]  }
 0x178   :  { %v2328_v39 = vor.u32 %v2327_v31, %v2324_v13  ;;  %v2348_v8 = vor.u32 %v2347_v17, %v2344_v14  ;;  %8921 = vmatpush3.bf16.msra.mxu1 %v9469_v25  ;;  %v8391_v30 = vadd.f32 %v8390_v59, %v8389_v50  ;;  %v2350_v49 = vrot.slane %v11398_v42, 4  ;;  %v8347_v57 = vpop.f32.mrb[53].mxu0  ;;  %v9476_v13 = vld [vmem:[%s11711_s1 + $0x878] sm:$0xff]  }
 0x179   :  { %v2339_v48 = vsel %vm11244_vm2, %v2330_v29, %v11398_v42  ;;  %v11412_v34 = vadd.f32 %v8388_v40, %v6264_v53  ;;  %v6267_v26 = vadd.f32 %v8345_v12, %v11204_v6  ;;  %v2355_v33 = vshll.u32 %v9470_v51, 16  ;;  %8922 = vmatprep.subr.bf16.mxu1 %v9473_v35  ;;  %v9477_v14 = vld [vmem:[%s11711_s1 + $0x8f8] sm:$0xff]   ;;  %v8349_v17 = vpop.f32.mrb[54].mxu0  ;;  %v9481_v12 = vld [vmem:[#allocation2 + $0x20] ss:$8 sps:$4 sm:$0xff]  }
 0x17a   :  { %v7771_v46 = vcombine.high %v2319_v5, %v2339_v48  ;;  %v2329_v27 = vsel %vm11244_vm2, %v2320_v44, %v2328_v39  ;;  %v2340_v2 = vrot.slane %v2328_v39, 4  ;;  %v7770_v10 = vcombine.low %v2319_v5, %v2339_v48  ;;  %8877 = vmatpush3.bf16.msra.mxu0 %v9474_v18  ;;  %v9479_v39 = vld [vmem:[%s11711_s1 + $0x8b8] sm:$0xff]  }
 0x17b   :  { %v2360_v56 = vrot.slane %v2348_v8, 4  ;;  %v11426_v47 = vadd.f32 %v8391_v30, %v6267_v26  ;;  %v2354_v6 = vrot.slane %v2352_v52, 6  ;;  %v2357_v44 = vrot.slane %v2355_v33, 7  ;;  %8878 = vmatprep.subr.bf16.mxu0 %v9476_v13  ;;  %v9485_v30 = vld [vmem:[#allocation2 + $0x30] ss:$8 sps:$4 sm:$0xff]  }
 0x17c   :  { %6989 = vmatprep.mubr.bf16.mxu0 %v7771_v46  ;;  %v2349_v9 = vsel %vm11244_vm2, %v2340_v2, %v2348_v8  ;;  %v2362_v0 = vshrl.u32 %v9471_v37, 16  ;;  %v2365_v55 = vshll.u32 %v9471_v37, 16  ;;  %v8392_v21 = vpop.f32.mrb[52].mxu1  ;;  %8923 = vmatpush3.bf16.msra.mxu1 %v9475_v32  ;;  %v8348_v60 = vadd.f32 %v8347_v57, %v8346_v23  ;;  %v8350_v8 = vpop.f32.mrb[55].mxu0  ;;  %v9483_v46 = vld [vmem:[#allocation2 + $0x24] ss:$8 sps:$4 sm:$0xff]  }
 0x17d   :  { %v7773_v54 = vcombine.high %v2329_v27, %v2349_v9  ;;  %6990 = vmatmul.mubr.bf16.gmra.mrb[152].mxu0 %v7770_v10  ;;  %v7772_v61 = vcombine.low %v2329_v27, %v2349_v9  ;;  %v2358_v28 = vor.u32 %v2357_v44, %v2354_v6  ;;  %v8393_v42 = vpop.f32.mrb[53].mxu1  ;;  %8924 = vmatprep.subr.bf16.mxu1 %v9477_v14  ;;  %v2516_v2 = vrot.slane %v9481_v12, 7  ;;  %v9484_v10 = vld [vmem:[#allocation2 + $0x14] ss:$8 sps:$4 sm:$0x88]  }
 0x17e   :  { %v2364_v24 = vrot.slane %v2362_v0, 6  ;;  %v2367_v1 = vrot.slane %v2365_v55, 7  ;;  %v8394_v31 = vadd.f32 %v8393_v42, %v8392_v21  ;;  %v8395_v40 = vpop.f32.mrb[54].mxu1  ;;  %v6272_v29 = vadd.f32 %v8348_v60, %v11230_v16  ;;  %8879 = vmatpush3.bf16.msra.mxu0 %v9478_v11  ;;  %v9480_v16 = vld [vmem:[#allocation2 + $0x4] ss:$8 sps:$4 sm:$0x88]  }
 0x17f   :  { %7061 = vmatprep.mubr.bf16.mxu1 %v7773_v54  ;;  %v2359_v7 = vsel %vm11244_vm2, %v2350_v49, %v2358_v28  ;;  %v8396_v43 = vpop.f32.mrb[55].mxu1  ;;  %v8351_v48 = vadd.f32 %v8350_v8, %v8349_v17  ;;  %v8352_v58 = vpop.f32.mrb[56].mxu0  ;;  %v7631_v27 = vrot.slane %v9480_v16, 11  ;;  %v2523_v26 = vrot.slane %v9483_v46, 7  ;;  %v9487_v49 = vld [vmem:[#allocation2 + $0x34] ss:$8 sps:$4 sm:$0xff]  }
 0x180   :  { %7062 = vmatmul.mubr.bf16.gmra.mrb[152].mxu1 %v7772_v61  ;;  %v2368_v62 = vor.u32 %v2367_v1, %v2364_v24  ;;  %v7807_v4 = vcombine.high %v2359_v7, %v2359_v7  ;;  %v7806_v38 = vcombine.low %v2359_v7, %v2359_v7  ;;  %v11454_v45 = vadd.f32 %v8394_v31, %v6272_v29  ;;  %v8353_v37 = vpop.f32.mrb[57].mxu0  ;;  %v9488_v55 = vld [vmem:[#allocation2 + $0x40] ss:$8 sps:$4 sm:$0xff]   ;;  %v9490_v24 = vld [vmem:[#allocation2 + $0x44] ss:$8 sps:$4 sm:$0xff]  }
 0x181   :  { %v8397_v25 = vadd.f32 %v8396_v43, %v8395_v40  ;;  %v6275_v59 = vadd.f32 %v8351_v48, %v11238_v36  ;;  %8925 = vmatpush3.bf16.msra.mxu1 %v9479_v39  ;;  %v2517_v9 = vsel %vm10438_vm8, %v7631_v27, %v2516_v2  ;;  %v2522_v52 = vrot.slane %v2516_v2, 4  ;;  %v8355_v44 = vpop.f32.mrb[58].mxu0  ;;  %v9491_v7 = vld [vmem:[#allocation2 + $0x50] ss:$8 sps:$4 sm:$0xff]   ;;  %v9494_v43 = vld [vmem:[#allocation2 + $0x60] ss:$8 sps:$4 sm:$0xff]  }
 0x182   :  { %v2369_v5 = vsel %vm11244_vm2, %v2360_v56, %v2368_v62  ;;  %6997 = vmatprep.mubr.bf16.mxu0 %v7807_v4  ;;  %v7632_v33 = vrot.slane %v9484_v10, 11  ;;  %v2520_v54 = vrot.slane %v9485_v30, 7  ;;  %v2526_v36 = vrot.slane %v9487_v49, 7  ;;  %v8356_v23 = vpop.f32.mrb[59].mxu0  ;;  %v9493_v62 = vld [vmem:[#allocation2 + $0x54] ss:$8 sps:$4 sm:$0xff]  }
 0x183   :  { %v7809_v53 = vcombine.high %v2369_v5, %v2369_v5  ;;  %v7808_v50 = vcombine.low %v2369_v5, %v2369_v5  ;;  %v11457_v51 = vadd.f32 %v8397_v25, %v6275_v59  ;;  %v8354_v61 = vadd.f32 %v8353_v37, %v8352_v58  ;;  %v11472_v48 = vld [vmem:[#allocation2 + $0x64] ss:$8 sps:$4 sm:$0xff]   ;;  %v9497_v30 = vld [vmem:[#allocation2 + $0x70] ss:$8 sps:$4 sm:$0xff]   ;;  %v9499_v49 = vld [vmem:[#allocation2 + $0x74] ss:$8 sps:$4 sm:$0xff]  }
 0x184   :  { %v8398_v56 = vpop.f32.mrb[56].mxu1  ;;  %v2524_v35 = vsel %vm10438_vm8, %v2522_v52, %v2523_v26  ;;  %v2528_v1 = vrot.slane %v2523_v26, 4  ;;  %v2521_v21 = vsel %vm10438_vm8, %v7632_v33, %v2520_v54  ;;  %v2525_v57 = vrot.slane %v2520_v54, 4 }
 0x185   :  { %6998 = vmatmul.mubr.bf16.gmra.mrb[156].mxu0 %v7806_v38  ;;  %7069 = vmatprep.mubr.bf16.mxu1 %v7809_v53  ;;  %v8399_v19 = vpop.f32.mrb[57].mxu1  ;;  %v7666_v18 = vcombine.low %v2517_v9, %v2524_v35  ;;  %v7667_v32 = vcombine.high %v2517_v9, %v2524_v35  ;;  %v6280_v60 = vadd.f32 %v8354_v61, %v11266_v41  ;;  %v2529_v42 = vrot.slane %v9488_v55, 7  ;;  %v9500_v35 = vld [vmem:[#allocation2 + $0x80] ss:$8 sps:$4 sm:$0xff]  }
 0x186   :  { %v8400_v6 = vadd.f32 %v8399_v19, %v8398_v56  ;;  %v8401_v0 = vpop.f32.mrb[58].mxu1  ;;  %v2535_v13 = vrot.slane %v9490_v24, 7  ;;  %v2531_v4 = vrot.slane %v2526_v36, 4  ;;  %v2527_v14 = vsel %vm10438_vm8, %v2525_v57, %v2526_v36 }
 0x187   :  { %v8402_v28 = vpop.f32.mrb[59].mxu1  ;;  %v8420_v38 = vpop.f32.mrb[60].mxu0  ;;  %7109 = vmatprep.mubr.bf16.mxu0 %v7667_v32  ;;  %v2532_v17 = vrot.slane %v9491_v7, 7  ;;  %v2538_v40 = vrot.slane %v9493_v62, 7  ;;  %v7668_v29 = vcombine.low %v2521_v21, %v2527_v14  ;;  %v7669_v53 = vcombine.high %v2521_v21, %v2527_v14  ;;  %v11492_v32 = vld [vmem:[#allocation2 + $0x84] ss:$8 sps:$4 sm:$0xff]  }
 0x188   :  { %7070 = vmatmul.mubr.bf16.gmra.mrb[156].mxu1 %v7808_v50  ;;  %v8421_v11 = vpop.f32.mrb[61].mxu0  ;;  %v11468_v50 = vadd.f32 %v8400_v6, %v6280_v60  ;;  %v2530_v41 = vsel %vm10438_vm8, %v2528_v1, %v2529_v42  ;;  %v2534_v25 = vrot.slane %v2529_v42, 4  ;;  %v2540_v26 = vrot.slane %v2535_v13, 4 }
 0x189   :  { %v8423_v39 = vpop.f32.mrb[62].mxu0  ;;  %v11476_v58 = vsel %vm10438_vm8, %v2531_v4, %v2532_v17  ;;  %v2537_v16 = vrot.slane %v2532_v17, 4  ;;  %v8422_v12 = vadd.f32 %v8421_v11, %v8420_v38  ;;  %7181 = vmatprep.mubr.bf16.mxu1 %v7669_v53  ;;  %v2541_v37 = vrot.slane %v9494_v43, 7 }
 0x18a   :  { %v8424_v59 = vpop.f32.mrb[63].mxu0  ;;  %v2536_v9 = vsel %vm10438_vm8, %v2534_v25, %v2535_v13  ;;  %v2547_v21 = vrot.slane %v11472_v48, 7  ;;  %v2543_v57 = vrot.slane %v2538_v40, 4  ;;  %v2544_v7 = vrot.slane %v9497_v30, 7  ;;  %v9505_v48 = vld [vmem:[#allocation2 + $0x94] ss:$8 sps:$4 sm:$0xff]  }
 0x18b   :  { %v8425_v2 = vadd.f32 %v8424_v59, %v8423_v39  ;;  %v2539_v52 = vsel %vm10438_vm8, %v2537_v16, %v2538_v40  ;;  %v6392_v33 = vadd.f32 %v8422_v12, %v11313_v63  ;;  %v7703_v36 = vcombine.high %v2530_v41, %v2536_v9 }
 0x18c   :  { %v8466_v31 = vpop.f32.mrb[60].mxu1  ;;  %v7705_v61 = vcombine.high %v11476_v58, %v2539_v52  ;;  %v7702_v6 = vcombine.low %v2530_v41, %v2536_v9  ;;  %v7704_v44 = vcombine.low %v11476_v58, %v2539_v52  ;;  %v11490_v24 = vsel %vm10438_vm8, %v2540_v26, %v2541_v37  ;;  %v9506_v26 = vld [vmem:[#allocation2 + $0xa0] ss:$8 sps:$4 sm:$0x77]  }
 0x18d   :  { %v8467_v5 = vpop.f32.mrb[61].mxu1  ;;  %7110 = vmatmul.mubr.bf16.vlgmr.msra.gmra.mrb[160].mxu0 %v7666_v18  ;;  %v6395_v28 = vadd.f32 %v8425_v2, %v11336_v15  ;;  %v2546_v63 = vrot.slane %v2541_v37, 4  ;;  %v2550_v62 = vrot.slane %v9499_v49, 7  ;;  %v2549_v40 = vrot.slane %v2544_v7, 4 }
 0x18e   :  { %v8469_v8 = vpop.f32.mrb[62].mxu1  ;;  %v8468_v27 = vadd.f32 %v8467_v5, %v8466_v31  ;;  %7117 = vmatprep.mubr.bf16.mxu0 %v7703_v36  ;;  %v9503_v31 = vld [vmem:[#allocation2 + $0x90] ss:$8 sps:$4 sm:$0xff]   ;;  %v11501_v5 = vsel %vm10438_vm8, %v2543_v57, %v2544_v7  ;;  %v2552_v12 = vrot.slane %v2547_v21, 4  ;;  %v2553_v59 = vrot.slane %v9500_v35, 7 }
 0x18f   :  { %v8470_v46 = vpop.f32.mrb[63].mxu1  ;;  %v8426_v56 = vpop.f32.mrb[64].mxu0  ;;  %v2548_v11 = vsel %vm10438_vm8, %v2546_v63, %v2547_v21  ;;  %v2551_v16 = vsel %vm10438_vm8, %v2549_v40, %v2550_v62  ;;  %v2556_v9 = vrot.slane %v9503_v31, 7  ;;  %v2562_v37 = vrot.slane %v9505_v48, 7 }
 0x190   :  { %v8471_v10 = vadd.f32 %v8470_v46, %v8469_v8  ;;  %7182 = vmatmul.mubr.bf16.vlgmr.msra.gmra.mrb[160].mxu1 %v7668_v29  ;;  %v8427_v54 = vpop.f32.mrb[65].mxu0  ;;  %v11485_v23 = vadd.f32 %v8468_v27, %v6392_v33  ;;  %v7739_v39 = vcombine.high %v11490_v24, %v2548_v11  ;;  %v2559_v46 = vrot.slane %v11492_v32, 7 }
 0x191   :  { %v8429_v55 = vpop.f32.mrb[66].mxu0  ;;  %7189 = vmatprep.mubr.bf16.mxu1 %v7705_v61  ;;  %v8428_v15 = vadd.f32 %v8427_v54, %v8426_v56  ;;  %v7741_v2 = vcombine.high %v11501_v5, %v2551_v16  ;;  %v2554_v49 = vsel %vm10438_vm8, %v2552_v12, %v2553_v59  ;;  %v2558_v56 = vrot.slane %v2553_v59, 4 }
 0x192   :  { %v8430_v18 = vpop.f32.mrb[67].mxu0  ;;  %v11495_v13 = vadd.f32 %v8471_v10, %v6395_v28  ;;  %v7738_v10 = vcombine.low %v11490_v24, %v2548_v11  ;;  %v9507_v28 = vld [vmem:[#allocation2 + $0xb0] ss:$8 sps:$4 sm:$0x77]  }
 0x193   :  { %v8431_v38 = vadd.f32 %v8430_v18, %v8429_v55  ;;  %v6400_v8 = vadd.f32 %v8428_v15, %v11370_v20  ;;  %v2561_v55 = vrot.slane %v2556_v9, 4 }
 0x194   :  { %v8472_v19 = vpop.f32.mrb[64].mxu1 }
 0x195   :  { %v8473_v0 = vpop.f32.mrb[65].mxu1  ;;  %7118 = vmatmul.mubr.bf16.gmra.mrb[164].mxu0 %v7702_v6  ;;  %v6403_v43 = vadd.f32 %v8431_v38, %v11390_v22  ;;  %v2555_v22 = vrot.slane %v2550_v62, 4  ;;  %v2563_v62 = vsel %vm10438_vm8, %v2561_v55, %v2562_v37 }
 0x196   :  { %v8475_v1 = vpop.f32.mrb[66].mxu1  ;;  %v8474_v4 = vadd.f32 %v8473_v0, %v8472_v19  ;;  %7125 = vmatprep.mubr.bf16.mxu0 %v7739_v39 }
 0x197   :  { %v8476_v60 = vpop.f32.mrb[67].mxu1  ;;  %v8432_v42 = vpop.f32.mrb[68].mxu0  ;;  %v2557_v0 = vsel %vm10438_vm8, %v2555_v22, %v2556_v9 }
 0x198   :  { %v8433_v17 = vpop.f32.mrb[69].mxu0  ;;  %v8477_v29 = vadd.f32 %v8476_v60, %v8475_v1  ;;  %7190 = vmatmul.mubr.bf16.gmra.mrb[164].mxu1 %v7704_v44  ;;  %v11511_v20 = vadd.f32 %v8474_v4, %v6400_v8  ;;  %v2560_v44 = vsel %vm10438_vm8, %v2558_v56, %v2559_v46  ;;  %v7740_v1 = vcombine.low %v11501_v5, %v2551_v16 }
 0x199   :  { %v8435_v41 = vpop.f32.mrb[70].mxu0  ;;  %7197 = vmatprep.mubr.bf16.mxu1 %v7741_v2  ;;  %v8434_v19 = vadd.f32 %v8433_v17, %v8432_v42  ;;  %v7775_v18 = vcombine.high %v2554_v49, %v2560_v44  ;;  %v2564_v60 = vrot.slane %v2559_v46, 4  ;;  %v2565_v42 = vrot.slane %v9506_v26, 7 }
 0x19a   :  { %v8436_v58 = vpop.f32.mrb[71].mxu0  ;;  %v11513_v30 = vadd.f32 %v8477_v29, %v6403_v43  ;;  %v7777_v4 = vcombine.high %v2557_v0, %v2563_v62  ;;  %v7774_v8 = vcombine.low %v2554_v49, %v2560_v44  ;;  %v7776_v22 = vcombine.low %v2557_v0, %v2563_v62 }
 0x19b   :  { %v8437_v36 = vadd.f32 %v8436_v58, %v8435_v41  ;;  %v6408_v32 = vadd.f32 %v8434_v19, %v11412_v34  ;;  %v2566_v34 = vsel %vm10438_vm8, %v2564_v60, %v2565_v42 }
 0x19c   :  { %v8478_v14 = vpop.f32.mrb[68].mxu1  ;;  %v7811_v58 = vcombine.high %v2566_v34, %v2566_v34  ;;  %v7810_v9 = vcombine.low %v2566_v34, %v2566_v34 }
 0x19d   :  { %v8479_v53 = vpop.f32.mrb[69].mxu1  ;;  %v6411_v21 = vadd.f32 %v8437_v36, %v11426_v47  ;;  %7126 = vmatmul.mubr.bf16.gmra.mrb[168].mxu0 %v7738_v10  ;;  %v2568_v47 = vrot.slane %v9507_v28, 7 }
 0x19e   :  { %v8481_v25 = vpop.f32.mrb[70].mxu1  ;;  %v8480_v54 = vadd.f32 %v8479_v53, %v8478_v14  ;;  %7133 = vmatprep.mubr.bf16.mxu0 %v7775_v18  ;;  %v2567_v14 = vrot.slane %v2562_v37, 4 }
 0x19f   :  { %v8482_v27 = vpop.f32.mrb[71].mxu1  ;;  %v8438_v52 = vpop.f32.mrb[72].mxu0 }
 0x1a0   :  { %v8439_v61 = vpop.f32.mrb[73].mxu0  ;;  %v8483_v35 = vadd.f32 %v8482_v27, %v8481_v25  ;;  %v11526_v38 = vadd.f32 %v8480_v54, %v6408_v32  ;;  %7198 = vmatmul.mubr.bf16.gmra.mrb[168].mxu1 %v7740_v1  ;;  %v2569_v16 = vsel %vm10438_vm8, %v2567_v14, %v2568_v47 }
 0x1a1   :  { %v8441_v24 = vpop.f32.mrb[74].mxu0  ;;  %v8440_v11 = vadd.f32 %v8439_v61, %v8438_v52  ;;  %7205 = vmatprep.mubr.bf16.mxu1 %v7777_v4 }
 0x1a2   :  { %v8442_v57 = vpop.f32.mrb[75].mxu0  ;;  %v11528_v31 = vadd.f32 %v8483_v35, %v6411_v21 }
 0x1a3   :  { %v8443_v29 = vadd.f32 %v8442_v57, %v8441_v24  ;;  %v6416_v43 = vadd.f32 %v8440_v11, %v11454_v45  ;;  %v7813_v45 = vcombine.high %v2569_v16, %v2569_v16 }
 0x1a4   :  { %v8484_v33 = vpop.f32.mrb[72].mxu1 }
 0x1a5   :  { %v8485_v6 = vpop.f32.mrb[73].mxu1  ;;  %v6419_v12 = vadd.f32 %v8443_v29, %v11457_v51  ;;  %7134 = vmatmul.mubr.bf16.gmra.mrb[172].mxu0 %v7774_v8 }
 0x1a6   :  { %v8487_v63 = vpop.f32.mrb[74].mxu1  ;;  %v8486_v5 = vadd.f32 %v8485_v6, %v8484_v33  ;;  %7141 = vmatprep.mubr.bf16.mxu0 %v7811_v58  ;;  %v7812_v6 = vcombine.low %v2569_v16, %v2569_v16 }
 0x1a7   :  { %v8488_v7 = vpop.f32.mrb[75].mxu1  ;;  %v8444_v15 = vpop.f32.mrb[76].mxu0 }
 0x1a8   :  { %v8445_v17 = vpop.f32.mrb[77].mxu0  ;;  %v8489_v53 = vadd.f32 %v8488_v7, %v8487_v63  ;;  %v11536_v27 = vadd.f32 %v8486_v5, %v6416_v43  ;;  %7206 = vmatmul.mubr.bf16.gmra.mrb[172].mxu1 %v7776_v22 }
 0x1a9   :  { %v8447_v40 = vpop.f32.mrb[78].mxu0  ;;  %v8446_v48 = vadd.f32 %v8445_v17, %v8444_v15  ;;  %7213 = vmatprep.mubr.bf16.mxu1 %v7813_v45 }
 0x1aa   :  { %v8448_v39 = vpop.f32.mrb[79].mxu0  ;;  %v11539_v26 = vadd.f32 %v8489_v53, %v6419_v12 }
 0x1ab   :  { %v6424_v2 = vadd.f32 %v8446_v48, %v11468_v50 }
 0x1ac   :  { %v8490_v41 = vpop.f32.mrb[76].mxu1 }
 0x1ad   :  { %v8491_v25 = vpop.f32.mrb[77].mxu1  ;;  %7142 = vmatmul.mubr.bf16.gmra.mrb[176].mxu0 %v7810_v9 }
 0x1ae   :  { %v8492_v59 = vadd.f32 %v8491_v25, %v8490_v41  ;;  %v8493_v46 = vpop.f32.mrb[78].mxu1 }
 0x1af   :  { %v8494_v10 = vpop.f32.mrb[79].mxu1  ;;  %v8512_v56 = vpop.f32.mrb[80].mxu0 }
 0x1b0   :  { %v11541_v49 = vadd.f32 %v8492_v59, %v6424_v2  ;;  %v8513_v3 = vpop.f32.mrb[81].mxu0  ;;  %7214 = vmatmul.mubr.bf16.gmra.mrb[176].mxu1 %v7812_v6 }
 0x1b1   :  { %v8514_v52 = vadd.f32 %v8513_v3, %v8512_v56  ;;  %v8515_v33 = vpop.f32.mrb[82].mxu0 }
 0x1b2   :  { %v8516_v19 = vpop.f32.mrb[83].mxu0 }
 0x1b3   :  { %v6536_v50 = vadd.f32 %v8514_v52, %v11485_v23  ;;  %v8517_v61 = vadd.f32 %v8516_v19, %v8515_v33 }
 0x1b4   :  { %v8558_v51 = vpop.f32.mrb[80].mxu1 }
 0x1b5   :  { %v8559_v37 = vpop.f32.mrb[81].mxu1  ;;  %v6539_v55 = vadd.f32 %v8517_v61, %v11495_v13 }
 0x1b6   :  { %v8560_v54 = vadd.f32 %v8559_v37, %v8558_v51  ;;  %v8561_v36 = vpop.f32.mrb[82].mxu1 }
 0x1b7   :  { %v8562_v44 = vpop.f32.mrb[83].mxu1  ;;  %v8518_v24 = vpop.f32.mrb[84].mxu0 }
 0x1b8   :  { %v11544_v0 = vadd.f32 %v8560_v54, %v6536_v50  ;;  %v8563_v35 = vadd.f32 %v8562_v44, %v8561_v36  ;;  %v8519_v63 = vpop.f32.mrb[85].mxu0 }
 0x1b9   :  { %v8520_v1 = vadd.f32 %v8519_v63, %v8518_v24  ;;  %v8521_v18 = vpop.f32.mrb[86].mxu0 }
 0x1ba   :  { %v11547_v28 = vadd.f32 %v8563_v35, %v6539_v55  ;;  %v8522_v23 = vpop.f32.mrb[87].mxu0 }
 0x1bb   :  { %v6544_v21 = vadd.f32 %v8520_v1, %v11511_v20  ;;  %v8523_v7 = vadd.f32 %v8522_v23, %v8521_v18 }
 0x1bc   :  { %v8564_v32 = vpop.f32.mrb[84].mxu1 }
 0x1bd   :  { %v8565_v57 = vpop.f32.mrb[85].mxu1  ;;  %v6547_v42 = vadd.f32 %v8523_v7, %v11513_v30 }
 0x1be   :  { %v8566_v62 = vadd.f32 %v8565_v57, %v8564_v32  ;;  %v8567_v60 = vpop.f32.mrb[86].mxu1 }
 0x1bf   :  { %v8568_v15 = vpop.f32.mrb[87].mxu1  ;;  %v8524_v14 = vpop.f32.mrb[88].mxu0 }
 0x1c0   :  { %v11551_v13 = vadd.f32 %v8566_v62, %v6544_v21  ;;  %v8569_v4 = vadd.f32 %v8568_v15, %v8567_v60  ;;  %v8525_v34 = vpop.f32.mrb[89].mxu0 }
 0x1c1   :  { %v8526_v47 = vadd.f32 %v8525_v34, %v8524_v14  ;;  %v8527_v11 = vpop.f32.mrb[90].mxu0 }
 0x1c2   :  { %v11553_v17 = vadd.f32 %v8569_v4, %v6547_v42  ;;  %v8528_v40 = vpop.f32.mrb[91].mxu0 }
 0x1c3   :  { %v6552_v20 = vadd.f32 %v8526_v47, %v11526_v38  ;;  %v8529_v53 = vadd.f32 %v8528_v40, %v8527_v11 }
 0x1c4   :  { %v8570_v5 = vpop.f32.mrb[88].mxu1 }
 0x1c5   :  { %v8571_v29 = vpop.f32.mrb[89].mxu1  ;;  %v6555_v30 = vadd.f32 %v8529_v53, %v11528_v31 }
 0x1c6   :  { %v8572_v41 = vadd.f32 %v8571_v29, %v8570_v5  ;;  %v8573_v39 = vpop.f32.mrb[90].mxu1 }
 0x1c7   :  { %v8574_v8 = vpop.f32.mrb[91].mxu1  ;;  %v8530_v58 = vpop.f32.mrb[92].mxu0 }
 0x1c8   :  { %v11557_v43 = vadd.f32 %v8572_v41, %v6552_v20  ;;  %v8575_v48 = vadd.f32 %v8574_v8, %v8573_v39  ;;  %v8531_v12 = vpop.f32.mrb[93].mxu0 }
 0x1c9   :  { %v8532_v59 = vadd.f32 %v8531_v12, %v8530_v58  ;;  %v8533_v2 = vpop.f32.mrb[94].mxu0 }
 0x1ca   :  { %v11559_v25 = vadd.f32 %v8575_v48, %v6555_v30  ;;  %v8534_v22 = vpop.f32.mrb[95].mxu0 }
 0x1cb   :  { %v6560_v45 = vadd.f32 %v8532_v59, %v11536_v27  ;;  %v8535_v56 = vadd.f32 %v8534_v22, %v8533_v2 }
 0x1cc   :  { %v8576_v16 = vpop.f32.mrb[92].mxu1 }
 0x1cd   :  { %v8577_v46 = vpop.f32.mrb[93].mxu1  ;;  %v6563_v51 = vadd.f32 %v8535_v56, %v11539_v26 }
 0x1ce   :  { %v8578_v10 = vadd.f32 %v8577_v46, %v8576_v16  ;;  %v8579_v38 = vpop.f32.mrb[94].mxu1 }
 0x1cf   :  { %v8580_v3 = vpop.f32.mrb[95].mxu1  ;;  %v8536_v33 = vpop.f32.mrb[96].mxu0 }
 0x1d0   :  { %v8581_v31 = vadd.f32 %v8580_v3, %v8579_v38  ;;  %v11562_v9 = vadd.f32 %v8578_v10, %v6560_v45  ;;  %v8537_v19 = vpop.f32.mrb[97].mxu0 }
 0x1d1   :  { %v8538_v50 = vadd.f32 %v8537_v19, %v8536_v33  ;;  %v8539_v36 = vpop.f32.mrb[98].mxu0 }
 0x1d2   :  { %v11565_v52 = vadd.f32 %v8581_v31, %v6563_v51  ;;  %v8540_v44 = vpop.f32.mrb[99].mxu0 }
 0x1d3   :  { %v6568_v27 = vadd.f32 %v8538_v50, %v11541_v49 }
 0x1d4   :  { %v8582_v37 = vpop.f32.mrb[96].mxu1 }
 0x1d5   :  { %v8583_v54 = vpop.f32.mrb[97].mxu1 }
 0x1d6   :  { %v8584_v61 = vadd.f32 %v8583_v54, %v8582_v37  ;;  %v8585_v6 = vpop.f32.mrb[98].mxu1 }
 0x1d7   :  { %v8586_v55 = vpop.f32.mrb[99].mxu1  ;;  %v8604_v24 = vpop.f32.mrb[100].mxu0 }
 0x1d8   :  { %v11568_v35 = vadd.f32 %v8584_v61, %v6568_v27  ;;  %v8605_v1 = vpop.f32.mrb[101].mxu0 }
 0x1d9   :  { %v8606_v26 = vadd.f32 %v8605_v1, %v8604_v24  ;;  %v8607_v32 = vpop.f32.mrb[102].mxu0  ;;  %v9509_v1 = vmov 0.0|0.0  }
 0x1da   :  { %v8608_v57 = vpop.f32.mrb[103].mxu0  ;;  %9018 = vmatprep.subr.bf16.mxu0 %v9509_v1  ;;  %9030 = vmatprep.subr.bf16.mxu1 %v9509_v1 }
 0x1db   :  { %v6680_v7 = vadd.f32 %v8606_v26, %v11544_v0  ;;  %v8609_v62 = vadd.f32 %v8608_v57, %v8607_v32 }
 0x1dc   :  { %v8650_v63 = vpop.f32.mrb[100].mxu1 }
 0x1dd   :  { %v8651_v18 = vpop.f32.mrb[101].mxu1  ;;  %v6683_v49 = vadd.f32 %v8609_v62, %v11547_v28 }
 0x1de   :  { %v8652_v23 = vadd.f32 %v8651_v18, %v8650_v63  ;;  %v8653_v21 = vpop.f32.mrb[102].mxu1 }
 0x1df   :  { %v8654_v60 = vpop.f32.mrb[103].mxu1  ;;  %v8610_v14 = vpop.f32.mrb[104].mxu0 }
 0x1e0   :  { %v8655_v42 = vadd.f32 %v8654_v60, %v8653_v21  ;;  %v11571_v15 = vadd.f32 %v8652_v23, %v6680_v7  ;;  %v8611_v47 = vpop.f32.mrb[105].mxu0 }
 0x1e1   :  { %v8612_v11 = vadd.f32 %v8611_v47, %v8610_v14  ;;  %v8613_v40 = vpop.f32.mrb[106].mxu0 }
 0x1e2   :  { %v11574_v4 = vadd.f32 %v8655_v42, %v6683_v49  ;;  %v8614_v53 = vpop.f32.mrb[107].mxu0 }
 0x1e3   :  { %v6688_v0 = vadd.f32 %v8612_v11, %v11551_v13  ;;  %v8615_v41 = vadd.f32 %v8614_v53, %v8613_v40 }
 0x1e4   :  { %v8656_v34 = vpop.f32.mrb[104].mxu1 }
 0x1e5   :  { %v8657_v5 = vpop.f32.mrb[105].mxu1  ;;  %v6691_v28 = vadd.f32 %v8615_v41, %v11553_v17 }
 0x1e6   :  { %v8658_v20 = vadd.f32 %v8657_v5, %v8656_v34  ;;  %v8659_v29 = vpop.f32.mrb[106].mxu1 }
 0x1e7   :  { %v8660_v39 = vpop.f32.mrb[107].mxu1  ;;  %v8616_v58 = vpop.f32.mrb[108].mxu0 }
 0x1e8   :  { %v8661_v30 = vadd.f32 %v8660_v39, %v8659_v29  ;;  %v11577_v8 = vadd.f32 %v8658_v20, %v6688_v0  ;;  %v8617_v12 = vpop.f32.mrb[109].mxu0 }
 0x1e9   :  { %v8618_v59 = vadd.f32 %v8617_v12, %v8616_v58  ;;  %v8619_v2 = vpop.f32.mrb[110].mxu0 }
 0x1ea   :  { %v11580_v48 = vadd.f32 %v8661_v30, %v6691_v28  ;;  %v8620_v22 = vpop.f32.mrb[111].mxu0 }
 0x1eb   :  { %v6696_v13 = vadd.f32 %v8618_v59, %v11557_v43  ;;  %v8621_v45 = vadd.f32 %v8620_v22, %v8619_v2 }
 0x1ec   :  { %v8662_v16 = vpop.f32.mrb[108].mxu1 }
 0x1ed   :  { %v8663_v46 = vpop.f32.mrb[109].mxu1  ;;  %v6699_v17 = vadd.f32 %v8621_v45, %v11559_v25 }
 0x1ee   :  { %v8664_v10 = vadd.f32 %v8663_v46, %v8662_v16  ;;  %v8665_v38 = vpop.f32.mrb[110].mxu1 }
 0x1ef   :  { %v8666_v56 = vpop.f32.mrb[111].mxu1  ;;  %v8622_v33 = vpop.f32.mrb[112].mxu0 }
 0x1f0   :  { %v8667_v3 = vadd.f32 %v8666_v56, %v8665_v38  ;;  %v11583_v31 = vadd.f32 %v8664_v10, %v6696_v13  ;;  %v8623_v19 = vpop.f32.mrb[113].mxu0 }
 0x1f1   :  { %v8624_v50 = vadd.f32 %v8623_v19, %v8622_v33  ;;  %v8625_v36 = vpop.f32.mrb[114].mxu0 }
 0x1f2   :  { %v11586_v51 = vadd.f32 %v8667_v3, %v6699_v17  ;;  %v8626_v44 = vpop.f32.mrb[115].mxu0 }
 0x1f3   :  { %v6704_v43 = vadd.f32 %v8624_v50, %v11562_v9  ;;  %v8627_v27 = vadd.f32 %v8626_v44, %v8625_v36 }
 0x1f4   :  { %v8668_v37 = vpop.f32.mrb[112].mxu1 }
 0x1f5   :  { %v8669_v54 = vpop.f32.mrb[113].mxu1  ;;  %v6707_v25 = vadd.f32 %v8627_v27, %v11565_v52 }
 0x1f6   :  { %v8670_v61 = vadd.f32 %v8669_v54, %v8668_v37  ;;  %v8671_v6 = vpop.f32.mrb[114].mxu1 }
 0x1f7   :  { %v8672_v55 = vpop.f32.mrb[115].mxu1  ;;  %v8628_v18 = vpop.f32.mrb[116].mxu0 }
 0x1f8   :  { %v8673_v24 = vadd.f32 %v8672_v55, %v8671_v6  ;;  %v11589_v63 = vadd.f32 %v8670_v61, %v6704_v43  ;;  %v8629_v23 = vpop.f32.mrb[117].mxu0 }
 0x1f9   :  { %v8630_v21 = vadd.f32 %v8629_v23, %v8628_v18  ;;  %v8631_v9 = vpop.f32.mrb[118].mxu0 }
 0x1fa   :  { %v11594_v26 = vadd.f32 %v8673_v24, %v6707_v25  ;;  %v8632_v60 = vpop.f32.mrb[119].mxu0  ;;  %v9511_v25 = vmov 0.0  }
 0x1fb   :  { %v6712_v42 = vadd.f32 %v8630_v21, %v11568_v35  ;;  %8994 = vmatprep.mubr.msk.f32.mxu0 %vm9510_vm4, %v9511_v25  ;;  %9015 = vmatprep.mubr.msk.f32.mxu1 %vm9510_vm4, %v9511_v25 }
 0x1fc   :  { %v8674_v32 = vpop.f32.mrb[116].mxu1 }
 0x1fd   :  { %v8675_v57 = vpop.f32.mrb[117].mxu1 }
 0x1fe   :  { %v8676_v7 = vadd.f32 %v8675_v57, %v8674_v32  ;;  %v8677_v62 = vpop.f32.mrb[118].mxu1 }
 0x1ff   :  { %v8678_v49 = vpop.f32.mrb[119].mxu1 }
 0x200   :  { %v11597_v52 = vadd.f32 %v8676_v7, %v6712_v42  ;;  %v8696_v14 = vpop.f32.mrb[120].mxu0 }
 0x201   :  { %v8697_v47 = vpop.f32.mrb[121].mxu0 }
 0x202   :  { %v8698_v11 = vadd.f32 %v8697_v47, %v8696_v14  ;;  %v8699_v40 = vpop.f32.mrb[122].mxu0 }
 0x203   :  { %v8700_v53 = vpop.f32.mrb[123].mxu0 }
 0x204   :  { %v6824_v0 = vadd.f32 %v8698_v11, %v11571_v15  ;;  %v8701_v41 = vadd.f32 %v8700_v53, %v8699_v40 }
 0x205   :  { %v8742_v34 = vpop.f32.mrb[120].mxu1 }
 0x206   :  { %v8743_v5 = vpop.f32.mrb[121].mxu1  ;;  %v6827_v35 = vadd.f32 %v8701_v41, %v11574_v4 }
 0x207   :  { %v8744_v20 = vadd.f32 %v8743_v5, %v8742_v34  ;;  %v8745_v29 = vpop.f32.mrb[122].mxu1 }
 0x208   :  { %v8746_v39 = vpop.f32.mrb[123].mxu1  ;;  %v8702_v16 = vpop.f32.mrb[124].mxu0 }
 0x209   :  { %v8747_v30 = vadd.f32 %v8746_v39, %v8745_v29  ;;  %v11600_v28 = vadd.f32 %v8744_v20, %v6824_v0  ;;  %v8703_v59 = vpop.f32.mrb[125].mxu0 }
 0x20a   :  { %v8704_v46 = vadd.f32 %v8703_v59, %v8702_v16  ;;  %v8705_v10 = vpop.f32.mrb[126].mxu0 }
 0x20b   :  { %v11603_v58 = vadd.f32 %v8747_v30, %v6827_v35  ;;  %v8706_v13 = vpop.f32.mrb[127].mxu0 }
 0x20c   :  { %v6832_v15 = vadd.f32 %v8704_v46, %v11577_v8  ;;  %v8707_v45 = vadd.f32 %v8706_v13, %v8705_v10 }
 0x20d   :  { %v8748_v12 = vpop.f32.mrb[124].mxu1 }
 0x20e   :  { %v8749_v2 = vpop.f32.mrb[125].mxu1  ;;  %v6835_v4 = vadd.f32 %v8707_v45, %v11580_v48 }
 0x20f   :  { %v8750_v38 = vadd.f32 %v8749_v2, %v8748_v12  ;;  %v8751_v22 = vpop.f32.mrb[126].mxu1 }
 0x210   :  { %v8752_v56 = vpop.f32.mrb[127].mxu1  ;;  %v8708_v37 = vpop.f32.mrb[128].mxu0 }
 0x211   :  { %v8753_v3 = vadd.f32 %v8752_v56, %v8751_v22  ;;  %v11606_v17 = vadd.f32 %v8750_v38, %v6832_v15  ;;  %v8709_v50 = vpop.f32.mrb[129].mxu0 }
 0x212   :  { %v8710_v54 = vadd.f32 %v8709_v50, %v8708_v37  ;;  %v8711_v61 = vpop.f32.mrb[130].mxu0 }
 0x213   :  { %v11609_v33 = vadd.f32 %v8753_v3, %v6835_v4  ;;  %v8712_v43 = vpop.f32.mrb[131].mxu0 }
 0x214   :  { %v6840_v8 = vadd.f32 %v8710_v54, %v11583_v31  ;;  %v8713_v27 = vadd.f32 %v8712_v43, %v8711_v61 }
 0x216   :  { %v6843_v18 = vadd.f32 %v8713_v27, %v11586_v51 }
 0x218   :  { %v8754_v19 = vpop.f32.mrb[128].mxu1 }
 0x219   :  { %v8755_v36 = vpop.f32.mrb[129].mxu1 }
 0x21a   :  { %v8756_v6 = vadd.f32 %v8755_v36, %v8754_v19  ;;  %v8757_v44 = vpop.f32.mrb[130].mxu1 }
 0x21b   :  { %v8758_v55 = vpop.f32.mrb[131].mxu1 }
 0x21c   :  { %v8759_v24 = vadd.f32 %v8758_v55, %v8757_v44  ;;  %v11614_v48 = vadd.f32 %v8756_v6, %v6840_v8  ;;  %v8714_v23 = vpop.f32.mrb[132].mxu0 }
 0x21d   :  { %v8715_v57 = vpop.f32.mrb[133].mxu0 }
 0x21e   :  { %v11617_v32 = vadd.f32 %v8759_v24, %v6843_v18  ;;  %v8716_v9 = vadd.f32 %v8715_v57, %v8714_v23  ;;  %v8717_v7 = vpop.f32.mrb[134].mxu0 }
 0x21f   :  { %v8718_v42 = vpop.f32.mrb[135].mxu0 }
 0x220   :  { %v8760_v21 = vpop.f32.mrb[132].mxu1  ;;  %v6848_v49 = vadd.f32 %v8716_v9, %v11589_v63  ;;  %v8719_v14 = vadd.f32 %v8718_v42, %v8717_v7 }
 0x221   :  { %v8761_v31 = vpop.f32.mrb[133].mxu1 }
 0x222   :  { %v8762_v62 = vadd.f32 %v8761_v31, %v8760_v21  ;;  %v8763_v60 = vpop.f32.mrb[134].mxu1  ;;  %v6851_v51 = vadd.f32 %v8719_v14, %v11594_v26 }
 0x223   :  { %v8764_v34 = vpop.f32.mrb[135].mxu1 }
 0x224   :  { %v8765_v47 = vadd.f32 %v8764_v34, %v8763_v60  ;;  %v11620_v11 = vadd.f32 %v8762_v62, %v6848_v49  ;;  %v8720_v40 = vpop.f32.mrb[136].mxu0 }
 0x225   :  { %v8721_v29 = vpop.f32.mrb[137].mxu0 }
 0x226   :  { %v11623_v5 = vadd.f32 %v8765_v47, %v6851_v51  ;;  %v8722_v53 = vadd.f32 %v8721_v29, %v8720_v40  ;;  %v8723_v41 = vpop.f32.mrb[138].mxu0 }
 0x227   :  { %v8724_v35 = vpop.f32.mrb[139].mxu0 }
 0x228   :  { %v8766_v20 = vpop.f32.mrb[136].mxu1  ;;  %v6856_v63 = vadd.f32 %v8722_v53, %v11597_v52 }
 0x229   :  { %v8767_v0 = vpop.f32.mrb[137].mxu1 }
 0x22a   :  { %v8768_v39 = vadd.f32 %v8767_v0, %v8766_v20  ;;  %v8769_v30 = vpop.f32.mrb[138].mxu1 }
 0x22b   :  { %v8770_v16 = vpop.f32.mrb[139].mxu1 }
 0x22c   :  { %v11626_v12 = vadd.f32 %v8768_v39, %v6856_v63 }
 0x232   :  { %v8788_v59 = vpop.f32.mrb[140].mxu0 }
 0x233   :  { %v8789_v46 = vpop.f32.mrb[141].mxu0 }
 0x234   :  { %v8790_v2 = vadd.f32 %v8789_v46, %v8788_v59  ;;  %v8791_v26 = vpop.f32.mrb[142].mxu0 }
 0x235   :  { %v8834_v10 = vpop.f32.mrb[140].mxu1  ;;  %v8792_v38 = vpop.f32.mrb[143].mxu0 }
 0x236   :  { %v6968_v22 = vadd.f32 %v8790_v2, %v11600_v28  ;;  %v8835_v13 = vpop.f32.mrb[141].mxu1  ;;  %v8793_v15 = vadd.f32 %v8792_v38, %v8791_v26 }
 0x237   :  { %v8836_v45 = vadd.f32 %v8835_v13, %v8834_v10  ;;  %v8837_v56 = vpop.f32.mrb[142].mxu1 }
 0x238   :  { %v6971_v3 = vadd.f32 %v8793_v15, %v11603_v58  ;;  %v8838_v4 = vpop.f32.mrb[143].mxu1 }
 0x239   :  { %v11630_v37 = vadd.f32 %v8836_v45, %v6968_v22  ;;  %v8839_v52 = vadd.f32 %v8838_v4, %v8837_v56 }
 0x23b   :  { %v11632_v19 = vadd.f32 %v8839_v52, %v6971_v3 }
 0x23d   :  { %v8794_v50 = vpop.f32.mrb[144].mxu0 }
 0x23e   :  { %v8795_v54 = vpop.f32.mrb[145].mxu0 }
 0x23f   :  { %v8796_v36 = vadd.f32 %v8795_v54, %v8794_v50  ;;  %v8797_v61 = vpop.f32.mrb[146].mxu0 }
 0x240   :  { %v8840_v6 = vpop.f32.mrb[144].mxu1  ;;  %v8798_v44 = vpop.f32.mrb[147].mxu0 }
 0x241   :  { %v6976_v28 = vadd.f32 %v8796_v36, %v11606_v17  ;;  %v8841_v43 = vpop.f32.mrb[145].mxu1  ;;  %v8799_v8 = vadd.f32 %v8798_v44, %v8797_v61 }
 0x242   :  { %v8842_v27 = vadd.f32 %v8841_v43, %v8840_v6  ;;  %v8843_v55 = vpop.f32.mrb[146].mxu1 }
 0x243   :  { %v6979_v58 = vadd.f32 %v8799_v8, %v11609_v33  ;;  %v8844_v24 = vpop.f32.mrb[147].mxu1 }
 0x244   :  { %v11636_v18 = vadd.f32 %v8842_v27, %v6976_v28  ;;  %v8845_v23 = vadd.f32 %v8844_v24, %v8843_v55 }
 0x245   :  { %v8800_v57 = vpop.f32.mrb[148].mxu0 }
 0x246   :  { %v11638_v21 = vadd.f32 %v8845_v23, %v6979_v58  ;;  %v8801_v9 = vpop.f32.mrb[149].mxu0 }
 0x247   :  { %v8802_v31 = vadd.f32 %v8801_v9, %v8800_v57  ;;  %v8803_v7 = vpop.f32.mrb[150].mxu0 }
 0x248   :  { %v8846_v62 = vpop.f32.mrb[148].mxu1  ;;  %v8804_v60 = vpop.f32.mrb[151].mxu0 }
 0x249   :  { %v6984_v17 = vadd.f32 %v8802_v31, %v11614_v48  ;;  %v8847_v42 = vpop.f32.mrb[149].mxu1  ;;  %v8805_v49 = vadd.f32 %v8804_v60, %v8803_v7 }
 0x24a   :  { %v8848_v14 = vadd.f32 %v8847_v42, %v8846_v62  ;;  %v8849_v34 = vpop.f32.mrb[150].mxu1 }
 0x24b   :  { %v6987_v33 = vadd.f32 %v8805_v49, %v11617_v32  ;;  %v8850_v47 = vpop.f32.mrb[151].mxu1 }
 0x24c   :  { %v11642_v51 = vadd.f32 %v8848_v14, %v6984_v17  ;;  %v8851_v40 = vadd.f32 %v8850_v47, %v8849_v34 }
 0x24e   :  { %v11644_v20 = vadd.f32 %v8851_v40, %v6987_v33 }
 0x250   :  { %v8806_v29 = vpop.f32.mrb[152].mxu0 }
 0x251   :  { %v8807_v53 = vpop.f32.mrb[153].mxu0 }
 0x252   :  { %v8808_v0 = vadd.f32 %v8807_v53, %v8806_v29  ;;  %v8809_v41 = vpop.f32.mrb[154].mxu0 }
 0x253   :  { %v8852_v39 = vpop.f32.mrb[152].mxu1  ;;  %v8810_v30 = vpop.f32.mrb[155].mxu0 }
 0x254   :  { %v6992_v48 = vadd.f32 %v8808_v0, %v11620_v11  ;;  %v8853_v35 = vpop.f32.mrb[153].mxu1  ;;  %v8811_v63 = vadd.f32 %v8810_v30, %v8809_v41 }
 0x255   :  { %v8854_v16 = vadd.f32 %v8853_v35, %v8852_v39  ;;  %v8855_v59 = vpop.f32.mrb[154].mxu1 }
 0x256   :  { %v6995_v32 = vadd.f32 %v8811_v63, %v11623_v5  ;;  %v8856_v46 = vpop.f32.mrb[155].mxu1 }
 0x257   :  { %v11648_v2 = vadd.f32 %v8854_v16, %v6992_v48  ;;  %v8857_v26 = vadd.f32 %v8856_v46, %v8855_v59 }
 0x258   :  { %v8812_v38 = vpop.f32.mrb[156].mxu0 }
 0x259   :  { %v11650_v10 = vadd.f32 %v8857_v26, %v6995_v32  ;;  %v8813_v22 = vpop.f32.mrb[157].mxu0 }
 0x25a   :  { %v8814_v15 = vadd.f32 %v8813_v22, %v8812_v38  ;;  %v8815_v45 = vpop.f32.mrb[158].mxu0 }
 0x25b   :  { %v8858_v13 = vpop.f32.mrb[156].mxu1  ;;  %v8816_v3 = vpop.f32.mrb[159].mxu0 }
 0x25c   :  { %v8859_v56 = vpop.f32.mrb[157].mxu1  ;;  %v7000_v11 = vadd.f32 %v8814_v15, %v11626_v12 }
 0x25d   :  { %v8860_v4 = vadd.f32 %v8859_v56, %v8858_v13  ;;  %v8861_v52 = vpop.f32.mrb[158].mxu1 }
 0x25e   :  { %v8862_v50 = vpop.f32.mrb[159].mxu1 }
 0x25f   :  { %v11653_v54 = vadd.f32 %v8860_v4, %v7000_v11 }
 0x260   :  { %v8880_v5 = vpop.f32.mrb[160].mxu0 }
 0x261   :  { %v8881_v36 = vpop.f32.mrb[161].mxu0 }
 0x262   :  { %v8882_v61 = vadd.f32 %v8881_v36, %v8880_v5  ;;  %v8883_v6 = vpop.f32.mrb[162].mxu0 }
 0x263   :  { %v8926_v44 = vpop.f32.mrb[160].mxu1  ;;  %v8884_v28 = vpop.f32.mrb[163].mxu0 }
 0x264   :  { %v7112_v43 = vadd.f32 %v8882_v61, %v11630_v37  ;;  %v8927_v8 = vpop.f32.mrb[161].mxu1  ;;  %v8885_v27 = vadd.f32 %v8884_v28, %v8883_v6 }
 0x265   :  { %v8928_v55 = vadd.f32 %v8927_v8, %v8926_v44  ;;  %v8929_v58 = vpop.f32.mrb[162].mxu1 }
 0x266   :  { %v7115_v24 = vadd.f32 %v8885_v27, %v11632_v19  ;;  %v8930_v12 = vpop.f32.mrb[163].mxu1 }
 0x267   :  { %v7184_v23 = vadd.f32 %v8928_v55, %v7112_v43  ;;  %v8931_v57 = vadd.f32 %v8930_v12, %v8929_v58 }
 0x268   :  { %v8886_v9 = vpop.f32.mrb[164].mxu0 }
 0x269   :  { %v7221_v31 = vmax.f32 %v7184_v23, 0.0  ;;  %v7187_v7 = vadd.f32 %v8931_v57, %v7115_v24  ;;  %v8887_v62 = vpop.f32.mrb[165].mxu0 }
 0x26a   :  { %v8888_v60 = vadd.f32 %v8887_v62, %v8886_v9  ;;  %v8889_v17 = vpop.f32.mrb[166].mxu0 }
 0x26b   :  { %7390 = vst [vmem:[%s11714_s4] sm:$0xff] %v7221_v31  ;;  %v7222_v37 = vmax.f32 %v7187_v7, 0.0  ;;  %v8932_v42 = vpop.f32.mrb[164].mxu1  ;;  %v8890_v49 = vpop.f32.mrb[167].mxu0  ;;  %v7307_v33 = vmul.f32 %v7221_v31, %v7221_v31 }
 0x26c   :  { %v7120_v14 = vadd.f32 %v8888_v60, %v11636_v18  ;;  %v8933_v34 = vpop.f32.mrb[165].mxu1  ;;  %v8891_v19 = vadd.f32 %v8890_v49, %v8889_v17 }
 0x26d   :  { %v7308_v47 = vmul.f32 %v7222_v37, %v7222_v37  ;;  %7391 = vst [vmem:[%s11714_s4 + $0x8] sm:$0xff] %v7222_v37  ;;  %v8934_v40 = vadd.f32 %v8933_v34, %v8932_v42  ;;  %v8935_v29 = vpop.f32.mrb[166].mxu1  ;;  %v9019_v53 = vpack.c.bf16 %v7222_v37, %v7221_v31 }
 0x26e   :  { %v7123_v0 = vadd.f32 %v8891_v19, %v11638_v21  ;;  %v8936_v41 = vpop.f32.mrb[167].mxu1 }
 0x26f   :  { %v7192_v39 = vadd.f32 %v8934_v40, %v7120_v14  ;;  %v8937_v30 = vadd.f32 %v8936_v41, %v8935_v29  ;;  %9020 = vmatpush3.bf16.msra.mxu0 %v9019_v53  ;;  %v9031_v48 = vpack.c.bf16 %v7308_v47, %v7307_v33 }
 0x270   :  { %v8892_v35 = vpop.f32.mrb[168].mxu0  ;;  %9021 = vmatprep.subr.bf16.mxu0 %v9509_v1 }
 0x271   :  { %v7223_v18 = vmax.f32 %v7192_v39, 0.0  ;;  %v7195_v63 = vadd.f32 %v8937_v30, %v7123_v0  ;;  %9032 = vmatpush3.bf16.msra.mxu1 %v9031_v48  ;;  %v8893_v16 = vpop.f32.mrb[169].mxu0 }
 0x272   :  { %v8894_v59 = vadd.f32 %v8893_v16, %v8892_v35  ;;  %v8895_v32 = vpop.f32.mrb[170].mxu0  ;;  %9033 = vmatprep.subr.bf16.mxu1 %v9509_v1  ;;  %v7306_v16 = vld [vmem:[%s11715_s3] sm:$0x1] }
 0x273   :  { %7392 = vst [vmem:[%s11714_s4 + $0x10] sm:$0xff] %v7223_v18  ;;  %v7224_v21 = vmax.f32 %v7195_v63, 0.0  ;;  %v8938_v46 = vpop.f32.mrb[168].mxu1  ;;  %v8896_v26 = vpop.f32.mrb[171].mxu0  ;;  %v7309_v15 = vmul.f32 %v7223_v18, %v7223_v18 }
 0x274   :  { %v7128_v38 = vadd.f32 %v8894_v59, %v11642_v51  ;;  %v8939_v22 = vpop.f32.mrb[169].mxu1  ;;  %v8897_v13 = vadd.f32 %v8896_v26, %v8895_v32 }
 0x275   :  { %v7310_v45 = vmul.f32 %v7224_v21, %v7224_v21  ;;  %7393 = vst [vmem:[%s11714_s4 + $0x18] sm:$0xff] %v7224_v21  ;;  %v8940_v56 = vadd.f32 %v8939_v22, %v8938_v46  ;;  %v8941_v3 = vpop.f32.mrb[170].mxu1  ;;  %v9022_v11 = vpack.c.bf16 %v7224_v21, %v7223_v18 }
 0x276   :  { %v7131_v4 = vadd.f32 %v8897_v13, %v11644_v20  ;;  %v8942_v52 = vpop.f32.mrb[171].mxu1 }
 0x277   :  { %v7200_v50 = vadd.f32 %v8940_v56, %v7128_v38  ;;  %v8943_v5 = vadd.f32 %v8942_v52, %v8941_v3  ;;  %9023 = vmatpush3.bf16.msra.mxu0 %v9022_v11  ;;  %v9034_v36 = vpack.c.bf16 %v7310_v45, %v7309_v15 }
 0x278   :  { %v8898_v61 = vpop.f32.mrb[172].mxu0  ;;  %9024 = vmatprep.subr.bf16.mxu0 %v9509_v1 }
 0x279   :  { %v7225_v51 = vmax.f32 %v7200_v50, 0.0  ;;  %v7203_v6 = vadd.f32 %v8943_v5, %v7131_v4  ;;  %9035 = vmatpush3.bf16.msra.mxu1 %v9034_v36  ;;  %v8899_v44 = vpop.f32.mrb[173].mxu0 }
 0x27a   :  { %v8900_v28 = vadd.f32 %v8899_v44, %v8898_v61  ;;  %v8901_v43 = vpop.f32.mrb[174].mxu0  ;;  %9036 = vmatprep.subr.bf16.mxu1 %v9509_v1 }
 0x27b   :  { %7394 = vst [vmem:[%s11714_s4 + $0x20] sm:$0xff] %v7225_v51  ;;  %v7226_v20 = vmax.f32 %v7203_v6, 0.0  ;;  %v8944_v8 = vpop.f32.mrb[172].mxu1  ;;  %v8902_v27 = vpop.f32.mrb[175].mxu0  ;;  %v7311_v12 = vmul.f32 %v7225_v51, %v7225_v51 }
 0x27c   :  { %v7136_v55 = vadd.f32 %v8900_v28, %v11648_v2  ;;  %v8945_v58 = vpop.f32.mrb[173].mxu1  ;;  %v8903_v24 = vadd.f32 %v8902_v27, %v8901_v43 }
 0x27d   :  { %v7312_v23 = vmul.f32 %v7226_v20, %v7226_v20  ;;  %7395 = vst [vmem:[%s11714_s4 + $0x28] sm:$0xff] %v7226_v20  ;;  %v8946_v57 = vadd.f32 %v8945_v58, %v8944_v8  ;;  %v8947_v9 = vpop.f32.mrb[174].mxu1  ;;  %v9025_v31 = vpack.c.bf16 %v7226_v20, %v7225_v51 }
 0x27e   :  { %v7139_v7 = vadd.f32 %v8903_v24, %v11650_v10  ;;  %v8948_v62 = vpop.f32.mrb[175].mxu1 }
 0x27f   :  { %v7208_v60 = vadd.f32 %v8946_v57, %v7136_v55  ;;  %v8949_v17 = vadd.f32 %v8948_v62, %v8947_v9  ;;  %9026 = vmatpush3.bf16.msra.mxu0 %v9025_v31  ;;  %v9037_v37 = vpack.c.bf16 %v7312_v23, %v7311_v12 }
 0x280   :  { %v8904_v42 = vpop.f32.mrb[176].mxu0  ;;  %9027 = vmatprep.subr.bf16.mxu0 %v9509_v1 }
 0x281   :  { %v7227_v2 = vmax.f32 %v7208_v60, 0.0  ;;  %v7211_v49 = vadd.f32 %v8949_v17, %v7139_v7  ;;  %9038 = vmatpush3.bf16.msra.mxu1 %v9037_v37  ;;  %v8905_v14 = vpop.f32.mrb[177].mxu0 }
 0x282   :  { %v8906_v34 = vadd.f32 %v8905_v14, %v8904_v42  ;;  %v8907_v19 = vpop.f32.mrb[178].mxu0  ;;  %9039 = vmatprep.subr.bf16.mxu1 %v9509_v1 }
 0x283   :  { %7396 = vst [vmem:[%s11714_s4 + $0x30] sm:$0xff] %v7227_v2  ;;  %v7228_v10 = vmax.f32 %v7211_v49, 0.0  ;;  %v8950_v33 = vpop.f32.mrb[176].mxu1  ;;  %v8908_v47 = vpop.f32.mrb[179].mxu0  ;;  %v7313_v53 = vmul.f32 %v7227_v2, %v7227_v2 }
 0x284   :  { %v7144_v40 = vadd.f32 %v8906_v34, %v11653_v54  ;;  %v8951_v29 = vpop.f32.mrb[177].mxu1  ;;  %v7230_v54 = vld [vmem:[%s11715_s3] sm:$0x1] }
 0x285   :  { %v7314_v0 = vmul.f32 %v7228_v10, %v7228_v10  ;;  %7397 = vst [vmem:[%s11714_s4 + $0x38] sm:$0xff] %v7228_v10  ;;  %v8952_v41 = vadd.f32 %v8951_v29, %v8950_v33  ;;  %v8953_v39 = vpop.f32.mrb[178].mxu1  ;;  %v9028_v30 = vpack.c.bf16 %v7228_v10, %v7227_v2 }
 0x286   :  { %v8954_v1 = vpop.f32.mrb[179].mxu1 }
 0x287   :  { %v7216_v48 = vadd.f32 %v8952_v41, %v7144_v40  ;;  %9029 = vmatpush3.bf16.msra.mxu0 %v9028_v30  ;;  %v9040_v35 = vpack.c.bf16 %v7314_v0, %v7313_v53 }
 0x288   :  { %8992 = vmatprep.subr.mxu0 %v9511_v25 }
 0x289   :  { %v7229_v18 = vmax.f32 %v7216_v48, 0.0  ;;  %9041 = vmatpush3.bf16.msra.mxu1 %v9040_v35 }
 0x28a   :  { %9013 = vmatprep.subr.mxu1 %v9511_v25 }
 0x28b   :  { %7398 = vst [vmem:[%s11714_s4 + $0x40] sm:$0xff] %v7229_v18  ;;  %8993 = vmatpush3.msra.mxu0 %v7229_v18  ;;  %v7315_v63 = vmul.f32 %v7229_v18, %v7229_v18 }
 0x28c   :  { %8995 = vmatmul.mubr.msk.f32.vlgmr.msra.gmra.mrb[180].mxu0 %vm7231_vm5, %v7230_v54 }
 0x28d   :  { %9014 = vmatpush3.msra.mxu1 %v7315_v63 }
 0x28e   :  { %9016 = vmatmul.mubr.msk.f32.vlgmr.msra.gmra.mrb[180].mxu1 %vm7231_vm5, %v7306_v16 }
 0x35f   :  { %v7301_v59 = vpop.f32.mrb[180].mxu0 }
 0x360   :  { %7305 = vst [vmem:[%s11716_s5] sm:$0x1] %v7301_v59  ;;  %v8996_v32 = vpop.f32.mrb[181].mxu0 }
 0x361   :  { %v7385_v25 = vpop.f32.mrb[180].mxu1 }
 0x362   :  { %7389 = vst [vmem:[%s11716_s5 + $0x1] sm:$0x1] %v7385_v25  ;;  %v9017_v21 = vpop.f32.mrb[181].mxu1 }

</bundles_post_ra>
